<compile_context>
chip_gen: v7x
topology: tpu7x:2x2x1
jax: 0.10.0
libtpu: 0.0.40
codegen_flags: <defaults>
</compile_context>

<pallas_src>
import functools
import math

import jax
import jax.numpy as jnp
from jax.experimental import pallas as pl
from jax.experimental.pallas import tpu as pltpu

_LN_EPS = 1e-5  # torch.nn.LayerNorm default


# ----------------------------- in-kernel math -------------------------------

def _erf(x):
    # Abramowitz & Stegun 7.1.26 (|err| < 1.5e-7), exact divide.
    # TODO(synk): switch to jax.lax.erf once its Mosaic lowering is confirmed.
    a1, a2, a3 = 0.254829592, -0.284496736, 1.421413741
    a4, a5, p = -1.453152027, 1.061405429, 0.3275911
    s = jnp.where(x < 0.0, -1.0, 1.0)
    ax = jnp.abs(x)
    t = 1.0 / (1.0 + p * ax)
    poly = ((((a5 * t + a4) * t + a3) * t + a2) * t + a1) * t
    return s * (1.0 - poly * jnp.exp(-ax * ax))


def _gelu(x):
    # exact (erf-based) GELU, matching torch.nn.GELU(approximate='none')
    return 0.5 * x * (1.0 + _erf(x * 0.7071067811865476))


def _layernorm(x, g, b):
    mean = jnp.mean(x, axis=-1, keepdims=True)
    var = jnp.mean(jnp.square(x - mean), axis=-1, keepdims=True)  # biased, like torch
    return (x - mean) * jax.lax.rsqrt(var + _LN_EPS) * g + b


def _mm(a, w):
    # bf16 MXU matmul with f32 accumulation
    return jnp.dot(a.astype(jnp.bfloat16), w.astype(jnp.bfloat16),
                   preferred_element_type=jnp.float32)


# ------------------------------ Pallas kernel --------------------------------

def _qformer_kernel(x_ref, tp_w1_ref, tp_b1_ref, tp_w2_ref, tp_b2_ref,
                    lhs_ref, pi_w_ref, pi_b_ref, tn_ref,
                    ln_ref, qkv_w_ref, out_w_ref, ff_w1_ref, ff_w2_ref,
                    po_w_ref, po_b_ref, no_ref,
                    out_ref,
                    tok_scr, qkvin_scr, attn_scr,
                    *, dim_head, use_residual):
    depth, _, three_inner = qkv_w_ref.shape
    inner = three_inner // 3
    heads = inner // dim_head
    n1 = lhs_ref.shape[1]
    nt, cad = tok_scr.shape

    # -------------------- token_proj: Linear -> GELU -> Linear ---------------
    h = _gelu(_mm(x_ref[0], tp_w1_ref[...]) + tp_b1_ref[...])            # (1, hid)
    flat = _mm(h, tp_w2_ref[...]) + tp_b2_ref[...]                       # (1, nt*cad)
    for t in range(nt):                                                  # lane-aligned
        tok_scr[t:t + 1, :] = flat[:, t * cad:(t + 1) * cad]

    # -------------------- token_norm -> residual base & latents --------------
    tok = _layernorm(tok_scr[...], tn_ref[0:1, :], tn_ref[1:2, :])       # (nt, cad) f32
    latents = tok

    # -------------------- proj_in on the image features ----------------------
    img = _mm(lhs_ref[0], pi_w_ref[...]) + pi_b_ref[...]                 # (n1, cad) f32

    softmax_scale = 1.0 / math.sqrt(dim_head)

    # -------------------- depth x [PerceiverAttention + FeedForward] ---------
    for d in range(depth):                                               # static loop
        ln_par = ln_ref[d]                                               # (8, cad) f32
        xn = _layernorm(img, ln_par[0:1, :], ln_par[1:2, :])             # norm1(x)
        latn = _layernorm(latents, ln_par[2:3, :], ln_par[3:4, :])       # norm2(latents)

        # Merged q|k|v projection over cat(x, latents) rows (image rows first).
        # The row order already matches the reference kv_input concatenation,
        # so no kv scratch / concat is needed.
        qkvin_scr[0:n1, :] = xn.astype(jnp.bfloat16)
        qkvin_scr[n1:, :] = latn.astype(jnp.bfloat16)
        qkv = jnp.dot(qkvin_scr[...], qkv_w_ref[d],
                      preferred_element_type=jnp.float32)                # (n1+nt, 3*inner)

        head_outs = []
        for hh in range(heads):
            lo = hh * dim_head
            qh = qkv[n1:, lo:lo + dim_head]                              # (nt, dh)
            kh = qkv[:, inner + lo:inner + lo + dim_head]                # (S, dh)
            vh = qkv[:, 2 * inner + lo:2 * inner + lo + dim_head]        # (S, dh)
            s = jax.lax.dot_general(qh.astype(jnp.bfloat16),
                                    kh.astype(jnp.bfloat16),
                                    (((1,), (1,)), ((), ())),
                                    preferred_element_type=jnp.float32)  # (nt, S)
            s = s * softmax_scale
            s = s - jnp.max(s, axis=-1, keepdims=True)
            p = jnp.exp(s)
            p = p / jnp.sum(p, axis=-1, keepdims=True)                   # exact divide
            head_outs.append(_mm(p, vh))                                 # (nt, dh) f32

        if heads == 1:
            attn_bf16 = head_outs[0].astype(jnp.bfloat16)
        else:
            # write per-head outputs into a pre-allocated slab (no concat)
            for hh, ho in enumerate(head_outs):
                attn_scr[:, hh * dim_head:(hh + 1) * dim_head] = ho.astype(jnp.bfloat16)
            attn_bf16 = attn_scr[...]

        lat = jnp.dot(attn_bf16, out_w_ref[d],
                      preferred_element_type=jnp.float32) + latents      # to_out + residual

        ffn = _layernorm(lat, ln_par[4:5, :], ln_par[5:6, :])
        ffh = _gelu(_mm(ffn, ff_w1_ref[d]))
        latents = _mm(ffh, ff_w2_ref[d]) + lat                           # FF + residual

    # -------------------- proj_out / norm_out / outer residual ---------------
    o = _mm(latents, po_w_ref[...]) + po_b_ref[...]
    o = _layernorm(o, no_ref[0:1, :], no_ref[1:2, :])
    if use_residual:
        o = tok + o                                                      # x + 1.0 * out
    out_ref[0] = o


# ------------------------- parameters (synthetic) ----------------------------

def init_params(key, *, id_dim, cad, num_tokens, emb_dim, depth, dim_head,
                ff_mult, ratio):
    heads = cad // dim_head
    inner = heads * dim_head
    ffd = cad * ff_mult
    hid = id_dim * ratio
    ks = iter(jax.random.split(key, 32))

    def w(shape, fan_in):
        return jax.random.normal(next(ks), shape, jnp.float32) / math.sqrt(fan_in)

    ones = jnp.ones((cad,), jnp.float32)
    zeros = jnp.zeros((cad,), jnp.float32)

    p = {
        # token_proj: Linear -> GELU -> Linear (both with bias)
        "tp_w1": w((id_dim, hid), id_dim).astype(jnp.bfloat16),
        "tp_b1": w((1, hid), id_dim),
        "tp_w2": w((hid, cad * num_tokens), hid).astype(jnp.bfloat16),
        "tp_b2": w((1, cad * num_tokens), hid),
        # token_norm (gamma row 0, beta row 1)
        "tn_gb": jnp.stack([ones, zeros]),
        # resampler proj_in / proj_out / norm_out
        "pi_w": w((emb_dim, cad), emb_dim).astype(jnp.bfloat16),
        "pi_b": w((1, cad), emb_dim),
        "po_w": w((cad, cad), cad).astype(jnp.bfloat16),
        "po_b": w((1, cad), cad),
        "no_gb": jnp.stack([ones, zeros]),
    }

    qkv, outw, ffw1, ffw2, lnp = [], [], [], [], []
    for _ in range(depth):
        qw = w((cad, inner), cad)
        kvw = w((cad, 2 * inner), cad)
        qkv.append(jnp.concatenate([qw, kvw], axis=1))      # fused q|k|v weight
        outw.append(w((inner, cad), inner))
        ffw1.append(w((cad, ffd), cad))
        ffw2.append(w((ffd, cad), ffd))
        # rows: [n1_g, n1_b, n2_g, n2_b, ff_g, ff_b, pad, pad]
        lnp.append(jnp.stack([ones, zeros, ones, zeros, ones, zeros, zeros, zeros]))

    p["qkv_w"] = jnp.stack(qkv).astype(jnp.bfloat16)        # (depth, cad, 3*inner)
    p["out_w"] = jnp.stack(outw).astype(jnp.bfloat16)       # (depth, inner, cad)
    p["ff_w1"] = jnp.stack(ffw1).astype(jnp.bfloat16)       # (depth, cad, ffd)
    p["ff_w2"] = jnp.stack(ffw2).astype(jnp.bfloat16)       # (depth, ffd, cad)
    p["ln"] = jnp.stack(lnp)                                # (depth, 8, cad) f32
    return p


# --------------------------------- forward -----------------------------------

def qformer_perceiver_forward(params, x, last_hidden_state, *, num_tokens,
                              dim_head, use_residual=True):
    B, id_dim = x.shape
    _, n1, emb = last_hidden_state.shape
    depth, cad, three_inner = params["qkv_w"].shape
    inner = three_inner // 3
    hid = params["tp_w1"].shape[1]
    ffd = params["ff_w1"].shape[2]

    # bf16 inputs: only ever used as bf16 MXU operands inside the kernel.
    x3 = x.astype(jnp.bfloat16).reshape(B, 1, id_dim)
    lhs = last_hidden_state.astype(jnp.bfloat16)

    kernel = functools.partial(_qformer_kernel, dim_head=dim_head,
                               use_residual=use_residual)
    const = lambda *_: (0, 0)
    const3 = lambda *_: (0, 0, 0)

    out = pl.pallas_call(
        kernel,
        out_shape=jax.ShapeDtypeStruct((B, num_tokens, cad), jnp.float32),
        grid_spec=pltpu.PrefetchScalarGridSpec(
            num_scalar_prefetch=0,
            grid=(B,),
            in_specs=[
                pl.BlockSpec((1, 1, id_dim), lambda b: (b, 0, 0)),          # x
                pl.BlockSpec((id_dim, hid), const),                         # tp w1
                pl.BlockSpec((1, hid), const),                              # tp b1
                pl.BlockSpec((hid, num_tokens * cad), const),               # tp w2
                pl.BlockSpec((1, num_tokens * cad), const),                 # tp b2
                pl.BlockSpec((1, n1, emb), lambda b: (b, 0, 0)),            # image feats
                pl.BlockSpec((emb, cad), const),                            # proj_in w
                pl.BlockSpec((1, cad), const),                              # proj_in b
                pl.BlockSpec((2, cad), const),                              # token_norm g/b
                pl.BlockSpec((depth, 8, cad), const3),                      # per-layer LN
                pl.BlockSpec((depth, cad, 3 * inner), const3),              # fused q|kv w
                pl.BlockSpec((depth, inner, cad), const3),                  # to_out w
                pl.BlockSpec((depth, cad, ffd), const3),                    # ff w1
                pl.BlockSpec((depth, ffd, cad), const3),                    # ff w2
                pl.BlockSpec((cad, cad), const),                            # proj_out w
                pl.BlockSpec((1, cad), const),                              # proj_out b
                pl.BlockSpec((2, cad), const),                              # norm_out g/b
            ],
            out_specs=pl.BlockSpec((1, num_tokens, cad), lambda b: (b, 0, 0)),
            scratch_shapes=[
                pltpu.VMEM((num_tokens, cad), jnp.float32),            # token_norm(x) tokens
                pltpu.VMEM((n1 + num_tokens, cad), jnp.bfloat16),      # merged QKV input rows
                pltpu.VMEM((num_tokens, inner), jnp.bfloat16),         # per-head attn slab
            ],
        ),
        compiler_params=pltpu.CompilerParams(
            dimension_semantics=("parallel",),
            vmem_limit_bytes=32 * 1024 * 1024,
        ),
    )(x3, params["tp_w1"], params["tp_b1"], params["tp_w2"], params["tp_b2"],
      lhs, params["pi_w"], params["pi_b"], params["tn_gb"],
      params["ln"], params["qkv_w"], params["out_w"],
      params["ff_w1"], params["ff_w2"],
      params["po_w"], params["po_b"], params["no_gb"])
    return out


# ----------------------------------- main -------------------------------------

if __name__ == "__main__":
    # Small shapes consistent with the module (heads = cross_attention_dim // 128).
    B = 2
    ID_DIM = 64            # id_embeddings_dim
    CAD = 128              # cross_attention_dim  (=> heads = 1, dim_head = 128)
    NUM_TOKENS = 8
    EMB_DIM = 64           # embedding_dim of last_hidden_state
    N1 = 16                # sequence length of last_hidden_state
    DEPTH = 4
    DIM_HEAD = 128
    FF_MULT = 4
    RATIO = 4

    key = jax.random.PRNGKey(0)
    kp, kx, kh = jax.random.split(key, 3)
    params = init_params(kp, id_dim=ID_DIM, cad=CAD, num_tokens=NUM_TOKENS,
                         emb_dim=EMB_DIM, depth=DEPTH, dim_head=DIM_HEAD,
                         ff_mult=FF_MULT, ratio=RATIO)
    x = jax.random.normal(kx, (B, ID_DIM), jnp.float32)
    last_hidden_state = jax.random.normal(kh, (B, N1, EMB_DIM), jnp.float32)

    fwd = jax.jit(functools.partial(
        qformer_perceiver_forward,
        num_tokens=NUM_TOKENS, dim_head=DIM_HEAD, use_residual=True))

    out = fwd(params, x, last_hidden_state)
    jax.block_until_ready(out)
    assert out.shape == (B, NUM_TOKENS, CAD)
    assert bool(jnp.all(jnp.isfinite(out)))
    print("KERNEL_OK")
</pallas_src>

<mosaic_0001>
module attributes {stable_mosaic.version = 11 : i64} {
  func.func @_qformer_kernel(%arg0: i32, %arg1: memref<1x1x64xbf16, #tpu.memory_space<vmem>>, %arg2: memref<64x256xbf16, #tpu.memory_space<vmem>>, %arg3: memref<1x256xf32, #tpu.memory_space<vmem>>, %arg4: memref<256x1024xbf16, #tpu.memory_space<vmem>>, %arg5: memref<1x1024xf32, #tpu.memory_space<vmem>>, %arg6: memref<1x16x64xbf16, #tpu.memory_space<vmem>>, %arg7: memref<64x128xbf16, #tpu.memory_space<vmem>>, %arg8: memref<1x128xf32, #tpu.memory_space<vmem>>, %arg9: memref<2x128xf32, #tpu.memory_space<vmem>>, %arg10: memref<4x8x128xf32, #tpu.memory_space<vmem>>, %arg11: memref<4x128x384xbf16, #tpu.memory_space<vmem>>, %arg12: memref<4x128x128xbf16, #tpu.memory_space<vmem>>, %arg13: memref<4x128x512xbf16, #tpu.memory_space<vmem>>, %arg14: memref<4x512x128xbf16, #tpu.memory_space<vmem>>, %arg15: memref<128x128xbf16, #tpu.memory_space<vmem>>, %arg16: memref<1x128xf32, #tpu.memory_space<vmem>>, %arg17: memref<2x128xf32, #tpu.memory_space<vmem>>, %arg18: memref<1x8x128xf32, #tpu.memory_space<vmem>>, %arg19: memref<8x128xf32, #tpu.memory_space<vmem>>, %arg20: memref<24x128xbf16, #tpu.memory_space<vmem>>, %arg21: memref<8x128xbf16, #tpu.memory_space<vmem>>) attributes {dimension_semantics = [#tpu.dimension_semantics<parallel>], iteration_bounds = array<i64: 2>, scalar_prefetch = 0 : i64, scratch_operands = 3 : i64, tpu.core_type = #tpu.core_type<tc>, window_params = [{transform_indices = @transform_0, window_bounds = array<i64: 1, 1, 64>}, {pipeline_mode = #tpu.pipeline_mode<synchronous>, transform_indices = @transform_1, window_bounds = array<i64: 64, 256>}, {pipeline_mode = #tpu.pipeline_mode<synchronous>, transform_indices = @transform_2, window_bounds = array<i64: 1, 256>}, {pipeline_mode = #tpu.pipeline_mode<synchronous>, transform_indices = @transform_3, window_bounds = array<i64: 256, 1024>}, {pipeline_mode = #tpu.pipeline_mode<synchronous>, transform_indices = @transform_4, window_bounds = array<i64: 1, 1024>}, {transform_indices = @transform_5, window_bounds = array<i64: 1, 16, 64>}, {pipeline_mode = #tpu.pipeline_mode<synchronous>, transform_indices = @transform_6, window_bounds = array<i64: 64, 128>}, {pipeline_mode = #tpu.pipeline_mode<synchronous>, transform_indices = @transform_7, window_bounds = array<i64: 1, 128>}, {pipeline_mode = #tpu.pipeline_mode<synchronous>, transform_indices = @transform_8, window_bounds = array<i64: 2, 128>}, {pipeline_mode = #tpu.pipeline_mode<synchronous>, transform_indices = @transform_9, window_bounds = array<i64: 4, 8, 128>}, {pipeline_mode = #tpu.pipeline_mode<synchronous>, transform_indices = @transform_10, window_bounds = array<i64: 4, 128, 384>}, {pipeline_mode = #tpu.pipeline_mode<synchronous>, transform_indices = @transform_11, window_bounds = array<i64: 4, 128, 128>}, {pipeline_mode = #tpu.pipeline_mode<synchronous>, transform_indices = @transform_12, window_bounds = array<i64: 4, 128, 512>}, {pipeline_mode = #tpu.pipeline_mode<synchronous>, transform_indices = @transform_13, window_bounds = array<i64: 4, 512, 128>}, {pipeline_mode = #tpu.pipeline_mode<synchronous>, transform_indices = @transform_14, window_bounds = array<i64: 128, 128>}, {pipeline_mode = #tpu.pipeline_mode<synchronous>, transform_indices = @transform_15, window_bounds = array<i64: 1, 128>}, {pipeline_mode = #tpu.pipeline_mode<synchronous>, transform_indices = @transform_16, window_bounds = array<i64: 2, 128>}, {transform_indices = @transform_17, window_bounds = array<i64: 1, 8, 128>}]} {
    %c0 = arith.constant 0 : index
    %c0_0 = arith.constant 0 : index
    %c0_1 = arith.constant 0 : index
    %0 = vector.load %arg1[%c0, %c0_0, %c0_1] : memref<1x1x64xbf16, #tpu.memory_space<vmem>>, vector<1x1x64xbf16>
    %1 = vector.shape_cast %0 : vector<1x1x64xbf16> to vector<1x64xbf16>
    %c0_2 = arith.constant 0 : index
    %c0_3 = arith.constant 0 : index
    %2 = vector.load %arg2[%c0_2, %c0_3] : memref<64x256xbf16, #tpu.memory_space<vmem>>, vector<64x256xbf16>
    %cst = arith.constant dense<0.000000e+00> : vector<1x256xf32>
    %3 = tpu.matmul %1, %2, %cst {dimension_numbers = #tpu.dot_dimension_numbers<[1], [0], [0], [1], [0, 0, 1, 1], [], []>} : vector<1x64xbf16>, vector<64x256xbf16>, vector<1x256xf32> -> vector<1x256xf32>
    %c0_4 = arith.constant 0 : index
    %c0_5 = arith.constant 0 : index
    %4 = vector.load %arg3[%c0_4, %c0_5] : memref<1x256xf32, #tpu.memory_space<vmem>>, vector<1x256xf32>
    %5 = arith.addf %3, %4 : vector<1x256xf32>
    %cst_6 = arith.constant 5.000000e-01 : f32
    %6 = vector.broadcast %cst_6 : f32 to vector<1x256xf32>
    %7 = arith.mulf %6, %5 : vector<1x256xf32>
    %cst_7 = arith.constant 0.707106769 : f32
    %8 = vector.broadcast %cst_7 : f32 to vector<1x256xf32>
    %9 = arith.mulf %5, %8 : vector<1x256xf32>
    %cst_8 = arith.constant 0.000000e+00 : f32
    %10 = vector.broadcast %cst_8 : f32 to vector<1x256xf32>
    %11 = arith.cmpf olt, %9, %10 : vector<1x256xf32>
    %cst_9 = arith.constant -1.000000e+00 : f32
    %cst_10 = arith.constant 1.000000e+00 : f32
    %12 = vector.broadcast %cst_9 : f32 to vector<1x256xf32>
    %13 = vector.broadcast %cst_10 : f32 to vector<1x256xf32>
    %14 = arith.select %11, %12, %13 : vector<1x256xi1>, vector<1x256xf32>
    %15 = math.absf %9 : vector<1x256xf32>
    %cst_11 = arith.constant 0.327591091 : f32
    %16 = vector.broadcast %cst_11 : f32 to vector<1x256xf32>
    %17 = arith.mulf %16, %15 : vector<1x256xf32>
    %cst_12 = arith.constant 1.000000e+00 : f32
    %18 = vector.broadcast %cst_12 : f32 to vector<1x256xf32>
    %19 = arith.addf %18, %17 : vector<1x256xf32>
    %cst_13 = arith.constant 1.000000e+00 : f32
    %20 = vector.broadcast %cst_13 : f32 to vector<1x256xf32>
    %21 = arith.divf %20, %19 : vector<1x256xf32>
    %cst_14 = arith.constant 1.06140542 : f32
    %22 = vector.broadcast %cst_14 : f32 to vector<1x256xf32>
    %23 = arith.mulf %22, %21 : vector<1x256xf32>
    %cst_15 = arith.constant -1.45315206 : f32
    %24 = vector.broadcast %cst_15 : f32 to vector<1x256xf32>
    %25 = arith.addf %23, %24 : vector<1x256xf32>
    %26 = arith.mulf %25, %21 : vector<1x256xf32>
    %cst_16 = arith.constant 1.42141378 : f32
    %27 = vector.broadcast %cst_16 : f32 to vector<1x256xf32>
    %28 = arith.addf %26, %27 : vector<1x256xf32>
    %29 = arith.mulf %28, %21 : vector<1x256xf32>
    %cst_17 = arith.constant -0.284496725 : f32
    %30 = vector.broadcast %cst_17 : f32 to vector<1x256xf32>
    %31 = arith.addf %29, %30 : vector<1x256xf32>
    %32 = arith.mulf %31, %21 : vector<1x256xf32>
    %cst_18 = arith.constant 0.254829586 : f32
    %33 = vector.broadcast %cst_18 : f32 to vector<1x256xf32>
    %34 = arith.addf %32, %33 : vector<1x256xf32>
    %35 = arith.mulf %34, %21 : vector<1x256xf32>
    %cst_19 = arith.constant 0.000000e+00 : f32
    %36 = vector.broadcast %cst_19 : f32 to vector<1x256xf32>
    %37 = arith.subf %36, %15 : vector<1x256xf32>
    %38 = arith.mulf %37, %15 : vector<1x256xf32>
    %39 = math.exp %38 : vector<1x256xf32>
    %40 = arith.mulf %35, %39 : vector<1x256xf32>
    %cst_20 = arith.constant 1.000000e+00 : f32
    %41 = vector.broadcast %cst_20 : f32 to vector<1x256xf32>
    %42 = arith.subf %41, %40 : vector<1x256xf32>
    %43 = arith.mulf %14, %42 : vector<1x256xf32>
    %cst_21 = arith.constant 1.000000e+00 : f32
    %44 = vector.broadcast %cst_21 : f32 to vector<1x256xf32>
    %45 = arith.addf %44, %43 : vector<1x256xf32>
    %46 = arith.mulf %7, %45 : vector<1x256xf32>
    %c0_22 = arith.constant 0 : index
    %c0_23 = arith.constant 0 : index
    %47 = vector.load %arg4[%c0_22, %c0_23] : memref<256x1024xbf16, #tpu.memory_space<vmem>>, vector<256x1024xbf16>
    %48 = arith.truncf %46 : vector<1x256xf32> to vector<1x256xbf16>
    %cst_24 = arith.constant dense<0.000000e+00> : vector<1x1024xf32>
    %49 = tpu.matmul %48, %47, %cst_24 {dimension_numbers = #tpu.dot_dimension_numbers<[1], [0], [0], [1], [0, 0, 1, 1], [], []>} : vector<1x256xbf16>, vector<256x1024xbf16>, vector<1x1024xf32> -> vector<1x1024xf32>
    %c0_25 = arith.constant 0 : index
    %c0_26 = arith.constant 0 : index
    %50 = vector.load %arg5[%c0_25, %c0_26] : memref<1x1024xf32, #tpu.memory_space<vmem>>, vector<1x1024xf32>
    %51 = arith.addf %49, %50 : vector<1x1024xf32>
    %52 = vector.extract_strided_slice %51 {offsets = [0, 0], sizes = [1, 128], strides = [1, 1]} : vector<1x1024xf32> to vector<1x128xf32>
    %c0_27 = arith.constant 0 : index
    %c0_28 = arith.constant 0 : index
    %53 = vector.load %arg19[%c0_27, %c0_28] : memref<8x128xf32, #tpu.memory_space<vmem>>, vector<1x128xf32>
    tpu.vector_store %arg19[%c0_27, %c0_28], %52 {strides = array<i32>} : memref<8x128xf32, #tpu.memory_space<vmem>>, vector<1x128xf32>,
    %54 = vector.extract_strided_slice %51 {offsets = [0, 128], sizes = [1, 128], strides = [1, 1]} : vector<1x1024xf32> to vector<1x128xf32>
    %c1 = arith.constant 1 : index
    %c0_29 = arith.constant 0 : index
    %55 = vector.load %arg19[%c1, %c0_29] : memref<8x128xf32, #tpu.memory_space<vmem>>, vector<1x128xf32>
    tpu.vector_store %arg19[%c1, %c0_29], %54 {strides = array<i32>} : memref<8x128xf32, #tpu.memory_space<vmem>>, vector<1x128xf32>,
    %56 = vector.extract_strided_slice %51 {offsets = [0, 256], sizes = [1, 128], strides = [1, 1]} : vector<1x1024xf32> to vector<1x128xf32>
    %c2 = arith.constant 2 : index
    %c0_30 = arith.constant 0 : index
    %57 = vector.load %arg19[%c2, %c0_30] : memref<8x128xf32, #tpu.memory_space<vmem>>, vector<1x128xf32>
    tpu.vector_store %arg19[%c2, %c0_30], %56 {strides = array<i32>} : memref<8x128xf32, #tpu.memory_space<vmem>>, vector<1x128xf32>,
    %58 = vector.extract_strided_slice %51 {offsets = [0, 384], sizes = [1, 128], strides = [1, 1]} : vector<1x1024xf32> to vector<1x128xf32>
    %c3 = arith.constant 3 : index
    %c0_31 = arith.constant 0 : index
    %59 = vector.load %arg19[%c3, %c0_31] : memref<8x128xf32, #tpu.memory_space<vmem>>, vector<1x128xf32>
    tpu.vector_store %arg19[%c3, %c0_31], %58 {strides = array<i32>} : memref<8x128xf32, #tpu.memory_space<vmem>>, vector<1x128xf32>,
    %60 = vector.extract_strided_slice %51 {offsets = [0, 512], sizes = [1, 128], strides = [1, 1]} : vector<1x1024xf32> to vector<1x128xf32>
    %c4 = arith.constant 4 : index
    %c0_32 = arith.constant 0 : index
    %61 = vector.load %arg19[%c4, %c0_32] : memref<8x128xf32, #tpu.memory_space<vmem>>, vector<1x128xf32>
    tpu.vector_store %arg19[%c4, %c0_32], %60 {strides = array<i32>} : memref<8x128xf32, #tpu.memory_space<vmem>>, vector<1x128xf32>,
    %62 = vector.extract_strided_slice %51 {offsets = [0, 640], sizes = [1, 128], strides = [1, 1]} : vector<1x1024xf32> to vector<1x128xf32>
    %c5 = arith.constant 5 : index
    %c0_33 = arith.constant 0 : index
    %63 = vector.load %arg19[%c5, %c0_33] : memref<8x128xf32, #tpu.memory_space<vmem>>, vector<1x128xf32>
    tpu.vector_store %arg19[%c5, %c0_33], %62 {strides = array<i32>} : memref<8x128xf32, #tpu.memory_space<vmem>>, vector<1x128xf32>,
    %64 = vector.extract_strided_slice %51 {offsets = [0, 768], sizes = [1, 128], strides = [1, 1]} : vector<1x1024xf32> to vector<1x128xf32>
    %c6 = arith.constant 6 : index
    %c0_34 = arith.constant 0 : index
    %65 = vector.load %arg19[%c6, %c0_34] : memref<8x128xf32, #tpu.memory_space<vmem>>, vector<1x128xf32>
    tpu.vector_store %arg19[%c6, %c0_34], %64 {strides = array<i32>} : memref<8x128xf32, #tpu.memory_space<vmem>>, vector<1x128xf32>,
    %66 = vector.extract_strided_slice %51 {offsets = [0, 896], sizes = [1, 128], strides = [1, 1]} : vector<1x1024xf32> to vector<1x128xf32>
    %c7 = arith.constant 7 : index
    %c0_35 = arith.constant 0 : index
    %67 = vector.load %arg19[%c7, %c0_35] : memref<8x128xf32, #tpu.memory_space<vmem>>, vector<1x128xf32>
    tpu.vector_store %arg19[%c7, %c0_35], %66 {strides = array<i32>} : memref<8x128xf32, #tpu.memory_space<vmem>>, vector<1x128xf32>,
    %c0_36 = arith.constant 0 : index
    %c0_37 = arith.constant 0 : index
    %68 = vector.load %arg19[%c0_36, %c0_37] : memref<8x128xf32, #tpu.memory_space<vmem>>, vector<8x128xf32>
    %c0_38 = arith.constant 0 : index
    %c0_39 = arith.constant 0 : index
    %69 = vector.load %arg9[%c0_38, %c0_39] : memref<2x128xf32, #tpu.memory_space<vmem>>, vector<1x128xf32>
    %c1_40 = arith.constant 1 : index
    %c0_41 = arith.constant 0 : index
    %70 = vector.load %arg9[%c1_40, %c0_41] : memref<2x128xf32, #tpu.memory_space<vmem>>, vector<1x128xf32>
    %cst_42 = arith.constant dense<0.000000e+00> : vector<8xf32>
    %71 = vector.multi_reduction <add>, %68, %cst_42 [1] : vector<8x128xf32> to vector<8xf32>
    %72 = vector.shape_cast %71 : vector<8xf32> to vector<8x1xf32>
    %cst_43 = arith.constant 1.280000e+02 : f32
    %73 = vector.broadcast %cst_43 : f32 to vector<8x1xf32>
    %74 = arith.divf %72, %73 : vector<8x1xf32>
    %75 = vector.broadcast %74 : vector<8x1xf32> to vector<8x128xf32>
    %76 = arith.subf %68, %75 : vector<8x128xf32>
    %77 = arith.mulf %76, %76 : vector<8x128xf32>
    %cst_44 = arith.constant dense<0.000000e+00> : vector<8xf32>
    %78 = vector.multi_reduction <add>, %77, %cst_44 [1] : vector<8x128xf32> to vector<8xf32>
    %79 = vector.shape_cast %78 : vector<8xf32> to vector<8x1xf32>
    %cst_45 = arith.constant 1.280000e+02 : f32
    %80 = vector.broadcast %cst_45 : f32 to vector<8x1xf32>
    %81 = arith.divf %79, %80 : vector<8x1xf32>
    %82 = vector.broadcast %74 : vector<8x1xf32> to vector<8x128xf32>
    %83 = arith.subf %68, %82 : vector<8x128xf32>
    %cst_46 = arith.constant 9.99999974E-6 : f32
    %84 = vector.broadcast %cst_46 : f32 to vector<8x1xf32>
    %85 = arith.addf %81, %84 : vector<8x1xf32>
    %86 = math.rsqrt %85 : vector<8x1xf32>
    %87 = vector.broadcast %86 : vector<8x1xf32> to vector<8x128xf32>
    %88 = arith.mulf %83, %87 : vector<8x128xf32>
    %89 = vector.broadcast %69 : vector<1x128xf32> to vector<8x128xf32>
    %90 = arith.mulf %88, %89 : vector<8x128xf32>
    %91 = vector.broadcast %70 : vector<1x128xf32> to vector<8x128xf32>
    %92 = arith.addf %90, %91 : vector<8x128xf32>
    %c0_47 = arith.constant 0 : index
    %c0_48 = arith.constant 0 : index
    %c0_49 = arith.constant 0 : index
    %93 = vector.load %arg6[%c0_47, %c0_48, %c0_49] : memref<1x16x64xbf16, #tpu.memory_space<vmem>>, vector<1x16x64xbf16>
    %94 = vector.shape_cast %93 : vector<1x16x64xbf16> to vector<16x64xbf16>
    %c0_50 = arith.constant 0 : index
    %c0_51 = arith.constant 0 : index
    %95 = vector.load %arg7[%c0_50, %c0_51] : memref<64x128xbf16, #tpu.memory_space<vmem>>, vector<64x128xbf16>
    %cst_52 = arith.constant dense<0.000000e+00> : vector<16x128xf32>
    %96 = tpu.matmul %94, %95, %cst_52 {dimension_numbers = #tpu.dot_dimension_numbers<[1], [0], [0], [1], [0, 0, 1, 1], [], []>} : vector<16x64xbf16>, vector<64x128xbf16>, vector<16x128xf32> -> vector<16x128xf32>
    %c0_53 = arith.constant 0 : index
    %c0_54 = arith.constant 0 : index
    %97 = vector.load %arg8[%c0_53, %c0_54] : memref<1x128xf32, #tpu.memory_space<vmem>>, vector<1x128xf32>
    %98 = vector.broadcast %97 : vector<1x128xf32> to vector<16x128xf32>
    %99 = arith.addf %96, %98 : vector<16x128xf32>
    %c0_55 = arith.constant 0 : index
    %c0_56 = arith.constant 0 : index
    %c0_57 = arith.constant 0 : index
    %100 = vector.load %arg10[%c0_55, %c0_56, %c0_57] : memref<4x8x128xf32, #tpu.memory_space<vmem>>, vector<1x8x128xf32>
    %101 = vector.shape_cast %100 : vector<1x8x128xf32> to vector<8x128xf32>
    %102 = vector.extract_strided_slice %101 {offsets = [0, 0], sizes = [1, 128], strides = [1, 1]} : vector<8x128xf32> to vector<1x128xf32>
    %103 = vector.extract_strided_slice %101 {offsets = [1, 0], sizes = [1, 128], strides = [1, 1]} : vector<8x128xf32> to vector<1x128xf32>
    %cst_58 = arith.constant dense<0.000000e+00> : vector<16xf32>
    %104 = vector.multi_reduction <add>, %99, %cst_58 [1] : vector<16x128xf32> to vector<16xf32>
    %105 = vector.shape_cast %104 : vector<16xf32> to vector<16x1xf32>
    %cst_59 = arith.constant 1.280000e+02 : f32
    %106 = vector.broadcast %cst_59 : f32 to vector<16x1xf32>
    %107 = arith.divf %105, %106 : vector<16x1xf32>
    %108 = vector.broadcast %107 : vector<16x1xf32> to vector<16x128xf32>
    %109 = arith.subf %99, %108 : vector<16x128xf32>
    %110 = arith.mulf %109, %109 : vector<16x128xf32>
    %cst_60 = arith.constant dense<0.000000e+00> : vector<16xf32>
    %111 = vector.multi_reduction <add>, %110, %cst_60 [1] : vector<16x128xf32> to vector<16xf32>
    %112 = vector.shape_cast %111 : vector<16xf32> to vector<16x1xf32>
    %cst_61 = arith.constant 1.280000e+02 : f32
    %113 = vector.broadcast %cst_61 : f32 to vector<16x1xf32>
    %114 = arith.divf %112, %113 : vector<16x1xf32>
    %115 = vector.broadcast %107 : vector<16x1xf32> to vector<16x128xf32>
    %116 = arith.subf %99, %115 : vector<16x128xf32>
    %cst_62 = arith.constant 9.99999974E-6 : f32
    %117 = vector.broadcast %cst_62 : f32 to vector<16x1xf32>
    %118 = arith.addf %114, %117 : vector<16x1xf32>
    %119 = math.rsqrt %118 : vector<16x1xf32>
    %120 = vector.broadcast %119 : vector<16x1xf32> to vector<16x128xf32>
    %121 = arith.mulf %116, %120 : vector<16x128xf32>
    %122 = vector.broadcast %102 : vector<1x128xf32> to vector<16x128xf32>
    %123 = arith.mulf %121, %122 : vector<16x128xf32>
    %124 = vector.broadcast %103 : vector<1x128xf32> to vector<16x128xf32>
    %125 = arith.addf %123, %124 : vector<16x128xf32>
    %126 = vector.extract_strided_slice %101 {offsets = [2, 0], sizes = [1, 128], strides = [1, 1]} : vector<8x128xf32> to vector<1x128xf32>
    %127 = vector.extract_strided_slice %101 {offsets = [3, 0], sizes = [1, 128], strides = [1, 1]} : vector<8x128xf32> to vector<1x128xf32>
    %cst_63 = arith.constant dense<0.000000e+00> : vector<8xf32>
    %128 = vector.multi_reduction <add>, %92, %cst_63 [1] : vector<8x128xf32> to vector<8xf32>
    %129 = vector.shape_cast %128 : vector<8xf32> to vector<8x1xf32>
    %cst_64 = arith.constant 1.280000e+02 : f32
    %130 = vector.broadcast %cst_64 : f32 to vector<8x1xf32>
    %131 = arith.divf %129, %130 : vector<8x1xf32>
    %132 = vector.broadcast %131 : vector<8x1xf32> to vector<8x128xf32>
    %133 = arith.subf %92, %132 : vector<8x128xf32>
    %134 = arith.mulf %133, %133 : vector<8x128xf32>
    %cst_65 = arith.constant dense<0.000000e+00> : vector<8xf32>
    %135 = vector.multi_reduction <add>, %134, %cst_65 [1] : vector<8x128xf32> to vector<8xf32>
    %136 = vector.shape_cast %135 : vector<8xf32> to vector<8x1xf32>
    %cst_66 = arith.constant 1.280000e+02 : f32
    %137 = vector.broadcast %cst_66 : f32 to vector<8x1xf32>
    %138 = arith.divf %136, %137 : vector<8x1xf32>
    %139 = vector.broadcast %131 : vector<8x1xf32> to vector<8x128xf32>
    %140 = arith.subf %92, %139 : vector<8x128xf32>
    %cst_67 = arith.constant 9.99999974E-6 : f32
    %141 = vector.broadcast %cst_67 : f32 to vector<8x1xf32>
    %142 = arith.addf %138, %141 : vector<8x1xf32>
    %143 = math.rsqrt %142 : vector<8x1xf32>
    %144 = vector.broadcast %143 : vector<8x1xf32> to vector<8x128xf32>
    %145 = arith.mulf %140, %144 : vector<8x128xf32>
    %146 = vector.broadcast %126 : vector<1x128xf32> to vector<8x128xf32>
    %147 = arith.mulf %145, %146 : vector<8x128xf32>
    %148 = vector.broadcast %127 : vector<1x128xf32> to vector<8x128xf32>
    %149 = arith.addf %147, %148 : vector<8x128xf32>
    %150 = arith.truncf %125 : vector<16x128xf32> to vector<16x128xbf16>
    %c0_68 = arith.constant 0 : index
    %c0_69 = arith.constant 0 : index
    %151 = vector.load %arg20[%c0_68, %c0_69] : memref<24x128xbf16, #tpu.memory_space<vmem>>, vector<16x128xbf16>
    tpu.vector_store %arg20[%c0_68, %c0_69], %150 {strides = array<i32>} : memref<24x128xbf16, #tpu.memory_space<vmem>>, vector<16x128xbf16>,
    %152 = arith.truncf %149 : vector<8x128xf32> to vector<8x128xbf16>
    %c16 = arith.constant 16 : index
    %c0_70 = arith.constant 0 : index
    %153 = vector.load %arg20[%c16, %c0_70] : memref<24x128xbf16, #tpu.memory_space<vmem>>, vector<8x128xbf16>
    tpu.vector_store %arg20[%c16, %c0_70], %152 {strides = array<i32>} : memref<24x128xbf16, #tpu.memory_space<vmem>>, vector<8x128xbf16>,
    %c0_71 = arith.constant 0 : index
    %c0_72 = arith.constant 0 : index
    %154 = vector.load %arg20[%c0_71, %c0_72] : memref<24x128xbf16, #tpu.memory_space<vmem>>, vector<24x128xbf16>
    %c0_73 = arith.constant 0 : index
    %c0_74 = arith.constant 0 : index
    %c0_75 = arith.constant 0 : index
    %155 = vector.load %arg11[%c0_73, %c0_74, %c0_75] : memref<4x128x384xbf16, #tpu.memory_space<vmem>>, vector<1x128x384xbf16>
    %156 = vector.shape_cast %155 : vector<1x128x384xbf16> to vector<128x384xbf16>
    %cst_76 = arith.constant dense<0.000000e+00> : vector<24x384xf32>
    %157 = tpu.matmul %154, %156, %cst_76 {dimension_numbers = #tpu.dot_dimension_numbers<[1], [0], [0], [1], [0, 0, 1, 1], [], []>} : vector<24x128xbf16>, vector<128x384xbf16>, vector<24x384xf32> -> vector<24x384xf32>
    %158 = vector.extract_strided_slice %157 {offsets = [16, 0], sizes = [8, 128], strides = [1, 1]} : vector<24x384xf32> to vector<8x128xf32>
    %159 = vector.extract_strided_slice %157 {offsets = [0, 128], sizes = [24, 128], strides = [1, 1]} : vector<24x384xf32> to vector<24x128xf32>
    %160 = vector.extract_strided_slice %157 {offsets = [0, 256], sizes = [24, 128], strides = [1, 1]} : vector<24x384xf32> to vector<24x128xf32>
    %161 = arith.truncf %158 : vector<8x128xf32> to vector<8x128xbf16>
    %162 = arith.truncf %159 : vector<24x128xf32> to vector<24x128xbf16>
    %cst_77 = arith.constant dense<0.000000e+00> : vector<8x24xf32>
    %163 = tpu.matmul %161, %162, %cst_77 {dimension_numbers = #tpu.dot_dimension_numbers<[1], [1], [0], [0], [0, 0, 1, 0], [], []>} : vector<8x128xbf16>, vector<24x128xbf16>, vector<8x24xf32> -> vector<8x24xf32>
    %cst_78 = arith.constant 0.0883883461 : f32
    %164 = vector.broadcast %cst_78 : f32 to vector<8x24xf32>
    %165 = arith.mulf %163, %164 : vector<8x24xf32>
    %cst_79 = arith.constant dense<0xFF800000> : vector<8xf32>
    %166 = vector.multi_reduction <maximumf>, %165, %cst_79 [1] : vector<8x24xf32> to vector<8xf32>
    %167 = vector.shape_cast %166 : vector<8xf32> to vector<8x1xf32>
    %168 = vector.broadcast %167 : vector<8x1xf32> to vector<8x24xf32>
    %169 = arith.subf %165, %168 : vector<8x24xf32>
    %170 = math.exp %169 : vector<8x24xf32>
    %cst_80 = arith.constant dense<0.000000e+00> : vector<8xf32>
    %171 = vector.multi_reduction <add>, %170, %cst_80 [1] : vector<8x24xf32> to vector<8xf32>
    %172 = vector.shape_cast %171 : vector<8xf32> to vector<8x1xf32>
    %173 = vector.broadcast %172 : vector<8x1xf32> to vector<8x24xf32>
    %174 = arith.divf %170, %173 : vector<8x24xf32>
    %175 = arith.truncf %174 : vector<8x24xf32> to vector<8x24xbf16>
    %176 = arith.truncf %160 : vector<24x128xf32> to vector<24x128xbf16>
    %cst_81 = arith.constant dense<0.000000e+00> : vector<8x128xf32>
    %177 = tpu.matmul %175, %176, %cst_81 {dimension_numbers = #tpu.dot_dimension_numbers<[1], [0], [0], [1], [0, 0, 1, 1], [], []>} : vector<8x24xbf16>, vector<24x128xbf16>, vector<8x128xf32> -> vector<8x128xf32>
    %178 = arith.truncf %177 : vector<8x128xf32> to vector<8x128xbf16>
    %c0_82 = arith.constant 0 : index
    %c0_83 = arith.constant 0 : index
    %c0_84 = arith.constant 0 : index
    %179 = vector.load %arg12[%c0_82, %c0_83, %c0_84] : memref<4x128x128xbf16, #tpu.memory_space<vmem>>, vector<1x128x128xbf16>
    %180 = vector.shape_cast %179 : vector<1x128x128xbf16> to vector<128x128xbf16>
    %cst_85 = arith.constant dense<0.000000e+00> : vector<8x128xf32>
    %181 = tpu.matmul %178, %180, %cst_85 {dimension_numbers = #tpu.dot_dimension_numbers<[1], [0], [0], [1], [0, 0, 1, 1], [], []>} : vector<8x128xbf16>, vector<128x128xbf16>, vector<8x128xf32> -> vector<8x128xf32>
    %182 = arith.addf %181, %92 : vector<8x128xf32>
    %183 = vector.extract_strided_slice %101 {offsets = [4, 0], sizes = [1, 128], strides = [1, 1]} : vector<8x128xf32> to vector<1x128xf32>
    %184 = vector.extract_strided_slice %101 {offsets = [5, 0], sizes = [1, 128], strides = [1, 1]} : vector<8x128xf32> to vector<1x128xf32>
    %cst_86 = arith.constant dense<0.000000e+00> : vector<8xf32>
    %185 = vector.multi_reduction <add>, %182, %cst_86 [1] : vector<8x128xf32> to vector<8xf32>
    %186 = vector.shape_cast %185 : vector<8xf32> to vector<8x1xf32>
    %cst_87 = arith.constant 1.280000e+02 : f32
    %187 = vector.broadcast %cst_87 : f32 to vector<8x1xf32>
    %188 = arith.divf %186, %187 : vector<8x1xf32>
    %189 = vector.broadcast %188 : vector<8x1xf32> to vector<8x128xf32>
    %190 = arith.subf %182, %189 : vector<8x128xf32>
    %191 = arith.mulf %190, %190 : vector<8x128xf32>
    %cst_88 = arith.constant dense<0.000000e+00> : vector<8xf32>
    %192 = vector.multi_reduction <add>, %191, %cst_88 [1] : vector<8x128xf32> to vector<8xf32>
    %193 = vector.shape_cast %192 : vector<8xf32> to vector<8x1xf32>
    %cst_89 = arith.constant 1.280000e+02 : f32
    %194 = vector.broadcast %cst_89 : f32 to vector<8x1xf32>
    %195 = arith.divf %193, %194 : vector<8x1xf32>
    %196 = vector.broadcast %188 : vector<8x1xf32> to vector<8x128xf32>
    %197 = arith.subf %182, %196 : vector<8x128xf32>
    %cst_90 = arith.constant 9.99999974E-6 : f32
    %198 = vector.broadcast %cst_90 : f32 to vector<8x1xf32>
    %199 = arith.addf %195, %198 : vector<8x1xf32>
    %200 = math.rsqrt %199 : vector<8x1xf32>
    %201 = vector.broadcast %200 : vector<8x1xf32> to vector<8x128xf32>
    %202 = arith.mulf %197, %201 : vector<8x128xf32>
    %203 = vector.broadcast %183 : vector<1x128xf32> to vector<8x128xf32>
    %204 = arith.mulf %202, %203 : vector<8x128xf32>
    %205 = vector.broadcast %184 : vector<1x128xf32> to vector<8x128xf32>
    %206 = arith.addf %204, %205 : vector<8x128xf32>
    %c0_91 = arith.constant 0 : index
    %c0_92 = arith.constant 0 : index
    %c0_93 = arith.constant 0 : index
    %207 = vector.load %arg13[%c0_91, %c0_92, %c0_93] : memref<4x128x512xbf16, #tpu.memory_space<vmem>>, vector<1x128x512xbf16>
    %208 = vector.shape_cast %207 : vector<1x128x512xbf16> to vector<128x512xbf16>
    %209 = arith.truncf %206 : vector<8x128xf32> to vector<8x128xbf16>
    %cst_94 = arith.constant dense<0.000000e+00> : vector<8x512xf32>
    %210 = tpu.matmul %209, %208, %cst_94 {dimension_numbers = #tpu.dot_dimension_numbers<[1], [0], [0], [1], [0, 0, 1, 1], [], []>} : vector<8x128xbf16>, vector<128x512xbf16>, vector<8x512xf32> -> vector<8x512xf32>
    %cst_95 = arith.constant 5.000000e-01 : f32
    %211 = vector.broadcast %cst_95 : f32 to vector<8x512xf32>
    %212 = arith.mulf %211, %210 : vector<8x512xf32>
    %cst_96 = arith.constant 0.707106769 : f32
    %213 = vector.broadcast %cst_96 : f32 to vector<8x512xf32>
    %214 = arith.mulf %210, %213 : vector<8x512xf32>
    %cst_97 = arith.constant 0.000000e+00 : f32
    %215 = vector.broadcast %cst_97 : f32 to vector<8x512xf32>
    %216 = arith.cmpf olt, %214, %215 : vector<8x512xf32>
    %cst_98 = arith.constant -1.000000e+00 : f32
    %cst_99 = arith.constant 1.000000e+00 : f32
    %217 = vector.broadcast %cst_98 : f32 to vector<8x512xf32>
    %218 = vector.broadcast %cst_99 : f32 to vector<8x512xf32>
    %219 = arith.select %216, %217, %218 : vector<8x512xi1>, vector<8x512xf32>
    %220 = math.absf %214 : vector<8x512xf32>
    %cst_100 = arith.constant 0.327591091 : f32
    %221 = vector.broadcast %cst_100 : f32 to vector<8x512xf32>
    %222 = arith.mulf %221, %220 : vector<8x512xf32>
    %cst_101 = arith.constant 1.000000e+00 : f32
    %223 = vector.broadcast %cst_101 : f32 to vector<8x512xf32>
    %224 = arith.addf %223, %222 : vector<8x512xf32>
    %cst_102 = arith.constant 1.000000e+00 : f32
    %225 = vector.broadcast %cst_102 : f32 to vector<8x512xf32>
    %226 = arith.divf %225, %224 : vector<8x512xf32>
    %cst_103 = arith.constant 1.06140542 : f32
    %227 = vector.broadcast %cst_103 : f32 to vector<8x512xf32>
    %228 = arith.mulf %227, %226 : vector<8x512xf32>
    %cst_104 = arith.constant -1.45315206 : f32
    %229 = vector.broadcast %cst_104 : f32 to vector<8x512xf32>
    %230 = arith.addf %228, %229 : vector<8x512xf32>
    %231 = arith.mulf %230, %226 : vector<8x512xf32>
    %cst_105 = arith.constant 1.42141378 : f32
    %232 = vector.broadcast %cst_105 : f32 to vector<8x512xf32>
    %233 = arith.addf %231, %232 : vector<8x512xf32>
    %234 = arith.mulf %233, %226 : vector<8x512xf32>
    %cst_106 = arith.constant -0.284496725 : f32
    %235 = vector.broadcast %cst_106 : f32 to vector<8x512xf32>
    %236 = arith.addf %234, %235 : vector<8x512xf32>
    %237 = arith.mulf %236, %226 : vector<8x512xf32>
    %cst_107 = arith.constant 0.254829586 : f32
    %238 = vector.broadcast %cst_107 : f32 to vector<8x512xf32>
    %239 = arith.addf %237, %238 : vector<8x512xf32>
    %240 = arith.mulf %239, %226 : vector<8x512xf32>
    %cst_108 = arith.constant 0.000000e+00 : f32
    %241 = vector.broadcast %cst_108 : f32 to vector<8x512xf32>
    %242 = arith.subf %241, %220 : vector<8x512xf32>
    %243 = arith.mulf %242, %220 : vector<8x512xf32>
    %244 = math.exp %243 : vector<8x512xf32>
    %245 = arith.mulf %240, %244 : vector<8x512xf32>
    %cst_109 = arith.constant 1.000000e+00 : f32
    %246 = vector.broadcast %cst_109 : f32 to vector<8x512xf32>
    %247 = arith.subf %246, %245 : vector<8x512xf32>
    %248 = arith.mulf %219, %247 : vector<8x512xf32>
    %cst_110 = arith.constant 1.000000e+00 : f32
    %249 = vector.broadcast %cst_110 : f32 to vector<8x512xf32>
    %250 = arith.addf %249, %248 : vector<8x512xf32>
    %251 = arith.mulf %212, %250 : vector<8x512xf32>
    %c0_111 = arith.constant 0 : index
    %c0_112 = arith.constant 0 : index
    %c0_113 = arith.constant 0 : index
    %252 = vector.load %arg14[%c0_111, %c0_112, %c0_113] : memref<4x512x128xbf16, #tpu.memory_space<vmem>>, vector<1x512x128xbf16>
    %253 = vector.shape_cast %252 : vector<1x512x128xbf16> to vector<512x128xbf16>
    %254 = arith.truncf %251 : vector<8x512xf32> to vector<8x512xbf16>
    %cst_114 = arith.constant dense<0.000000e+00> : vector<8x128xf32>
    %255 = tpu.matmul %254, %253, %cst_114 {dimension_numbers = #tpu.dot_dimension_numbers<[1], [0], [0], [1], [0, 0, 1, 1], [], []>} : vector<8x512xbf16>, vector<512x128xbf16>, vector<8x128xf32> -> vector<8x128xf32>
    %256 = arith.addf %255, %182 : vector<8x128xf32>
    %c1_115 = arith.constant 1 : index
    %c0_116 = arith.constant 0 : index
    %c0_117 = arith.constant 0 : index
    %257 = vector.load %arg10[%c1_115, %c0_116, %c0_117] : memref<4x8x128xf32, #tpu.memory_space<vmem>>, vector<1x8x128xf32>
    %258 = vector.shape_cast %257 : vector<1x8x128xf32> to vector<8x128xf32>
    %259 = vector.extract_strided_slice %258 {offsets = [0, 0], sizes = [1, 128], strides = [1, 1]} : vector<8x128xf32> to vector<1x128xf32>
    %260 = vector.extract_strided_slice %258 {offsets = [1, 0], sizes = [1, 128], strides = [1, 1]} : vector<8x128xf32> to vector<1x128xf32>
    %cst_118 = arith.constant dense<0.000000e+00> : vector<16xf32>
    %261 = vector.multi_reduction <add>, %99, %cst_118 [1] : vector<16x128xf32> to vector<16xf32>
    %262 = vector.shape_cast %261 : vector<16xf32> to vector<16x1xf32>
    %cst_119 = arith.constant 1.280000e+02 : f32
    %263 = vector.broadcast %cst_119 : f32 to vector<16x1xf32>
    %264 = arith.divf %262, %263 : vector<16x1xf32>
    %265 = vector.broadcast %264 : vector<16x1xf32> to vector<16x128xf32>
    %266 = arith.subf %99, %265 : vector<16x128xf32>
    %267 = arith.mulf %266, %266 : vector<16x128xf32>
    %cst_120 = arith.constant dense<0.000000e+00> : vector<16xf32>
    %268 = vector.multi_reduction <add>, %267, %cst_120 [1] : vector<16x128xf32> to vector<16xf32>
    %269 = vector.shape_cast %268 : vector<16xf32> to vector<16x1xf32>
    %cst_121 = arith.constant 1.280000e+02 : f32
    %270 = vector.broadcast %cst_121 : f32 to vector<16x1xf32>
    %271 = arith.divf %269, %270 : vector<16x1xf32>
    %272 = vector.broadcast %264 : vector<16x1xf32> to vector<16x128xf32>
    %273 = arith.subf %99, %272 : vector<16x128xf32>
    %cst_122 = arith.constant 9.99999974E-6 : f32
    %274 = vector.broadcast %cst_122 : f32 to vector<16x1xf32>
    %275 = arith.addf %271, %274 : vector<16x1xf32>
    %276 = math.rsqrt %275 : vector<16x1xf32>
    %277 = vector.broadcast %276 : vector<16x1xf32> to vector<16x128xf32>
    %278 = arith.mulf %273, %277 : vector<16x128xf32>
    %279 = vector.broadcast %259 : vector<1x128xf32> to vector<16x128xf32>
    %280 = arith.mulf %278, %279 : vector<16x128xf32>
    %281 = vector.broadcast %260 : vector<1x128xf32> to vector<16x128xf32>
    %282 = arith.addf %280, %281 : vector<16x128xf32>
    %283 = vector.extract_strided_slice %258 {offsets = [2, 0], sizes = [1, 128], strides = [1, 1]} : vector<8x128xf32> to vector<1x128xf32>
    %284 = vector.extract_strided_slice %258 {offsets = [3, 0], sizes = [1, 128], strides = [1, 1]} : vector<8x128xf32> to vector<1x128xf32>
    %cst_123 = arith.constant dense<0.000000e+00> : vector<8xf32>
    %285 = vector.multi_reduction <add>, %256, %cst_123 [1] : vector<8x128xf32> to vector<8xf32>
    %286 = vector.shape_cast %285 : vector<8xf32> to vector<8x1xf32>
    %cst_124 = arith.constant 1.280000e+02 : f32
    %287 = vector.broadcast %cst_124 : f32 to vector<8x1xf32>
    %288 = arith.divf %286, %287 : vector<8x1xf32>
    %289 = vector.broadcast %288 : vector<8x1xf32> to vector<8x128xf32>
    %290 = arith.subf %256, %289 : vector<8x128xf32>
    %291 = arith.mulf %290, %290 : vector<8x128xf32>
    %cst_125 = arith.constant dense<0.000000e+00> : vector<8xf32>
    %292 = vector.multi_reduction <add>, %291, %cst_125 [1] : vector<8x128xf32> to vector<8xf32>
    %293 = vector.shape_cast %292 : vector<8xf32> to vector<8x1xf32>
    %cst_126 = arith.constant 1.280000e+02 : f32
    %294 = vector.broadcast %cst_126 : f32 to vector<8x1xf32>
    %295 = arith.divf %293, %294 : vector<8x1xf32>
    %296 = vector.broadcast %288 : vector<8x1xf32> to vector<8x128xf32>
    %297 = arith.subf %256, %296 : vector<8x128xf32>
    %cst_127 = arith.constant 9.99999974E-6 : f32
    %298 = vector.broadcast %cst_127 : f32 to vector<8x1xf32>
    %299 = arith.addf %295, %298 : vector<8x1xf32>
    %300 = math.rsqrt %299 : vector<8x1xf32>
    %301 = vector.broadcast %300 : vector<8x1xf32> to vector<8x128xf32>
    %302 = arith.mulf %297, %301 : vector<8x128xf32>
    %303 = vector.broadcast %283 : vector<1x128xf32> to vector<8x128xf32>
    %304 = arith.mulf %302, %303 : vector<8x128xf32>
    %305 = vector.broadcast %284 : vector<1x128xf32> to vector<8x128xf32>
    %306 = arith.addf %304, %305 : vector<8x128xf32>
    %307 = arith.truncf %282 : vector<16x128xf32> to vector<16x128xbf16>
    %c0_128 = arith.constant 0 : index
    %c0_129 = arith.constant 0 : index
    %308 = vector.load %arg20[%c0_128, %c0_129] : memref<24x128xbf16, #tpu.memory_space<vmem>>, vector<16x128xbf16>
    tpu.vector_store %arg20[%c0_128, %c0_129], %307 {strides = array<i32>} : memref<24x128xbf16, #tpu.memory_space<vmem>>, vector<16x128xbf16>,
    %309 = arith.truncf %306 : vector<8x128xf32> to vector<8x128xbf16>
    %c16_130 = arith.constant 16 : index
    %c0_131 = arith.constant 0 : index
    %310 = vector.load %arg20[%c16_130, %c0_131] : memref<24x128xbf16, #tpu.memory_space<vmem>>, vector<8x128xbf16>
    tpu.vector_store %arg20[%c16_130, %c0_131], %309 {strides = array<i32>} : memref<24x128xbf16, #tpu.memory_space<vmem>>, vector<8x128xbf16>,
    %c0_132 = arith.constant 0 : index
    %c0_133 = arith.constant 0 : index
    %311 = vector.load %arg20[%c0_132, %c0_133] : memref<24x128xbf16, #tpu.memory_space<vmem>>, vector<24x128xbf16>
    %c1_134 = arith.constant 1 : index
    %c0_135 = arith.constant 0 : index
    %c0_136 = arith.constant 0 : index
    %312 = vector.load %arg11[%c1_134, %c0_135, %c0_136] : memref<4x128x384xbf16, #tpu.memory_space<vmem>>, vector<1x128x384xbf16>
    %313 = vector.shape_cast %312 : vector<1x128x384xbf16> to vector<128x384xbf16>
    %cst_137 = arith.constant dense<0.000000e+00> : vector<24x384xf32>
    %314 = tpu.matmul %311, %313, %cst_137 {dimension_numbers = #tpu.dot_dimension_numbers<[1], [0], [0], [1], [0, 0, 1, 1], [], []>} : vector<24x128xbf16>, vector<128x384xbf16>, vector<24x384xf32> -> vector<24x384xf32>
    %315 = vector.extract_strided_slice %314 {offsets = [16, 0], sizes = [8, 128], strides = [1, 1]} : vector<24x384xf32> to vector<8x128xf32>
    %316 = vector.extract_strided_slice %314 {offsets = [0, 128], sizes = [24, 128], strides = [1, 1]} : vector<24x384xf32> to vector<24x128xf32>
    %317 = vector.extract_strided_slice %314 {offsets = [0, 256], sizes = [24, 128], strides = [1, 1]} : vector<24x384xf32> to vector<24x128xf32>
    %318 = arith.truncf %315 : vector<8x128xf32> to vector<8x128xbf16>
    %319 = arith.truncf %316 : vector<24x128xf32> to vector<24x128xbf16>
    %cst_138 = arith.constant dense<0.000000e+00> : vector<8x24xf32>
    %320 = tpu.matmul %318, %319, %cst_138 {dimension_numbers = #tpu.dot_dimension_numbers<[1], [1], [0], [0], [0, 0, 1, 0], [], []>} : vector<8x128xbf16>, vector<24x128xbf16>, vector<8x24xf32> -> vector<8x24xf32>
    %cst_139 = arith.constant 0.0883883461 : f32
    %321 = vector.broadcast %cst_139 : f32 to vector<8x24xf32>
    %322 = arith.mulf %320, %321 : vector<8x24xf32>
    %cst_140 = arith.constant dense<0xFF800000> : vector<8xf32>
    %323 = vector.multi_reduction <maximumf>, %322, %cst_140 [1] : vector<8x24xf32> to vector<8xf32>
    %324 = vector.shape_cast %323 : vector<8xf32> to vector<8x1xf32>
    %325 = vector.broadcast %324 : vector<8x1xf32> to vector<8x24xf32>
    %326 = arith.subf %322, %325 : vector<8x24xf32>
    %327 = math.exp %326 : vector<8x24xf32>
    %cst_141 = arith.constant dense<0.000000e+00> : vector<8xf32>
    %328 = vector.multi_reduction <add>, %327, %cst_141 [1] : vector<8x24xf32> to vector<8xf32>
    %329 = vector.shape_cast %328 : vector<8xf32> to vector<8x1xf32>
    %330 = vector.broadcast %329 : vector<8x1xf32> to vector<8x24xf32>
    %331 = arith.divf %327, %330 : vector<8x24xf32>
    %332 = arith.truncf %331 : vector<8x24xf32> to vector<8x24xbf16>
    %333 = arith.truncf %317 : vector<24x128xf32> to vector<24x128xbf16>
    %cst_142 = arith.constant dense<0.000000e+00> : vector<8x128xf32>
    %334 = tpu.matmul %332, %333, %cst_142 {dimension_numbers = #tpu.dot_dimension_numbers<[1], [0], [0], [1], [0, 0, 1, 1], [], []>} : vector<8x24xbf16>, vector<24x128xbf16>, vector<8x128xf32> -> vector<8x128xf32>
    %335 = arith.truncf %334 : vector<8x128xf32> to vector<8x128xbf16>
    %c1_143 = arith.constant 1 : index
    %c0_144 = arith.constant 0 : index
    %c0_145 = arith.constant 0 : index
    %336 = vector.load %arg12[%c1_143, %c0_144, %c0_145] : memref<4x128x128xbf16, #tpu.memory_space<vmem>>, vector<1x128x128xbf16>
    %337 = vector.shape_cast %336 : vector<1x128x128xbf16> to vector<128x128xbf16>
    %cst_146 = arith.constant dense<0.000000e+00> : vector<8x128xf32>
    %338 = tpu.matmul %335, %337, %cst_146 {dimension_numbers = #tpu.dot_dimension_numbers<[1], [0], [0], [1], [0, 0, 1, 1], [], []>} : vector<8x128xbf16>, vector<128x128xbf16>, vector<8x128xf32> -> vector<8x128xf32>
    %339 = arith.addf %338, %256 : vector<8x128xf32>
    %340 = vector.extract_strided_slice %258 {offsets = [4, 0], sizes = [1, 128], strides = [1, 1]} : vector<8x128xf32> to vector<1x128xf32>
    %341 = vector.extract_strided_slice %258 {offsets = [5, 0], sizes = [1, 128], strides = [1, 1]} : vector<8x128xf32> to vector<1x128xf32>
    %cst_147 = arith.constant dense<0.000000e+00> : vector<8xf32>
    %342 = vector.multi_reduction <add>, %339, %cst_147 [1] : vector<8x128xf32> to vector<8xf32>
    %343 = vector.shape_cast %342 : vector<8xf32> to vector<8x1xf32>
    %cst_148 = arith.constant 1.280000e+02 : f32
    %344 = vector.broadcast %cst_148 : f32 to vector<8x1xf32>
    %345 = arith.divf %343, %344 : vector<8x1xf32>
    %346 = vector.broadcast %345 : vector<8x1xf32> to vector<8x128xf32>
    %347 = arith.subf %339, %346 : vector<8x128xf32>
    %348 = arith.mulf %347, %347 : vector<8x128xf32>
    %cst_149 = arith.constant dense<0.000000e+00> : vector<8xf32>
    %349 = vector.multi_reduction <add>, %348, %cst_149 [1] : vector<8x128xf32> to vector<8xf32>
    %350 = vector.shape_cast %349 : vector<8xf32> to vector<8x1xf32>
    %cst_150 = arith.constant 1.280000e+02 : f32
    %351 = vector.broadcast %cst_150 : f32 to vector<8x1xf32>
    %352 = arith.divf %350, %351 : vector<8x1xf32>
    %353 = vector.broadcast %345 : vector<8x1xf32> to vector<8x128xf32>
    %354 = arith.subf %339, %353 : vector<8x128xf32>
    %cst_151 = arith.constant 9.99999974E-6 : f32
    %355 = vector.broadcast %cst_151 : f32 to vector<8x1xf32>
    %356 = arith.addf %352, %355 : vector<8x1xf32>
    %357 = math.rsqrt %356 : vector<8x1xf32>
    %358 = vector.broadcast %357 : vector<8x1xf32> to vector<8x128xf32>
    %359 = arith.mulf %354, %358 : vector<8x128xf32>
    %360 = vector.broadcast %340 : vector<1x128xf32> to vector<8x128xf32>
    %361 = arith.mulf %359, %360 : vector<8x128xf32>
    %362 = vector.broadcast %341 : vector<1x128xf32> to vector<8x128xf32>
    %363 = arith.addf %361, %362 : vector<8x128xf32>
    %c1_152 = arith.constant 1 : index
    %c0_153 = arith.constant 0 : index
    %c0_154 = arith.constant 0 : index
    %364 = vector.load %arg13[%c1_152, %c0_153, %c0_154] : memref<4x128x512xbf16, #tpu.memory_space<vmem>>, vector<1x128x512xbf16>
    %365 = vector.shape_cast %364 : vector<1x128x512xbf16> to vector<128x512xbf16>
    %366 = arith.truncf %363 : vector<8x128xf32> to vector<8x128xbf16>
    %cst_155 = arith.constant dense<0.000000e+00> : vector<8x512xf32>
    %367 = tpu.matmul %366, %365, %cst_155 {dimension_numbers = #tpu.dot_dimension_numbers<[1], [0], [0], [1], [0, 0, 1, 1], [], []>} : vector<8x128xbf16>, vector<128x512xbf16>, vector<8x512xf32> -> vector<8x512xf32>
    %cst_156 = arith.constant 5.000000e-01 : f32
    %368 = vector.broadcast %cst_156 : f32 to vector<8x512xf32>
    %369 = arith.mulf %368, %367 : vector<8x512xf32>
    %cst_157 = arith.constant 0.707106769 : f32
    %370 = vector.broadcast %cst_157 : f32 to vector<8x512xf32>
    %371 = arith.mulf %367, %370 : vector<8x512xf32>
    %cst_158 = arith.constant 0.000000e+00 : f32
    %372 = vector.broadcast %cst_158 : f32 to vector<8x512xf32>
    %373 = arith.cmpf olt, %371, %372 : vector<8x512xf32>
    %cst_159 = arith.constant -1.000000e+00 : f32
    %cst_160 = arith.constant 1.000000e+00 : f32
    %374 = vector.broadcast %cst_159 : f32 to vector<8x512xf32>
    %375 = vector.broadcast %cst_160 : f32 to vector<8x512xf32>
    %376 = arith.select %373, %374, %375 : vector<8x512xi1>, vector<8x512xf32>
    %377 = math.absf %371 : vector<8x512xf32>
    %cst_161 = arith.constant 0.327591091 : f32
    %378 = vector.broadcast %cst_161 : f32 to vector<8x512xf32>
    %379 = arith.mulf %378, %377 : vector<8x512xf32>
    %cst_162 = arith.constant 1.000000e+00 : f32
    %380 = vector.broadcast %cst_162 : f32 to vector<8x512xf32>
    %381 = arith.addf %380, %379 : vector<8x512xf32>
    %cst_163 = arith.constant 1.000000e+00 : f32
    %382 = vector.broadcast %cst_163 : f32 to vector<8x512xf32>
    %383 = arith.divf %382, %381 : vector<8x512xf32>
    %cst_164 = arith.constant 1.06140542 : f32
    %384 = vector.broadcast %cst_164 : f32 to vector<8x512xf32>
    %385 = arith.mulf %384, %383 : vector<8x512xf32>
    %cst_165 = arith.constant -1.45315206 : f32
    %386 = vector.broadcast %cst_165 : f32 to vector<8x512xf32>
    %387 = arith.addf %385, %386 : vector<8x512xf32>
    %388 = arith.mulf %387, %383 : vector<8x512xf32>
    %cst_166 = arith.constant 1.42141378 : f32
    %389 = vector.broadcast %cst_166 : f32 to vector<8x512xf32>
    %390 = arith.addf %388, %389 : vector<8x512xf32>
    %391 = arith.mulf %390, %383 : vector<8x512xf32>
    %cst_167 = arith.constant -0.284496725 : f32
    %392 = vector.broadcast %cst_167 : f32 to vector<8x512xf32>
    %393 = arith.addf %391, %392 : vector<8x512xf32>
    %394 = arith.mulf %393, %383 : vector<8x512xf32>
    %cst_168 = arith.constant 0.254829586 : f32
    %395 = vector.broadcast %cst_168 : f32 to vector<8x512xf32>
    %396 = arith.addf %394, %395 : vector<8x512xf32>
    %397 = arith.mulf %396, %383 : vector<8x512xf32>
    %cst_169 = arith.constant 0.000000e+00 : f32
    %398 = vector.broadcast %cst_169 : f32 to vector<8x512xf32>
    %399 = arith.subf %398, %377 : vector<8x512xf32>
    %400 = arith.mulf %399, %377 : vector<8x512xf32>
    %401 = math.exp %400 : vector<8x512xf32>
    %402 = arith.mulf %397, %401 : vector<8x512xf32>
    %cst_170 = arith.constant 1.000000e+00 : f32
    %403 = vector.broadcast %cst_170 : f32 to vector<8x512xf32>
    %404 = arith.subf %403, %402 : vector<8x512xf32>
    %405 = arith.mulf %376, %404 : vector<8x512xf32>
    %cst_171 = arith.constant 1.000000e+00 : f32
    %406 = vector.broadcast %cst_171 : f32 to vector<8x512xf32>
    %407 = arith.addf %406, %405 : vector<8x512xf32>
    %408 = arith.mulf %369, %407 : vector<8x512xf32>
    %c1_172 = arith.constant 1 : index
    %c0_173 = arith.constant 0 : index
    %c0_174 = arith.constant 0 : index
    %409 = vector.load %arg14[%c1_172, %c0_173, %c0_174] : memref<4x512x128xbf16, #tpu.memory_space<vmem>>, vector<1x512x128xbf16>
    %410 = vector.shape_cast %409 : vector<1x512x128xbf16> to vector<512x128xbf16>
    %411 = arith.truncf %408 : vector<8x512xf32> to vector<8x512xbf16>
    %cst_175 = arith.constant dense<0.000000e+00> : vector<8x128xf32>
    %412 = tpu.matmul %411, %410, %cst_175 {dimension_numbers = #tpu.dot_dimension_numbers<[1], [0], [0], [1], [0, 0, 1, 1], [], []>} : vector<8x512xbf16>, vector<512x128xbf16>, vector<8x128xf32> -> vector<8x128xf32>
    %413 = arith.addf %412, %339 : vector<8x128xf32>
    %c2_176 = arith.constant 2 : index
    %c0_177 = arith.constant 0 : index
    %c0_178 = arith.constant 0 : index
    %414 = vector.load %arg10[%c2_176, %c0_177, %c0_178] : memref<4x8x128xf32, #tpu.memory_space<vmem>>, vector<1x8x128xf32>
    %415 = vector.shape_cast %414 : vector<1x8x128xf32> to vector<8x128xf32>
    %416 = vector.extract_strided_slice %415 {offsets = [0, 0], sizes = [1, 128], strides = [1, 1]} : vector<8x128xf32> to vector<1x128xf32>
    %417 = vector.extract_strided_slice %415 {offsets = [1, 0], sizes = [1, 128], strides = [1, 1]} : vector<8x128xf32> to vector<1x128xf32>
    %cst_179 = arith.constant dense<0.000000e+00> : vector<16xf32>
    %418 = vector.multi_reduction <add>, %99, %cst_179 [1] : vector<16x128xf32> to vector<16xf32>
    %419 = vector.shape_cast %418 : vector<16xf32> to vector<16x1xf32>
    %cst_180 = arith.constant 1.280000e+02 : f32
    %420 = vector.broadcast %cst_180 : f32 to vector<16x1xf32>
    %421 = arith.divf %419, %420 : vector<16x1xf32>
    %422 = vector.broadcast %421 : vector<16x1xf32> to vector<16x128xf32>
    %423 = arith.subf %99, %422 : vector<16x128xf32>
    %424 = arith.mulf %423, %423 : vector<16x128xf32>
    %cst_181 = arith.constant dense<0.000000e+00> : vector<16xf32>
    %425 = vector.multi_reduction <add>, %424, %cst_181 [1] : vector<16x128xf32> to vector<16xf32>
    %426 = vector.shape_cast %425 : vector<16xf32> to vector<16x1xf32>
    %cst_182 = arith.constant 1.280000e+02 : f32
    %427 = vector.broadcast %cst_182 : f32 to vector<16x1xf32>
    %428 = arith.divf %426, %427 : vector<16x1xf32>
    %429 = vector.broadcast %421 : vector<16x1xf32> to vector<16x128xf32>
    %430 = arith.subf %99, %429 : vector<16x128xf32>
    %cst_183 = arith.constant 9.99999974E-6 : f32
    %431 = vector.broadcast %cst_183 : f32 to vector<16x1xf32>
    %432 = arith.addf %428, %431 : vector<16x1xf32>
    %433 = math.rsqrt %432 : vector<16x1xf32>
    %434 = vector.broadcast %433 : vector<16x1xf32> to vector<16x128xf32>
    %435 = arith.mulf %430, %434 : vector<16x128xf32>
    %436 = vector.broadcast %416 : vector<1x128xf32> to vector<16x128xf32>
    %437 = arith.mulf %435, %436 : vector<16x128xf32>
    %438 = vector.broadcast %417 : vector<1x128xf32> to vector<16x128xf32>
    %439 = arith.addf %437, %438 : vector<16x128xf32>
    %440 = vector.extract_strided_slice %415 {offsets = [2, 0], sizes = [1, 128], strides = [1, 1]} : vector<8x128xf32> to vector<1x128xf32>
    %441 = vector.extract_strided_slice %415 {offsets = [3, 0], sizes = [1, 128], strides = [1, 1]} : vector<8x128xf32> to vector<1x128xf32>
    %cst_184 = arith.constant dense<0.000000e+00> : vector<8xf32>
    %442 = vector.multi_reduction <add>, %413, %cst_184 [1] : vector<8x128xf32> to vector<8xf32>
    %443 = vector.shape_cast %442 : vector<8xf32> to vector<8x1xf32>
    %cst_185 = arith.constant 1.280000e+02 : f32
    %444 = vector.broadcast %cst_185 : f32 to vector<8x1xf32>
    %445 = arith.divf %443, %444 : vector<8x1xf32>
    %446 = vector.broadcast %445 : vector<8x1xf32> to vector<8x128xf32>
    %447 = arith.subf %413, %446 : vector<8x128xf32>
    %448 = arith.mulf %447, %447 : vector<8x128xf32>
    %cst_186 = arith.constant dense<0.000000e+00> : vector<8xf32>
    %449 = vector.multi_reduction <add>, %448, %cst_186 [1] : vector<8x128xf32> to vector<8xf32>
    %450 = vector.shape_cast %449 : vector<8xf32> to vector<8x1xf32>
    %cst_187 = arith.constant 1.280000e+02 : f32
    %451 = vector.broadcast %cst_187 : f32 to vector<8x1xf32>
    %452 = arith.divf %450, %451 : vector<8x1xf32>
    %453 = vector.broadcast %445 : vector<8x1xf32> to vector<8x128xf32>
    %454 = arith.subf %413, %453 : vector<8x128xf32>
    %cst_188 = arith.constant 9.99999974E-6 : f32
    %455 = vector.broadcast %cst_188 : f32 to vector<8x1xf32>
    %456 = arith.addf %452, %455 : vector<8x1xf32>
    %457 = math.rsqrt %456 : vector<8x1xf32>
    %458 = vector.broadcast %457 : vector<8x1xf32> to vector<8x128xf32>
    %459 = arith.mulf %454, %458 : vector<8x128xf32>
    %460 = vector.broadcast %440 : vector<1x128xf32> to vector<8x128xf32>
    %461 = arith.mulf %459, %460 : vector<8x128xf32>
    %462 = vector.broadcast %441 : vector<1x128xf32> to vector<8x128xf32>
    %463 = arith.addf %461, %462 : vector<8x128xf32>
    %464 = arith.truncf %439 : vector<16x128xf32> to vector<16x128xbf16>
    %c0_189 = arith.constant 0 : index
    %c0_190 = arith.constant 0 : index
    %465 = vector.load %arg20[%c0_189, %c0_190] : memref<24x128xbf16, #tpu.memory_space<vmem>>, vector<16x128xbf16>
    tpu.vector_store %arg20[%c0_189, %c0_190], %464 {strides = array<i32>} : memref<24x128xbf16, #tpu.memory_space<vmem>>, vector<16x128xbf16>,
    %466 = arith.truncf %463 : vector<8x128xf32> to vector<8x128xbf16>
    %c16_191 = arith.constant 16 : index
    %c0_192 = arith.constant 0 : index
    %467 = vector.load %arg20[%c16_191, %c0_192] : memref<24x128xbf16, #tpu.memory_space<vmem>>, vector<8x128xbf16>
    tpu.vector_store %arg20[%c16_191, %c0_192], %466 {strides = array<i32>} : memref<24x128xbf16, #tpu.memory_space<vmem>>, vector<8x128xbf16>,
    %c0_193 = arith.constant 0 : index
    %c0_194 = arith.constant 0 : index
    %468 = vector.load %arg20[%c0_193, %c0_194] : memref<24x128xbf16, #tpu.memory_space<vmem>>, vector<24x128xbf16>
    %c2_195 = arith.constant 2 : index
    %c0_196 = arith.constant 0 : index
    %c0_197 = arith.constant 0 : index
    %469 = vector.load %arg11[%c2_195, %c0_196, %c0_197] : memref<4x128x384xbf16, #tpu.memory_space<vmem>>, vector<1x128x384xbf16>
    %470 = vector.shape_cast %469 : vector<1x128x384xbf16> to vector<128x384xbf16>
    %cst_198 = arith.constant dense<0.000000e+00> : vector<24x384xf32>
    %471 = tpu.matmul %468, %470, %cst_198 {dimension_numbers = #tpu.dot_dimension_numbers<[1], [0], [0], [1], [0, 0, 1, 1], [], []>} : vector<24x128xbf16>, vector<128x384xbf16>, vector<24x384xf32> -> vector<24x384xf32>
    %472 = vector.extract_strided_slice %471 {offsets = [16, 0], sizes = [8, 128], strides = [1, 1]} : vector<24x384xf32> to vector<8x128xf32>
    %473 = vector.extract_strided_slice %471 {offsets = [0, 128], sizes = [24, 128], strides = [1, 1]} : vector<24x384xf32> to vector<24x128xf32>
    %474 = vector.extract_strided_slice %471 {offsets = [0, 256], sizes = [24, 128], strides = [1, 1]} : vector<24x384xf32> to vector<24x128xf32>
    %475 = arith.truncf %472 : vector<8x128xf32> to vector<8x128xbf16>
    %476 = arith.truncf %473 : vector<24x128xf32> to vector<24x128xbf16>
    %cst_199 = arith.constant dense<0.000000e+00> : vector<8x24xf32>
    %477 = tpu.matmul %475, %476, %cst_199 {dimension_numbers = #tpu.dot_dimension_numbers<[1], [1], [0], [0], [0, 0, 1, 0], [], []>} : vector<8x128xbf16>, vector<24x128xbf16>, vector<8x24xf32> -> vector<8x24xf32>
    %cst_200 = arith.constant 0.0883883461 : f32
    %478 = vector.broadcast %cst_200 : f32 to vector<8x24xf32>
    %479 = arith.mulf %477, %478 : vector<8x24xf32>
    %cst_201 = arith.constant dense<0xFF800000> : vector<8xf32>
    %480 = vector.multi_reduction <maximumf>, %479, %cst_201 [1] : vector<8x24xf32> to vector<8xf32>
    %481 = vector.shape_cast %480 : vector<8xf32> to vector<8x1xf32>
    %482 = vector.broadcast %481 : vector<8x1xf32> to vector<8x24xf32>
    %483 = arith.subf %479, %482 : vector<8x24xf32>
    %484 = math.exp %483 : vector<8x24xf32>
    %cst_202 = arith.constant dense<0.000000e+00> : vector<8xf32>
    %485 = vector.multi_reduction <add>, %484, %cst_202 [1] : vector<8x24xf32> to vector<8xf32>
    %486 = vector.shape_cast %485 : vector<8xf32> to vector<8x1xf32>
    %487 = vector.broadcast %486 : vector<8x1xf32> to vector<8x24xf32>
    %488 = arith.divf %484, %487 : vector<8x24xf32>
    %489 = arith.truncf %488 : vector<8x24xf32> to vector<8x24xbf16>
    %490 = arith.truncf %474 : vector<24x128xf32> to vector<24x128xbf16>
    %cst_203 = arith.constant dense<0.000000e+00> : vector<8x128xf32>
    %491 = tpu.matmul %489, %490, %cst_203 {dimension_numbers = #tpu.dot_dimension_numbers<[1], [0], [0], [1], [0, 0, 1, 1], [], []>} : vector<8x24xbf16>, vector<24x128xbf16>, vector<8x128xf32> -> vector<8x128xf32>
    %492 = arith.truncf %491 : vector<8x128xf32> to vector<8x128xbf16>
    %c2_204 = arith.constant 2 : index
    %c0_205 = arith.constant 0 : index
    %c0_206 = arith.constant 0 : index
    %493 = vector.load %arg12[%c2_204, %c0_205, %c0_206] : memref<4x128x128xbf16, #tpu.memory_space<vmem>>, vector<1x128x128xbf16>
    %494 = vector.shape_cast %493 : vector<1x128x128xbf16> to vector<128x128xbf16>
    %cst_207 = arith.constant dense<0.000000e+00> : vector<8x128xf32>
    %495 = tpu.matmul %492, %494, %cst_207 {dimension_numbers = #tpu.dot_dimension_numbers<[1], [0], [0], [1], [0, 0, 1, 1], [], []>} : vector<8x128xbf16>, vector<128x128xbf16>, vector<8x128xf32> -> vector<8x128xf32>
    %496 = arith.addf %495, %413 : vector<8x128xf32>
    %497 = vector.extract_strided_slice %415 {offsets = [4, 0], sizes = [1, 128], strides = [1, 1]} : vector<8x128xf32> to vector<1x128xf32>
    %498 = vector.extract_strided_slice %415 {offsets = [5, 0], sizes = [1, 128], strides = [1, 1]} : vector<8x128xf32> to vector<1x128xf32>
    %cst_208 = arith.constant dense<0.000000e+00> : vector<8xf32>
    %499 = vector.multi_reduction <add>, %496, %cst_208 [1] : vector<8x128xf32> to vector<8xf32>
    %500 = vector.shape_cast %499 : vector<8xf32> to vector<8x1xf32>
    %cst_209 = arith.constant 1.280000e+02 : f32
    %501 = vector.broadcast %cst_209 : f32 to vector<8x1xf32>
    %502 = arith.divf %500, %501 : vector<8x1xf32>
    %503 = vector.broadcast %502 : vector<8x1xf32> to vector<8x128xf32>
    %504 = arith.subf %496, %503 : vector<8x128xf32>
    %505 = arith.mulf %504, %504 : vector<8x128xf32>
    %cst_210 = arith.constant dense<0.000000e+00> : vector<8xf32>
    %506 = vector.multi_reduction <add>, %505, %cst_210 [1] : vector<8x128xf32> to vector<8xf32>
    %507 = vector.shape_cast %506 : vector<8xf32> to vector<8x1xf32>
    %cst_211 = arith.constant 1.280000e+02 : f32
    %508 = vector.broadcast %cst_211 : f32 to vector<8x1xf32>
    %509 = arith.divf %507, %508 : vector<8x1xf32>
    %510 = vector.broadcast %502 : vector<8x1xf32> to vector<8x128xf32>
    %511 = arith.subf %496, %510 : vector<8x128xf32>
    %cst_212 = arith.constant 9.99999974E-6 : f32
    %512 = vector.broadcast %cst_212 : f32 to vector<8x1xf32>
    %513 = arith.addf %509, %512 : vector<8x1xf32>
    %514 = math.rsqrt %513 : vector<8x1xf32>
    %515 = vector.broadcast %514 : vector<8x1xf32> to vector<8x128xf32>
    %516 = arith.mulf %511, %515 : vector<8x128xf32>
    %517 = vector.broadcast %497 : vector<1x128xf32> to vector<8x128xf32>
    %518 = arith.mulf %516, %517 : vector<8x128xf32>
    %519 = vector.broadcast %498 : vector<1x128xf32> to vector<8x128xf32>
    %520 = arith.addf %518, %519 : vector<8x128xf32>
    %c2_213 = arith.constant 2 : index
    %c0_214 = arith.constant 0 : index
    %c0_215 = arith.constant 0 : index
    %521 = vector.load %arg13[%c2_213, %c0_214, %c0_215] : memref<4x128x512xbf16, #tpu.memory_space<vmem>>, vector<1x128x512xbf16>
    %522 = vector.shape_cast %521 : vector<1x128x512xbf16> to vector<128x512xbf16>
    %523 = arith.truncf %520 : vector<8x128xf32> to vector<8x128xbf16>
    %cst_216 = arith.constant dense<0.000000e+00> : vector<8x512xf32>
    %524 = tpu.matmul %523, %522, %cst_216 {dimension_numbers = #tpu.dot_dimension_numbers<[1], [0], [0], [1], [0, 0, 1, 1], [], []>} : vector<8x128xbf16>, vector<128x512xbf16>, vector<8x512xf32> -> vector<8x512xf32>
    %cst_217 = arith.constant 5.000000e-01 : f32
    %525 = vector.broadcast %cst_217 : f32 to vector<8x512xf32>
    %526 = arith.mulf %525, %524 : vector<8x512xf32>
    %cst_218 = arith.constant 0.707106769 : f32
    %527 = vector.broadcast %cst_218 : f32 to vector<8x512xf32>
    %528 = arith.mulf %524, %527 : vector<8x512xf32>
    %cst_219 = arith.constant 0.000000e+00 : f32
    %529 = vector.broadcast %cst_219 : f32 to vector<8x512xf32>
    %530 = arith.cmpf olt, %528, %529 : vector<8x512xf32>
    %cst_220 = arith.constant -1.000000e+00 : f32
    %cst_221 = arith.constant 1.000000e+00 : f32
    %531 = vector.broadcast %cst_220 : f32 to vector<8x512xf32>
    %532 = vector.broadcast %cst_221 : f32 to vector<8x512xf32>
    %533 = arith.select %530, %531, %532 : vector<8x512xi1>, vector<8x512xf32>
    %534 = math.absf %528 : vector<8x512xf32>
    %cst_222 = arith.constant 0.327591091 : f32
    %535 = vector.broadcast %cst_222 : f32 to vector<8x512xf32>
    %536 = arith.mulf %535, %534 : vector<8x512xf32>
    %cst_223 = arith.constant 1.000000e+00 : f32
    %537 = vector.broadcast %cst_223 : f32 to vector<8x512xf32>
    %538 = arith.addf %537, %536 : vector<8x512xf32>
    %cst_224 = arith.constant 1.000000e+00 : f32
    %539 = vector.broadcast %cst_224 : f32 to vector<8x512xf32>
    %540 = arith.divf %539, %538 : vector<8x512xf32>
    %cst_225 = arith.constant 1.06140542 : f32
    %541 = vector.broadcast %cst_225 : f32 to vector<8x512xf32>
    %542 = arith.mulf %541, %540 : vector<8x512xf32>
    %cst_226 = arith.constant -1.45315206 : f32
    %543 = vector.broadcast %cst_226 : f32 to vector<8x512xf32>
    %544 = arith.addf %542, %543 : vector<8x512xf32>
    %545 = arith.mulf %544, %540 : vector<8x512xf32>
    %cst_227 = arith.constant 1.42141378 : f32
    %546 = vector.broadcast %cst_227 : f32 to vector<8x512xf32>
    %547 = arith.addf %545, %546 : vector<8x512xf32>
    %548 = arith.mulf %547, %540 : vector<8x512xf32>
    %cst_228 = arith.constant -0.284496725 : f32
    %549 = vector.broadcast %cst_228 : f32 to vector<8x512xf32>
    %550 = arith.addf %548, %549 : vector<8x512xf32>
    %551 = arith.mulf %550, %540 : vector<8x512xf32>
    %cst_229 = arith.constant 0.254829586 : f32
    %552 = vector.broadcast %cst_229 : f32 to vector<8x512xf32>
    %553 = arith.addf %551, %552 : vector<8x512xf32>
    %554 = arith.mulf %553, %540 : vector<8x512xf32>
    %cst_230 = arith.constant 0.000000e+00 : f32
    %555 = vector.broadcast %cst_230 : f32 to vector<8x512xf32>
    %556 = arith.subf %555, %534 : vector<8x512xf32>
    %557 = arith.mulf %556, %534 : vector<8x512xf32>
    %558 = math.exp %557 : vector<8x512xf32>
    %559 = arith.mulf %554, %558 : vector<8x512xf32>
    %cst_231 = arith.constant 1.000000e+00 : f32
    %560 = vector.broadcast %cst_231 : f32 to vector<8x512xf32>
    %561 = arith.subf %560, %559 : vector<8x512xf32>
    %562 = arith.mulf %533, %561 : vector<8x512xf32>
    %cst_232 = arith.constant 1.000000e+00 : f32
    %563 = vector.broadcast %cst_232 : f32 to vector<8x512xf32>
    %564 = arith.addf %563, %562 : vector<8x512xf32>
    %565 = arith.mulf %526, %564 : vector<8x512xf32>
    %c2_233 = arith.constant 2 : index
    %c0_234 = arith.constant 0 : index
    %c0_235 = arith.constant 0 : index
    %566 = vector.load %arg14[%c2_233, %c0_234, %c0_235] : memref<4x512x128xbf16, #tpu.memory_space<vmem>>, vector<1x512x128xbf16>
    %567 = vector.shape_cast %566 : vector<1x512x128xbf16> to vector<512x128xbf16>
    %568 = arith.truncf %565 : vector<8x512xf32> to vector<8x512xbf16>
    %cst_236 = arith.constant dense<0.000000e+00> : vector<8x128xf32>
    %569 = tpu.matmul %568, %567, %cst_236 {dimension_numbers = #tpu.dot_dimension_numbers<[1], [0], [0], [1], [0, 0, 1, 1], [], []>} : vector<8x512xbf16>, vector<512x128xbf16>, vector<8x128xf32> -> vector<8x128xf32>
    %570 = arith.addf %569, %496 : vector<8x128xf32>
    %c3_237 = arith.constant 3 : index
    %c0_238 = arith.constant 0 : index
    %c0_239 = arith.constant 0 : index
    %571 = vector.load %arg10[%c3_237, %c0_238, %c0_239] : memref<4x8x128xf32, #tpu.memory_space<vmem>>, vector<1x8x128xf32>
    %572 = vector.shape_cast %571 : vector<1x8x128xf32> to vector<8x128xf32>
    %573 = vector.extract_strided_slice %572 {offsets = [0, 0], sizes = [1, 128], strides = [1, 1]} : vector<8x128xf32> to vector<1x128xf32>
    %574 = vector.extract_strided_slice %572 {offsets = [1, 0], sizes = [1, 128], strides = [1, 1]} : vector<8x128xf32> to vector<1x128xf32>
    %cst_240 = arith.constant dense<0.000000e+00> : vector<16xf32>
    %575 = vector.multi_reduction <add>, %99, %cst_240 [1] : vector<16x128xf32> to vector<16xf32>
    %576 = vector.shape_cast %575 : vector<16xf32> to vector<16x1xf32>
    %cst_241 = arith.constant 1.280000e+02 : f32
    %577 = vector.broadcast %cst_241 : f32 to vector<16x1xf32>
    %578 = arith.divf %576, %577 : vector<16x1xf32>
    %579 = vector.broadcast %578 : vector<16x1xf32> to vector<16x128xf32>
    %580 = arith.subf %99, %579 : vector<16x128xf32>
    %581 = arith.mulf %580, %580 : vector<16x128xf32>
    %cst_242 = arith.constant dense<0.000000e+00> : vector<16xf32>
    %582 = vector.multi_reduction <add>, %581, %cst_242 [1] : vector<16x128xf32> to vector<16xf32>
    %583 = vector.shape_cast %582 : vector<16xf32> to vector<16x1xf32>
    %cst_243 = arith.constant 1.280000e+02 : f32
    %584 = vector.broadcast %cst_243 : f32 to vector<16x1xf32>
    %585 = arith.divf %583, %584 : vector<16x1xf32>
    %586 = vector.broadcast %578 : vector<16x1xf32> to vector<16x128xf32>
    %587 = arith.subf %99, %586 : vector<16x128xf32>
    %cst_244 = arith.constant 9.99999974E-6 : f32
    %588 = vector.broadcast %cst_244 : f32 to vector<16x1xf32>
    %589 = arith.addf %585, %588 : vector<16x1xf32>
    %590 = math.rsqrt %589 : vector<16x1xf32>
    %591 = vector.broadcast %590 : vector<16x1xf32> to vector<16x128xf32>
    %592 = arith.mulf %587, %591 : vector<16x128xf32>
    %593 = vector.broadcast %573 : vector<1x128xf32> to vector<16x128xf32>
    %594 = arith.mulf %592, %593 : vector<16x128xf32>
    %595 = vector.broadcast %574 : vector<1x128xf32> to vector<16x128xf32>
    %596 = arith.addf %594, %595 : vector<16x128xf32>
    %597 = vector.extract_strided_slice %572 {offsets = [2, 0], sizes = [1, 128], strides = [1, 1]} : vector<8x128xf32> to vector<1x128xf32>
    %598 = vector.extract_strided_slice %572 {offsets = [3, 0], sizes = [1, 128], strides = [1, 1]} : vector<8x128xf32> to vector<1x128xf32>
    %cst_245 = arith.constant dense<0.000000e+00> : vector<8xf32>
    %599 = vector.multi_reduction <add>, %570, %cst_245 [1] : vector<8x128xf32> to vector<8xf32>
    %600 = vector.shape_cast %599 : vector<8xf32> to vector<8x1xf32>
    %cst_246 = arith.constant 1.280000e+02 : f32
    %601 = vector.broadcast %cst_246 : f32 to vector<8x1xf32>
    %602 = arith.divf %600, %601 : vector<8x1xf32>
    %603 = vector.broadcast %602 : vector<8x1xf32> to vector<8x128xf32>
    %604 = arith.subf %570, %603 : vector<8x128xf32>
    %605 = arith.mulf %604, %604 : vector<8x128xf32>
    %cst_247 = arith.constant dense<0.000000e+00> : vector<8xf32>
    %606 = vector.multi_reduction <add>, %605, %cst_247 [1] : vector<8x128xf32> to vector<8xf32>
    %607 = vector.shape_cast %606 : vector<8xf32> to vector<8x1xf32>
    %cst_248 = arith.constant 1.280000e+02 : f32
    %608 = vector.broadcast %cst_248 : f32 to vector<8x1xf32>
    %609 = arith.divf %607, %608 : vector<8x1xf32>
    %610 = vector.broadcast %602 : vector<8x1xf32> to vector<8x128xf32>
    %611 = arith.subf %570, %610 : vector<8x128xf32>
    %cst_249 = arith.constant 9.99999974E-6 : f32
    %612 = vector.broadcast %cst_249 : f32 to vector<8x1xf32>
    %613 = arith.addf %609, %612 : vector<8x1xf32>
    %614 = math.rsqrt %613 : vector<8x1xf32>
    %615 = vector.broadcast %614 : vector<8x1xf32> to vector<8x128xf32>
    %616 = arith.mulf %611, %615 : vector<8x128xf32>
    %617 = vector.broadcast %597 : vector<1x128xf32> to vector<8x128xf32>
    %618 = arith.mulf %616, %617 : vector<8x128xf32>
    %619 = vector.broadcast %598 : vector<1x128xf32> to vector<8x128xf32>
    %620 = arith.addf %618, %619 : vector<8x128xf32>
    %621 = arith.truncf %596 : vector<16x128xf32> to vector<16x128xbf16>
    %c0_250 = arith.constant 0 : index
    %c0_251 = arith.constant 0 : index
    %622 = vector.load %arg20[%c0_250, %c0_251] : memref<24x128xbf16, #tpu.memory_space<vmem>>, vector<16x128xbf16>
    tpu.vector_store %arg20[%c0_250, %c0_251], %621 {strides = array<i32>} : memref<24x128xbf16, #tpu.memory_space<vmem>>, vector<16x128xbf16>,
    %623 = arith.truncf %620 : vector<8x128xf32> to vector<8x128xbf16>
    %c16_252 = arith.constant 16 : index
    %c0_253 = arith.constant 0 : index
    %624 = vector.load %arg20[%c16_252, %c0_253] : memref<24x128xbf16, #tpu.memory_space<vmem>>, vector<8x128xbf16>
    tpu.vector_store %arg20[%c16_252, %c0_253], %623 {strides = array<i32>} : memref<24x128xbf16, #tpu.memory_space<vmem>>, vector<8x128xbf16>,
    %c0_254 = arith.constant 0 : index
    %c0_255 = arith.constant 0 : index
    %625 = vector.load %arg20[%c0_254, %c0_255] : memref<24x128xbf16, #tpu.memory_space<vmem>>, vector<24x128xbf16>
    %c3_256 = arith.constant 3 : index
    %c0_257 = arith.constant 0 : index
    %c0_258 = arith.constant 0 : index
    %626 = vector.load %arg11[%c3_256, %c0_257, %c0_258] : memref<4x128x384xbf16, #tpu.memory_space<vmem>>, vector<1x128x384xbf16>
    %627 = vector.shape_cast %626 : vector<1x128x384xbf16> to vector<128x384xbf16>
    %cst_259 = arith.constant dense<0.000000e+00> : vector<24x384xf32>
    %628 = tpu.matmul %625, %627, %cst_259 {dimension_numbers = #tpu.dot_dimension_numbers<[1], [0], [0], [1], [0, 0, 1, 1], [], []>} : vector<24x128xbf16>, vector<128x384xbf16>, vector<24x384xf32> -> vector<24x384xf32>
    %629 = vector.extract_strided_slice %628 {offsets = [16, 0], sizes = [8, 128], strides = [1, 1]} : vector<24x384xf32> to vector<8x128xf32>
    %630 = vector.extract_strided_slice %628 {offsets = [0, 128], sizes = [24, 128], strides = [1, 1]} : vector<24x384xf32> to vector<24x128xf32>
    %631 = vector.extract_strided_slice %628 {offsets = [0, 256], sizes = [24, 128], strides = [1, 1]} : vector<24x384xf32> to vector<24x128xf32>
    %632 = arith.truncf %629 : vector<8x128xf32> to vector<8x128xbf16>
    %633 = arith.truncf %630 : vector<24x128xf32> to vector<24x128xbf16>
    %cst_260 = arith.constant dense<0.000000e+00> : vector<8x24xf32>
    %634 = tpu.matmul %632, %633, %cst_260 {dimension_numbers = #tpu.dot_dimension_numbers<[1], [1], [0], [0], [0, 0, 1, 0], [], []>} : vector<8x128xbf16>, vector<24x128xbf16>, vector<8x24xf32> -> vector<8x24xf32>
    %cst_261 = arith.constant 0.0883883461 : f32
    %635 = vector.broadcast %cst_261 : f32 to vector<8x24xf32>
    %636 = arith.mulf %634, %635 : vector<8x24xf32>
    %cst_262 = arith.constant dense<0xFF800000> : vector<8xf32>
    %637 = vector.multi_reduction <maximumf>, %636, %cst_262 [1] : vector<8x24xf32> to vector<8xf32>
    %638 = vector.shape_cast %637 : vector<8xf32> to vector<8x1xf32>
    %639 = vector.broadcast %638 : vector<8x1xf32> to vector<8x24xf32>
    %640 = arith.subf %636, %639 : vector<8x24xf32>
    %641 = math.exp %640 : vector<8x24xf32>
    %cst_263 = arith.constant dense<0.000000e+00> : vector<8xf32>
    %642 = vector.multi_reduction <add>, %641, %cst_263 [1] : vector<8x24xf32> to vector<8xf32>
    %643 = vector.shape_cast %642 : vector<8xf32> to vector<8x1xf32>
    %644 = vector.broadcast %643 : vector<8x1xf32> to vector<8x24xf32>
    %645 = arith.divf %641, %644 : vector<8x24xf32>
    %646 = arith.truncf %645 : vector<8x24xf32> to vector<8x24xbf16>
    %647 = arith.truncf %631 : vector<24x128xf32> to vector<24x128xbf16>
    %cst_264 = arith.constant dense<0.000000e+00> : vector<8x128xf32>
    %648 = tpu.matmul %646, %647, %cst_264 {dimension_numbers = #tpu.dot_dimension_numbers<[1], [0], [0], [1], [0, 0, 1, 1], [], []>} : vector<8x24xbf16>, vector<24x128xbf16>, vector<8x128xf32> -> vector<8x128xf32>
    %649 = arith.truncf %648 : vector<8x128xf32> to vector<8x128xbf16>
    %c3_265 = arith.constant 3 : index
    %c0_266 = arith.constant 0 : index
    %c0_267 = arith.constant 0 : index
    %650 = vector.load %arg12[%c3_265, %c0_266, %c0_267] : memref<4x128x128xbf16, #tpu.memory_space<vmem>>, vector<1x128x128xbf16>
    %651 = vector.shape_cast %650 : vector<1x128x128xbf16> to vector<128x128xbf16>
    %cst_268 = arith.constant dense<0.000000e+00> : vector<8x128xf32>
    %652 = tpu.matmul %649, %651, %cst_268 {dimension_numbers = #tpu.dot_dimension_numbers<[1], [0], [0], [1], [0, 0, 1, 1], [], []>} : vector<8x128xbf16>, vector<128x128xbf16>, vector<8x128xf32> -> vector<8x128xf32>
    %653 = arith.addf %652, %570 : vector<8x128xf32>
    %654 = vector.extract_strided_slice %572 {offsets = [4, 0], sizes = [1, 128], strides = [1, 1]} : vector<8x128xf32> to vector<1x128xf32>
    %655 = vector.extract_strided_slice %572 {offsets = [5, 0], sizes = [1, 128], strides = [1, 1]} : vector<8x128xf32> to vector<1x128xf32>
    %cst_269 = arith.constant dense<0.000000e+00> : vector<8xf32>
    %656 = vector.multi_reduction <add>, %653, %cst_269 [1] : vector<8x128xf32> to vector<8xf32>
    %657 = vector.shape_cast %656 : vector<8xf32> to vector<8x1xf32>
    %cst_270 = arith.constant 1.280000e+02 : f32
    %658 = vector.broadcast %cst_270 : f32 to vector<8x1xf32>
    %659 = arith.divf %657, %658 : vector<8x1xf32>
    %660 = vector.broadcast %659 : vector<8x1xf32> to vector<8x128xf32>
    %661 = arith.subf %653, %660 : vector<8x128xf32>
    %662 = arith.mulf %661, %661 : vector<8x128xf32>
    %cst_271 = arith.constant dense<0.000000e+00> : vector<8xf32>
    %663 = vector.multi_reduction <add>, %662, %cst_271 [1] : vector<8x128xf32> to vector<8xf32>
    %664 = vector.shape_cast %663 : vector<8xf32> to vector<8x1xf32>
    %cst_272 = arith.constant 1.280000e+02 : f32
    %665 = vector.broadcast %cst_272 : f32 to vector<8x1xf32>
    %666 = arith.divf %664, %665 : vector<8x1xf32>
    %667 = vector.broadcast %659 : vector<8x1xf32> to vector<8x128xf32>
    %668 = arith.subf %653, %667 : vector<8x128xf32>
    %cst_273 = arith.constant 9.99999974E-6 : f32
    %669 = vector.broadcast %cst_273 : f32 to vector<8x1xf32>
    %670 = arith.addf %666, %669 : vector<8x1xf32>
    %671 = math.rsqrt %670 : vector<8x1xf32>
    %672 = vector.broadcast %671 : vector<8x1xf32> to vector<8x128xf32>
    %673 = arith.mulf %668, %672 : vector<8x128xf32>
    %674 = vector.broadcast %654 : vector<1x128xf32> to vector<8x128xf32>
    %675 = arith.mulf %673, %674 : vector<8x128xf32>
    %676 = vector.broadcast %655 : vector<1x128xf32> to vector<8x128xf32>
    %677 = arith.addf %675, %676 : vector<8x128xf32>
    %c3_274 = arith.constant 3 : index
    %c0_275 = arith.constant 0 : index
    %c0_276 = arith.constant 0 : index
    %678 = vector.load %arg13[%c3_274, %c0_275, %c0_276] : memref<4x128x512xbf16, #tpu.memory_space<vmem>>, vector<1x128x512xbf16>
    %679 = vector.shape_cast %678 : vector<1x128x512xbf16> to vector<128x512xbf16>
    %680 = arith.truncf %677 : vector<8x128xf32> to vector<8x128xbf16>
    %cst_277 = arith.constant dense<0.000000e+00> : vector<8x512xf32>
    %681 = tpu.matmul %680, %679, %cst_277 {dimension_numbers = #tpu.dot_dimension_numbers<[1], [0], [0], [1], [0, 0, 1, 1], [], []>} : vector<8x128xbf16>, vector<128x512xbf16>, vector<8x512xf32> -> vector<8x512xf32>
    %cst_278 = arith.constant 5.000000e-01 : f32
    %682 = vector.broadcast %cst_278 : f32 to vector<8x512xf32>
    %683 = arith.mulf %682, %681 : vector<8x512xf32>
    %cst_279 = arith.constant 0.707106769 : f32
    %684 = vector.broadcast %cst_279 : f32 to vector<8x512xf32>
    %685 = arith.mulf %681, %684 : vector<8x512xf32>
    %cst_280 = arith.constant 0.000000e+00 : f32
    %686 = vector.broadcast %cst_280 : f32 to vector<8x512xf32>
    %687 = arith.cmpf olt, %685, %686 : vector<8x512xf32>
    %cst_281 = arith.constant -1.000000e+00 : f32
    %cst_282 = arith.constant 1.000000e+00 : f32
    %688 = vector.broadcast %cst_281 : f32 to vector<8x512xf32>
    %689 = vector.broadcast %cst_282 : f32 to vector<8x512xf32>
    %690 = arith.select %687, %688, %689 : vector<8x512xi1>, vector<8x512xf32>
    %691 = math.absf %685 : vector<8x512xf32>
    %cst_283 = arith.constant 0.327591091 : f32
    %692 = vector.broadcast %cst_283 : f32 to vector<8x512xf32>
    %693 = arith.mulf %692, %691 : vector<8x512xf32>
    %cst_284 = arith.constant 1.000000e+00 : f32
    %694 = vector.broadcast %cst_284 : f32 to vector<8x512xf32>
    %695 = arith.addf %694, %693 : vector<8x512xf32>
    %cst_285 = arith.constant 1.000000e+00 : f32
    %696 = vector.broadcast %cst_285 : f32 to vector<8x512xf32>
    %697 = arith.divf %696, %695 : vector<8x512xf32>
    %cst_286 = arith.constant 1.06140542 : f32
    %698 = vector.broadcast %cst_286 : f32 to vector<8x512xf32>
    %699 = arith.mulf %698, %697 : vector<8x512xf32>
    %cst_287 = arith.constant -1.45315206 : f32
    %700 = vector.broadcast %cst_287 : f32 to vector<8x512xf32>
    %701 = arith.addf %699, %700 : vector<8x512xf32>
    %702 = arith.mulf %701, %697 : vector<8x512xf32>
    %cst_288 = arith.constant 1.42141378 : f32
    %703 = vector.broadcast %cst_288 : f32 to vector<8x512xf32>
    %704 = arith.addf %702, %703 : vector<8x512xf32>
    %705 = arith.mulf %704, %697 : vector<8x512xf32>
    %cst_289 = arith.constant -0.284496725 : f32
    %706 = vector.broadcast %cst_289 : f32 to vector<8x512xf32>
    %707 = arith.addf %705, %706 : vector<8x512xf32>
    %708 = arith.mulf %707, %697 : vector<8x512xf32>
    %cst_290 = arith.constant 0.254829586 : f32
    %709 = vector.broadcast %cst_290 : f32 to vector<8x512xf32>
    %710 = arith.addf %708, %709 : vector<8x512xf32>
    %711 = arith.mulf %710, %697 : vector<8x512xf32>
    %cst_291 = arith.constant 0.000000e+00 : f32
    %712 = vector.broadcast %cst_291 : f32 to vector<8x512xf32>
    %713 = arith.subf %712, %691 : vector<8x512xf32>
    %714 = arith.mulf %713, %691 : vector<8x512xf32>
    %715 = math.exp %714 : vector<8x512xf32>
    %716 = arith.mulf %711, %715 : vector<8x512xf32>
    %cst_292 = arith.constant 1.000000e+00 : f32
    %717 = vector.broadcast %cst_292 : f32 to vector<8x512xf32>
    %718 = arith.subf %717, %716 : vector<8x512xf32>
    %719 = arith.mulf %690, %718 : vector<8x512xf32>
    %cst_293 = arith.constant 1.000000e+00 : f32
    %720 = vector.broadcast %cst_293 : f32 to vector<8x512xf32>
    %721 = arith.addf %720, %719 : vector<8x512xf32>
    %722 = arith.mulf %683, %721 : vector<8x512xf32>
    %c3_294 = arith.constant 3 : index
    %c0_295 = arith.constant 0 : index
    %c0_296 = arith.constant 0 : index
    %723 = vector.load %arg14[%c3_294, %c0_295, %c0_296] : memref<4x512x128xbf16, #tpu.memory_space<vmem>>, vector<1x512x128xbf16>
    %724 = vector.shape_cast %723 : vector<1x512x128xbf16> to vector<512x128xbf16>
    %725 = arith.truncf %722 : vector<8x512xf32> to vector<8x512xbf16>
    %cst_297 = arith.constant dense<0.000000e+00> : vector<8x128xf32>
    %726 = tpu.matmul %725, %724, %cst_297 {dimension_numbers = #tpu.dot_dimension_numbers<[1], [0], [0], [1], [0, 0, 1, 1], [], []>} : vector<8x512xbf16>, vector<512x128xbf16>, vector<8x128xf32> -> vector<8x128xf32>
    %727 = arith.addf %726, %653 : vector<8x128xf32>
    %c0_298 = arith.constant 0 : index
    %c0_299 = arith.constant 0 : index
    %728 = vector.load %arg15[%c0_298, %c0_299] : memref<128x128xbf16, #tpu.memory_space<vmem>>, vector<128x128xbf16>
    %729 = arith.truncf %727 : vector<8x128xf32> to vector<8x128xbf16>
    %cst_300 = arith.constant dense<0.000000e+00> : vector<8x128xf32>
    %730 = tpu.matmul %729, %728, %cst_300 {dimension_numbers = #tpu.dot_dimension_numbers<[1], [0], [0], [1], [0, 0, 1, 1], [], []>} : vector<8x128xbf16>, vector<128x128xbf16>, vector<8x128xf32> -> vector<8x128xf32>
    %c0_301 = arith.constant 0 : index
    %c0_302 = arith.constant 0 : index
    %731 = vector.load %arg16[%c0_301, %c0_302] : memref<1x128xf32, #tpu.memory_space<vmem>>, vector<1x128xf32>
    %732 = vector.broadcast %731 : vector<1x128xf32> to vector<8x128xf32>
    %733 = arith.addf %730, %732 : vector<8x128xf32>
    %c0_303 = arith.constant 0 : index
    %c0_304 = arith.constant 0 : index
    %734 = vector.load %arg17[%c0_303, %c0_304] : memref<2x128xf32, #tpu.memory_space<vmem>>, vector<1x128xf32>
    %c1_305 = arith.constant 1 : index
    %c0_306 = arith.constant 0 : index
    %735 = vector.load %arg17[%c1_305, %c0_306] : memref<2x128xf32, #tpu.memory_space<vmem>>, vector<1x128xf32>
    %cst_307 = arith.constant dense<0.000000e+00> : vector<8xf32>
    %736 = vector.multi_reduction <add>, %733, %cst_307 [1] : vector<8x128xf32> to vector<8xf32>
    %737 = vector.shape_cast %736 : vector<8xf32> to vector<8x1xf32>
    %cst_308 = arith.constant 1.280000e+02 : f32
    %738 = vector.broadcast %cst_308 : f32 to vector<8x1xf32>
    %739 = arith.divf %737, %738 : vector<8x1xf32>
    %740 = vector.broadcast %739 : vector<8x1xf32> to vector<8x128xf32>
    %741 = arith.subf %733, %740 : vector<8x128xf32>
    %742 = arith.mulf %741, %741 : vector<8x128xf32>
    %cst_309 = arith.constant dense<0.000000e+00> : vector<8xf32>
    %743 = vector.multi_reduction <add>, %742, %cst_309 [1] : vector<8x128xf32> to vector<8xf32>
    %744 = vector.shape_cast %743 : vector<8xf32> to vector<8x1xf32>
    %cst_310 = arith.constant 1.280000e+02 : f32
    %745 = vector.broadcast %cst_310 : f32 to vector<8x1xf32>
    %746 = arith.divf %744, %745 : vector<8x1xf32>
    %747 = vector.broadcast %739 : vector<8x1xf32> to vector<8x128xf32>
    %748 = arith.subf %733, %747 : vector<8x128xf32>
    %cst_311 = arith.constant 9.99999974E-6 : f32
    %749 = vector.broadcast %cst_311 : f32 to vector<8x1xf32>
    %750 = arith.addf %746, %749 : vector<8x1xf32>
    %751 = math.rsqrt %750 : vector<8x1xf32>
    %752 = vector.broadcast %751 : vector<8x1xf32> to vector<8x128xf32>
    %753 = arith.mulf %748, %752 : vector<8x128xf32>
    %754 = vector.broadcast %734 : vector<1x128xf32> to vector<8x128xf32>
    %755 = arith.mulf %753, %754 : vector<8x128xf32>
    %756 = vector.broadcast %735 : vector<1x128xf32> to vector<8x128xf32>
    %757 = arith.addf %755, %756 : vector<8x128xf32>
    %758 = arith.addf %92, %757 : vector<8x128xf32>
    %c0_312 = arith.constant 0 : index
    %c0_313 = arith.constant 0 : index
    %c0_314 = arith.constant 0 : index
    %759 = vector.load %arg18[%c0_312, %c0_313, %c0_314] : memref<1x8x128xf32, #tpu.memory_space<vmem>>, vector<1x8x128xf32>
    %760 = vector.shape_cast %759 : vector<1x8x128xf32> to vector<8x128xf32>
    %761 = vector.shape_cast %758 : vector<8x128xf32> to vector<1x8x128xf32>
    tpu.vector_store %arg18[%c0_312, %c0_313, %c0_314], %761 {strides = array<i32>} : memref<1x8x128xf32, #tpu.memory_space<vmem>>, vector<1x8x128xf32>,
    return
  }
  func.func @transform_0(%arg0: i32) -> (i32, i32, i32) {
    %c0_i32 = arith.constant 0 : i32
    %c0_i32_0 = arith.constant 0 : i32
    %c0_i32_1 = arith.constant 0 : i32
    return %arg0, %c0_i32, %c0_i32_0 : i32, i32, i32
  }
  func.func @transform_1(%arg0: i32) -> (i32, i32) {
    %c0_i32 = arith.constant 0 : i32
    %c0_i32_0 = arith.constant 0 : i32
    %c0_i32_1 = arith.constant 0 : i32
    return %c0_i32, %c0_i32_0 : i32, i32
  }
  func.func @transform_2(%arg0: i32) -> (i32, i32) {
    %c0_i32 = arith.constant 0 : i32
    %c0_i32_0 = arith.constant 0 : i32
    %c0_i32_1 = arith.constant 0 : i32
    return %c0_i32, %c0_i32_0 : i32, i32
  }
  func.func @transform_3(%arg0: i32) -> (i32, i32) {
    %c0_i32 = arith.constant 0 : i32
    %c0_i32_0 = arith.constant 0 : i32
    %c0_i32_1 = arith.constant 0 : i32
    return %c0_i32, %c0_i32_0 : i32, i32
  }
  func.func @transform_4(%arg0: i32) -> (i32, i32) {
    %c0_i32 = arith.constant 0 : i32
    %c0_i32_0 = arith.constant 0 : i32
    %c0_i32_1 = arith.constant 0 : i32
    return %c0_i32, %c0_i32_0 : i32, i32
  }
  func.func @transform_5(%arg0: i32) -> (i32, i32, i32) {
    %c0_i32 = arith.constant 0 : i32
    %c0_i32_0 = arith.constant 0 : i32
    %c0_i32_1 = arith.constant 0 : i32
    return %arg0, %c0_i32, %c0_i32_0 : i32, i32, i32
  }
  func.func @transform_6(%arg0: i32) -> (i32, i32) {
    %c0_i32 = arith.constant 0 : i32
    %c0_i32_0 = arith.constant 0 : i32
    %c0_i32_1 = arith.constant 0 : i32
    return %c0_i32, %c0_i32_0 : i32, i32
  }
  func.func @transform_7(%arg0: i32) -> (i32, i32) {
    %c0_i32 = arith.constant 0 : i32
    %c0_i32_0 = arith.constant 0 : i32
    %c0_i32_1 = arith.constant 0 : i32
    return %c0_i32, %c0_i32_0 : i32, i32
  }
  func.func @transform_8(%arg0: i32) -> (i32, i32) {
    %c0_i32 = arith.constant 0 : i32
    %c0_i32_0 = arith.constant 0 : i32
    %c0_i32_1 = arith.constant 0 : i32
    return %c0_i32, %c0_i32_0 : i32, i32
  }
  func.func @transform_9(%arg0: i32) -> (i32, i32, i32) {
    %c0_i32 = arith.constant 0 : i32
    %c0_i32_0 = arith.constant 0 : i32
    %c0_i32_1 = arith.constant 0 : i32
    %c0_i32_2 = arith.constant 0 : i32
    return %c0_i32, %c0_i32_0, %c0_i32_1 : i32, i32, i32
  }
  func.func @transform_10(%arg0: i32) -> (i32, i32, i32) {
    %c0_i32 = arith.constant 0 : i32
    %c0_i32_0 = arith.constant 0 : i32
    %c0_i32_1 = arith.constant 0 : i32
    %c0_i32_2 = arith.constant 0 : i32
    return %c0_i32, %c0_i32_0, %c0_i32_1 : i32, i32, i32
  }
  func.func @transform_11(%arg0: i32) -> (i32, i32, i32) {
    %c0_i32 = arith.constant 0 : i32
    %c0_i32_0 = arith.constant 0 : i32
    %c0_i32_1 = arith.constant 0 : i32
    %c0_i32_2 = arith.constant 0 : i32
    return %c0_i32, %c0_i32_0, %c0_i32_1 : i32, i32, i32
  }
  func.func @transform_12(%arg0: i32) -> (i32, i32, i32) {
    %c0_i32 = arith.constant 0 : i32
    %c0_i32_0 = arith.constant 0 : i32
    %c0_i32_1 = arith.constant 0 : i32
    %c0_i32_2 = arith.constant 0 : i32
    return %c0_i32, %c0_i32_0, %c0_i32_1 : i32, i32, i32
  }
  func.func @transform_13(%arg0: i32) -> (i32, i32, i32) {
    %c0_i32 = arith.constant 0 : i32
    %c0_i32_0 = arith.constant 0 : i32
    %c0_i32_1 = arith.constant 0 : i32
    %c0_i32_2 = arith.constant 0 : i32
    return %c0_i32, %c0_i32_0, %c0_i32_1 : i32, i32, i32
  }
  func.func @transform_14(%arg0: i32) -> (i32, i32) {
    %c0_i32 = arith.constant 0 : i32
    %c0_i32_0 = arith.constant 0 : i32
    %c0_i32_1 = arith.constant 0 : i32
    return %c0_i32, %c0_i32_0 : i32, i32
  }
  func.func @transform_15(%arg0: i32) -> (i32, i32) {
    %c0_i32 = arith.constant 0 : i32
    %c0_i32_0 = arith.constant 0 : i32
    %c0_i32_1 = arith.constant 0 : i32
    return %c0_i32, %c0_i32_0 : i32, i32
  }
  func.func @transform_16(%arg0: i32) -> (i32, i32) {
    %c0_i32 = arith.constant 0 : i32
    %c0_i32_0 = arith.constant 0 : i32
    %c0_i32_1 = arith.constant 0 : i32
    return %c0_i32, %c0_i32_0 : i32, i32
  }
  func.func @transform_17(%arg0: i32) -> (i32, i32, i32) {
    %c0_i32 = arith.constant 0 : i32
    %c0_i32_0 = arith.constant 0 : i32
    %c0_i32_1 = arith.constant 0 : i32
    return %arg0, %c0_i32, %c0_i32_0 : i32, i32, i32
  }
}

</mosaic_0001>

<bundles_post_ra>
// kernel: qformer_perceiver_forward.1
= control target key start
LH: loop header
LB: loop body
LE: loop exit
PB: predicated region body
PF: predicated region fallthrough
CT: control target
= control target key end

     0   :  { %s10859_s0 = inlined_call_operand.vmem [shape: bf16[2,1,64], index: 0, kind: input, shape index: {}]   ;;  %s10860_s1 = inlined_call_operand.vmem [shape: bf16[64,256], index: 1, kind: input, shape index: {}]   ;;  %s10861_s2 = inlined_call_operand.hbm [shape: f32[1,256], index: 2, kind: input, shape index: {}]   ;;  %s10862_s3 = inlined_call_operand.hbm [shape: bf16[256,1024], index: 3, kind: input, shape index: {}]   ;;  %s10863_s4 = inlined_call_operand.vmem [shape: f32[1,1024], index: 4, kind: input, shape index: {}]   ;;  %s10864_s5 = inlined_call_operand.vmem [shape: bf16[2,16,64], index: 5, kind: input, shape index: {}]   ;;  %s10865_s6 = inlined_call_operand.vmem [shape: bf16[64,128], index: 6, kind: input, shape index: {}]   ;;  %s10866_s7 = inlined_call_operand.hbm [shape: f32[1,128], index: 7, kind: input, shape index: {}]   ;;  %s10867_s8 = inlined_call_operand.hbm [shape: f32[2,128], index: 8, kind: input, shape index: {}]   ;;  %s10868_s9 = inlined_call_operand.hbm [shape: f32[4,8,128], index: 9, kind: input, shape index: {}]   ;;  %s10869_s10 = inlined_call_operand.hbm [shape: bf16[4,128,384], index: 10, kind: input, shape index: {}]   ;;  %s10870_s11 = inlined_call_operand.hbm [shape: bf16[4,128,128], index: 11, kind: input, shape index: {}]   ;;  %s10871_s12 = inlined_call_operand.hbm [shape: bf16[4,128,512], index: 12, kind: input, shape index: {}]   ;;  %s10872_s13 = inlined_call_operand.hbm [shape: bf16[4,512,128], index: 13, kind: input, shape index: {}]   ;;  %s10873_s14 = inlined_call_operand.hbm [shape: bf16[128,128], index: 14, kind: input, shape index: {}]   ;;  %s10874_s15 = inlined_call_operand.hbm [shape: f32[1,128], index: 15, kind: input, shape index: {}]   ;;  %s10875_s16 = inlined_call_operand.hbm [shape: f32[2,128], index: 16, kind: input, shape index: {}]   ;;  %s10876_s17 = inlined_call_operand.hbm [shape: f32[2,8,128], index: 17, kind: output, shape index: {}]  }
   0x1   :  { %10896 = sst [smem:[#allocation42_spill]] %s10859_s0 }
   0x2   :  { %10897 = sst [smem:[#allocation43_spill]] %s10860_s1 }
   0x3   :  { %10898 = sst [smem:[#allocation44_spill]] %s10863_s4 }
   0x4   :  { %10899 = sst [smem:[#allocation45_spill]] %s10865_s6 }
   0x5   :  { %10900 = sst [smem:[#allocation46_spill]] %s10876_s17 }
   0x6   :  { %22 = vsyncpa [#allocation6], 0 }
   0x7   :  { %23 = vsyncpa [#allocation9], 0 }
   0x8   :  { %24 = vsyncpa [#allocation12], 0 }
   0x9   :  { %25 = vsyncpa [#allocation15], 0 }
   0xa   :  { %26 = vsyncpa [#allocation18], 0 }
   0xb   :  { %27 = vsyncpa [#allocation21], 0 }
   0xc   :  { %28 = vsyncpa [#allocation24], 0 }
   0xd   :  { %29 = vsyncpa [#allocation7], 0 }
   0xe   :  { %31 = vsyncpa [#allocation7 + $0x1], 0  ;;  %s9955_s24 = smov 0   ;;  %s9957_s25 = smov 0  }
   0xf   :  { %s9959_s26 = smov 0   ;;  %s9961_s27 = smov 0  }
  0x10 LB: > { %10901 = sst [smem:[#allocation34_spill]] %s9824_s24  ;;  %s9976_s28 = sadd.s32 4294967295, %s9836_s27   ;;  %s9836_s27 = sphi %s9961_s27, %s10944_s27   ;;  %s9832_s26 = sphi %s9959_s26, %s10947_s26   ;;  %s9828_s25 = sphi %s9957_s25, %s10946_s25   ;;  %s9824_s24 = sphi %s9955_s24, %s10945_s24  }
  0x11   : > { %10902 = sst [smem:[#allocation35_spill]] %s9828_s25  ;;  %s7437_s29 = sadd.s32 4294967294, %s9836_s27  }
  0x12   : > { %10903 = sst [smem:[#allocation36_spill]] %s9832_s26  ;;  %s9980_s0 = sadd.s32 1, %s9836_s27  }
  0x13   : > { %10904 = sst [smem:[#allocation37_spill]] %s9836_s27  ;;  %s411_s30 = sadd.s32 1, %s9832_s26 }
  0x14   : > { %10905 = sst [smem:[#allocation38_spill]] %s9980_s0  ;;  %s408_s18 = ssub.s32 %s9836_s27, %s9980_s0 }
  0x15   : > { %p421_p0 = scmp.ne.s32.totalorder %s9832_s26, %s9828_s25  ;;  %p409_p1 = scmp.eq.s32.totalorder %s408_s18, 0 }
  0x16   : > { %p422_p2 = scmp.eq.s32.totalorder %s9976_s28, 1  ;;  %p427_p3 = scmp.ne.s32.totalorder %s9828_s25, %s9824_s24 }
  0x17   : > { %p428_p4 = scmp.eq.s32.totalorder %s7437_s29, 1  ;;  %p7438_p7 = scmp.ge.s32.totalorder %s9836_s27, 1 }
  0x18   : > { %s9991_s19 = scalar_select %p409_p1, %s9832_s26, %s411_s30  }
  0x19   : > { %p9993_p5 = por %p422_p2, %p421_p0  ;;  %p9997_p6 = por %p428_p4, %p427_p3 }
  0x1a   : > { %10906 = sst [smem:[#allocation39_spill]] %s9991_s19  ;;  %p435_p8 = scmp.lt.s32.totalorder %s9836_s27, 3 }
  0x1b   : > { %s10907_s1 = scalar_select %p9993_p5, 1, 0 }
  0x1c   : > { %s10909_s20 = scalar_select %p9997_p6, 1, 0 }
  0x1d   : > { %10908 = sst [smem:[#allocation40_spill]] %s10907_s1  ;;  %p10885_p9 = scmp.eq.s32.totalorder %s9976_s28, 0 }
  0x1e   : > { %10910 = sst [smem:[#allocation41_spill]] %s10909_s20  ;;  %p10004_p10 = pnand %p7438_p7, %p435_p8 }
  0x1f   : > { %s9838_s22 = smov [#allocation8]   ;;  %s9839_s30 = smov [#allocation11]  }
  0x20   : > { %s10911_s21 = scalar_select %p10004_p10, 1, 0 }
  0x21   : > { %s461_s23 = sshll.u32 %s9838_s22, 4  ;;  %p8658_p11 = pneg %p10004_p10  ;;  %s10010_s23 = int_to_ptr.vmem [resolvable:$true] %s461_s23 }
  0x22   : > { %s492_s18 = sshll.u32 %s9839_s30, 4  ;;  %s9840_s19 = smov [#allocation14]   ;;  %s10018_s18 = int_to_ptr.vmem [resolvable:$true] %s492_s18 }
  0x23   : > { %p10014_p12 = pnand %p10885_p9, %p8658_p11  ;;  %s10020_s26 = sshll.u32 %s9840_s19, 4  ;;  %s516_s26 = int_to_ptr.vmem [resolvable:$true] %s10020_s26 }
  0x24   : > { %s9410_s22 = scalar_lea.hbm %s10862_s3, 16384 }
  0x25   : > { %p9411_p13 = scmp.ne.s32.totalorder %s10862_s3, %s9410_s22  ;;  %p10030_p0 = pneg %p10014_p12 }
  0x26   : > { %p9417_p3 = scmp.lt.u32.totalorder %s9410_s22, %s10862_s3 }
  0x27   : > { %p9413_p1 = pnand %p10030_p0, %p9411_p13 }
  0x29   : > { %p9414_p2 = pneg %p9413_p1 }
  0x2b   : > { %p9419_p4 = pnand %p9417_p3, %p9414_p2 }
  0x2d   : > { %9422 = shalt.err (!%p9419_p4)
}
  0x2e   : > { %s9423_s24 = scalar_lea.vmem %s10010_s23, 16384  ;;  %p9431_p9 = scmp.lt.s32.totalorder %s10010_s23, %s10010_s23 }
  0x2f   : > { %p9424_p7 = scmp.ne.s32.totalorder %s10010_s23, %s9423_s24  ;;  %p9432_p6 = scmp.lt.s32.totalorder %s9423_s24, %s9423_s24 }
  0x31   : > { %p9426_p8 = pnand %p9424_p7, %p10030_p0  ;;  %p9433_p13 = por %p9432_p6, %p9431_p9 }
  0x33   : > { %p9427_p11 = pneg %p9426_p8 }
  0x35   : > { %p9434_p1 = pnand %p9433_p13, %p9427_p11 }
  0x37   : > { %9437 = shalt.err (!%p9434_p1)
}
  0x38   : > { %s9841_s27 = smov 512   ;;  %s9842_s0 = smov 32  }
  0x39   : > { %8664 = dma.hbm_to_vmem [thread:$0]  (!%p10014_p12), %s10862_s3, 16384, %s10010_s23, [#allocation9], %s9841_s27, %s9841_s27, %s9842_s0  }
  0x3a   : > { %s9438_s1 = scalar_lea.hbm %s10867_s8, 32 }
  0x3b   : > { %p9439_p6 = scmp.ne.s32.totalorder %s10867_s8, %s9438_s1  ;;  %p9445_p3 = scmp.lt.u32.totalorder %s9438_s1, %s10867_s8 }
  0x3d   : > { %p9441_p9 = pnand %p9439_p6, %p10030_p0 }
  0x3f   : > { %p9442_p2 = pneg %p9441_p9 }
  0x41   : > { %p9447_p4 = pnand %p9445_p3, %p9442_p2 }
  0x43   : > { %9450 = shalt.err (!%p9447_p4)
}
  0x44   : > { %s9451_s23 = scalar_lea.vmem %s10018_s18, 32  ;;  %p9459_p13 = scmp.lt.s32.totalorder %s10018_s18, %s10018_s18 }
  0x45   : > { %p9452_p7 = scmp.ne.s32.totalorder %s10018_s18, %s9451_s23  ;;  %p9460_p1 = scmp.lt.s32.totalorder %s9451_s23, %s9451_s23 }
  0x47   : > { %p9454_p8 = pnand %p9452_p7, %p10030_p0  ;;  %p9461_p6 = por %p9460_p1, %p9459_p13 }
  0x49   : > { %p9455_p11 = pneg %p9454_p8 }
  0x4b   : > { %p9462_p9 = pnand %p9461_p6, %p9455_p11 }
  0x4d   : > { %9465 = shalt.err (!%p9462_p9)
}
  0x4e   : > { %8670 = dma.hbm_to_vmem [thread:$0]  (!%p10014_p12), %s10867_s8, 32, %s10018_s18, [#allocation12]  }
  0x4f   : > { %s9466_s27 = scalar_lea.hbm %s10869_s10, 12288 }
  0x50   : > { %p9467_p2 = scmp.ne.s32.totalorder %s10869_s10, %s9466_s27  ;;  %p9473_p7 = scmp.lt.u32.totalorder %s9466_s27, %s10869_s10 }
  0x52   : > { %p9469_p3 = pnand %p9467_p2, %p10030_p0 }
  0x54   : > { %p9470_p4 = pneg %p9469_p3 }
  0x56   : > { %p9475_p8 = pnand %p9473_p7, %p9470_p4 }
  0x58   : > { %9478 = shalt.err (!%p9475_p8)
}
  0x59   : > { %s9479_s19 = scalar_lea.vmem %s516_s26, 12288  ;;  %p9487_p6 = scmp.lt.s32.totalorder %s516_s26, %s516_s26 }
  0x5a   : > { %p9480_p11 = scmp.ne.s32.totalorder %s516_s26, %s9479_s19  ;;  %p9488_p9 = scmp.lt.s32.totalorder %s9479_s19, %s9479_s19 }
  0x5c   : > { %p9482_p13 = pnand %p9480_p11, %p10030_p0  ;;  %p9489_p5 = por %p9488_p9, %p9487_p6 }
  0x5e   : > { %p9483_p1 = pneg %p9482_p13 }
  0x60   : > { %p9490_p10 = pnand %p9489_p5, %p9483_p1 }
  0x62   : > { %9493 = shalt.err (!%p9490_p10)
}
  0x63   : > { %s9843_s18 = smov 192   ;;  %s9844_s24 = smov 12  }
  0x64   : > { %8676 = dma.hbm_to_vmem [thread:$0]  (!%p10014_p12), %s10869_s10, 12288, %s516_s26, [#allocation15], %s9843_s18, %s9843_s18, %s9844_s24  }
  0x65   : > { %s9845_s6 = smov [#allocation17]   ;;  %s9494_s0 = scalar_lea.hbm %s10871_s12, 16384 }
  0x66   : > { %s541_s25 = sshll.u32 %s9845_s6, 4  ;;  %p9495_p5 = scmp.ne.s32.totalorder %s10871_s12, %s9494_s0  ;;  %s542_s25 = int_to_ptr.vmem [resolvable:$true] %s541_s25 }
  0x67   : > { %p9501_p3 = scmp.lt.u32.totalorder %s9494_s0, %s10871_s12 }
  0x68   : > { %p9497_p10 = pnand %p9495_p5, %p10030_p0 }
  0x6a   : > { %p9498_p2 = pneg %p9497_p10 }
  0x6c   : > { %p9503_p4 = pnand %p9501_p3, %p9498_p2 }
  0x6e   : > { %9506 = shalt.err (!%p9503_p4)
}
  0x6f   : > { %s9507_s26 = scalar_lea.vmem %s542_s25, 16384  ;;  %p9515_p13 = scmp.lt.s32.totalorder %s542_s25, %s542_s25 }
  0x70   : > { %p9508_p7 = scmp.ne.s32.totalorder %s542_s25, %s9507_s26  ;;  %p9516_p1 = scmp.lt.s32.totalorder %s9507_s26, %s9507_s26 }
  0x72   : > { %p9510_p8 = pnand %p9508_p7, %p10030_p0  ;;  %p9517_p6 = por %p9516_p1, %p9515_p13 }
  0x74   : > { %p9511_p11 = pneg %p9510_p8 }
  0x76   : > { %p9518_p9 = pnand %p9517_p6, %p9511_p11 }
  0x78   : > { %9521 = shalt.err (!%p9518_p9)
}
  0x79   : > { %s9846_s18 = smov 256   ;;  %s9847_s24 = smov 16  }
  0x7a   : > { %8682 = dma.hbm_to_vmem [thread:$0]  (!%p10014_p12), %s10871_s12, 16384, %s542_s25, [#allocation18], %s9846_s18, %s9846_s18, %s9847_s24  }
  0x7b   : > { %s9848_s6 = smov [#allocation20]   ;;  %s9849_s27 = smov [#allocation5]  }
  0x7c   : > { %s567_s1 = sshll.u32 %s9848_s6, 4  ;;  %s451_s0 = sshll.u32 %s9849_s27, 4  ;;  %s568_s1 = int_to_ptr.vmem [resolvable:$true] %s567_s1  ;;  %s10111_s0 = int_to_ptr.vmem [resolvable:$true] %s451_s0 }
  0x7d   : > { %s9522_s30 = scalar_lea.hbm %s10873_s14, 1024 }
  0x7e   : > { %p9523_p5 = scmp.ne.s32.totalorder %s10873_s14, %s9522_s30  ;;  %p9529_p3 = scmp.lt.u32.totalorder %s9522_s30, %s10873_s14 }
  0x80   : > { %p9525_p10 = pnand %p9523_p5, %p10030_p0 }
  0x82   : > { %p9526_p2 = pneg %p9525_p10 }
  0x84   : > { %p9531_p4 = pnand %p9529_p3, %p9526_p2 }
  0x86   : > { %9534 = shalt.err (!%p9531_p4)
}
  0x87   : > { %s9535_s18 = scalar_lea.vmem %s568_s1, 1024  ;;  %p9543_p13 = scmp.lt.s32.totalorder %s568_s1, %s568_s1 }
  0x88   : > { %p9536_p7 = scmp.ne.s32.totalorder %s568_s1, %s9535_s18  ;;  %p9544_p1 = scmp.lt.s32.totalorder %s9535_s18, %s9535_s18 }
  0x8a   : > { %p9538_p8 = pnand %p9536_p7, %p10030_p0  ;;  %p9545_p6 = por %p9544_p1, %p9543_p13 }
  0x8c   : > { %p9539_p11 = pneg %p9538_p8 }
  0x8e   : > { %p9546_p9 = pnand %p9545_p6, %p9539_p11 }
  0x90   : > { %9549 = shalt.err (!%p9546_p9)
}
  0x91   : > { %s10892_s24 = smov 64   ;;  %s10894_s4 = smov 4  }
  0x92   : > { %8688 = dma.hbm_to_vmem [thread:$0]  (!%p10014_p12), %s10873_s14, 1024, %s568_s1, [#allocation21], %s10892_s24, %s10892_s24, %s10894_s4  }
  0x93   : > { %s9550_s30 = scalar_lea.hbm %s10861_s2, 32 }
  0x94   : > { %p9551_p5 = scmp.ne.s32.totalorder %s10861_s2, %s9550_s30  ;;  %p9557_p3 = scmp.lt.u32.totalorder %s9550_s30, %s10861_s2 }
  0x96   : > { %p9553_p10 = pnand %p9551_p5, %p10030_p0 }
  0x98   : > { %p9554_p2 = pneg %p9553_p10 }
  0x9a   : > { %p9559_p4 = pnand %p9557_p3, %p9554_p2 }
  0x9c   : > { %9562 = shalt.err (!%p9559_p4)
}
  0x9d   : > { %s9563_s1 = scalar_lea.vmem %s10111_s0, 32  ;;  %p9571_p13 = scmp.lt.s32.totalorder %s10111_s0, %s10111_s0 }
  0x9e   : > { %p9564_p7 = scmp.ne.s32.totalorder %s10111_s0, %s9563_s1  ;;  %p9572_p1 = scmp.lt.s32.totalorder %s9563_s1, %s9563_s1 }
  0xa0   : > { %p9566_p8 = pnand %p9564_p7, %p10030_p0  ;;  %p9573_p6 = por %p9572_p1, %p9571_p13 }
  0xa2   : > { %p9567_p11 = pneg %p9566_p8 }
  0xa4   : > { %p9574_p9 = pnand %p9573_p6, %p9567_p11 }
  0xa6   : > { %9577 = shalt.err (!%p9574_p9)
}
  0xa7   : > { %8661 = dma.hbm_to_vmem [thread:$0]  (!%p10014_p12), %s10861_s2, 32, %s10111_s0, [#allocation6]  }
  0xa8   : > { %s9852_s27 = smov [#allocation10]   ;;  %s9853_s22 = smov [#allocation13]  }
  0xa9   : > { %s481_s20 = sshll.u32 %s9852_s27, 4  ;;  %s502_s30 = sshll.u32 %s9853_s22, 4  ;;  %s482_s20 = int_to_ptr.vmem [resolvable:$true] %s481_s20  ;;  %s10157_s30 = int_to_ptr.vmem [resolvable:$true] %s502_s30 }
  0xaa   : > { %s9578_s23 = scalar_lea.hbm %s10866_s7, 16 }
  0xab   : > { %p9579_p5 = scmp.ne.s32.totalorder %s10866_s7, %s9578_s23  ;;  %p9585_p3 = scmp.lt.u32.totalorder %s9578_s23, %s10866_s7 }
  0xad   : > { %p9581_p10 = pnand %p9579_p5, %p10030_p0 }
  0xaf   : > { %p9582_p2 = pneg %p9581_p10 }
  0xb1   : > { %p9587_p4 = pnand %p9585_p3, %p9582_p2 }
  0xb3   : > { %9590 = shalt.err (!%p9587_p4)
}
  0xb4   : > { %s9591_s6 = scalar_lea.vmem %s482_s20, 16  ;;  %s9598_s27 = scalar_lea.vmem %s482_s20, 32 }
  0xb5   : > { %p9592_p7 = scmp.ne.s32.totalorder %s482_s20, %s9591_s6  ;;  %p9599_p13 = scmp.lt.s32.totalorder %s482_s20, %s482_s20 }
  0xb6   : > { %p9600_p1 = scmp.lt.s32.totalorder %s9598_s27, %s9591_s6 }
  0xb7   : > { %p9594_p8 = pnand %p9592_p7, %p10030_p0 }
  0xb8   : > { %p9601_p6 = por %p9600_p1, %p9599_p13 }
  0xb9   : > { %p9595_p11 = pneg %p9594_p8 }
  0xbb   : > { %p9602_p9 = pnand %p9601_p6, %p9595_p11 }
  0xbd   : > { %9605 = shalt.err (!%p9602_p9)
}
  0xbe   : > { %8667 = dma.hbm_to_vmem [thread:$0]  (!%p10014_p12), %s10866_s7, 16, %s482_s20, [#allocation9]  }
  0xbf   : > { %s9606_s25 = scalar_lea.hbm %s10868_s9, 512 }
  0xc0   : > { %p9607_p5 = scmp.ne.s32.totalorder %s10868_s9, %s9606_s25  ;;  %p9613_p3 = scmp.lt.u32.totalorder %s9606_s25, %s10868_s9 }
  0xc2   : > { %p9609_p10 = pnand %p9607_p5, %p10030_p0 }
  0xc4   : > { %p9610_p2 = pneg %p9609_p10 }
  0xc6   : > { %p9615_p4 = pnand %p9613_p3, %p9610_p2 }
  0xc8   : > { %9618 = shalt.err (!%p9615_p4)
}
  0xc9   : > { %s9619_s20 = scalar_lea.vmem %s10157_s30, 512  ;;  %p9627_p13 = scmp.lt.s32.totalorder %s10157_s30, %s10157_s30 }
  0xca   : > { %p9620_p7 = scmp.ne.s32.totalorder %s10157_s30, %s9619_s20  ;;  %p9628_p1 = scmp.lt.s32.totalorder %s9619_s20, %s9619_s20 }
  0xcc   : > { %p9622_p8 = pnand %p9620_p7, %p10030_p0  ;;  %p9629_p6 = por %p9628_p1, %p9627_p13 }
  0xce   : > { %p9623_p11 = pneg %p9622_p8 }
  0xd0   : > { %p9630_p9 = pnand %p9629_p6, %p9623_p11 }
  0xd2   : > { %9633 = shalt.err (!%p9630_p9)
}
  0xd3   : > { %s9854_s27 = smov 128   ;;  %s9855_s22 = smov 8  }
  0xd4   : > { %8673 = dma.hbm_to_vmem [thread:$0]  (!%p10014_p12), %s10868_s9, 512, %s10157_s30, [#allocation12], %s9854_s27, %s9854_s27, %s9855_s22  }
  0xd5   : > { %s9856_s23 = smov [#allocation16]   ;;  %s9857_s1 = smov [#allocation19]  }
  0xd6   : > { %s528_s25 = sshll.u32 %s9856_s23, 4  ;;  %s554_s18 = sshll.u32 %s9857_s1, 4  ;;  %s529_s25 = int_to_ptr.vmem [resolvable:$true] %s528_s25  ;;  %s10200_s18 = int_to_ptr.vmem [resolvable:$true] %s554_s18 }
  0xd7   : > { %s9634_s20 = scalar_lea.hbm %s10870_s11, 4096 }
  0xd8   : > { %p9635_p5 = scmp.ne.s32.totalorder %s10870_s11, %s9634_s20  ;;  %p9641_p3 = scmp.lt.u32.totalorder %s9634_s20, %s10870_s11 }
  0xda   : > { %p9637_p10 = pnand %p9635_p5, %p10030_p0 }
  0xdc   : > { %p9638_p2 = pneg %p9637_p10 }
  0xde   : > { %p9643_p4 = pnand %p9641_p3, %p9638_p2 }
  0xe0   : > { %9646 = shalt.err (!%p9643_p4)
}
  0xe1   : > { %s9647_s27 = scalar_lea.vmem %s529_s25, 4096  ;;  %p9655_p13 = scmp.lt.s32.totalorder %s529_s25, %s529_s25 }
  0xe2   : > { %p9648_p7 = scmp.ne.s32.totalorder %s529_s25, %s9647_s27  ;;  %p9656_p1 = scmp.lt.s32.totalorder %s9647_s27, %s9647_s27 }
  0xe4   : > { %p9650_p8 = pnand %p9648_p7, %p10030_p0  ;;  %p9657_p6 = por %p9656_p1, %p9655_p13 }
  0xe6   : > { %p9651_p11 = pneg %p9650_p8 }
  0xe8   : > { %p9658_p9 = pnand %p9657_p6, %p9651_p11 }
  0xea   : > { %9661 = shalt.err (!%p9658_p9)
}
  0xeb   : > { %s10914_s24 = smov 4   ;;  %s10915_s4 = smov 64  }
  0xec   : > { %8679 = dma.hbm_to_vmem [thread:$0]  (!%p10014_p12), %s10870_s11, 4096, %s529_s25, [#allocation15], %s10915_s4, %s10915_s4, %s10914_s24  }
  0xed   : > { %s9662_s0 = scalar_lea.hbm %s10872_s13, 16384 }
  0xee   : > { %p9663_p5 = scmp.ne.s32.totalorder %s10872_s13, %s9662_s0  ;;  %p9669_p3 = scmp.lt.u32.totalorder %s9662_s0, %s10872_s13 }
  0xf0   : > { %p9665_p10 = pnand %p9663_p5, %p10030_p0 }
  0xf2   : > { %p9666_p2 = pneg %p9665_p10 }
  0xf4   : > { %p9671_p4 = pnand %p9669_p3, %p9666_p2 }
  0xf6   : > { %9674 = shalt.err (!%p9671_p4)
}
  0xf7   : > { %s9675_s25 = scalar_lea.vmem %s10200_s18, 16384  ;;  %p9683_p13 = scmp.lt.s32.totalorder %s10200_s18, %s10200_s18 }
  0xf8   : > { %p9676_p7 = scmp.ne.s32.totalorder %s10200_s18, %s9675_s25  ;;  %p9684_p1 = scmp.lt.s32.totalorder %s9675_s25, %s9675_s25 }
  0xfa   : > { %p9678_p8 = pnand %p9676_p7, %p10030_p0  ;;  %p9685_p6 = por %p9684_p1, %p9683_p13 }
  0xfc   : > { %p9679_p11 = pneg %p9678_p8 }
  0xfe   : > { %p9686_p9 = pnand %p9685_p6, %p9679_p11 }
 0x100   : > { %9689 = shalt.err (!%p9686_p9)
}
 0x101   : > { %8685 = dma.hbm_to_vmem [thread:$0]  (!%p10014_p12), %s10872_s13, 16384, %s10200_s18, [#allocation18], %s10915_s4, %s10915_s4, %s10914_s24  }
 0x102   : > { %s9858_s26 = smov [#allocation22]   ;;  %s9859_s1 = smov [#allocation23]  }
 0x103   : > { %s581_s23 = sshll.u32 %s9858_s26, 4  ;;  %s592_s0 = sshll.u32 %s9859_s1, 4  ;;  %s582_s23 = int_to_ptr.vmem [resolvable:$true] %s581_s23  ;;  %s10249_s0 = int_to_ptr.vmem [resolvable:$true] %s592_s0 }
 0x104   : > { %s9690_s19 = scalar_lea.hbm %s10874_s15, 16 }
 0x105   : > { %p9691_p5 = scmp.ne.s32.totalorder %s10874_s15, %s9690_s19  ;;  %p9697_p3 = scmp.lt.u32.totalorder %s9690_s19, %s10874_s15 }
 0x107   : > { %p9693_p10 = pnand %p9691_p5, %p10030_p0 }
 0x109   : > { %p9694_p2 = pneg %p9693_p10 }
 0x10b   : > { %p9699_p4 = pnand %p9697_p3, %p9694_p2 }
 0x10d   : > { %9702 = shalt.err (!%p9699_p4)
}
 0x10e   : > { %s9703_s24 = scalar_lea.vmem %s582_s23, 16  ;;  %s9710_s4 = scalar_lea.vmem %s582_s23, 32 }
 0x10f   : > { %p9704_p7 = scmp.ne.s32.totalorder %s582_s23, %s9703_s24  ;;  %p9711_p13 = scmp.lt.s32.totalorder %s582_s23, %s582_s23 }
 0x110   : > { %p9712_p1 = scmp.lt.s32.totalorder %s9710_s4, %s9703_s24 }
 0x111   : > { %p9706_p8 = pnand %p9704_p7, %p10030_p0 }
 0x112   : > { %p9713_p6 = por %p9712_p1, %p9711_p13 }
 0x113   : > { %p9707_p11 = pneg %p9706_p8 }
 0x115   : > { %p9714_p9 = pnand %p9713_p6, %p9707_p11 }
 0x117   : > { %9717 = shalt.err (!%p9714_p9)
}
 0x118   : > { %8691 = dma.hbm_to_vmem [thread:$0]  (!%p10014_p12), %s10874_s15, 16, %s582_s23, [#allocation21]  }
 0x119   : > { %s9718_s20 = scalar_lea.hbm %s10875_s16, 32 }
 0x11a   : > { %p9719_p5 = scmp.ne.s32.totalorder %s10875_s16, %s9718_s20  ;;  %p9725_p3 = scmp.lt.u32.totalorder %s9718_s20, %s10875_s16 }
 0x11c   : > { %p9721_p10 = pnand %p9719_p5, %p10030_p0 }
 0x11e   : > { %p9722_p2 = pneg %p9721_p10 }
 0x120   : > { %p9727_p4 = pnand %p9725_p3, %p9722_p2 }
 0x122   : > { %9730 = shalt.err (!%p9727_p4)
}
 0x123   : > { %s9731_s23 = scalar_lea.vmem %s10249_s0, 32  ;;  %p9739_p13 = scmp.lt.s32.totalorder %s10249_s0, %s10249_s0 }
 0x124   : > { %p9732_p7 = scmp.ne.s32.totalorder %s10249_s0, %s9731_s23  ;;  %p9740_p1 = scmp.lt.s32.totalorder %s9731_s23, %s9731_s23 }
 0x126   : > { %p9734_p8 = pnand %p9732_p7, %p10030_p0  ;;  %p9741_p6 = por %p9740_p1, %p9739_p13 }
 0x128   : > { %p9735_p11 = pneg %p9734_p8 }
 0x12a   : > { %p9742_p9 = pnand %p9741_p6, %p9735_p11 }
 0x12c   : > { %9745 = shalt.err (!%p9742_p9)
}
 0x12d   : > { %8694 = dma.hbm_to_vmem [thread:$0]  (!%p10014_p12), %s10875_s16, 32, %s10249_s0, [#allocation24]  }
 0x12e   : > { %p10916_p5 = scmp.ne.s32.totalorder %s10911_s21, 0 }
 0x12f   : > { %p10917_p10 = scmp.eq.s32.totalorder (!%p10916_p5), %s9976_s28, 0 }
 0x130   : > { %619 = sbr.rel (%p10916_p5) target bundleno = 10948 (0x2ac4), region = 88 }
 0x137   : > { %9791 = dma.done.wait (%p10917_p10), [#allocation6], 32   ;;  %p10918_p0 = pmov %p10917_p10 }
 0x139   : > { %9793 = vsyncadd (%p10918_p0), [#allocation6], 4294967264  ;;  %p10919_p2 = pmov %p10918_p0 }
 0x13a   : > { %p10920_p3 = pmov %p10918_p0 }
 0x13b   : > { %9795 = dma.done.wait (%p10919_p2), [#allocation9], 16400  }
 0x13c   : > { %9797 = vsyncadd (%p10920_p3), [#allocation9], 4294950896  ;;  %p10921_p4 = pmov %p10918_p0 }
 0x13d   : > { %p10922_p12 = pmov %p10918_p0 }
 0x13e   : > { %9799 = dma.done.wait (%p10921_p4), [#allocation12], 544  }
 0x13f   : > { %9801 = vsyncadd (%p10922_p12), [#allocation12], 4294966752  ;;  %p10923_p7 = pmov %p10918_p0 }
 0x140   : > { %p10924_p8 = pmov %p10918_p0 }
 0x141   : > { %9803 = dma.done.wait (%p10923_p7), [#allocation15], 16384  }
 0x142   : > { %9805 = vsyncadd (%p10924_p8), [#allocation15], 4294950912  ;;  %p10925_p11 = pmov %p10918_p0 }
 0x143   : > { %p10926_p13 = pmov %p10918_p0 }
 0x144   : > { %9807 = dma.done.wait (%p10925_p11), [#allocation18], 32768  }
 0x145   : > { %9809 = vsyncadd (%p10926_p13), [#allocation18], 4294934528  ;;  %p10927_p1 = pmov %p10918_p0 }
 0x146   : > { %p10928_p6 = pmov %p10918_p0 }
 0x147   : > { %9811 = dma.done.wait (%p10927_p1), [#allocation21], 1040  }
 0x148   : > { %9813 = vsyncadd (%p10928_p6), [#allocation21], 4294966256  ;;  %p10929_p9 = pmov %p10918_p0 }
 0x149   : > { %p10930_p5 = pmov %p10918_p0 }
 0x14a   : > { %9815 = dma.done.wait (%p10929_p9), [#allocation24], 32  }
 0x14b   : > { %9817 = vsyncadd (%p10930_p5), [#allocation24], 4294967264  ;;  %v9860_v0 = vmov 0   ;;  %p718_p10 = scmp.lt.s32.totalorder %s9976_s28, 1  ;;  %s10931_s0 = sld [smem:[#allocation43_spill]]  ;;  %v887_v6 = vld [vmem:[#allocation8] sm:$0xff] }
 0x14c   : > { %824 = vmatprep.mubr.bf16.mxu0 %v9860_v0  ;;  %v891_v9 = vld [vmem:[#allocation8 + $0x20] sm:$0xff]  ;;  %v888_v11 = vld [vmem:[#allocation8 + $0x8] sm:$0xff]  ;;  %s10932_s20 = sld [smem:[#allocation42_spill]]  ;;  %vm788_vm0 = vcmask 523264   ;;  %s10933_s25 = sld [smem:[#allocation45_spill]]  ;;  %vm9863_vm3 = vmmov 0  }
 0x14d   : > { %s10325_s17 = scalar_select %p718_p10, %s9976_s28, 1  ;;  %v7478_v10 = vcombine.high %v887_v6, %v891_v9  ;;  %v7477_v12 = vcombine.low %v887_v6, %v891_v9  ;;  %v895_v13 = vld [vmem:[#allocation8 + $0x40] sm:$0xff]  ;;  %v892_v15 = vld [vmem:[#allocation8 + $0x28] sm:$0xff]  ;;  %vm2386_vm4 = vcmask 1043456   ;;  %vm2368_vm5 = vcmask 195584  }
 0x14e   : > { %v899_v14 = vld [vmem:[#allocation8 + $0x60] sm:$0xff]  ;;  %v896_v20 = vld [vmem:[#allocation8 + $0x48] sm:$0xff]  ;;  %v7480_v23 = vcombine.high %v888_v11, %v892_v15  ;;  %v7479_v26 = vcombine.low %v888_v11, %v892_v15  ;;  %s10935_s6 = sld [smem:[#allocation44_spill]]  ;;  %s8030_s30 = sshll.u32 %s9976_s28, 7 }
 0x14f   : > { %s8033_s26 = sshll.u32 %s10325_s17, 3  ;;  %v7486_v16 = vcombine.high %v895_v13, %v899_v14  ;;  %v903_v17 = vld [vmem:[#allocation8 + $0x80] sm:$0xff]  ;;  %1699 = vmatprep.subr.bf16.mxu1 %v7478_v10  ;;  %v900_v21 = vld [vmem:[#allocation8 + $0x68] sm:$0xff]  ;;  %v7485_v22 = vcombine.low %v895_v13, %v899_v14  ;;  %s10938_s29 = sld [smem:[#allocation46_spill]] }
 0x150   : > { %s10346_s18 = scalar_lea.vmem %s10864_s5, %s8033_s26  ;;  %v907_v18 = vld [vmem:[#allocation8 + $0xa0] sm:$0xff]  ;;  %1700 = vmatpush1.bf16.msra.mxu1 %v7477_v12  ;;  %v904_v27 = vld [vmem:[#allocation8 + $0x88] sm:$0xff]  ;;  %v7488_v30 = vcombine.high %v896_v20, %v900_v21  ;;  %v7487_v31 = vcombine.low %v896_v20, %v900_v21  ;;  %s9864_s28 = smov [#allocation25]  }
 0x151   : > { %v8782_v1 = vld [vmem:[%s10931_s0 + $0x4] ss:$8 sps:$4 sm:$0xff]   ;;  %v8784_v2 = vld [vmem:[%s10931_s0] ss:$8 sps:$4 sm:$0xff]   ;;  %v8785_v3 = vld [vmem:[%s10931_s0 + $0x14] ss:$8 sps:$4 sm:$0xff]   ;;  %1701 = vmatprep.subr.bf16.mxu1 %v7486_v16  ;;  %v7494_v24 = vcombine.high %v903_v17, %v907_v18  ;;  %v7493_v29 = vcombine.low %v903_v17, %v907_v18 }
 0x152   : > { %792 = vmatprep.subr.bf16.mxu0 %v8782_v1  ;;  %v8787_v4 = vld [vmem:[%s10931_s0 + $0x10] ss:$8 sps:$4 sm:$0xff]   ;;  %v8788_v5 = vld [vmem:[%s10931_s0 + $0x24] ss:$8 sps:$4 sm:$0xff]   ;;  %v8790_v7 = vld [vmem:[%s10931_s0 + $0x20] ss:$8 sps:$4 sm:$0xff]   ;;  %s720_s19 = scalar_lea.vmem %s10932_s20, %s10325_s17  ;;  %s10934_s23 = smov %s10933_s25 }
 0x153   : > { %793 = vmatpush1.bf16.msra.mxu0 %v8784_v2  ;;  %v8791_v8 = vld [vmem:[%s10931_s0 + $0x34] ss:$8 sps:$4 sm:$0xff]   ;;  %v8793_v19 = vld [vmem:[%s10931_s0 + $0x30] ss:$8 sps:$4 sm:$0xff]   ;;  %v727_v25 = vld [vmem:[%s720_s19] sm:$0x1] }
 0x154   : > { %794 = vmatprep.subr.bf16.mxu0 %v8785_v3  ;;  %1702 = vmatpush1.bf16.msra.mxu1 %v7485_v22  ;;  %v908_v28 = vld [vmem:[#allocation8 + $0xa8] sm:$0xff]  ;;  %v911_v34 = vld [vmem:[#allocation8 + $0xc0] sm:$0xff]  ;;  %s10937_s17 = sld [smem:[#allocation40_spill]]  ;;  %s9750_s1 = sshll.u32 %s9864_s28, 4  ;;  %s9751_s1 = int_to_ptr.vmem [resolvable:$false] %s9750_s1 }
 0x155   : > { %1703 = vmatprep.subr.bf16.mxu1 %v7494_v24  ;;  %v7496_v32 = vcombine.high %v904_v27, %v908_v28  ;;  %v7495_v33 = vcombine.low %v904_v27, %v908_v28  ;;  %v915_v35 = vld [vmem:[#allocation8 + $0xe0] sm:$0xff]  ;;  %v912_v36 = vld [vmem:[#allocation8 + $0xc8] sm:$0xff]  ;;  %s10817_s4 = scalar_lea.hbm %s10938_s29, %s8030_s30 }
 0x156   : > { %v7502_v37 = vcombine.high %v911_v34, %v915_v35  ;;  %v916_v38 = vld [vmem:[#allocation8 + $0xe8] sm:$0xff]  ;;  %v7501_v41 = vcombine.low %v911_v34, %v915_v35  ;;  %v919_v42 = vld [vmem:[#allocation8 + $0x100] sm:$0xff] }
 0x157   : > { %795 = vmatpush1.bf16.msra.mxu0 %v8787_v4  ;;  %v7503_v39 = vcombine.low %v912_v36, %v916_v38  ;;  %v7504_v40 = vcombine.high %v912_v36, %v916_v38  ;;  %v923_v43 = vld [vmem:[#allocation8 + $0x120] sm:$0xff]  ;;  %v920_v44 = vld [vmem:[#allocation8 + $0x108] sm:$0xff] }
 0x158   : > { %796 = vmatprep.subr.bf16.mxu0 %v8788_v5  ;;  %1704 = vmatpush1.bf16.msra.mxu1 %v7493_v29  ;;  %v7510_v45 = vcombine.high %v919_v42, %v923_v43  ;;  %v924_v46 = vld [vmem:[#allocation8 + $0x128] sm:$0xff]  ;;  %v7509_v49 = vcombine.low %v919_v42, %v923_v43  ;;  %v927_v50 = vld [vmem:[#allocation8 + $0x140] sm:$0xff] }
 0x159   : > { %1705 = vmatprep.subr.bf16.mxu1 %v7502_v37  ;;  %v7511_v47 = vcombine.low %v920_v44, %v924_v46  ;;  %v7512_v48 = vcombine.high %v920_v44, %v924_v46  ;;  %v931_v51 = vld [vmem:[#allocation8 + $0x160] sm:$0xff]  ;;  %v928_v52 = vld [vmem:[#allocation8 + $0x148] sm:$0xff] }
 0x15a   : > { %v7518_v53 = vcombine.high %v927_v50, %v931_v51  ;;  %v932_v54 = vld [vmem:[#allocation8 + $0x168] sm:$0xff]  ;;  %v7517_v57 = vcombine.low %v927_v50, %v931_v51  ;;  %v935_v58 = vld [vmem:[#allocation8 + $0x180] sm:$0xff]  ;;  %p10939_p2 = scmp.ne.s32.totalorder %s10937_s17, 0 }
 0x15b   : > { %797 = vmatpush1.bf16.msra.mxu0 %v8790_v7  ;;  %v7519_v55 = vcombine.low %v928_v52, %v932_v54  ;;  %v7520_v56 = vcombine.high %v928_v52, %v932_v54  ;;  %v939_v59 = vld [vmem:[#allocation8 + $0x1a0] sm:$0xff]  ;;  %v936_v60 = vld [vmem:[#allocation8 + $0x188] sm:$0xff] }
 0x15c   : > { %798 = vmatprep.subr.bf16.mxu0 %v8791_v8  ;;  %1706 = vmatpush1.bf16.msra.mxu1 %v7501_v41  ;;  %v7526_v61 = vcombine.high %v935_v58, %v939_v59  ;;  %v940_v62 = vld [vmem:[#allocation8 + $0x1a8] sm:$0xff]  ;;  %v7525_v2 = vcombine.low %v935_v58, %v939_v59  ;;  %v943_v3 = vld [vmem:[#allocation8 + $0x1c0] sm:$0xff] }
 0x15d   : > { %1707 = vmatprep.subr.bf16.mxu1 %v7510_v45  ;;  %v7527_v63 = vcombine.low %v936_v60, %v940_v62  ;;  %v7528_v1 = vcombine.high %v936_v60, %v940_v62  ;;  %v947_v4 = vld [vmem:[#allocation8 + $0x1e0] sm:$0xff]  ;;  %v944_v5 = vld [vmem:[#allocation8 + $0x1c8] sm:$0xff] }
 0x15e   : > { %v7534_v6 = vcombine.high %v943_v3, %v947_v4  ;;  %v948_v7 = vld [vmem:[#allocation8 + $0x1e8] sm:$0xff]  ;;  %v7533_v10 = vcombine.low %v943_v3, %v947_v4  ;;  %v951_v11 = vld [vmem:[#allocation8 + $0x200] sm:$0xff] }
 0x15f   : > { %799 = vmatpush1.bf16.msra.mxu0 %v8793_v19  ;;  %v7535_v8 = vcombine.low %v944_v5, %v948_v7  ;;  %v7536_v9 = vcombine.high %v944_v5, %v948_v7  ;;  %v955_v12 = vld [vmem:[#allocation8 + $0x220] sm:$0xff]  ;;  %v952_v13 = vld [vmem:[#allocation8 + $0x208] sm:$0xff] }
 0x160   : > { %1740 = vmatprep.subr.bf16.mxu0 %v7480_v23  ;;  %1708 = vmatpush1.bf16.msra.mxu1 %v7509_v49  ;;  %v7542_v14 = vcombine.high %v951_v11, %v955_v12  ;;  %v956_v15 = vld [vmem:[#allocation8 + $0x228] sm:$0xff]  ;;  %v7541_v18 = vcombine.low %v951_v11, %v955_v12  ;;  %v959_v19 = vld [vmem:[#allocation8 + $0x240] sm:$0xff]  ;;  %v10362_v12 = vld [vmem:[#allocation8 + $0x10] sm:$0xff] }
 0x161   : > { %1709 = vmatprep.subr.bf16.mxu1 %v7518_v53  ;;  %v7543_v16 = vcombine.low %v952_v13, %v956_v15  ;;  %v7544_v17 = vcombine.high %v952_v13, %v956_v15  ;;  %v963_v20 = vld [vmem:[#allocation8 + $0x260] sm:$0xff]  ;;  %v960_v21 = vld [vmem:[#allocation8 + $0x248] sm:$0xff]  ;;  %v10364_v13 = vld [vmem:[#allocation8 + $0x30] sm:$0xff] }
 0x162   : > { %7476 = vmatmul.mubr.msk.bf16.vlgmr.msra.gmra.mrb[0].mxu0 %vm788_vm0, %v727_v25  ;;  %v7550_v22 = vcombine.high %v959_v19, %v963_v20  ;;  %v964_v23 = vld [vmem:[#allocation8 + $0x268] sm:$0xff]  ;;  %v967_v27 = vld [vmem:[#allocation8 + $0x280] sm:$0xff]  ;;  %v7482_v15 = vcombine.high %v10362_v12, %v10364_v13 }
 0x163   : > { %1741 = vmatpush1.bf16.msra.mxu0 %v7479_v26  ;;  %v7551_v24 = vcombine.low %v960_v21, %v964_v23  ;;  %v7552_v25 = vcombine.high %v960_v21, %v964_v23  ;;  %v7549_v26 = vcombine.low %v959_v19, %v963_v20  ;;  %v971_v28 = vld [vmem:[#allocation8 + $0x2a0] sm:$0xff]  ;;  %v968_v29 = vld [vmem:[#allocation8 + $0x288] sm:$0xff]  ;;  %v778_v20 = vlaneseq }
 0x164   : > { %1742 = vmatprep.subr.bf16.mxu0 %v7488_v30  ;;  %1710 = vmatpush1.bf16.msra.mxu1 %v7517_v57  ;;  %v7558_v30 = vcombine.high %v967_v27, %v971_v28  ;;  %v7557_v34 = vcombine.low %v967_v27, %v971_v28  ;;  %v975_v35 = vld [vmem:[#allocation8 + $0x2c0] sm:$0xff]  ;;  %v976_v37 = vld [vmem:[#allocation8 + $0x2c8] sm:$0xff] }
 0x165   : > { %1711 = vmatprep.subr.bf16.mxu1 %v7526_v61  ;;  %v979_v36 = vld [vmem:[#allocation8 + $0x2e0] sm:$0xff]  ;;  %v984_v45 = vld [vmem:[#allocation8 + $0x308] sm:$0xff]  ;;  %v10378_v21 = vshrl.u32 %v778_v20, 7 }
 0x166   : > { %v7566_v38 = vcombine.high %v975_v35, %v979_v36  ;;  %v7565_v42 = vcombine.low %v975_v35, %v979_v36  ;;  %v983_v43 = vld [vmem:[#allocation8 + $0x300] sm:$0xff]  ;;  %v992_v53 = vld [vmem:[#allocation8 + $0x348] sm:$0xff] }
 0x167   : > { %1743 = vmatpush1.bf16.msra.mxu0 %v7487_v31  ;;  %v972_v31 = vld [vmem:[#allocation8 + $0x2a8] sm:$0xff]  ;;  %v987_v44 = vld [vmem:[#allocation8 + $0x320] sm:$0xff]  ;;  %v10381_v23 = vsub.s32 0, %v10378_v21 }
 0x168   : > { %1744 = vmatprep.subr.bf16.mxu0 %v7496_v32  ;;  %1712 = vmatpush1.bf16.msra.mxu1 %v7525_v2  ;;  %v7559_v32 = vcombine.low %v968_v29, %v972_v31  ;;  %v7574_v46 = vcombine.high %v983_v43, %v987_v44  ;;  %v7573_v50 = vcombine.low %v983_v43, %v987_v44  ;;  %v991_v51 = vld [vmem:[#allocation8 + $0x340] sm:$0xff]  ;;  %v1000_v61 = vld [vmem:[#allocation8 + $0x388] sm:$0xff] }
 0x169   : > { %1713 = vmatprep.subr.bf16.mxu1 %v7534_v6  ;;  %v995_v52 = vld [vmem:[#allocation8 + $0x360] sm:$0xff]  ;;  %v1008_v6 = vld [vmem:[#allocation8 + $0x3c8] sm:$0xff] }
 0x16a   : > { %v7582_v54 = vcombine.high %v991_v51, %v995_v52  ;;  %v7581_v58 = vcombine.low %v991_v51, %v995_v52  ;;  %v999_v59 = vld [vmem:[#allocation8 + $0x380] sm:$0xff] }
 0x16b   : > { %1745 = vmatpush1.bf16.msra.mxu0 %v7495_v33  ;;  %v7560_v33 = vcombine.high %v968_v29, %v972_v31  ;;  %v1003_v60 = vld [vmem:[#allocation8 + $0x3a0] sm:$0xff] }
 0x16c   : > { %1746 = vmatprep.subr.bf16.mxu0 %v7504_v40  ;;  %1714 = vmatpush1.bf16.msra.mxu1 %v7533_v10  ;;  %v7590_v62 = vcombine.high %v999_v59, %v1003_v60  ;;  %v7589_v3 = vcombine.low %v999_v59, %v1003_v60  ;;  %v1007_v4 = vld [vmem:[#allocation8 + $0x3c0] sm:$0xff] }
 0x16d   : > { %1715 = vmatprep.subr.bf16.mxu1 %v7542_v14  ;;  %v1011_v5 = vld [vmem:[#allocation8 + $0x3e0] sm:$0xff]  ;;  %v10366_v14 = vld [vmem:[#allocation8 + $0x18] sm:$0xff] }
 0x16e   : > { %v7598_v7 = vcombine.high %v1007_v4, %v1011_v5  ;;  %v7597_v11 = vcombine.low %v1007_v4, %v1011_v5 }
 0x16f   : > { %1747 = vmatpush1.bf16.msra.mxu0 %v7503_v39  ;;  %v980_v39 = vld [vmem:[#allocation8 + $0x2e8] sm:$0xff] }
 0x170   : > { %1748 = vmatprep.subr.bf16.mxu0 %v7512_v48  ;;  %1716 = vmatpush1.bf16.msra.mxu1 %v7541_v18  ;;  %v7567_v40 = vcombine.low %v976_v37, %v980_v39  ;;  %v7568_v41 = vcombine.high %v976_v37, %v980_v39 }
 0x171   : > { %1717 = vmatprep.subr.bf16.mxu1 %v7550_v22  ;;  %v736_v22 = vld [vmem:[#allocation5] sm:$0x3] }
 0x173   : > { %1749 = vmatpush1.bf16.msra.mxu0 %v7511_v47  ;;  %v988_v47 = vld [vmem:[#allocation8 + $0x328] sm:$0xff] }
 0x174   : > { %1750 = vmatprep.subr.bf16.mxu0 %v7520_v56  ;;  %1718 = vmatpush1.bf16.msra.mxu1 %v7549_v26  ;;  %v7575_v48 = vcombine.low %v984_v45, %v988_v47  ;;  %v7576_v49 = vcombine.high %v984_v45, %v988_v47 }
 0x175   : > { %1719 = vmatprep.subr.bf16.mxu1 %v7558_v30 }
 0x177   : > { %1751 = vmatpush1.bf16.msra.mxu0 %v7519_v55  ;;  %v996_v55 = vld [vmem:[#allocation8 + $0x368] sm:$0xff] }
 0x178   : > { %1752 = vmatprep.subr.bf16.mxu0 %v7528_v1  ;;  %1720 = vmatpush1.bf16.msra.mxu1 %v7557_v34  ;;  %v7583_v56 = vcombine.low %v992_v53, %v996_v55  ;;  %v7584_v57 = vcombine.high %v992_v53, %v996_v55 }
 0x179   : > { %1721 = vmatprep.subr.bf16.mxu1 %v7566_v38 }
 0x17b   : > { %1753 = vmatpush1.bf16.msra.mxu0 %v7527_v63  ;;  %v1004_v63 = vld [vmem:[#allocation8 + $0x3a8] sm:$0xff] }
 0x17c   : > { %1754 = vmatprep.subr.bf16.mxu0 %v7536_v9  ;;  %1722 = vmatpush1.bf16.msra.mxu1 %v7565_v42  ;;  %v7591_v1 = vcombine.low %v1000_v61, %v1004_v63  ;;  %v7592_v2 = vcombine.high %v1000_v61, %v1004_v63 }
 0x17d   : > { %1723 = vmatprep.subr.bf16.mxu1 %v7574_v46 }
 0x17f   : > { %1755 = vmatpush1.bf16.msra.mxu0 %v7535_v8  ;;  %v1012_v8 = vld [vmem:[#allocation8 + $0x3e8] sm:$0xff] }
 0x180   : > { %1756 = vmatprep.subr.bf16.mxu0 %v7544_v17  ;;  %1724 = vmatpush1.bf16.msra.mxu1 %v7573_v50  ;;  %v7599_v9 = vcombine.low %v1008_v6, %v1012_v8  ;;  %v7600_v10 = vcombine.high %v1008_v6, %v1012_v8  ;;  %v7481_v17 = vcombine.low %v10362_v12, %v10364_v13 }
 0x181   : > { %1725 = vmatprep.subr.bf16.mxu1 %v7582_v54 }
 0x183   : > { %1757 = vmatpush1.bf16.msra.mxu0 %v7543_v16  ;;  %v10370_v16 = vld [vmem:[#allocation8 + $0x38] sm:$0xff] }
 0x184   : > { %1758 = vmatprep.subr.bf16.mxu0 %v7552_v25  ;;  %1726 = vmatpush1.bf16.msra.mxu1 %v7581_v58  ;;  %v7483_v18 = vcombine.low %v10366_v14, %v10370_v16  ;;  %v7484_v19 = vcombine.high %v10366_v14, %v10370_v16  ;;  %v781_v25 = vrot.slane %v736_v22, %v10381_v23 }
 0x185   : > { %1727 = vmatprep.subr.bf16.mxu1 %v7590_v62 }
 0x187   : > { %1759 = vmatpush1.bf16.msra.mxu0 %v7551_v24  ;;  %v10384_v24 = vsub.s32 1, %v10378_v21 }
 0x188   : > { %1760 = vmatprep.subr.bf16.mxu0 %v7560_v33  ;;  %1728 = vmatpush1.bf16.msra.mxu1 %v7589_v3 }
 0x189   : > { %1729 = vmatprep.subr.bf16.mxu1 %v7598_v7  ;;  %v785_v26 = vrot.slane %v736_v22, %v10384_v24 }
 0x18b   : > { %1761 = vmatpush1.bf16.msra.mxu0 %v7559_v32 }
 0x18c   : > { %1762 = vmatprep.subr.bf16.mxu0 %v7568_v41  ;;  %1730 = vmatpush1.bf16.msra.mxu1 %v7597_v11 }
 0x18d   : > { %1781 = vmatprep.subr.bf16.mxu1 %v7482_v15 }
 0x18f   : > { %1763 = vmatpush1.bf16.msra.mxu0 %v7567_v40 }
 0x190   : > { %1764 = vmatprep.subr.bf16.mxu0 %v7576_v49 }
 0x193   : > { %1765 = vmatpush1.bf16.msra.mxu0 %v7575_v48 }
 0x194   : > { %1766 = vmatprep.subr.bf16.mxu0 %v7584_v57 }
 0x197   : > { %1767 = vmatpush1.bf16.msra.mxu0 %v7583_v56 }
 0x198   : > { %1768 = vmatprep.subr.bf16.mxu0 %v7592_v2 }
 0x19b   : > { %1769 = vmatpush1.bf16.msra.mxu0 %v7591_v1 }
 0x19c   : > { %1770 = vmatprep.subr.bf16.mxu0 %v7600_v10 }
 0x19f   : > { %1771 = vmatpush1.bf16.msra.mxu0 %v7599_v9  ;;  %v9861_v9 = vmov 1.0  }
 0x1a0   : > { %1822 = vmatprep.subr.bf16.mxu0 %v7484_v19 }
 0x235   : > { %v826_v27 = vpop.f32.mrb[0].mxu0 }
 0x236   : > { %v827_v28 = vadd.f32 %v826_v27, %v781_v25  ;;  %v828_v29 = vpop.f32.mrb[1].mxu0 }
 0x237   : > { %v829_v30 = vadd.f32 %v828_v29, %v785_v26  ;;  %v830_v31 = vpop.f32.mrb[2].mxu0 }
 0x238   : > { %v835_v32 = vmul.f32 0.70710677, %v827_v28  ;;  %v831_v33 = vpop.f32.mrb[3].mxu0  ;;  %v833_v22 = vmul.f32 0.5, %v827_v28  ;;  %v910_v28 = vld [vmem:[#allocation8 + $0xb8] sm:$0xff] }
 0x239   : > { %v836_v34 = vmul.f32 0.70710677, %v829_v30  ;;  %v834_v26 = vmul.f32 0.5, %v829_v30  ;;  %v897_v33 = vld [vmem:[#allocation8 + $0x50] sm:$0xff] }
 0x23a   : > { %v841_v35 = vand.u32 2147483647, %v835_v32  ;;  %vm837_vm1 = vcmp.lt.f32.partialorder %v835_v32, 0.0  ;;  %v901_v32 = vld [vmem:[#allocation8 + $0x70] sm:$0xff] }
 0x23b   : > { %v842_v36 = vand.u32 2147483647, %v836_v34  ;;  %vm838_vm2 = vcmp.lt.f32.partialorder %v836_v34, 0.0  ;;  %v839_v10 = vsel %vm837_vm1, -1.0, %v9861_v9  ;;  %v902_v34 = vld [vmem:[#allocation8 + $0x78] sm:$0xff]  ;;  %v7489_v30 = vcombine.low %v897_v33, %v901_v32 }
 0x23c   : > { %v843_v37 = vmul.f32 0.3275911, %v841_v35  ;;  %v869_v38 = vsub.f32 0.0, %v841_v35  ;;  %v840_v19 = vsel %vm838_vm2, -1.0, %v9861_v9 }
 0x23d   : > { %v844_v39 = vmul.f32 0.3275911, %v842_v36  ;;  %v870_v40 = vsub.f32 0.0, %v842_v36 }
 0x23e   : > { %v845_v41 = vadd.f32 1.0, %v843_v37  ;;  %v871_v42 = vmul.f32 %v869_v38, %v841_v35  ;;  %v898_v35 = vld [vmem:[#allocation8 + $0x58] sm:$0xff]  ;;  %v905_v38 = vld [vmem:[#allocation8 + $0x90] sm:$0xff] }
 0x23f   : > { %v846_v43 = vadd.f32 1.0, %v844_v39  ;;  %v872_v44 = vmul.f32 %v870_v40, %v842_v36  ;;  %v7490_v39 = vcombine.high %v897_v33, %v901_v32  ;;  %v7492_v40 = vcombine.high %v898_v35, %v902_v34  ;;  %v958_v33 = vld [vmem:[#allocation8 + $0x238] sm:$0xff] }
 0x240   : > { %9295 = vrcp.f32 %v845_v41  ;;  %v873_v45 = vmul.f32 1.442695, %v871_v42  ;;  %v909_v41 = vld [vmem:[#allocation8 + $0xb0] sm:$0xff]  ;;  %v906_v42 = vld [vmem:[#allocation8 + $0x98] sm:$0xff] }
 0x241   : > { %9297 = vrcp.f32 %v846_v43  ;;  %v875_v46 = vmul.f32 1.442695, %v872_v44  ;;  %v7491_v43 = vcombine.low %v898_v35, %v902_v34  ;;  %v7498_v44 = vcombine.high %v905_v38, %v909_v41 }
 0x242   : > { %9299 = vpow2.f32 %v873_v45  ;;  %v7500_v45 = vcombine.high %v906_v42, %v910_v28  ;;  %v7497_v12 = vcombine.low %v905_v38, %v909_v41  ;;  %v7499_v13 = vcombine.low %v906_v42, %v910_v28  ;;  %v961_v38 = vld [vmem:[#allocation8 + $0x250] sm:$0xff]  ;;  %v966_v41 = vld [vmem:[#allocation8 + $0x278] sm:$0xff] }
 0x243   : > { %9301 = vpow2.f32 %v875_v46  ;;  %v913_v46 = vld [vmem:[#allocation8 + $0xd0] sm:$0xff] }
 0x24a   : > { %v9296_v47 = vpop.eup %9295 }
 0x24b   : > { %v9298_v48 = vpop.eup %9297  ;;  %v851_v49 = vmul.f32 1.0614054, %v9296_v47 }
 0x24c   : > { %v852_v50 = vmul.f32 1.0614054, %v9298_v48  ;;  %v9300_v3 = vpop.eup %9299 }
 0x24d   : > { %v853_v51 = vadd.f32 -1.4531521, %v851_v49  ;;  %v9302_v5 = vpop.eup %9301  ;;  %v918_v49 = vld [vmem:[#allocation8 + $0xf8] sm:$0xff] }
 0x24e   : > { %v854_v52 = vadd.f32 -1.4531521, %v852_v50  ;;  %v922_v50 = vld [vmem:[#allocation8 + $0x118] sm:$0xff] }
 0x24f   : > { %v855_v53 = vmul.f32 %v9296_v47, %v853_v51  ;;  %v926_v51 = vld [vmem:[#allocation8 + $0x138] sm:$0xff] }
 0x250   : > { %v856_v54 = vmul.f32 %v9298_v48, %v854_v52 }
 0x251   : > { %v857_v55 = vadd.f32 1.4214138, %v855_v53 }
 0x252   : > { %v858_v56 = vadd.f32 1.4214138, %v856_v54 }
 0x253   : > { %v859_v57 = vmul.f32 %v9296_v47, %v857_v55  ;;  %v7516_v55 = vcombine.high %v922_v50, %v926_v51 }
 0x254   : > { %v860_v58 = vmul.f32 %v9298_v48, %v858_v56  ;;  %v929_v56 = vld [vmem:[#allocation8 + $0x150] sm:$0xff] }
 0x255   : > { %v861_v59 = vadd.f32 -0.28449672, %v859_v57  ;;  %v933_v57 = vld [vmem:[#allocation8 + $0x170] sm:$0xff] }
 0x256   : > { %v862_v60 = vadd.f32 -0.28449672, %v860_v58  ;;  %v930_v58 = vld [vmem:[#allocation8 + $0x158] sm:$0xff] }
 0x257   : > { %v863_v61 = vmul.f32 %v9296_v47, %v861_v59  ;;  %v934_v59 = vld [vmem:[#allocation8 + $0x178] sm:$0xff] }
 0x258   : > { %v864_v62 = vmul.f32 %v9298_v48, %v862_v60 }
 0x259   : > { %v865_v63 = vadd.f32 0.2548296, %v863_v61  ;;  %v7515_v61 = vcombine.low %v922_v50, %v926_v51 }
 0x25a   : > { %v866_v1 = vadd.f32 0.2548296, %v864_v62  ;;  %v7522_v62 = vcombine.high %v929_v56, %v933_v57 }
 0x25b   : > { %v867_v2 = vmul.f32 %v9296_v47, %v865_v63  ;;  %v917_v47 = vld [vmem:[#allocation8 + $0xf0] sm:$0xff]  ;;  %v7524_v63 = vcombine.high %v930_v58, %v934_v59 }
 0x25c   : > { %v868_v4 = vmul.f32 %v9298_v48, %v866_v1  ;;  %v914_v48 = vld [vmem:[#allocation8 + $0xd8] sm:$0xff]  ;;  %v7506_v14 = vcombine.high %v913_v46, %v917_v47  ;;  %v7505_v52 = vcombine.low %v913_v46, %v917_v47  ;;  %v937_v1 = vld [vmem:[#allocation8 + $0x190] sm:$0xff] }
 0x25d   : > { %v877_v6 = vmul.f32 %v9300_v3, %v867_v2  ;;  %v7508_v16 = vcombine.high %v914_v48, %v918_v49  ;;  %v7507_v53 = vcombine.low %v914_v48, %v918_v49  ;;  %v941_v2 = vld [vmem:[#allocation8 + $0x1b0] sm:$0xff]  ;;  %v938_v3 = vld [vmem:[#allocation8 + $0x198] sm:$0xff] }
 0x25e   : > { %v878_v7 = vmul.f32 %v9302_v5, %v868_v4  ;;  %v942_v4 = vld [vmem:[#allocation8 + $0x1b8] sm:$0xff]  ;;  %v7521_v5 = vcombine.low %v929_v56, %v933_v57 }
 0x25f   : > { %v879_v8 = vsub.f32 1.0, %v877_v6  ;;  %v7523_v6 = vcombine.low %v930_v58, %v934_v59  ;;  %v970_v46 = vld [vmem:[#allocation8 + $0x298] sm:$0xff] }
 0x260   : > { %v880_v11 = vsub.f32 1.0, %v878_v7  ;;  %v7530_v7 = vcombine.high %v937_v1, %v941_v2  ;;  %v974_v47 = vld [vmem:[#allocation8 + $0x2b8] sm:$0xff] }
 0x261   : > { %v881_v15 = vmul.f32 %v879_v8, %v839_v10  ;;  %v7532_v8 = vcombine.high %v938_v3, %v942_v4  ;;  %v945_v10 = vld [vmem:[#allocation8 + $0x1d0] sm:$0xff]  ;;  %v7563_v51 = vcombine.low %v970_v46, %v974_v47  ;;  %v986_v56 = vld [vmem:[#allocation8 + $0x318] sm:$0xff] }
 0x262   : > { %v882_v20 = vmul.f32 %v880_v11, %v840_v19  ;;  %v949_v11 = vld [vmem:[#allocation8 + $0x1f0] sm:$0xff]  ;;  %v950_v19 = vld [vmem:[#allocation8 + $0x1f8] sm:$0xff] }
 0x263   : > { %v883_v25 = vadd.f32 1.0, %v881_v15  ;;  %v946_v15 = vld [vmem:[#allocation8 + $0x1d8] sm:$0xff]  ;;  %v7537_v32 = vcombine.low %v945_v10, %v949_v11 }
 0x264   : > { %v884_v27 = vadd.f32 1.0, %v882_v20  ;;  %v7529_v20 = vcombine.low %v937_v1, %v941_v2  ;;  %v7539_v35 = vcombine.low %v946_v15, %v950_v19  ;;  %v990_v57 = vld [vmem:[#allocation8 + $0x338] sm:$0xff] }
 0x265   : > { %v885_v29 = vmul.f32 %v883_v25, %v833_v22  ;;  %v7531_v22 = vcombine.low %v938_v3, %v942_v4  ;;  %v7538_v25 = vcombine.high %v945_v10, %v949_v11  ;;  %v994_v1 = vld [vmem:[#allocation8 + $0x358] sm:$0xff]  ;;  %v7579_v4 = vcombine.low %v986_v56, %v990_v57 }
 0x266   : > { %v886_v31 = vmul.f32 %v884_v27, %v834_v26  ;;  %v7540_v26 = vcombine.high %v946_v15, %v950_v19  ;;  %v953_v27 = vld [vmem:[#allocation8 + $0x210] sm:$0xff]  ;;  %v998_v2 = vld [vmem:[#allocation8 + $0x378] sm:$0xff] }
 0x267   : > { %v10390_v37 = vpack.c.bf16 %v885_v29, %v885_v29  ;;  %v957_v29 = vld [vmem:[#allocation8 + $0x230] sm:$0xff]  ;;  %v1002_v10 = vld [vmem:[#allocation8 + $0x398] sm:$0xff]  ;;  %v7587_v19 = vcombine.low %v994_v1, %v998_v2 }
 0x268   : > { %v1016_v36 = vpack.c.bf16 %v886_v31, %v886_v31  ;;  %v954_v31 = vld [vmem:[#allocation8 + $0x218] sm:$0xff]  ;;  %v7546_v34 = vcombine.high %v953_v27, %v957_v29  ;;  %v7545_v42 = vcombine.low %v953_v27, %v957_v29 }
 0x269   : > { %v7547_v28 = vcombine.low %v954_v31, %v958_v33  ;;  %v1006_v11 = vld [vmem:[#allocation8 + $0x3b8] sm:$0xff] }
 0x26a   : > { %1731 = vmatprep.mubr.bf16.mxu1 %v1016_v36  ;;  %1772 = vmatprep.mubr.bf16.mxu0 %v1016_v36  ;;  %v1010_v27 = vld [vmem:[#allocation8 + $0x3d8] sm:$0xff] }
 0x26b   : > { %1732 = vmatmul.mubr.bf16.vlgmr.msra.gmra.mrb[0].mxu1 %v10390_v37  ;;  %1773 = vmatmul.mubr.bf16.vlgmr.msra.gmra.mrb[4].mxu0 %v10390_v37  ;;  %v1014_v29 = vld [vmem:[#allocation8 + $0x3f8] sm:$0xff] }
 0x26c   : > { %1782 = vmatpush1.bf16.msra.mxu1 %v7481_v17  ;;  %1823 = vmatpush1.bf16.msra.mxu0 %v7483_v18  ;;  %v921_v17 = vld [vmem:[#allocation8 + $0x110] sm:$0xff] }
 0x26d   : > { %1813 = vmatprep.mubr.bf16.mxu1 %v1016_v36  ;;  %1854 = vmatprep.mubr.bf16.mxu0 %v1016_v36  ;;  %v925_v18 = vld [vmem:[#allocation8 + $0x130] sm:$0xff]  ;;  %v7548_v36 = vcombine.high %v954_v31, %v958_v33  ;;  %v7595_v33 = vcombine.low %v1002_v10, %v1006_v11 }
 0x26e   : > { %1783 = vmatprep.subr.bf16.mxu1 %v7490_v39  ;;  %1824 = vmatprep.subr.bf16.mxu0 %v7492_v40  ;;  %v7514_v54 = vcombine.high %v921_v17, %v925_v18  ;;  %v7513_v60 = vcombine.low %v921_v17, %v925_v18  ;;  %v965_v39 = vld [vmem:[#allocation8 + $0x270] sm:$0xff]  ;;  %v962_v40 = vld [vmem:[#allocation8 + $0x258] sm:$0xff] }
 0x26f   : > { %v7553_v48 = vcombine.low %v961_v38, %v965_v39  ;;  %v7555_v49 = vcombine.low %v962_v40, %v966_v41  ;;  %v978_v17 = vld [vmem:[#allocation8 + $0x2d8] sm:$0xff] }
 0x270   : > { %1784 = vmatpush1.bf16.msra.mxu1 %v7489_v30  ;;  %1825 = vmatpush1.bf16.msra.mxu0 %v7491_v43  ;;  %v7554_v30 = vcombine.high %v961_v38, %v965_v39  ;;  %v7556_v43 = vcombine.high %v962_v40, %v966_v41  ;;  %v982_v18 = vld [vmem:[#allocation8 + $0x2f8] sm:$0xff]  ;;  %v8795_v38 = vld [vmem:[%s10933_s25] sm:$0xff]   ;;  %v9862_v39 = vmov 0.0  }
 0x271   : > { %1785 = vmatprep.subr.bf16.mxu1 %v7498_v44  ;;  %1826 = vmatprep.subr.bf16.mxu0 %v7500_v45  ;;  %v969_v44 = vld [vmem:[#allocation8 + $0x290] sm:$0xff]  ;;  %v7571_v59 = vcombine.low %v978_v17, %v982_v18  ;;  %v8797_v41 = vld [vmem:[%s10934_s23 + $0x10] sm:$0xff]  }
 0x272   : > { %v973_v45 = vld [vmem:[#allocation8 + $0x2b0] sm:$0xff] }
 0x273   : > { %v7561_v50 = vcombine.low %v969_v44, %v973_v45  ;;  %v8796_v40 = vld [vmem:[%s10934_s23 + $0x8] sm:$0xff]  }
 0x274   : > { %1786 = vmatpush1.bf16.msra.mxu1 %v7497_v12  ;;  %1827 = vmatpush1.bf16.msra.mxu0 %v7499_v13  ;;  %v7562_v12 = vcombine.high %v969_v44, %v973_v45  ;;  %v7564_v13 = vcombine.high %v970_v46, %v974_v47 }
 0x275   : > { %1787 = vmatprep.subr.bf16.mxu1 %v7506_v14  ;;  %1828 = vmatprep.subr.bf16.mxu0 %v7508_v16  ;;  %v977_v14 = vld [vmem:[#allocation8 + $0x2d0] sm:$0xff] }
 0x276   : > { %v981_v16 = vld [vmem:[#allocation8 + $0x2f0] sm:$0xff] }
 0x277   : > { %v7569_v58 = vcombine.low %v977_v14, %v981_v16 }
 0x278   : > { %1788 = vmatpush1.bf16.msra.mxu1 %v7505_v52  ;;  %1829 = vmatpush1.bf16.msra.mxu0 %v7507_v53  ;;  %v7570_v52 = vcombine.high %v977_v14, %v981_v16  ;;  %v7572_v53 = vcombine.high %v978_v17, %v982_v18 }
 0x279   : > { %1789 = vmatprep.subr.bf16.mxu1 %v7514_v54  ;;  %1830 = vmatprep.subr.bf16.mxu0 %v7516_v55  ;;  %v985_v54 = vld [vmem:[#allocation8 + $0x310] sm:$0xff] }
 0x27a   : > { %v989_v55 = vld [vmem:[#allocation8 + $0x330] sm:$0xff] }
 0x27b   : > { %v7577_v3 = vcombine.low %v985_v54, %v989_v55 }
 0x27c   : > { %1790 = vmatpush1.bf16.msra.mxu1 %v7513_v60  ;;  %1831 = vmatpush1.bf16.msra.mxu0 %v7515_v61  ;;  %v7578_v60 = vcombine.high %v985_v54, %v989_v55  ;;  %v7580_v61 = vcombine.high %v986_v56, %v990_v57  ;;  %v10437_v54 = vsub.s32 4, %v10378_v21  ;;  %v1685_v55 = vsub.s32 6, %v10378_v21 }
 0x27d   : > { %1791 = vmatprep.subr.bf16.mxu1 %v7522_v62  ;;  %1832 = vmatprep.subr.bf16.mxu0 %v7524_v63  ;;  %v993_v62 = vld [vmem:[#allocation8 + $0x350] sm:$0xff]  ;;  %v10441_v56 = vsub.s32 5, %v10378_v21  ;;  %v1689_v57 = vsub.s32 7, %v10378_v21 }
 0x27e   : > { %v997_v63 = vld [vmem:[#allocation8 + $0x370] sm:$0xff] }
 0x27f   : > { %v7585_v15 = vcombine.low %v993_v62, %v997_v63 }
 0x280   : > { %1792 = vmatpush1.bf16.msra.mxu1 %v7521_v5  ;;  %1833 = vmatpush1.bf16.msra.mxu0 %v7523_v6  ;;  %v7586_v5 = vcombine.high %v993_v62, %v997_v63  ;;  %v7588_v6 = vcombine.high %v994_v1, %v998_v2 }
 0x281   : > { %1793 = vmatprep.subr.bf16.mxu1 %v7530_v7  ;;  %1834 = vmatprep.subr.bf16.mxu0 %v7532_v8  ;;  %v1001_v7 = vld [vmem:[#allocation8 + $0x390] sm:$0xff] }
 0x282   : > { %v1005_v8 = vld [vmem:[#allocation8 + $0x3b0] sm:$0xff] }
 0x283   : > { %v7593_v31 = vcombine.low %v1001_v7, %v1005_v8 }
 0x284   : > { %1794 = vmatpush1.bf16.msra.mxu1 %v7529_v20  ;;  %1835 = vmatpush1.bf16.msra.mxu0 %v7531_v22  ;;  %v7594_v20 = vcombine.high %v1001_v7, %v1005_v8  ;;  %v7596_v22 = vcombine.high %v1002_v10, %v1006_v11 }
 0x285   : > { %1795 = vmatprep.subr.bf16.mxu1 %v7538_v25  ;;  %1836 = vmatprep.subr.bf16.mxu0 %v7540_v26  ;;  %v1009_v25 = vld [vmem:[#allocation8 + $0x3d0] sm:$0xff] }
 0x286   : > { %v1013_v26 = vld [vmem:[#allocation8 + $0x3f0] sm:$0xff] }
 0x288   : > { %1796 = vmatpush1.bf16.msra.mxu1 %v7537_v32  ;;  %1837 = vmatpush1.bf16.msra.mxu0 %v7539_v35  ;;  %v7602_v32 = vcombine.high %v1009_v25, %v1013_v26  ;;  %v7604_v35 = vcombine.high %v1010_v27, %v1014_v29 }
 0x289   : > { %1797 = vmatprep.subr.bf16.mxu1 %v7546_v34  ;;  %1838 = vmatprep.subr.bf16.mxu0 %v7548_v36  ;;  %v7601_v34 = vcombine.low %v1009_v25, %v1013_v26  ;;  %v7603_v36 = vcombine.low %v1010_v27, %v1014_v29 }
 0x28c   : > { %1798 = vmatpush1.bf16.msra.mxu1 %v7545_v42  ;;  %1839 = vmatpush1.bf16.msra.mxu0 %v7547_v28  ;;  %v8794_v42 = vld [vmem:[%s10346_s18] sm:$0xff]   ;;  %v10424_v28 = vsub.s32 2, %v10378_v21  ;;  %s10936_s18 = sld [smem:[#allocation35_spill]] }
 0x28d   : > { %1799 = vmatprep.subr.bf16.mxu1 %v7554_v30  ;;  %1840 = vmatprep.subr.bf16.mxu0 %v7556_v43  ;;  %v1017_v30 = vld [vmem:[%s10935_s6] sm:$0xff]  ;;  %v10430_v43 = vsub.s32 3, %v10378_v21  ;;  %s9752_s6 = scalar_lea.vmem %s9751_s1, 256 }
 0x28e   : > { %v1662_v44 = vrot.slane %v1017_v30, %v10381_v23  ;;  %v1670_v45 = vrot.slane %v1017_v30, %v10424_v28  ;;  %v1666_v46 = vrot.slane %v1017_v30, %v10384_v24 }
 0x28f   : > { %v1674_v47 = vrot.slane %v1017_v30, %v10430_v43 }
 0x290   : > { %1800 = vmatpush1.bf16.msra.mxu1 %v7553_v48  ;;  %1841 = vmatpush1.bf16.msra.mxu0 %v7555_v49 }
 0x291   : > { %1801 = vmatprep.subr.bf16.mxu1 %v7562_v12  ;;  %1842 = vmatprep.subr.bf16.mxu0 %v7564_v13 }
 0x292   : > { %s715_s20 = sand.u32 1, %s10936_s18  }
 0x293   : > { %s7465_s19 = sshll.u32 %s715_s20, 3  ;;  %s7239_s22 = scalar_lea.sflag [#allocation7], %s715_s20 }
 0x294   : > { %1802 = vmatpush1.bf16.msra.mxu1 %v7561_v50  ;;  %1843 = vmatpush1.bf16.msra.mxu0 %v7563_v51  ;;  %s717_s25 = scalar_lea.vmem [#allocation25], %s7465_s19 }
 0x295   : > { %1803 = vmatprep.subr.bf16.mxu1 %v7570_v52  ;;  %1844 = vmatprep.subr.bf16.mxu0 %v7572_v53  ;;  %s7252_s27 = sshll.u32 %s717_s25, 4  ;;  %s10819_s27 = int_to_ptr.vmem [resolvable:$true] %s7252_s27 }
 0x296   : > { %s9746_s26 = scalar_lea.vmem %s10819_s27, 128  ;;  %p9753_p12 = scmp.lt.s32.totalorder %s10819_s27, %s9751_s1 }
 0x297   : > { %p9747_p0 = scmp.ne.s32.totalorder %s10819_s27, %s9746_s26  ;;  %p9754_p7 = scmp.lt.s32.totalorder %s9752_s6, %s9746_s26 }
 0x298   : > { %1804 = vmatpush1.bf16.msra.mxu1 %v7569_v58  ;;  %1845 = vmatpush1.bf16.msra.mxu0 %v7571_v59  ;;  %v1678_v58 = vrot.slane %v1017_v30, %v10437_v54  ;;  %v1686_v59 = vrot.slane %v1017_v30, %v1685_v55  ;;  %v8813_v55 = vld [vmem:[#allocation14 + $0x64] ss:$12 sps:$4 sm:$0xff]  }
 0x299   : > { %1805 = vmatprep.subr.bf16.mxu1 %v7578_v60  ;;  %1846 = vmatprep.subr.bf16.mxu0 %v7580_v61  ;;  %v1682_v60 = vrot.slane %v1017_v30, %v10441_v56  ;;  %v1690_v61 = vrot.slane %v1017_v30, %v1689_v57  ;;  %v8811_v57 = vld [vmem:[#allocation14 + $0x60] ss:$12 sps:$4 sm:$0xff]   ;;  %p9748_p3 = pnand %p9747_p0, %p10939_p2  ;;  %p9755_p8 = por %p9754_p7, %p9753_p12 }
 0x29b   : > { %p9749_p4 = pneg %p9748_p3 }
 0x29c   : > { %1806 = vmatpush1.bf16.msra.mxu1 %v7577_v3  ;;  %1847 = vmatpush1.bf16.msra.mxu0 %v7579_v4 }
 0x29d   : > { %1807 = vmatprep.subr.bf16.mxu1 %v7586_v5  ;;  %1848 = vmatprep.subr.bf16.mxu0 %v7588_v6  ;;  %p9756_p11 = pnand %p9755_p8, %p9749_p4 }
 0x2a0   : > { %1808 = vmatpush1.bf16.msra.mxu1 %v7585_v15  ;;  %1849 = vmatpush1.bf16.msra.mxu0 %v7587_v19  ;;  %v7607_v15 = vld [vmem:[#allocation10] ss:$0 sm:$0xff] }
 0x2a1   : > { %1809 = vmatprep.subr.bf16.mxu1 %v7594_v20  ;;  %1850 = vmatprep.subr.bf16.mxu0 %v7596_v22 }
 0x2a4   : > { %1810 = vmatpush1.bf16.msra.mxu1 %v7593_v31  ;;  %1851 = vmatpush1.bf16.msra.mxu0 %v7595_v33 }
 0x2a5   : > { %1811 = vmatprep.subr.bf16.mxu1 %v7602_v32  ;;  %1852 = vmatprep.subr.bf16.mxu0 %v7604_v35 }
 0x2a8   : > { %1812 = vmatpush1.bf16.msra.mxu1 %v7601_v34  ;;  %1853 = vmatpush1.bf16.msra.mxu0 %v7603_v36 }
 0x2a9   : > { %8352 = vmatprep.subr.bf16.mxu1 %v9862_v39 }
 0x2ab   : > { %1814 = vmatmul.mubr.bf16.vlgmr.msra.gmra.mrb[4].mxu1 %v10390_v37  ;;  %1855 = vmatmul.mubr.bf16.vlgmr.msra.gmra.mrb[8].mxu0 %v10390_v37  ;;  %v8798_v37 = vld [vmem:[%s10934_s23 + $0x18] sm:$0xff]  }
 0x2ac   : > { %8353 = vmatpush3.bf16.msra.mxu1 %v8795_v38  ;;  %8360 = vmatprep.mubr.msk.bf16.mxu1 %vm9863_vm3, %v9862_v39 }
 0x2ad   : > { %8354 = vmatprep.subr.bf16.mxu1 %v9862_v39  ;;  %2259 = vmatprep.mubr.bf16.mxu0 %v9860_v0 }
 0x2b0   : > { %8355 = vmatpush3.bf16.msra.mxu1 %v8796_v40 }
 0x2b1   : > { %8356 = vmatprep.subr.bf16.mxu1 %v9862_v39 }
 0x2b4   : > { %8357 = vmatpush3.bf16.msra.mxu1 %v8797_v41 }
 0x2b5   : > { %8358 = vmatprep.subr.bf16.mxu1 %v9862_v39 }
 0x2b8   : > { %8359 = vmatpush3.bf16.msra.mxu1 %v8798_v37 }
 0x2bb   : > { %8361 = vmatmul.mubr.msk.bf16.vlgmr.msra.gmra.mrb[8].mxu1 %vm788_vm0, %v8794_v42 }
 0x33e   : > { %v1733_v48 = vpop.f32.mrb[0].mxu1  ;;  %v1774_v49 = vpop.f32.mrb[4].mxu0 }
 0x33f   : > { %v1734_v12 = vadd.f32 %v1733_v48, %v1662_v44  ;;  %v1775_v13 = vadd.f32 %v1774_v49, %v1670_v45  ;;  %v1735_v14 = vpop.f32.mrb[1].mxu1  ;;  %v1776_v16 = vpop.f32.mrb[5].mxu0  ;;  %v7605_v44 = vld [vmem:[#allocation11] ss:$0 sm:$0xff] }
 0x340   : > { %v1736_v17 = vadd.f32 %v1735_v14, %v1666_v46  ;;  %v1777_v18 = vadd.f32 %v1776_v16, %v1674_v47  ;;  %v1737_v50 = vpop.f32.mrb[2].mxu1  ;;  %v1778_v51 = vpop.f32.mrb[6].mxu0  ;;  %v7606_v47 = vld [vmem:[#allocation11 + $0x1] ss:$0 sm:$0xff]  ;;  %v8801_v14 = vld [vmem:[#allocation14 + $0x4] ss:$12 sps:$4 sm:$0xff]  }
 0x341   : > { %1863 = vst [vmem:[#allocation2] sm:$0x1] %v1734_v12  ;;  %1865 = vst [vmem:[#allocation2 + $0x2] sm:$0x1] %v1775_v13  ;;  %v1738_v52 = vpop.f32.mrb[3].mxu1  ;;  %v1779_v53 = vpop.f32.mrb[7].mxu0  ;;  %2227 = vmatprep.subr.bf16.mxu0 %v8801_v14 }
 0x342   : > { %1864 = vst [vmem:[#allocation2 + $0x1] sm:$0x1] %v1736_v17  ;;  %1866 = vst [vmem:[#allocation2 + $0x3] sm:$0x1] %v1777_v18  ;;  %v8799_v16 = vld [vmem:[#allocation14] ss:$12 sps:$4 sm:$0xff]  }
 0x343   : > { %2228 = vmatpush1.bf16.msra.mxu0 %v8799_v16  ;;  %v8804_v17 = vld [vmem:[#allocation14 + $0x1c] ss:$12 sps:$4 sm:$0xff]   ;;  %v8802_v18 = vld [vmem:[#allocation14 + $0x18] ss:$12 sps:$4 sm:$0xff]   ;;  %v8807_v50 = vld [vmem:[#allocation14 + $0x34] ss:$12 sps:$4 sm:$0xff]  }
 0x344   : > { %2229 = vmatprep.subr.bf16.mxu0 %v8804_v17  ;;  %v8805_v51 = vld [vmem:[#allocation14 + $0x30] ss:$12 sps:$4 sm:$0xff]   ;;  %v8810_v52 = vld [vmem:[#allocation14 + $0x4c] ss:$12 sps:$4 sm:$0xff]   ;;  %v8808_v53 = vld [vmem:[#allocation14 + $0x48] ss:$12 sps:$4 sm:$0xff]  }
 0x345   : > { %v8828_v14 = vld [vmem:[#allocation14 + $0x68] ss:$12 sps:$4 sm:$0xff]  }
 0x347   : > { %2230 = vmatpush1.bf16.msra.mxu0 %v8802_v18  ;;  %v5828_v18 = vld [vmem:[#allocation13 + $0x18] sm:$0xff] }
 0x348   : > { %2231 = vmatprep.subr.bf16.mxu0 %v8807_v50 }
 0x34b   : > { %2232 = vmatpush1.bf16.msra.mxu0 %v8805_v51  ;;  %v8829_v51 = vld [vmem:[#allocation14 + $0x80] ss:$12 sps:$4 sm:$0xff]  }
 0x34c   : > { %2233 = vmatprep.subr.bf16.mxu0 %v8810_v52  ;;  %v5832_v52 = vrot.slane %v5828_v18, %v10381_v23 }
 0x34f   : > { %2234 = vmatpush1.bf16.msra.mxu0 %v8808_v53 }
 0x350   : > { %2235 = vmatprep.subr.bf16.mxu0 %v8813_v55 }
 0x353   : > { %2236 = vmatpush1.bf16.msra.mxu0 %v8811_v57 }
 0x37e   : > { %v1815_v62 = vpop.f32.mrb[4].mxu1  ;;  %v1856_v63 = vpop.f32.mrb[8].mxu0 }
 0x37f   : > { %v1816_v1 = vadd.f32 %v1815_v62, %v1678_v58  ;;  %v1857_v2 = vadd.f32 %v1856_v63, %v1686_v59  ;;  %v1817_v3 = vpop.f32.mrb[5].mxu1  ;;  %v1858_v4 = vpop.f32.mrb[9].mxu0  ;;  %v8816_v58 = vld [vmem:[#allocation14 + $0x7c] ss:$12 sps:$4 sm:$0xff]   ;;  %v8814_v59 = vld [vmem:[#allocation14 + $0x78] ss:$12 sps:$4 sm:$0xff]  }
 0x380   : > { %v1818_v5 = vadd.f32 %v1817_v3, %v1682_v60  ;;  %v1859_v6 = vadd.f32 %v1858_v4, %v1690_v61  ;;  %v1819_v7 = vpop.f32.mrb[6].mxu1  ;;  %v1860_v8 = vpop.f32.mrb[10].mxu0  ;;  %2237 = vmatprep.subr.bf16.mxu0 %v8816_v58  ;;  %v8817_v60 = vld [vmem:[#allocation14 + $0x90] ss:$12 sps:$4 sm:$0xff]   ;;  %v8819_v61 = vld [vmem:[#allocation14 + $0x94] ss:$12 sps:$4 sm:$0xff]  }
 0x381   : > { %1867 = vst [vmem:[#allocation2 + $0x4] sm:$0x1] %v1816_v1  ;;  %1869 = vst [vmem:[#allocation2 + $0x6] sm:$0x1] %v1857_v2  ;;  %v1820_v10 = vpop.f32.mrb[7].mxu1  ;;  %v1861_v21 = vpop.f32.mrb[11].mxu0  ;;  %2238 = vmatpush1.bf16.msra.mxu0 %v8814_v59 }
 0x382   : > { %1868 = vst [vmem:[#allocation2 + $0x5] sm:$0x1] %v1818_v5  ;;  %1870 = vst [vmem:[#allocation2 + $0x7] sm:$0x1] %v1859_v6  ;;  %v8822_v62 = vld [vmem:[#allocation14 + $0xac] ss:$12 sps:$4 sm:$0xff]   ;;  %2239 = vmatprep.subr.bf16.mxu0 %v8819_v61  ;;  %v5838_v61 = vrot.slane %v5828_v18, %v10384_v24 }
 0x383   : > { %v8820_v63 = vld [vmem:[#allocation14 + $0xa8] ss:$12 sps:$4 sm:$0xff]   ;;  %v8830_v58 = vld [vmem:[#allocation14 + $0x98] ss:$12 sps:$4 sm:$0xff]   ;;  %v8831_v59 = vld [vmem:[#allocation14 + $0xb0] ss:$12 sps:$4 sm:$0xff]  }
 0x385   : > { %2240 = vmatpush1.bf16.msra.mxu0 %v8817_v60 }
 0x386   : > { %2241 = vmatprep.subr.bf16.mxu0 %v8822_v62 }
 0x389   : > { %v1871_v11 = vld [vmem:[#allocation2] sm:$0xff]  ;;  %2242 = vmatpush1.bf16.msra.mxu0 %v8820_v63 }
 0x38a   : > { %1874 = vadd.xlane.f32.xlu0 %v1871_v11  ;;  %8384 = vmatprep.subr.bf16.mxu0 %v9862_v39 }
 0x38e   : > { %v1979_v19 = vpop.f32.mrb[8].mxu1 }
 0x38f   : > { %v1980_v20 = vadd.f32 %v7607_v15, %v1979_v19  ;;  %v8362_v22 = vpop.f32.mrb[9].mxu1 }
 0x390   : > { %v1982_v25 = vpop.f32.mrb[10].mxu1 }
 0x391   : > { %1987 = vadd.xlane.f32.xlu1 %v1980_v20  ;;  %v1983_v26 = vadd.f32 %v7607_v15, %v1982_v25  ;;  %v8363_v27 = vpop.f32.mrb[11].mxu1  ;;  %v10459_v15 = vld [vmem:[#allocation13] sm:$0xff]  ;;  %v8824_v25 = vld [vmem:[#allocation14 + $0x8] ss:$12 sps:$4 sm:$0xff]  }
 0x392   : > { %v2012_v19 = vrot.slane %v10459_v15, %v10381_v23  ;;  %8364 = vmatprep.subr.bf16.mxu1 %v8824_v25 }
 0x393   : > { %8365 = vmatpush3.bf16.msra.mxu1 %v8824_v25 }
 0x395   : > { %1989 = vadd.xlane.f32.xlu1 %v1983_v26 }
 0x417   : > { %v1875_v29 = vpop.xlane.xlu0 %1874 }
 0x418   : > { %v1877_v31 = vmul.f32 0.0078125, %v1875_v29 }
 0x41a   : > { %v1878_v33 = vsub.f32 %v1871_v11, %v1877_v31  ;;  %v3280_v31 = vld [vmem:[#allocation13 + $0x8] sm:$0xff] }
 0x41c   : > { %v1879_v32 = vmul.f32 %v1878_v33, %v1878_v33 }
 0x41e   : > { %v1988_v35 = vpop.xlane.xlu1 %1987  ;;  %1880 = vadd.xlane.f32.xlu0 %v1879_v32  ;;  %v8825_v32 = vld [vmem:[#allocation14 + $0x20] ss:$12 sps:$4 sm:$0xff]  }
 0x41f   : > { %v1991_v34 = vmul.f32 0.0078125, %v1988_v35  ;;  %v3284_v35 = vrot.slane %v3280_v31, %v10381_v23  ;;  %8366 = vmatprep.subr.bf16.mxu1 %v8825_v32 }
 0x420   : > { %8367 = vmatpush3.bf16.msra.mxu1 %v8825_v32 }
 0x421   : > { %v10446_v36 = vsub.f32 %v1980_v20, %v1991_v34 }
 0x422   : > { %v1990_v30 = vpop.xlane.xlu1 %1989 }
 0x423   : > { %v1995_v38 = vmul.f32 %v10446_v36, %v10446_v36  ;;  %v1992_v45 = vmul.f32 0.0078125, %v1990_v30  ;;  %v4554_v30 = vld [vmem:[#allocation13 + $0x10] sm:$0xff] }
 0x424   : > { %v4564_v16 = vrot.slane %v4554_v30, %v10384_v24 }
 0x425   : > { %1997 = vadd.xlane.f32.xlu1 %v1995_v38  ;;  %v1994_v49 = vsub.f32 %v1983_v26, %v1992_v45  ;;  %v2018_v26 = vrot.slane %v10459_v15, %v10384_v24  ;;  %v8827_v45 = vld [vmem:[#allocation14 + $0x50] ss:$12 sps:$4 sm:$0xff]  }
 0x427   : > { %v1996_v13 = vmul.f32 %v1994_v49, %v1994_v49 }
 0x4ab   : > { %v1881_v40 = vpop.xlane.xlu0 %1880 }
 0x4ac   : > { %v1882_v41 = vmul.f32 0.0078125, %v1881_v40 }
 0x4ae   : > { %v1883_v37 = vadd.f32 1e-05, %v1882_v41 }
 0x4b0   : > { %9303 = vrsqrt.f32 %v1883_v37  ;;  %v3290_v37 = vrot.slane %v3280_v31, %v10384_v24  ;;  %v2035_v24 = vrot.slane %v10459_v15, %v10424_v28 }
 0x4b2   : > { %v1998_v1 = vpop.xlane.xlu1 %1997 }
 0x4b3   : > { %v2001_v2 = vmul.f32 0.0078125, %v1998_v1 }
 0x4b5   : > { %v2003_v3 = vadd.f32 1e-05, %v2001_v2 }
 0x4b7   : > { %9305 = vrsqrt.f32 %v2003_v3 }
 0x4ba   : > { %v9304_v42 = vpop.eup %9303 }
 0x4bb   : > { %v1885_v46 = vmul.f32 %v9304_v42, %v1878_v33 }
 0x4bd   : > { %v1890_v48 = vmul.f32 %v7605_v44, %v1885_v46 }
 0x4bf   : > { %v10450_v12 = vadd.f32 %v7606_v47, %v1890_v48  ;;  %v4558_v47 = vrot.slane %v4554_v30, %v10381_v23 }
 0x4c1   : > { %2021 = vadd.xlane.f32.xlu0 %v10450_v12  ;;  %v9306_v11 = vpop.eup %9305 }
 0x4c2   : > { %v2007_v20 = vmul.f32 %v9306_v11, %v10446_v36  ;;  %v8826_v36 = vld [vmem:[#allocation14 + $0x38] ss:$12 sps:$4 sm:$0xff]  }
 0x4c3   : > { %8368 = vmatprep.subr.bf16.mxu1 %v8826_v36 }
 0x4c4   : > { %v2013_v27 = vmul.f32 %v2012_v19, %v2007_v20  ;;  %v3285_v42 = vmul.f32 %v3284_v35, %v2007_v20  ;;  %8369 = vmatpush3.bf16.msra.mxu1 %v8826_v36  ;;  %v4559_v17 = vmul.f32 %v4558_v47, %v2007_v20  ;;  %v5833_v62 = vmul.f32 %v5832_v52, %v2007_v20 }
 0x4c5   : > { %1999 = vadd.xlane.f32.xlu0 %v1996_v13  ;;  %8370 = vmatprep.subr.bf16.mxu1 %v8827_v45 }
 0x4c6   : > { %v2019_v34 = vadd.f32 %v2018_v26, %v2013_v27  ;;  %v3291_v46 = vadd.f32 %v3290_v37, %v3285_v42  ;;  %v4565_v53 = vadd.f32 %v4564_v16, %v4559_v17  ;;  %v5839_v1 = vadd.f32 %v5838_v61, %v5833_v62  ;;  %v8838_v62 = vld [vmem:[#allocation16 + $0x28] sm:$0xff]  }
 0x4c8   : > { %8371 = vmatpush3.bf16.msra.mxu1 %v8827_v45 }
 0x4c9   : > { %8372 = vmatprep.subr.bf16.mxu1 %v8828_v14 }
 0x4cc   : > { %8373 = vmatpush3.bf16.msra.mxu1 %v8828_v14 }
 0x4cd   : > { %8374 = vmatprep.subr.bf16.mxu1 %v8829_v51 }
 0x4d0   : > { %8375 = vmatpush3.bf16.msra.mxu1 %v8829_v51 }
 0x4d1   : > { %8376 = vmatprep.subr.bf16.mxu1 %v8830_v58 }
 0x4d4   : > { %8377 = vmatpush3.bf16.msra.mxu1 %v8830_v58  ;;  %v8835_v58 = vld [vmem:[#allocation16 + $0x10] sm:$0xff]  }
 0x4d5   : > { %8378 = vmatprep.subr.bf16.mxu1 %v8831_v59 }
 0x4d8   : > { %8379 = vmatpush3.bf16.msra.mxu1 %v8831_v59  ;;  %v8836_v59 = vld [vmem:[#allocation16 + $0x18] sm:$0xff]  }
 0x4d9   : > { %8392 = vmatprep.subr.bf16.mxu1 %v9862_v39 }
 0x54e   : > { %v2022_v4 = vpop.xlane.xlu0 %2021 }
 0x54f   : > { %v2023_v5 = vmul.f32 0.0078125, %v2022_v4 }
 0x551   : > { %v10455_v6 = vsub.f32 %v10450_v12, %v2023_v5 }
 0x552   : > { %v2000_v7 = vpop.xlane.xlu0 %1999 }
 0x553   : > { %v2002_v8 = vmul.f32 0.0078125, %v2000_v7  ;;  %v2025_v10 = vmul.f32 %v10455_v6, %v10455_v6 }
 0x555   : > { %v2004_v21 = vadd.f32 1e-05, %v2002_v8  ;;  %2026 = vadd.xlane.f32.xlu1 %v2025_v10  ;;  %v2040_v8 = vrot.slane %v10459_v15, %v10430_v43 }
 0x557   : > { %9307 = vrsqrt.f32 %v2004_v21 }
 0x561   : > { %v9308_v22 = vpop.eup %9307 }
 0x562   : > { %v2008_v29 = vmul.f32 %v9308_v22, %v1994_v49 }
 0x564   : > { %v2014_v33 = vmul.f32 %v2012_v19, %v2008_v29  ;;  %v3286_v40 = vmul.f32 %v3284_v35, %v2008_v29  ;;  %v4560_v49 = vmul.f32 %v4558_v47, %v2008_v29  ;;  %v5834_v57 = vmul.f32 %v5832_v52, %v2008_v29 }
 0x566   : > { %v2020_v38 = vadd.f32 %v2018_v26, %v2014_v33  ;;  %v3292_v44 = vadd.f32 %v3290_v37, %v3286_v40  ;;  %v4566_v50 = vadd.f32 %v4564_v16, %v4560_v49  ;;  %v5840_v63 = vadd.f32 %v5838_v61, %v5834_v57  ;;  %v8834_v57 = vld [vmem:[#allocation16 + $0x8] sm:$0xff]   ;;  %v8837_v61 = vld [vmem:[#allocation16 + $0x20] sm:$0xff]  }
 0x568   : > { %v8045_v41 = vpack.c.bf16 %v2020_v38, %v2019_v34  ;;  %v8050_v48 = vpack.c.bf16 %v3292_v44, %v3291_v46  ;;  %v8055_v55 = vpack.c.bf16 %v4566_v50, %v4565_v53  ;;  %v8060_v2 = vpack.c.bf16 %v5840_v63, %v5839_v1  ;;  %v8833_v53 = vld [vmem:[#allocation16] sm:$0xff]   ;;  %v8839_v63 = vld [vmem:[#allocation16 + $0x30] sm:$0xff]   ;;  %v8840_v1 = vld [vmem:[#allocation16 + $0x38] sm:$0xff]  }
 0x56a   : > { %8046 = vst [vmem:[#allocation3] sm:$0xff] %v8045_v41  }
 0x571   : > { %v8823_v13 = vld [vmem:[#allocation3] sm:$0xff]  }
 0x572   : > { %8051 = vst [vmem:[#allocation3] sm:$0xff] %v8050_v48   ;;  %2260 = vmatmul.mubr.bf16.vlgmr.msra.gmra.mrb[12].mxu0 %v8823_v13  ;;  %8380 = vmatprep.mubr.bf16.mxu1 %v8823_v13 }
 0x573   : > { %2267 = vmatprep.mubr.bf16.mxu0 %v9860_v0 }
 0x579   : > { %v10472_v60 = vld [vmem:[#allocation3] sm:$0xff]  }
 0x57a   : > { %8056 = vst [vmem:[#allocation3] sm:$0xff] %v8055_v55  }
 0x581   : > { %v10476_v23 = vld [vmem:[#allocation3] sm:$0xff]  }
 0x582   : > { %8061 = vst [vmem:[#allocation3] sm:$0xff] %v8060_v2  }
 0x5e2   : > { %v2027_v3 = vpop.xlane.xlu1 %2026 }
 0x5e3   : > { %v2028_v4 = vmul.f32 0.0078125, %v2027_v3 }
 0x5e5   : > { %v2029_v5 = vadd.f32 1e-05, %v2028_v4 }
 0x5e7   : > { %9309 = vrsqrt.f32 %v2029_v5 }
 0x5f1   : > { %v9310_v7 = vpop.eup %9309 }
 0x5f2   : > { %v2031_v10 = vmul.f32 %v9310_v7, %v10455_v6 }
 0x5f4   : > { %v2036_v21 = vmul.f32 %v2035_v24, %v2031_v10 }
 0x5f6   : > { %v2041_v11 = vadd.f32 %v2040_v8, %v2036_v21 }
 0x5f8   : > { %v2052_v19 = vpack.c.bf16 %v2041_v11, %v2041_v11 }
 0x5fa   : > { %2053 = vst [vmem:[#allocation3 + $0x8] sm:$0xf] %v2052_v19  ;;  %v8841_v19 = vld [vmem:[#allocation17] ss:$16 sps:$4 sm:$0xff]  }
 0x601   : > { %v8832_v20 = vld [vmem:[#allocation3 + $0x8] ss:$0 sps:$4 sm:$0xff]  }
 0x602   : > { %2268 = vmatmul.mubr.bf16.gmra.mrb[16].mxu0 %v8832_v20  ;;  %8381 = vmatmul.mubr.bf16.vlgmr.msra.gmra.mrb[12].mxu1 %v8832_v20  ;;  %v8843_v20 = vld [vmem:[#allocation17 + $0x4] ss:$16 sps:$4 sm:$0xff]  }
 0x603   : > { %8388 = vmatprep.mubr.msk.bf16.mxu0 %vm9863_vm3, %v9862_v39  ;;  %8396 = vmatprep.mubr.msk.bf16.mxu1 %vm9863_vm3, %v9862_v39 }
 0x645   : > { %v2261_v22 = vpop.f32.mrb[12].mxu0 }
 0x646   : > { %v2262_v25 = vpop.f32.mrb[13].mxu0  ;;  %v8844_v22 = vld [vmem:[#allocation17 + $0x8] ss:$16 sps:$4 sm:$0xff]  }
 0x647   : > { %v2264_v26 = vpop.f32.mrb[14].mxu0 }
 0x648   : > { %v2265_v27 = vpop.f32.mrb[15].mxu0  ;;  %v8849_v26 = vld [vmem:[#allocation17 + $0x24] ss:$16 sps:$4 sm:$0xff]  }
 0x649   : > { %v2325_v29 = vpack.c.bf16 %v2265_v27, %v2262_v25  ;;  %v8846_v25 = vld [vmem:[#allocation17 + $0xc] ss:$16 sps:$4 sm:$0xff]  }
 0x64a   : > { %v8852_v27 = vld [vmem:[#allocation17 + $0x2c] ss:$16 sps:$4 sm:$0xff]  }
 0x64b   : > { %8385 = vmatpush3.bf16.xpose.msra.mxu0 %v2325_v29  ;;  %v8847_v29 = vld [vmem:[#allocation17 + $0x20] ss:$16 sps:$4 sm:$0xff]  }
 0x64c   : > { %8386 = vmatprep.subr.bf16.mxu0 %v9862_v39 }
 0x6d5   : > { %v2269_v6 = vpop.f32.mrb[16].mxu0  ;;  %v8382_v31 = vpop.f32.mrb[12].mxu1 }
 0x6d6   : > { %v2271_v33 = vpop.f32.mrb[17].mxu0  ;;  %v2310_v32 = vpop.f32.mrb[13].mxu1  ;;  %v2382_v37 = vpack.c.bf16 %v8382_v31, %v8382_v31  ;;  %v2324_v42 = vpack.c.bf16 %v2269_v6, %v2269_v6  ;;  %v8850_v6 = vld [vmem:[#allocation17 + $0x28] ss:$16 sps:$4 sm:$0xff]   ;;  %v8855_v31 = vld [vmem:[#allocation17 + $0x44] ss:$16 sps:$4 sm:$0xff]  }
 0x6d7   : > { %v2326_v35 = vpack.c.bf16 %v2271_v33, %v2271_v33  ;;  %v2273_v34 = vpop.f32.mrb[18].mxu0  ;;  %v8383_v38 = vpop.f32.mrb[14].mxu1  ;;  %v8858_v33 = vld [vmem:[#allocation17 + $0x4c] ss:$16 sps:$4 sm:$0xff]  }
 0x6d8   : > { %v2274_v40 = vpop.f32.mrb[19].mxu0  ;;  %v2313_v41 = vpop.f32.mrb[15].mxu1  ;;  %v2388_v30 = vsel %vm2386_vm4, %v2382_v37, 0  ;;  %v8864_v37 = vld [vmem:[#allocation17 + $0x6c] ss:$16 sps:$4 sm:$0xff]  }
 0x6d9   : > { %v2381_v36 = vpack.c.bf16 %v2313_v41, %v2310_v32  ;;  %8387 = vmatpush3.bf16.xpose.msra.mxu0 %v2326_v35  ;;  %v8853_v32 = vld [vmem:[#allocation17 + $0x40] ss:$16 sps:$4 sm:$0xff]   ;;  %v8856_v35 = vld [vmem:[#allocation17 + $0x48] ss:$16 sps:$4 sm:$0xff]  }
 0x6da   : > { %2749 = vmatprep.subr.bf16.mxu0 %v8843_v20  ;;  %v8896_v20 = vld [vmem:[#allocation19 + $0x88] sm:$0xff]  }
 0x6db   : > { %8393 = vmatpush3.bf16.msra.mxu1 %v2381_v36  ;;  %v8861_v36 = vld [vmem:[#allocation17 + $0x64] ss:$16 sps:$4 sm:$0xff]  }
 0x6dc   : > { %8394 = vmatprep.subr.bf16.mxu1 %v9862_v39 }
 0x6df   : > { %8395 = vmatpush3.bf16.msra.mxu1 %v2388_v30  ;;  %v8862_v30 = vld [vmem:[#allocation17 + $0x68] ss:$16 sps:$4 sm:$0xff]  }
 0x6e0   : > { %8389 = vmatmul.mubr.bf16.vlgmr.msra.gmra.mrb[20].mxu0 %v2324_v42  ;;  %8400 = vmatprep.subr.bf16.mxu1 %v9862_v39  ;;  %v8859_v42 = vld [vmem:[#allocation17 + $0x60] ss:$16 sps:$4 sm:$0xff]  }
 0x6e1   : > { %2781 = vmatprep.mubr.bf16.mxu0 %v9860_v0  ;;  %2750 = vmatpush1.bf16.msra.mxu0 %v8841_v19  ;;  %v8895_v19 = vld [vmem:[#allocation19 + $0xc8] sm:$0xff]  }
 0x6e2   : > { %2751 = vmatprep.subr.bf16.mxu0 %v8849_v26  ;;  %v8900_v26 = vld [vmem:[#allocation19 + $0x90] sm:$0xff]  }
 0x6e5   : > { %2752 = vmatpush1.bf16.msra.mxu0 %v8847_v29  ;;  %v8902_v29 = vld [vmem:[#allocation19 + $0x18] sm:$0xff]  }
 0x6e6   : > { %2753 = vmatprep.subr.bf16.mxu0 %v8855_v31  ;;  %v8904_v31 = vld [vmem:[#allocation19 + $0x98] sm:$0xff]  }
 0x6e9   : > { %2754 = vmatpush1.bf16.msra.mxu0 %v8853_v32  ;;  %v8906_v32 = vld [vmem:[#allocation19 + $0x20] sm:$0xff]  }
 0x6ea   : > { %2755 = vmatprep.subr.bf16.mxu0 %v8861_v36  ;;  %v8912_v36 = vld [vmem:[#allocation19 + $0xa8] sm:$0xff]  }
 0x6ed   : > { %2756 = vmatpush1.bf16.msra.mxu0 %v8859_v42  ;;  %v8914_v42 = vld [vmem:[#allocation19 + $0x30] sm:$0xff]  }
 0x7b3   : > { %v2361_v44 = vpop.f32.mrb[20].mxu0 }
 0x7b4   : > { %v2367_v45 = vmul.f32 0.088388346, %v2361_v44  ;;  %v8390_v46 = vpop.f32.mrb[21].mxu0  ;;  %v8865_v44 = vld [vmem:[#allocation17 + $0x80] ss:$16 sps:$4 sm:$0xff]  }
 0x7b5   : > { %v2364_v47 = vpop.f32.mrb[22].mxu0  ;;  %v8868_v46 = vld [vmem:[#allocation17 + $0x88] ss:$16 sps:$4 sm:$0xff]  }
 0x7b6   : > { %v8391_v48 = vpop.f32.mrb[23].mxu0  ;;  %v2369_v49 = vsel %vm2368_vm5, %v2367_v45, -inf  ;;  %v8870_v47 = vld [vmem:[#allocation17 + $0x8c] ss:$16 sps:$4 sm:$0xff]  }
 0x7b7   : > { %2370 = vmax.xlane.f32.xlu0 %v2369_v49  ;;  %v8873_v48 = vld [vmem:[#allocation17 + $0xa4] ss:$16 sps:$4 sm:$0xff]   ;;  %v8876_v49 = vld [vmem:[#allocation17 + $0xac] ss:$16 sps:$4 sm:$0xff]  }
 0x844   : > { %v2371_v13 = vpop.xlane.xlu0 %2370 }
 0x845   : > { %v2372_v14 = vsub.f32 %v2367_v45, %v2371_v13  ;;  %v8867_v45 = vld [vmem:[#allocation17 + $0x84] ss:$16 sps:$4 sm:$0xff]   ;;  %v8871_v13 = vld [vmem:[#allocation17 + $0xa0] ss:$16 sps:$4 sm:$0xff]  }
 0x846   : > { %2757 = vmatprep.subr.bf16.mxu0 %v8867_v45  ;;  %v8917_v45 = vld [vmem:[#allocation19 + $0x78] sm:$0xff]  }
 0x847   : > { %v2373_v16 = vmul.f32 1.442695, %v2372_v14  ;;  %2758 = vmatpush1.bf16.msra.mxu0 %v8865_v44  ;;  %v8874_v14 = vld [vmem:[#allocation17 + $0xa8] ss:$16 sps:$4 sm:$0xff]   ;;  %v8916_v44 = vld [vmem:[#allocation19 + $0xb0] sm:$0xff]  }
 0x848   : > { %2759 = vmatprep.subr.bf16.mxu0 %v8873_v48  ;;  %v8920_v48 = vld [vmem:[#allocation19 + $0xb8] sm:$0xff]  }
 0x849   : > { %9311 = vpow2.f32 %v2373_v16  ;;  %v8879_v16 = vld [vmem:[#allocation17 + $0xc4] ss:$16 sps:$4 sm:$0xff]  }
 0x84b   : > { %2760 = vmatpush1.bf16.msra.mxu0 %v8871_v13 }
 0x84c   : > { %2761 = vmatprep.subr.bf16.mxu0 %v8879_v16 }
 0x853   : > { %v9312_v17 = vpop.eup %9311 }
 0x854   : > { %v2375_v18 = vsel %vm2368_vm5, %v9312_v17, 0.0 }
 0x855   : > { %2376 = vadd.xlane.f32.xlu1 %v2375_v18  ;;  %v8877_v18 = vld [vmem:[#allocation17 + $0xc0] ss:$16 sps:$4 sm:$0xff]  }
 0x856   : > { %2762 = vmatpush1.bf16.msra.mxu0 %v8877_v18 }
 0x8e2   : > { %v2377_v50 = vpop.xlane.xlu1 %2376 }
 0x8e3   : > { %9313 = vrcp.f32 %v2377_v50  ;;  %v8880_v50 = vld [vmem:[#allocation17 + $0xc8] ss:$16 sps:$4 sm:$0xff]  }
 0x8ed   : > { %v9314_v51 = vpop.eup %9313 }
 0x8ee   : > { %v2379_v52 = vmul.f32 %v9314_v51, %v9312_v17  ;;  %v8882_v17 = vld [vmem:[#allocation17 + $0xcc] ss:$16 sps:$4 sm:$0xff]   ;;  %v8885_v51 = vld [vmem:[#allocation17 + $0xe4] ss:$16 sps:$4 sm:$0xff]  }
 0x8ef   : > { %2763 = vmatprep.subr.bf16.mxu0 %v8885_v51 }
 0x8f0   : > { %v2380_v55 = vpack.c.bf16 %v2379_v52, %v2379_v52  ;;  %v8888_v52 = vld [vmem:[#allocation17 + $0xec] ss:$16 sps:$4 sm:$0xff]  }
 0x8f2   : > { %8397 = vmatmul.mubr.msk.bf16.vlgmr.msra.gmra.mrb[16].mxu1 %vm2368_vm5, %v2380_v55  ;;  %v8886_v55 = vld [vmem:[#allocation17 + $0xe8] ss:$16 sps:$4 sm:$0xff]  }
 0x8f3   : > { %8401 = vmatpush3.bf16.msra.mxu1 %v8833_v53  ;;  %8416 = vmatprep.mubr.msk.bf16.mxu1 %vm9863_vm3, %v9862_v39  ;;  %v8883_v53 = vld [vmem:[#allocation17 + $0xe0] ss:$16 sps:$4 sm:$0xff]  }
 0x8f4   : > { %8402 = vmatprep.subr.bf16.mxu1 %v9862_v39  ;;  %2764 = vmatpush1.bf16.msra.mxu0 %v8883_v53 }
 0x8f7   : > { %8403 = vmatpush3.bf16.msra.mxu1 %v8834_v57 }
 0x8f8   : > { %8404 = vmatprep.subr.bf16.mxu1 %v9862_v39 }
 0x8fb   : > { %8405 = vmatpush3.bf16.msra.mxu1 %v8835_v58 }
 0x8fc   : > { %8406 = vmatprep.subr.bf16.mxu1 %v9862_v39 }
 0x8ff   : > { %8407 = vmatpush3.bf16.msra.mxu1 %v8836_v59 }
 0x900   : > { %8408 = vmatprep.subr.bf16.mxu1 %v9862_v39 }
 0x903   : > { %8409 = vmatpush3.bf16.msra.mxu1 %v8837_v61  ;;  %v2549_v61 = vrot.slane %v10459_v15, %v10437_v54 }
 0x904   : > { %8410 = vmatprep.subr.bf16.mxu1 %v9862_v39 }
 0x907   : > { %8411 = vmatpush3.bf16.msra.mxu1 %v8838_v62 }
 0x908   : > { %8412 = vmatprep.subr.bf16.mxu1 %v9862_v39 }
 0x90b   : > { %8413 = vmatpush3.bf16.msra.mxu1 %v8839_v63 }
 0x90c   : > { %8414 = vmatprep.subr.bf16.mxu1 %v9862_v39 }
 0x90f   : > { %8415 = vmatpush3.bf16.msra.mxu1 %v8840_v1  ;;  %v2554_v1 = vrot.slane %v10459_v15, %v10441_v56  ;;  %v8897_v15 = vld [vmem:[#allocation19 + $0x50] sm:$0xff]  }
 0x910   : > { %2790 = vmatprep.subr.bf16.mxu1 %v8846_v25  ;;  %v8899_v25 = vld [vmem:[#allocation19 + $0xd0] sm:$0xff]  }
 0x9c5   : > { %v2424_v2 = vpop.f32.mrb[16].mxu1 }
 0x9c6   : > { %v2430_v3 = vpack.c.bf16 %v2424_v2, %v2424_v2  ;;  %v8398_v4 = vpop.f32.mrb[17].mxu1 }
 0x9c7   : > { %v2427_v5 = vpop.f32.mrb[18].mxu1 }
 0x9c8   : > { %v8399_v24 = vpop.f32.mrb[19].mxu1  ;;  %8417 = vmatmul.mubr.bf16.vlgmr.msra.gmra.mrb[20].mxu1 %v2430_v3  ;;  %v8889_v5 = vld [vmem:[#allocation19 + $0x40] sm:$0xff]  }
 0x9c9   : > { %2822 = vmatprep.mubr.bf16.mxu1 %v9860_v0  ;;  %2791 = vmatpush1.bf16.msra.mxu1 %v8844_v22  ;;  %v8890_v24 = vld [vmem:[#allocation19] sm:$0xff]   ;;  %v8898_v22 = vld [vmem:[#allocation19 + $0x10] sm:$0xff]  }
 0x9ca   : > { %2792 = vmatprep.subr.bf16.mxu1 %v8852_v27  ;;  %8092 = vmatprep.subr.bf16.mxu0 %v8889_v5  ;;  %v8901_v27 = vld [vmem:[#allocation19 + $0x58] sm:$0xff]  }
 0x9cd   : > { %2793 = vmatpush1.bf16.msra.mxu1 %v8850_v6  ;;  %v8903_v6 = vld [vmem:[#allocation19 + $0xd8] sm:$0xff]  }
 0x9ce   : > { %2794 = vmatprep.subr.bf16.mxu1 %v8858_v33  ;;  %v8905_v33 = vld [vmem:[#allocation19 + $0x60] sm:$0xff]  }
 0x9d1   : > { %2795 = vmatpush1.bf16.msra.mxu1 %v8856_v35  ;;  %v8907_v35 = vld [vmem:[#allocation19 + $0xe0] sm:$0xff]  }
 0x9d2   : > { %2796 = vmatprep.subr.bf16.mxu1 %v8864_v37  ;;  %v8913_v37 = vld [vmem:[#allocation19 + $0x70] sm:$0xff]  }
 0x9d5   : > { %2797 = vmatpush1.bf16.msra.mxu1 %v8862_v30  ;;  %v8915_v30 = vld [vmem:[#allocation19 + $0xf0] sm:$0xff]  }
 0x9d6   : > { %2798 = vmatprep.subr.bf16.mxu1 %v8870_v47  ;;  %v8919_v47 = vld [vmem:[#allocation19 + $0xf8] sm:$0xff]  }
 0x9d9   : > { %2799 = vmatpush1.bf16.msra.mxu1 %v8868_v46  ;;  %v8918_v46 = vld [vmem:[#allocation19 + $0x38] sm:$0xff]  }
 0x9da   : > { %2800 = vmatprep.subr.bf16.mxu1 %v8876_v49  ;;  %v8923_v49 = vld [vmem:[#allocation14 + $0xc4] ss:$12 sps:$4 sm:$0xff]  }
 0x9dd   : > { %2801 = vmatpush1.bf16.msra.mxu1 %v8874_v14 }
 0x9de   : > { %2802 = vmatprep.subr.bf16.mxu1 %v8882_v17 }
 0x9e1   : > { %2803 = vmatpush1.bf16.msra.mxu1 %v8880_v50 }
 0x9e2   : > { %2804 = vmatprep.subr.bf16.mxu1 %v8888_v52 }
 0x9e5   : > { %2805 = vmatpush1.bf16.msra.mxu1 %v8886_v55 }
 0xa9b   : > { %v2529_v7 = vpop.f32.mrb[20].mxu1 }
 0xa9c   : > { %v10506_v8 = vadd.f32 %v2529_v7, %v10450_v12  ;;  %v8418_v10 = vpop.f32.mrb[21].mxu1  ;;  %v8891_v7 = vld [vmem:[#allocation19 + $0xc0] sm:$0xff]  }
 0xa9d   : > { %v2532_v21 = vpop.f32.mrb[22].mxu1  ;;  %v8892_v10 = vld [vmem:[#allocation19 + $0x80] sm:$0xff]   ;;  %8114 = vmatprep.subr.bf16.mxu1 %v8891_v7 }
 0xa9e   : > { %2535 = vadd.xlane.f32.xlu0 %v10506_v8  ;;  %v8419_v11 = vpop.f32.mrb[23].mxu1  ;;  %v8893_v21 = vld [vmem:[#allocation19 + $0x48] sm:$0xff]  }
 0xa9f   : > { %v8894_v11 = vld [vmem:[#allocation19 + $0x8] sm:$0xff]  }
 0xb2b   : > { %v2536_v34 = vpop.xlane.xlu0 %2535 }
 0xb2c   : > { %v2537_v38 = vmul.f32 0.0078125, %v2536_v34  ;;  %v8908_v34 = vld [vmem:[#allocation19 + $0xa0] sm:$0xff]  }
 0xb2e   : > { %v2538_v40 = vsub.f32 %v10506_v8, %v2537_v38  ;;  %v8909_v38 = vld [vmem:[#allocation19 + $0x68] sm:$0xff]  }
 0xb30   : > { %v2539_v41 = vmul.f32 %v2538_v40, %v2538_v40 }
 0xb32   : > { %2540 = vadd.xlane.f32.xlu1 %v2539_v41  ;;  %v8911_v41 = vld [vmem:[#allocation19 + $0xe8] sm:$0xff]  }
 0xbbf   : > { %v2541_v57 = vpop.xlane.xlu1 %2540 }
 0xbc0   : > { %v2542_v58 = vmul.f32 0.0078125, %v2541_v57 }
 0xbc2   : > { %v2543_v59 = vadd.f32 1e-05, %v2542_v58 }
 0xbc4   : > { %9315 = vrsqrt.f32 %v2543_v59 }
 0xbce   : > { %v9316_v62 = vpop.eup %9315 }
 0xbcf   : > { %v2545_v63 = vmul.f32 %v9316_v62, %v2538_v40  ;;  %v8910_v40 = vld [vmem:[#allocation19 + $0x28] sm:$0xff]  }
 0xbd1   : > { %v2550_v2 = vmul.f32 %v2549_v61, %v2545_v63 }
 0xbd3   : > { %v2555_v3 = vadd.f32 %v2554_v1, %v2550_v2 }
 0xbd5   : > { %v2588_v4 = vpack.c.bf16 %v2555_v3, %v2555_v3 }
 0xbd7   : > { %2782 = vmatmul.mubr.bf16.vlgmr.msra.gmra.mrb[24].mxu0 %v2588_v4  ;;  %2823 = vmatmul.mubr.bf16.vlgmr.msra.gmra.mrb[24].mxu1 %v2588_v4 }
 0xbd8   : > { %8093 = vmatpush3.bf16.msra.mxu0 %v8890_v24  ;;  %8115 = vmatpush3.bf16.msra.mxu1 %v8892_v10 }
 0xbd9   : > { %8094 = vmatprep.subr.bf16.mxu0 %v8893_v21  ;;  %8116 = vmatprep.subr.bf16.mxu1 %v8895_v19 }
 0xbdc   : > { %8095 = vmatpush3.bf16.msra.mxu0 %v8894_v11  ;;  %8117 = vmatpush3.bf16.msra.mxu1 %v8896_v20 }
 0xbdd   : > { %8096 = vmatprep.subr.bf16.mxu0 %v8897_v15  ;;  %8118 = vmatprep.subr.bf16.mxu1 %v8899_v25 }
 0xbe0   : > { %8097 = vmatpush3.bf16.msra.mxu0 %v8898_v22  ;;  %8119 = vmatpush3.bf16.msra.mxu1 %v8900_v26 }
 0xbe1   : > { %8098 = vmatprep.subr.bf16.mxu0 %v8901_v27  ;;  %8120 = vmatprep.subr.bf16.mxu1 %v8903_v6 }
 0xbe4   : > { %8099 = vmatpush3.bf16.msra.mxu0 %v8902_v29  ;;  %8121 = vmatpush3.bf16.msra.mxu1 %v8904_v31 }
 0xbe5   : > { %8100 = vmatprep.subr.bf16.mxu0 %v8905_v33  ;;  %8122 = vmatprep.subr.bf16.mxu1 %v8907_v35 }
 0xbe8   : > { %8101 = vmatpush3.bf16.msra.mxu0 %v8906_v32  ;;  %8123 = vmatpush3.bf16.msra.mxu1 %v8908_v34 }
 0xbe9   : > { %8102 = vmatprep.subr.bf16.mxu0 %v8909_v38  ;;  %8124 = vmatprep.subr.bf16.mxu1 %v8911_v41 }
 0xbec   : > { %8103 = vmatpush3.bf16.msra.mxu0 %v8910_v40  ;;  %8125 = vmatpush3.bf16.msra.mxu1 %v8912_v36 }
 0xbed   : > { %8104 = vmatprep.subr.bf16.mxu0 %v8913_v37  ;;  %8126 = vmatprep.subr.bf16.mxu1 %v8915_v30 }
 0xbf0   : > { %8105 = vmatpush3.bf16.msra.mxu0 %v8914_v42  ;;  %8127 = vmatpush3.bf16.msra.mxu1 %v8916_v44 }
 0xbf1   : > { %8106 = vmatprep.subr.bf16.mxu0 %v8917_v45  ;;  %8128 = vmatprep.subr.bf16.mxu1 %v8919_v47 }
 0xbf4   : > { %8107 = vmatpush3.bf16.msra.mxu0 %v8918_v46  ;;  %8129 = vmatpush3.bf16.msra.mxu1 %v8920_v48 }
 0xbf5   : > { %3500 = vmatprep.subr.bf16.mxu0 %v8923_v49 }
 0xcaa   : > { %v10514_v13 = vpop.f32.mrb[24].mxu0  ;;  %v10516_v14 = vpop.f32.mrb[24].mxu1 }
 0xcab   : > { %v10519_v16 = vmul.f32 0.70710677, %v10514_v13  ;;  %v10522_v17 = vmul.f32 0.70710677, %v10516_v14  ;;  %v10524_v18 = vpop.f32.mrb[25].mxu0  ;;  %v10526_v50 = vpop.f32.mrb[25].mxu1 }
 0xcac   : > { %v10531_v53 = vmul.f32 0.70710677, %v10524_v18  ;;  %v2787_v55 = vpop.f32.mrb[26].mxu0  ;;  %v10535_v61 = vmul.f32 0.70710677, %v10526_v50  ;;  %v2828_v1 = vpop.f32.mrb[26].mxu1 }
 0xcad   : > { %v2847_v51 = vand.u32 2147483647, %v10519_v16  ;;  %v2849_v52 = vand.u32 2147483647, %v10522_v17  ;;  %v2788_v2 = vpop.f32.mrb[27].mxu0  ;;  %v2829_v4 = vpop.f32.mrb[27].mxu1 }
 0xcae   : > { %v2848_v59 = vand.u32 2147483647, %v10531_v53  ;;  %v2850_v24 = vand.u32 2147483647, %v10535_v61  ;;  %vm2839_vm6 = vcmp.lt.f32.partialorder %v10519_v16, 0.0  ;;  %vm2841_vm7 = vcmp.lt.f32.partialorder %v10522_v17, 0.0 }
 0xcaf   : > { %v2851_v57 = vmul.f32 0.3275911, %v2847_v51  ;;  %v2853_v58 = vmul.f32 0.3275911, %v2849_v52  ;;  %v2903_v21 = vsub.f32 0.0, %v2847_v51  ;;  %v2905_v11 = vsub.f32 0.0, %v2849_v52 }
 0xcb0   : > { %v2852_v3 = vmul.f32 0.3275911, %v2848_v59  ;;  %v2854_v7 = vmul.f32 0.3275911, %v2850_v24  ;;  %v2904_v15 = vsub.f32 0.0, %v2848_v59  ;;  %v2906_v6 = vsub.f32 0.0, %v2850_v24 }
 0xcb1   : > { %v2855_v62 = vadd.f32 1.0, %v2851_v57  ;;  %v2857_v63 = vadd.f32 1.0, %v2853_v58  ;;  %v2907_v20 = vmul.f32 %v2903_v21, %v2847_v51  ;;  %v2909_v26 = vmul.f32 %v2905_v11, %v2849_v52 }
 0xcb2   : > { %v2856_v5 = vadd.f32 1.0, %v2852_v3  ;;  %v2858_v10 = vadd.f32 1.0, %v2854_v7  ;;  %v2908_v35 = vmul.f32 %v2904_v15, %v2848_v59  ;;  %v2910_v30 = vmul.f32 %v2906_v6, %v2850_v24 }
 0xcb3   : > { %9317 = vrcp.f32 %v2855_v62  ;;  %v2911_v33 = vmul.f32 1.442695, %v2907_v20  ;;  %v2915_v38 = vmul.f32 1.442695, %v2909_v26  ;;  %vm2840_vm8 = vcmp.lt.f32.partialorder %v10531_v53, 0.0 }
 0xcb4   : > { %9319 = vrcp.f32 %v2857_v63  ;;  %v2913_v45 = vmul.f32 1.442695, %v2908_v35  ;;  %v2917_v57 = vmul.f32 1.442695, %v2910_v30  ;;  %v2843_v35 = vsel %vm2839_vm6, -1.0, %v9861_v9 }
 0xcb5   : > { %9321 = vrcp.f32 %v2856_v5  ;;  %vm2842_vm9 = vcmp.lt.f32.partialorder %v10535_v61, 0.0  ;;  %v2832_v53 = vmul.f32 0.5, %v10524_v18 }
 0xcb6   : > { %9323 = vrcp.f32 %v2858_v10 }
 0xcb7   : > { %9325 = vpow2.f32 %v2911_v33 }
 0xcb8   : > { %9327 = vpow2.f32 %v2915_v38 }
 0xcb9   : > { %9329 = vpow2.f32 %v2913_v45  ;;  %v2831_v45 = vmul.f32 0.5, %v10514_v13 }
 0xcba   : > { %9331 = vpow2.f32 %v2917_v57  ;;  %v2834_v57 = vmul.f32 0.5, %v10526_v50  ;;  %v8928_v50 = vld [vmem:[#allocation14 + $0xf0] ss:$12 sps:$4 sm:$0xff]  }
 0xcbd   : > { %v9318_v19 = vpop.eup %9317 }
 0xcbe   : > { %v9320_v22 = vpop.eup %9319  ;;  %v2867_v25 = vmul.f32 1.0614054, %v9318_v19 }
 0xcbf   : > { %v2869_v27 = vmul.f32 1.0614054, %v9320_v22  ;;  %v9322_v31 = vpop.eup %9321 }
 0xcc0   : > { %v2871_v29 = vadd.f32 -1.4531521, %v2867_v25  ;;  %v2868_v40 = vmul.f32 1.0614054, %v9322_v31  ;;  %v9324_v36 = vpop.eup %9323 }
 0xcc1   : > { %v2873_v32 = vadd.f32 -1.4531521, %v2869_v27  ;;  %v2870_v46 = vmul.f32 1.0614054, %v9324_v36  ;;  %v9326_v21 = vpop.eup %9325 }
 0xcc2   : > { %v2875_v34 = vmul.f32 %v9318_v19, %v2871_v29  ;;  %v2872_v42 = vadd.f32 -1.4531521, %v2868_v40  ;;  %v9328_v15 = vpop.eup %9327  ;;  %v2845_v40 = vsel %vm2841_vm7, -1.0, %v9861_v9 }
 0xcc3   : > { %v2877_v41 = vmul.f32 %v9320_v22, %v2873_v32  ;;  %v2874_v51 = vadd.f32 -1.4531521, %v2870_v46  ;;  %v9330_v32 = vpop.eup %9329 }
 0xcc4   : > { %v2879_v37 = vadd.f32 1.4214138, %v2875_v34  ;;  %v2876_v48 = vmul.f32 %v9322_v31, %v2872_v42 }
 0xcc5   : > { %v2881_v44 = vadd.f32 1.4214138, %v2877_v41  ;;  %v2878_v59 = vmul.f32 %v9324_v36, %v2874_v51  ;;  %v9332_v41 = vpop.eup %9331 }
 0xcc6   : > { %v2883_v47 = vmul.f32 %v9318_v19, %v2879_v37  ;;  %v2880_v55 = vadd.f32 1.4214138, %v2876_v48 }
 0xcc7   : > { %v2885_v49 = vmul.f32 %v9320_v22, %v2881_v44  ;;  %v2882_v2 = vadd.f32 1.4214138, %v2878_v59  ;;  %v2844_v44 = vsel %vm2840_vm8, -1.0, %v9861_v9 }
 0xcc8   : > { %v2887_v52 = vadd.f32 -0.28449672, %v2883_v47  ;;  %v2884_v63 = vmul.f32 %v9322_v31, %v2880_v55 }
 0xcc9   : > { %v2889_v58 = vadd.f32 -0.28449672, %v2885_v49  ;;  %v2886_v24 = vmul.f32 %v9324_v36, %v2882_v2  ;;  %v2846_v49 = vsel %vm2842_vm9, -1.0, %v9861_v9 }
 0xcca   : > { %v2891_v62 = vmul.f32 %v9318_v19, %v2887_v52  ;;  %v2888_v4 = vadd.f32 -0.28449672, %v2884_v63  ;;  %v2833_v52 = vmul.f32 0.5, %v10516_v14  ;;  %v8930_v14 = vld [vmem:[#allocation14 + $0xf4] ss:$12 sps:$4 sm:$0xff]  }
 0xccb   : > { %v2893_v1 = vmul.f32 %v9320_v22, %v2889_v58  ;;  %v2890_v20 = vadd.f32 -0.28449672, %v2886_v24  ;;  %v8936_v24 = vld [vmem:[#allocation14 + $0x124] ss:$12 sps:$4 sm:$0xff]  }
 0xccc   : > { %v2895_v3 = vadd.f32 0.2548296, %v2891_v62  ;;  %v2892_v10 = vmul.f32 %v9322_v31, %v2888_v4  ;;  %v8921_v62 = vld [vmem:[#allocation14 + $0xc0] ss:$12 sps:$4 sm:$0xff]  }
 0xccd   : > { %v2897_v5 = vadd.f32 0.2548296, %v2893_v1  ;;  %v2894_v29 = vmul.f32 %v9324_v36, %v2890_v20  ;;  %v8927_v1 = vld [vmem:[#allocation14 + $0xdc] ss:$12 sps:$4 sm:$0xff]   ;;  %v8933_v4 = vld [vmem:[#allocation14 + $0x10c] ss:$12 sps:$4 sm:$0xff]  }
 0xcce   : > { %v2899_v7 = vmul.f32 %v9318_v19, %v2895_v3  ;;  %v2896_v26 = vadd.f32 0.2548296, %v2892_v10  ;;  %v8925_v3 = vld [vmem:[#allocation14 + $0xd8] ss:$12 sps:$4 sm:$0xff]   ;;  %v8939_v10 = vld [vmem:[#allocation14 + $0x13c] ss:$12 sps:$4 sm:$0xff]  }
 0xccf   : > { %v2901_v11 = vmul.f32 %v9320_v22, %v2897_v5  ;;  %v2898_v19 = vadd.f32 0.2548296, %v2894_v29  ;;  %v8931_v5 = vld [vmem:[#allocation14 + $0x108] ss:$12 sps:$4 sm:$0xff]   ;;  %v8940_v20 = vld [vmem:[#allocation14 + $0x150] ss:$12 sps:$4 sm:$0xff]  }
 0xcd0   : > { %v2919_v25 = vmul.f32 %v9326_v21, %v2899_v7  ;;  %v2900_v33 = vmul.f32 %v9322_v31, %v2896_v26  ;;  %v8934_v7 = vld [vmem:[#allocation14 + $0x120] ss:$12 sps:$4 sm:$0xff]   ;;  %v8937_v21 = vld [vmem:[#allocation14 + $0x138] ss:$12 sps:$4 sm:$0xff]  }
 0xcd1   : > { %v2921_v27 = vmul.f32 %v9328_v15, %v2901_v11  ;;  %v2902_v16 = vmul.f32 %v9324_v36, %v2898_v19  ;;  %v8942_v11 = vld [vmem:[#allocation14 + $0x154] ss:$12 sps:$4 sm:$0xff]   ;;  %v8945_v15 = vld [vmem:[#allocation14 + $0x16c] ss:$12 sps:$4 sm:$0xff]  }
 0xcd2   : > { %v2923_v6 = vsub.f32 1.0, %v2919_v25  ;;  %v2920_v22 = vmul.f32 %v9330_v32, %v2900_v33  ;;  %v8943_v25 = vld [vmem:[#allocation14 + $0x168] ss:$12 sps:$4 sm:$0xff]  }
 0xcd3   : > { %v2925_v34 = vsub.f32 1.0, %v2921_v27  ;;  %v2922_v17 = vmul.f32 %v9332_v41, %v2902_v16 }
 0xcd4   : > { %v2927_v38 = vmul.f32 %v2923_v6, %v2843_v35  ;;  %v2924_v42 = vsub.f32 1.0, %v2920_v22 }
 0xcd5   : > { %v2929_v37 = vmul.f32 %v2925_v34, %v2845_v40  ;;  %v2926_v46 = vsub.f32 1.0, %v2922_v17 }
 0xcd6   : > { %v2931_v30 = vadd.f32 1.0, %v2927_v38  ;;  %v2928_v31 = vmul.f32 %v2924_v42, %v2844_v44 }
 0xcd7   : > { %v2933_v47 = vadd.f32 1.0, %v2929_v37  ;;  %v2930_v51 = vmul.f32 %v2926_v46, %v2846_v49  ;;  %v8948_v46 = vld [vmem:[#allocation14 + $0xf8] ss:$12 sps:$4 sm:$0xff]  }
 0xcd8   : > { %v2932_v48 = vadd.f32 1.0, %v2928_v31  ;;  %v2935_v36 = vmul.f32 %v2931_v30, %v2831_v45  ;;  %v8946_v31 = vld [vmem:[#allocation14 + $0xc8] ss:$12 sps:$4 sm:$0xff]   ;;  %v8947_v45 = vld [vmem:[#allocation14 + $0xe0] ss:$12 sps:$4 sm:$0xff]  }
 0xcd9   : > { %v2934_v58 = vadd.f32 1.0, %v2930_v51  ;;  %v2937_v61 = vmul.f32 %v2933_v47, %v2833_v52  ;;  %8420 = vmatprep.subr.bf16.mxu1 %v8946_v31  ;;  %v8949_v47 = vld [vmem:[#allocation14 + $0x110] ss:$12 sps:$4 sm:$0xff]   ;;  %v8952_v49 = vld [vmem:[#allocation14 + $0x158] ss:$12 sps:$4 sm:$0xff]  }
 0xcda   : > { %v2936_v55 = vmul.f32 %v2932_v48, %v2832_v53  ;;  %v3003_v63 = vpack.c.bf16 %v2935_v36, %v2935_v36  ;;  %v8950_v53 = vld [vmem:[#allocation14 + $0x128] ss:$12 sps:$4 sm:$0xff]   ;;  %v8951_v48 = vld [vmem:[#allocation14 + $0x140] ss:$12 sps:$4 sm:$0xff]   ;;  %v8953_v36 = vld [vmem:[#allocation14 + $0x170] ss:$12 sps:$4 sm:$0xff]  }
 0xcdb   : > { %v2938_v13 = vmul.f32 %v2934_v58, %v2834_v57  ;;  %v3005_v18 = vpack.c.bf16 %v2937_v61, %v2937_v61  ;;  %v10561_v57 = vld [vmem:[#allocation13 + $0x8] sm:$0xff] }
 0xcdc   : > { %v3004_v59 = vpack.c.bf16 %v2936_v55, %v2936_v55  ;;  %v3307_v58 = vrot.slane %v10561_v57, %v10424_v28 }
 0xcdd   : > { %v3006_v2 = vpack.c.bf16 %v2938_v13, %v2938_v13 }
 0xcde   : > { %3231 = vmatprep.mubr.bf16.mxu0 %v3004_v59  ;;  %v3312_v59 = vrot.slane %v10561_v57, %v10430_v43 }
 0xcdf   : > { %3232 = vmatmul.mubr.bf16.vlgmr.msra.gmra.mrb[28].mxu0 %v3003_v63  ;;  %3271 = vmatprep.mubr.bf16.mxu1 %v3006_v2 }
 0xce0   : > { %3501 = vmatpush1.bf16.msra.mxu0 %v8921_v62  ;;  %3532 = vmatprep.mubr.bf16.mxu0 %v9860_v0 }
 0xce1   : > { %3502 = vmatprep.subr.bf16.mxu0 %v8927_v1  ;;  %3272 = vmatmul.mubr.bf16.vlgmr.msra.gmra.mrb[28].mxu1 %v3005_v18 }
 0xce2   : > { %8436 = vmatprep.mubr.bf16.mxu1 %v10472_v60  ;;  %8421 = vmatpush3.bf16.msra.mxu1 %v8946_v31  ;;  %v8961_v31 = vld [vmem:[#allocation16 + $0x70] sm:$0xff]  }
 0xce3   : > { %8422 = vmatprep.subr.bf16.mxu1 %v8947_v45 }
 0xce4   : > { %3503 = vmatpush1.bf16.msra.mxu0 %v8925_v3 }
 0xce5   : > { %3504 = vmatprep.subr.bf16.mxu0 %v8930_v14 }
 0xce6   : > { %8423 = vmatpush3.bf16.msra.mxu1 %v8947_v45  ;;  %v8962_v45 = vld [vmem:[#allocation16 + $0x78] sm:$0xff]  }
 0xce7   : > { %8424 = vmatprep.subr.bf16.mxu1 %v8948_v46 }
 0xce8   : > { %3505 = vmatpush1.bf16.msra.mxu0 %v8928_v50 }
 0xce9   : > { %3506 = vmatprep.subr.bf16.mxu0 %v8933_v4 }
 0xcea   : > { %8425 = vmatpush3.bf16.msra.mxu1 %v8948_v46 }
 0xceb   : > { %8426 = vmatprep.subr.bf16.mxu1 %v8949_v47 }
 0xcec   : > { %3507 = vmatpush1.bf16.msra.mxu0 %v8931_v5 }
 0xced   : > { %3508 = vmatprep.subr.bf16.mxu0 %v8936_v24 }
 0xcee   : > { %8427 = vmatpush3.bf16.msra.mxu1 %v8949_v47 }
 0xcef   : > { %8428 = vmatprep.subr.bf16.mxu1 %v8950_v53 }
 0xcf0   : > { %3509 = vmatpush1.bf16.msra.mxu0 %v8934_v7 }
 0xcf1   : > { %3510 = vmatprep.subr.bf16.mxu0 %v8939_v10 }
 0xcf2   : > { %8429 = vmatpush3.bf16.msra.mxu1 %v8950_v53 }
 0xcf3   : > { %8430 = vmatprep.subr.bf16.mxu1 %v8951_v48 }
 0xcf4   : > { %3511 = vmatpush1.bf16.msra.mxu0 %v8937_v21 }
 0xcf5   : > { %3512 = vmatprep.subr.bf16.mxu0 %v8942_v11 }
 0xcf6   : > { %8431 = vmatpush3.bf16.msra.mxu1 %v8951_v48 }
 0xcf7   : > { %8432 = vmatprep.subr.bf16.mxu1 %v8952_v49 }
 0xcf8   : > { %3513 = vmatpush1.bf16.msra.mxu0 %v8940_v20 }
 0xcf9   : > { %3514 = vmatprep.subr.bf16.mxu0 %v8945_v15 }
 0xcfa   : > { %8433 = vmatpush3.bf16.msra.mxu1 %v8952_v49 }
 0xcfb   : > { %8434 = vmatprep.subr.bf16.mxu1 %v8953_v36 }
 0xcfc   : > { %3515 = vmatpush1.bf16.msra.mxu0 %v8943_v25 }
 0xcfd   : > { %8440 = vmatprep.subr.bf16.mxu0 %v9862_v39 }
 0xcfe   : > { %8435 = vmatpush3.bf16.msra.mxu1 %v8953_v36 }
 0xcff   : > { %3533 = vmatmul.mubr.bf16.vlgmr.msra.gmra.mrb[32].mxu0 %v10472_v60 }
 0xd00   : > { %3540 = vmatprep.mubr.bf16.mxu0 %v9860_v0 }
 0xdb2   : > { %v8108_v26 = vpop.f32.mrb[28].mxu0 }
 0xdb3   : > { %v8109_v27 = vpop.f32.mrb[29].mxu0 }
 0xdb4   : > { %v8110_v29 = vadd.f32 %v8109_v27, %v8108_v26  ;;  %v8111_v6 = vpop.f32.mrb[30].mxu0  ;;  %v8130_v33 = vpop.f32.mrb[28].mxu1 }
 0xdb5   : > { %v8112_v32 = vpop.f32.mrb[31].mxu0  ;;  %v8131_v34 = vpop.f32.mrb[29].mxu1 }
 0xdb6   : > { %v3234_v35 = vadd.f32 %v8110_v29, %v10506_v8  ;;  %v8132_v19 = vadd.f32 %v8131_v34, %v8130_v33  ;;  %v8133_v38 = vpop.f32.mrb[30].mxu1 }
 0xdb7   : > { %v8134_v22 = vpop.f32.mrb[31].mxu1 }
 0xdb8   : > { %v10556_v40 = vadd.f32 %v8132_v19, %v3234_v35 }
 0xdba   : > { %3293 = vadd.xlane.f32.xlu0 %v10556_v40 }
 0xdd2   : > { %v3534_v16 = vpop.f32.mrb[32].mxu0 }
 0xdd3   : > { %v3535_v60 = vpop.f32.mrb[33].mxu0 }
 0xdd4   : > { %v3537_v41 = vpop.f32.mrb[34].mxu0 }
 0xdd5   : > { %v3538_v37 = vpop.f32.mrb[35].mxu0  ;;  %v8955_v41 = vld [vmem:[#allocation16 + $0x40] sm:$0xff]  }
 0xdd6   : > { %v3598_v42 = vpack.c.bf16 %v3538_v37, %v3535_v60 }
 0xdd8   : > { %8441 = vmatpush3.bf16.xpose.msra.mxu0 %v3598_v42  ;;  %v8956_v42 = vld [vmem:[#allocation16 + $0x48] sm:$0xff]  }
 0xdd9   : > { %8442 = vmatprep.subr.bf16.mxu0 %v9862_v39 }
 0xe47   : > { %v3294_v30 = vpop.xlane.xlu0 %3293 }
 0xe48   : > { %v3295_v44 = vmul.f32 0.0078125, %v3294_v30  ;;  %v8957_v30 = vld [vmem:[#allocation16 + $0x50] sm:$0xff]  }
 0xe4a   : > { %v3296_v8 = vsub.f32 %v10556_v40, %v3295_v44  ;;  %v8958_v44 = vld [vmem:[#allocation16 + $0x58] sm:$0xff]  }
 0xe4c   : > { %v3297_v17 = vmul.f32 %v3296_v8, %v3296_v8 }
 0xe4e   : > { %3298 = vadd.xlane.f32.xlu1 %v3297_v17  ;;  %v8960_v17 = vld [vmem:[#allocation16 + $0x68] sm:$0xff]  }
 0xedb   : > { %v3299_v51 = vpop.xlane.xlu1 %3298 }
 0xedc   : > { %v3300_v52 = vmul.f32 0.0078125, %v3299_v51 }
 0xede   : > { %v3301_v55 = vadd.f32 1e-05, %v3300_v52 }
 0xee0   : > { %9333 = vrsqrt.f32 %v3301_v55 }
 0xeea   : > { %v9334_v61 = vpop.eup %9333 }
 0xeeb   : > { %v3303_v62 = vmul.f32 %v9334_v61, %v3296_v8  ;;  %v8959_v8 = vld [vmem:[#allocation16 + $0x60] sm:$0xff]  }
 0xeec   : > { %v8963_v61 = vld [vmem:[#allocation17 + $0x100] ss:$16 sps:$4 sm:$0xff]  }
 0xeed   : > { %v3308_v63 = vmul.f32 %v3307_v58, %v3303_v62  ;;  %v8966_v62 = vld [vmem:[#allocation17 + $0x108] ss:$16 sps:$4 sm:$0xff]  }
 0xeef   : > { %v3313_v13 = vadd.f32 %v3312_v59, %v3308_v63  ;;  %v8965_v59 = vld [vmem:[#allocation17 + $0x104] ss:$16 sps:$4 sm:$0xff]   ;;  %v8968_v63 = vld [vmem:[#allocation17 + $0x10c] ss:$16 sps:$4 sm:$0xff]  }
 0xef0   : > { %4022 = vmatprep.subr.bf16.mxu1 %v8965_v59  ;;  %v9020_v59 = vld [vmem:[#allocation19 + $0x110] sm:$0xff]  }
 0xef1   : > { %v3324_v1 = vpack.c.bf16 %v3313_v13, %v3313_v13  ;;  %v8971_v13 = vld [vmem:[#allocation17 + $0x124] ss:$16 sps:$4 sm:$0xff]  }
 0xef3   : > { %3325 = vst [vmem:[#allocation3 + $0x8] sm:$0xf] %v3324_v1  ;;  %v8974_v1 = vld [vmem:[#allocation17 + $0x12c] ss:$16 sps:$4 sm:$0xff]  }
 0xefa   : > { %v8954_v2 = vld [vmem:[#allocation3 + $0x8] ss:$0 sps:$4 sm:$0xff]  }
 0xefb   : > { %3541 = vmatmul.mubr.bf16.gmra.mrb[36].mxu0 %v8954_v2  ;;  %8437 = vmatmul.mubr.bf16.vlgmr.msra.gmra.mrb[32].mxu1 %v8954_v2  ;;  %v8969_v2 = vld [vmem:[#allocation17 + $0x120] ss:$16 sps:$4 sm:$0xff]  }
 0xefc   : > { %8444 = vmatprep.mubr.msk.bf16.mxu0 %vm9863_vm3, %v9862_v39  ;;  %4054 = vmatprep.mubr.bf16.mxu1 %v9860_v0 }
 0xefd   : > { %4023 = vmatpush1.bf16.msra.mxu1 %v8963_v61  ;;  %v9018_v61 = vld [vmem:[#allocation19 + $0x188] sm:$0xff]  }
 0xefe   : > { %4024 = vmatprep.subr.bf16.mxu1 %v8971_v13  ;;  %v9023_v13 = vld [vmem:[#allocation19 + $0x158] sm:$0xff]  }
 0xf01   : > { %4025 = vmatpush1.bf16.msra.mxu1 %v8969_v2  ;;  %v9025_v2 = vld [vmem:[#allocation19 + $0x1d8] sm:$0xff]  }
 0xfce   : > { %v3542_v18 = vpop.f32.mrb[36].mxu0  ;;  %v8438_v3 = vpop.f32.mrb[32].mxu1 }
 0xfcf   : > { %v3544_v14 = vpop.f32.mrb[37].mxu0  ;;  %v3583_v50 = vpop.f32.mrb[33].mxu1  ;;  %v3597_v11 = vpack.c.bf16 %v3542_v18, %v3542_v18  ;;  %v3654_v20 = vpack.c.bf16 %v8438_v3, %v8438_v3  ;;  %v8972_v18 = vld [vmem:[#allocation17 + $0x128] ss:$16 sps:$4 sm:$0xff]   ;;  %v8980_v3 = vld [vmem:[#allocation17 + $0x14c] ss:$16 sps:$4 sm:$0xff]  }
 0xfd0   : > { %v3599_v4 = vpack.c.bf16 %v3544_v14, %v3544_v14  ;;  %v3546_v5 = vpop.f32.mrb[38].mxu0  ;;  %v8439_v24 = vpop.f32.mrb[34].mxu1  ;;  %v8975_v14 = vld [vmem:[#allocation17 + $0x140] ss:$16 sps:$4 sm:$0xff]  }
 0xfd1   : > { %v3547_v7 = vpop.f32.mrb[39].mxu0  ;;  %v3586_v10 = vpop.f32.mrb[35].mxu1  ;;  %v3659_v15 = vsel %vm2386_vm4, %v3654_v20, 0  ;;  %v8984_v20 = vld [vmem:[#allocation17 + $0x168] ss:$16 sps:$4 sm:$0xff]  }
 0xfd2   : > { %v3653_v21 = vpack.c.bf16 %v3586_v10, %v3583_v50  ;;  %8443 = vmatpush3.bf16.xpose.msra.mxu0 %v3599_v4  ;;  %v8978_v50 = vld [vmem:[#allocation17 + $0x148] ss:$16 sps:$4 sm:$0xff]   ;;  %v8983_v10 = vld [vmem:[#allocation17 + $0x164] ss:$16 sps:$4 sm:$0xff]  }
 0xfd3   : > { %8448 = vmatprep.subr.bf16.mxu0 %v9862_v39 }
 0xfd9   : > { %8445 = vmatmul.mubr.bf16.vlgmr.msra.gmra.mrb[40].mxu0 %v3597_v11  ;;  %v8981_v11 = vld [vmem:[#allocation17 + $0x160] ss:$16 sps:$4 sm:$0xff]  }
 0xfda   : > { %8449 = vmatpush3.bf16.msra.mxu0 %v3653_v21  ;;  %8452 = vmatprep.mubr.msk.bf16.mxu0 %vm9863_vm3, %v9862_v39  ;;  %v8986_v21 = vld [vmem:[#allocation17 + $0x16c] ss:$16 sps:$4 sm:$0xff]  }
 0xfdb   : > { %8450 = vmatprep.subr.bf16.mxu0 %v9862_v39 }
 0xfde   : > { %8451 = vmatpush3.bf16.msra.mxu0 %v3659_v15  ;;  %v8989_v15 = vld [vmem:[#allocation17 + $0x184] ss:$16 sps:$4 sm:$0xff]  }
 0xfdf   : > { %8456 = vmatprep.subr.bf16.mxu0 %v9862_v39 }
0x10ac   : > { %v3634_v25 = vpop.f32.mrb[40].mxu0 }
0x10ad   : > { %v3640_v26 = vmul.f32 0.088388346, %v3634_v25  ;;  %v8446_v27 = vpop.f32.mrb[41].mxu0  ;;  %v8992_v25 = vld [vmem:[#allocation17 + $0x18c] ss:$16 sps:$4 sm:$0xff]  }
0x10ae   : > { %v3637_v29 = vpop.f32.mrb[42].mxu0  ;;  %v8990_v27 = vld [vmem:[#allocation17 + $0x188] ss:$16 sps:$4 sm:$0xff]  }
0x10af   : > { %v8447_v6 = vpop.f32.mrb[43].mxu0  ;;  %v3641_v33 = vsel %vm2368_vm5, %v3640_v26, -inf  ;;  %v8995_v29 = vld [vmem:[#allocation17 + $0x1a4] ss:$16 sps:$4 sm:$0xff]  }
0x10b0   : > { %3642 = vmax.xlane.f32.xlu0 %v3641_v33  ;;  %v8998_v6 = vld [vmem:[#allocation17 + $0x1ac] ss:$16 sps:$4 sm:$0xff]   ;;  %v8993_v33 = vld [vmem:[#allocation17 + $0x1a0] ss:$16 sps:$4 sm:$0xff]  }
0x113d   : > { %v3643_v32 = vpop.xlane.xlu0 %3642 }
0x113e   : > { %v3644_v35 = vsub.f32 %v3640_v26, %v3643_v32  ;;  %v8987_v26 = vld [vmem:[#allocation17 + $0x180] ss:$16 sps:$4 sm:$0xff]   ;;  %v8996_v32 = vld [vmem:[#allocation17 + $0x1a8] ss:$16 sps:$4 sm:$0xff]  }
0x1140   : > { %v3645_v34 = vmul.f32 1.442695, %v3644_v35  ;;  %v9001_v35 = vld [vmem:[#allocation17 + $0x1c4] ss:$16 sps:$4 sm:$0xff]  }
0x1142   : > { %9335 = vpow2.f32 %v3645_v34  ;;  %v9004_v34 = vld [vmem:[#allocation17 + $0x1cc] ss:$16 sps:$4 sm:$0xff]  }
0x114c   : > { %v9336_v19 = vpop.eup %9335 }
0x114d   : > { %v3647_v38 = vsel %vm2368_vm5, %v9336_v19, 0.0 }
0x114e   : > { %3648 = vadd.xlane.f32.xlu1 %v3647_v38  ;;  %v9002_v38 = vld [vmem:[#allocation17 + $0x1c8] ss:$16 sps:$4 sm:$0xff]  }
0x11db   : > { %v3649_v22 = vpop.xlane.xlu1 %3648 }
0x11dc   : > { %9337 = vrcp.f32 %v3649_v22  ;;  %v9007_v22 = vld [vmem:[#allocation17 + $0x1e4] ss:$16 sps:$4 sm:$0xff]  }
0x11e6   : > { %v9338_v16 = vpop.eup %9337 }
0x11e7   : > { %v3651_v60 = vmul.f32 %v9338_v16, %v9336_v19  ;;  %v8999_v19 = vld [vmem:[#allocation17 + $0x1c0] ss:$16 sps:$4 sm:$0xff]   ;;  %v9010_v16 = vld [vmem:[#allocation17 + $0x1ec] ss:$16 sps:$4 sm:$0xff]  }
0x11e9   : > { %v3652_v37 = vpack.c.bf16 %v3651_v60, %v3651_v60  ;;  %v9005_v60 = vld [vmem:[#allocation17 + $0x1e0] ss:$16 sps:$4 sm:$0xff]  }
0x11eb   : > { %8453 = vmatmul.mubr.msk.bf16.vlgmr.msra.gmra.mrb[44].mxu0 %vm2368_vm5, %v3652_v37 }
0x11ec   : > { %8457 = vmatpush3.bf16.msra.mxu0 %v8955_v41  ;;  %8472 = vmatprep.mubr.msk.bf16.mxu0 %vm9863_vm3, %v9862_v39  ;;  %v9008_v41 = vld [vmem:[#allocation17 + $0x1e8] ss:$16 sps:$4 sm:$0xff]  }
0x11ed   : > { %8458 = vmatprep.subr.bf16.mxu0 %v9862_v39 }
0x11f0   : > { %8459 = vmatpush3.bf16.msra.mxu0 %v8956_v42 }
0x11f1   : > { %8460 = vmatprep.subr.bf16.mxu0 %v9862_v39 }
0x11f4   : > { %8461 = vmatpush3.bf16.msra.mxu0 %v8957_v30 }
0x11f5   : > { %8462 = vmatprep.subr.bf16.mxu0 %v9862_v39 }
0x11f8   : > { %8463 = vmatpush3.bf16.msra.mxu0 %v8958_v44  ;;  %v3821_v44 = vrot.slane %v10561_v57, %v10437_v54 }
0x11f9   : > { %8464 = vmatprep.subr.bf16.mxu0 %v9862_v39 }
0x11fc   : > { %8465 = vmatpush3.bf16.msra.mxu0 %v8959_v8 }
0x11fd   : > { %8466 = vmatprep.subr.bf16.mxu0 %v9862_v39 }
0x1200   : > { %8467 = vmatpush3.bf16.msra.mxu0 %v8960_v17 }
0x1201   : > { %8468 = vmatprep.subr.bf16.mxu0 %v9862_v39 }
0x1204   : > { %8469 = vmatpush3.bf16.msra.mxu0 %v8961_v31  ;;  %v3826_v31 = vrot.slane %v10561_v57, %v10441_v56  ;;  %v9019_v57 = vld [vmem:[#allocation19 + $0x150] sm:$0xff]  }
0x1205   : > { %8470 = vmatprep.subr.bf16.mxu0 %v9862_v39 }
0x1208   : > { %8471 = vmatpush3.bf16.msra.mxu0 %v8962_v45 }
0x1209   : > { %4063 = vmatprep.subr.bf16.mxu0 %v8968_v63  ;;  %v9022_v63 = vld [vmem:[#allocation19 + $0x190] sm:$0xff]  }
0x12be   : > { %v3695_v46 = vpop.f32.mrb[44].mxu0 }
0x12bf   : > { %v3701_v47 = vpack.c.bf16 %v3695_v46, %v3695_v46  ;;  %v8454_v53 = vpop.f32.mrb[45].mxu0 }
0x12c0   : > { %v3698_v48 = vpop.f32.mrb[46].mxu0  ;;  %v9011_v53 = vld [vmem:[#allocation19 + $0x140] sm:$0xff]  }
0x12c1   : > { %v8455_v49 = vpop.f32.mrb[47].mxu0  ;;  %8473 = vmatmul.mubr.bf16.vlgmr.msra.gmra.mrb[48].mxu0 %v3701_v47  ;;  %v9012_v48 = vld [vmem:[#allocation19 + $0x100] sm:$0xff]  }
0x12c2   : > { %4095 = vmatprep.mubr.bf16.mxu0 %v9860_v0  ;;  %4064 = vmatpush1.bf16.msra.mxu0 %v8966_v62  ;;  %v9013_v49 = vld [vmem:[#allocation19 + $0x1c0] sm:$0xff]   ;;  %v9021_v62 = vld [vmem:[#allocation19 + $0x1d0] sm:$0xff]  }
0x12c3   : > { %4065 = vmatprep.subr.bf16.mxu0 %v8974_v1  ;;  %v9024_v1 = vld [vmem:[#allocation19 + $0x118] sm:$0xff]  }
0x12c6   : > { %4066 = vmatpush1.bf16.msra.mxu0 %v8972_v18  ;;  %v9026_v18 = vld [vmem:[#allocation19 + $0x198] sm:$0xff]  }
0x12c7   : > { %4067 = vmatprep.subr.bf16.mxu0 %v8980_v3  ;;  %v9028_v3 = vld [vmem:[#allocation19 + $0x120] sm:$0xff]  }
0x12ca   : > { %4068 = vmatpush1.bf16.msra.mxu0 %v8978_v50  ;;  %v9030_v50 = vld [vmem:[#allocation19 + $0x1a0] sm:$0xff]  }
0x12cb   : > { %4069 = vmatprep.subr.bf16.mxu0 %v8986_v21  ;;  %v9036_v21 = vld [vmem:[#allocation19 + $0x130] sm:$0xff]  }
0x12ce   : > { %4070 = vmatpush1.bf16.msra.mxu0 %v8984_v20  ;;  %v9038_v20 = vld [vmem:[#allocation19 + $0x1b0] sm:$0xff]  }
0x12cf   : > { %4071 = vmatprep.subr.bf16.mxu0 %v8992_v25  ;;  %v9040_v25 = vld [vmem:[#allocation19 + $0x138] sm:$0xff]  }
0x12d2   : > { %4072 = vmatpush1.bf16.msra.mxu0 %v8990_v27  ;;  %v9042_v27 = vld [vmem:[#allocation19 + $0x1b8] sm:$0xff]  }
0x12d3   : > { %4073 = vmatprep.subr.bf16.mxu0 %v8998_v6 }
0x12d6   : > { %4074 = vmatpush1.bf16.msra.mxu0 %v8996_v32 }
0x12d7   : > { %4075 = vmatprep.subr.bf16.mxu0 %v9004_v34 }
0x12da   : > { %4076 = vmatpush1.bf16.msra.mxu0 %v9002_v38 }
0x12db   : > { %4077 = vmatprep.subr.bf16.mxu0 %v9010_v16 }
0x12de   : > { %4078 = vmatpush1.bf16.msra.mxu0 %v9008_v41 }
0x12df   : > { %8183 = vmatprep.subr.bf16.mxu0 %v9013_v49 }
0x1394   : > { %v3801_v36 = vpop.f32.mrb[48].mxu0 }
0x1395   : > { %v10590_v51 = vadd.f32 %v3801_v36, %v10556_v40  ;;  %v8474_v52 = vpop.f32.mrb[49].mxu0  ;;  %v8977_v40 = vld [vmem:[#allocation17 + $0x144] ss:$16 sps:$4 sm:$0xff]  }
0x1396   : > { %v3804_v55 = vpop.f32.mrb[50].mxu0  ;;  %4026 = vmatprep.subr.bf16.mxu1 %v8977_v40  ;;  %v9014_v36 = vld [vmem:[#allocation19 + $0x180] sm:$0xff]   ;;  %v9015_v52 = vld [vmem:[#allocation19 + $0x148] sm:$0xff]  }
0x1397   : > { %3807 = vadd.xlane.f32.xlu0 %v10590_v51  ;;  %v8475_v58 = vpop.f32.mrb[51].mxu0  ;;  %4027 = vmatpush1.bf16.msra.mxu1 %v8975_v14  ;;  %v9016_v55 = vld [vmem:[#allocation19 + $0x108] sm:$0xff]   ;;  %v9027_v40 = vld [vmem:[#allocation19 + $0x160] sm:$0xff]  }
0x1398   : > { %4028 = vmatprep.subr.bf16.mxu1 %v8983_v10  ;;  %v9017_v58 = vld [vmem:[#allocation19 + $0x1c8] sm:$0xff]   ;;  %v9029_v14 = vld [vmem:[#allocation19 + $0x1e0] sm:$0xff]   ;;  %v9035_v10 = vld [vmem:[#allocation19 + $0x170] sm:$0xff]  }
0x139b   : > { %4029 = vmatpush1.bf16.msra.mxu1 %v8981_v11  ;;  %v9037_v11 = vld [vmem:[#allocation19 + $0x1f0] sm:$0xff]  }
0x139c   : > { %4030 = vmatprep.subr.bf16.mxu1 %v8989_v15  ;;  %v9039_v15 = vld [vmem:[#allocation19 + $0x178] sm:$0xff]  }
0x139f   : > { %4031 = vmatpush1.bf16.msra.mxu1 %v8987_v26  ;;  %v9041_v26 = vld [vmem:[#allocation19 + $0x1f8] sm:$0xff]  }
0x13a0   : > { %4032 = vmatprep.subr.bf16.mxu1 %v8995_v29  ;;  %v9045_v29 = vld [vmem:[#allocation14 + $0x184] ss:$12 sps:$4 sm:$0xff]  }
0x13a3   : > { %4033 = vmatpush1.bf16.msra.mxu1 %v8993_v33 }
0x13a4   : > { %4034 = vmatprep.subr.bf16.mxu1 %v9001_v35 }
0x13a7   : > { %4035 = vmatpush1.bf16.msra.mxu1 %v8999_v19 }
0x13a8   : > { %4036 = vmatprep.subr.bf16.mxu1 %v9007_v22 }
0x13ab   : > { %4037 = vmatpush1.bf16.msra.mxu1 %v9005_v60 }
0x13ac   : > { %8161 = vmatprep.subr.bf16.mxu1 %v9011_v53 }
0x1424   : > { %v3808_v4 = vpop.xlane.xlu0 %3807 }
0x1425   : > { %v3809_v5 = vmul.f32 0.0078125, %v3808_v4  ;;  %v9031_v4 = vld [vmem:[#allocation19 + $0x168] sm:$0xff]  }
0x1427   : > { %v3810_v24 = vsub.f32 %v10590_v51, %v3809_v5  ;;  %v9032_v5 = vld [vmem:[#allocation19 + $0x128] sm:$0xff]  }
0x1429   : > { %v3811_v7 = vmul.f32 %v3810_v24, %v3810_v24 }
0x142b   : > { %3812 = vadd.xlane.f32.xlu1 %v3811_v7  ;;  %v9034_v7 = vld [vmem:[#allocation19 + $0x1a8] sm:$0xff]  }
0x14b8   : > { %v3813_v37 = vpop.xlane.xlu1 %3812 }
0x14b9   : > { %v3814_v42 = vmul.f32 0.0078125, %v3813_v37 }
0x14bb   : > { %v3815_v30 = vadd.f32 1e-05, %v3814_v42 }
0x14bd   : > { %9339 = vrsqrt.f32 %v3815_v30 }
0x14c7   : > { %v9340_v8 = vpop.eup %9339 }
0x14c8   : > { %v3817_v17 = vmul.f32 %v9340_v8, %v3810_v24  ;;  %v9033_v24 = vld [vmem:[#allocation19 + $0x1e8] sm:$0xff]  }
0x14ca   : > { %v3822_v45 = vmul.f32 %v3821_v44, %v3817_v17 }
0x14cc   : > { %v3827_v46 = vadd.f32 %v3826_v31, %v3822_v45 }
0x14ce   : > { %v3861_v47 = vpack.c.bf16 %v3827_v46, %v3827_v46 }
0x14d0   : > { %4055 = vmatmul.mubr.bf16.vlgmr.msra.gmra.mrb[36].mxu1 %v3861_v47  ;;  %4096 = vmatmul.mubr.bf16.vlgmr.msra.gmra.mrb[52].mxu0 %v3861_v47 }
0x14d1   : > { %8162 = vmatpush3.bf16.msra.mxu1 %v9012_v48  ;;  %8184 = vmatpush3.bf16.msra.mxu0 %v9014_v36 }
0x14d2   : > { %8163 = vmatprep.subr.bf16.mxu1 %v9015_v52  ;;  %8185 = vmatprep.subr.bf16.mxu0 %v9017_v58 }
0x14d5   : > { %8164 = vmatpush3.bf16.msra.mxu1 %v9016_v55  ;;  %8186 = vmatpush3.bf16.msra.mxu0 %v9018_v61 }
0x14d6   : > { %8165 = vmatprep.subr.bf16.mxu1 %v9019_v57  ;;  %8187 = vmatprep.subr.bf16.mxu0 %v9021_v62 }
0x14d9   : > { %8166 = vmatpush3.bf16.msra.mxu1 %v9020_v59  ;;  %8188 = vmatpush3.bf16.msra.mxu0 %v9022_v63 }
0x14da   : > { %8167 = vmatprep.subr.bf16.mxu1 %v9023_v13  ;;  %8189 = vmatprep.subr.bf16.mxu0 %v9025_v2 }
0x14dd   : > { %8168 = vmatpush3.bf16.msra.mxu1 %v9024_v1  ;;  %8190 = vmatpush3.bf16.msra.mxu0 %v9026_v18 }
0x14de   : > { %8169 = vmatprep.subr.bf16.mxu1 %v9027_v40  ;;  %8191 = vmatprep.subr.bf16.mxu0 %v9029_v14 }
0x14e1   : > { %8170 = vmatpush3.bf16.msra.mxu1 %v9028_v3  ;;  %8192 = vmatpush3.bf16.msra.mxu0 %v9030_v50 }
0x14e2   : > { %8171 = vmatprep.subr.bf16.mxu1 %v9031_v4  ;;  %8193 = vmatprep.subr.bf16.mxu0 %v9033_v24 }
0x14e5   : > { %8172 = vmatpush3.bf16.msra.mxu1 %v9032_v5  ;;  %8194 = vmatpush3.bf16.msra.mxu0 %v9034_v7 }
0x14e6   : > { %8173 = vmatprep.subr.bf16.mxu1 %v9035_v10  ;;  %8195 = vmatprep.subr.bf16.mxu0 %v9037_v11 }
0x14e9   : > { %8174 = vmatpush3.bf16.msra.mxu1 %v9036_v21  ;;  %8196 = vmatpush3.bf16.msra.mxu0 %v9038_v20 }
0x14ea   : > { %8175 = vmatprep.subr.bf16.mxu1 %v9039_v15  ;;  %8197 = vmatprep.subr.bf16.mxu0 %v9041_v26 }
0x14ed   : > { %8176 = vmatpush3.bf16.msra.mxu1 %v9040_v25  ;;  %8198 = vmatpush3.bf16.msra.mxu0 %v9042_v27 }
0x14ee   : > { %4774 = vmatprep.subr.bf16.mxu1 %v9045_v29 }
0x15a3   : > { %v10598_v6 = vpop.f32.mrb[36].mxu1  ;;  %v10600_v33 = vpop.f32.mrb[52].mxu0 }
0x15a4   : > { %v10603_v32 = vmul.f32 0.70710677, %v10598_v6  ;;  %v10606_v35 = vmul.f32 0.70710677, %v10600_v33  ;;  %v10608_v34 = vpop.f32.mrb[37].mxu1  ;;  %v10610_v19 = vpop.f32.mrb[53].mxu0 }
0x15a5   : > { %v10615_v16 = vmul.f32 0.70710677, %v10608_v34  ;;  %v4060_v60 = vpop.f32.mrb[38].mxu1  ;;  %v10619_v30 = vmul.f32 0.70710677, %v10610_v19  ;;  %v4101_v17 = vpop.f32.mrb[54].mxu0 }
0x15a6   : > { %v4120_v38 = vand.u32 2147483647, %v10603_v32  ;;  %v4122_v22 = vand.u32 2147483647, %v10606_v35  ;;  %v4061_v31 = vpop.f32.mrb[39].mxu1  ;;  %v4102_v46 = vpop.f32.mrb[55].mxu0 }
0x15a7   : > { %v4121_v42 = vand.u32 2147483647, %v10615_v16  ;;  %v4123_v53 = vand.u32 2147483647, %v10619_v30  ;;  %vm4112_vm10 = vcmp.lt.f32.partialorder %v10603_v32, 0.0  ;;  %vm4114_vm11 = vcmp.lt.f32.partialorder %v10606_v35, 0.0 }
0x15a8   : > { %v4124_v41 = vmul.f32 0.3275911, %v4120_v38  ;;  %v4126_v37 = vmul.f32 0.3275911, %v4122_v22  ;;  %v4176_v36 = vsub.f32 0.0, %v4120_v38  ;;  %v4178_v52 = vsub.f32 0.0, %v4122_v22 }
0x15a9   : > { %v4125_v45 = vmul.f32 0.3275911, %v4121_v42  ;;  %v4127_v48 = vmul.f32 0.3275911, %v4123_v53  ;;  %v4177_v61 = vsub.f32 0.0, %v4121_v42  ;;  %v4179_v1 = vsub.f32 0.0, %v4123_v53 }
0x15aa   : > { %v4128_v44 = vadd.f32 1.0, %v4124_v41  ;;  %v4130_v8 = vadd.f32 1.0, %v4126_v37  ;;  %v4180_v58 = vmul.f32 %v4176_v36, %v4120_v38  ;;  %v4182_v62 = vmul.f32 %v4178_v52, %v4122_v22 }
0x15ab   : > { %v4129_v47 = vadd.f32 1.0, %v4125_v45  ;;  %v4131_v49 = vadd.f32 1.0, %v4127_v48  ;;  %v4181_v3 = vmul.f32 %v4177_v61, %v4121_v42  ;;  %v4183_v21 = vmul.f32 %v4179_v1, %v4123_v53 }
0x15ac   : > { %9341 = vrcp.f32 %v4128_v44  ;;  %v4184_v18 = vmul.f32 1.442695, %v4180_v58  ;;  %v4188_v50 = vmul.f32 1.442695, %v4182_v62  ;;  %vm4113_vm12 = vcmp.lt.f32.partialorder %v10615_v16, 0.0 }
0x15ad   : > { %9343 = vrcp.f32 %v4130_v8  ;;  %v4186_v20 = vmul.f32 1.442695, %v4181_v3  ;;  %v4190_v60 = vmul.f32 1.442695, %v4183_v21  ;;  %v4117_v21 = vsel %vm4113_vm12, -1.0, %v9861_v9 }
0x15ae   : > { %9345 = vrcp.f32 %v4129_v47  ;;  %vm4115_vm13 = vcmp.lt.f32.partialorder %v10619_v30, 0.0  ;;  %v4105_v16 = vmul.f32 0.5, %v10608_v34 }
0x15af   : > { %9347 = vrcp.f32 %v4131_v49 }
0x15b0   : > { %9349 = vpow2.f32 %v4184_v18 }
0x15b1   : > { %9351 = vpow2.f32 %v4188_v50  ;;  %v4118_v50 = vsel %vm4114_vm11, -1.0, %v9861_v9 }
0x15b2   : > { %9353 = vpow2.f32 %v4186_v20 }
0x15b3   : > { %9355 = vpow2.f32 %v4190_v60 }
0x15b6   : > { %v9342_v55 = vpop.eup %9341 }
0x15b7   : > { %v9344_v57 = vpop.eup %9343  ;;  %v4140_v59 = vmul.f32 1.0614054, %v9342_v55 }
0x15b8   : > { %v4142_v63 = vmul.f32 1.0614054, %v9344_v57  ;;  %v9346_v2 = vpop.eup %9345 }
0x15b9   : > { %v4144_v13 = vadd.f32 -1.4531521, %v4140_v59  ;;  %v4141_v4 = vmul.f32 1.0614054, %v9346_v2  ;;  %v9348_v24 = vpop.eup %9347 }
0x15ba   : > { %v4146_v40 = vadd.f32 -1.4531521, %v4142_v63  ;;  %v4143_v15 = vmul.f32 1.0614054, %v9348_v24  ;;  %v9350_v49 = vpop.eup %9349 }
0x15bb   : > { %v4148_v14 = vmul.f32 %v9342_v55, %v4144_v13  ;;  %v4145_v10 = vadd.f32 -1.4531521, %v4141_v4  ;;  %v9352_v58 = vpop.eup %9351 }
0x15bc   : > { %v4150_v5 = vmul.f32 %v9344_v57, %v4146_v40  ;;  %v4147_v29 = vadd.f32 -1.4531521, %v4143_v15  ;;  %v9354_v18 = vpop.eup %9353  ;;  %v4116_v40 = vsel %vm4112_vm10, -1.0, %v9861_v9 }
0x15bd   : > { %v4152_v7 = vadd.f32 1.4214138, %v4148_v14  ;;  %v4149_v26 = vmul.f32 %v9346_v2, %v4145_v10  ;;  %v9356_v4 = vpop.eup %9355 }
0x15be   : > { %v4154_v11 = vadd.f32 1.4214138, %v4150_v5  ;;  %v4151_v37 = vmul.f32 %v9348_v24, %v4147_v29  ;;  %v4106_v29 = vmul.f32 0.5, %v10600_v33  ;;  %v9052_v33 = vld [vmem:[#allocation14 + $0x1b4] ss:$12 sps:$4 sm:$0xff]  }
0x15bf   : > { %v4156_v25 = vmul.f32 %v9342_v55, %v4152_v7  ;;  %v4153_v22 = vadd.f32 1.4214138, %v4149_v26  ;;  %v4119_v26 = vsel %vm4115_vm13, -1.0, %v9861_v9 }
0x15c0   : > { %v4158_v27 = vmul.f32 %v9344_v57, %v4154_v11  ;;  %v4155_v17 = vadd.f32 1.4214138, %v4151_v37  ;;  %v4104_v11 = vmul.f32 0.5, %v10598_v6  ;;  %v9043_v37 = vld [vmem:[#allocation14 + $0x180] ss:$12 sps:$4 sm:$0xff]  }
0x15c1   : > { %v4160_v38 = vadd.f32 -0.28449672, %v4156_v25  ;;  %v4157_v44 = vmul.f32 %v9346_v2, %v4153_v22  ;;  %v4107_v22 = vmul.f32 0.5, %v10610_v19  ;;  %v9050_v19 = vld [vmem:[#allocation14 + $0x1b0] ss:$12 sps:$4 sm:$0xff]  }
0x15c2   : > { %v4162_v41 = vadd.f32 -0.28449672, %v4158_v27  ;;  %v4159_v47 = vmul.f32 %v9348_v24, %v4155_v17  ;;  %v9047_v17 = vld [vmem:[#allocation14 + $0x198] ss:$12 sps:$4 sm:$0xff]  }
0x15c3   : > { %v4164_v42 = vmul.f32 %v9342_v55, %v4160_v38  ;;  %v4161_v45 = vadd.f32 -0.28449672, %v4157_v44  ;;  %v9049_v44 = vld [vmem:[#allocation14 + $0x19c] ss:$12 sps:$4 sm:$0xff]  }
0x15c4   : > { %v4166_v8 = vmul.f32 %v9344_v57, %v4162_v41  ;;  %v4163_v52 = vadd.f32 -0.28449672, %v4159_v47  ;;  %v9056_v47 = vld [vmem:[#allocation14 + $0x1e0] ss:$12 sps:$4 sm:$0xff]  }
0x15c5   : > { %v4168_v31 = vadd.f32 0.2548296, %v4164_v42  ;;  %v4165_v48 = vmul.f32 %v9346_v2, %v4161_v45  ;;  %v9053_v45 = vld [vmem:[#allocation14 + $0x1c8] ss:$12 sps:$4 sm:$0xff]  }
0x15c6   : > { %v4170_v46 = vadd.f32 0.2548296, %v4166_v8  ;;  %v4167_v63 = vmul.f32 %v9348_v24, %v4163_v52  ;;  %v9067_v52 = vld [vmem:[#allocation14 + $0x22c] ss:$12 sps:$4 sm:$0xff]  }
0x15c7   : > { %v4172_v53 = vmul.f32 %v9342_v55, %v4168_v31  ;;  %v4169_v59 = vadd.f32 0.2548296, %v4165_v48  ;;  %v9055_v31 = vld [vmem:[#allocation14 + $0x1cc] ss:$12 sps:$4 sm:$0xff]  }
0x15c8   : > { %v4174_v36 = vmul.f32 %v9344_v57, %v4170_v46  ;;  %v4171_v55 = vadd.f32 0.2548296, %v4167_v63  ;;  %v9058_v46 = vld [vmem:[#allocation14 + $0x1e4] ss:$12 sps:$4 sm:$0xff]  }
0x15c9   : > { %v4192_v61 = vmul.f32 %v9350_v49, %v4172_v53  ;;  %v4173_v1 = vmul.f32 %v9346_v2, %v4169_v59  ;;  %v9061_v53 = vld [vmem:[#allocation14 + $0x1fc] ss:$12 sps:$4 sm:$0xff]   ;;  %v9059_v48 = vld [vmem:[#allocation14 + $0x1f8] ss:$12 sps:$4 sm:$0xff]   ;;  %v9064_v49 = vld [vmem:[#allocation14 + $0x214] ss:$12 sps:$4 sm:$0xff]  }
0x15ca   : > { %v4194_v62 = vmul.f32 %v9352_v58, %v4174_v36  ;;  %v4175_v32 = vmul.f32 %v9348_v24, %v4171_v55  ;;  %v9062_v36 = vld [vmem:[#allocation14 + $0x210] ss:$12 sps:$4 sm:$0xff]   ;;  %v9065_v58 = vld [vmem:[#allocation14 + $0x228] ss:$12 sps:$4 sm:$0xff]  }
0x15cb   : > { %v4196_v13 = vsub.f32 1.0, %v4192_v61  ;;  %v4193_v57 = vmul.f32 %v9354_v18, %v4173_v1 }
0x15cc   : > { %v4198_v3 = vsub.f32 1.0, %v4194_v62  ;;  %v4195_v35 = vmul.f32 %v9356_v4, %v4175_v32 }
0x15cd   : > { %v4200_v14 = vmul.f32 %v4196_v13, %v4116_v40  ;;  %v4197_v7 = vsub.f32 1.0, %v4193_v57 }
0x15ce   : > { %v4202_v5 = vmul.f32 %v4198_v3, %v4118_v50  ;;  %v4199_v20 = vsub.f32 1.0, %v4195_v35  ;;  %v9068_v35 = vld [vmem:[#allocation14 + $0x188] ss:$12 sps:$4 sm:$0xff]  }
0x15cf   : > { %v4204_v10 = vadd.f32 1.0, %v4200_v14  ;;  %v4201_v2 = vmul.f32 %v4197_v7, %v4117_v21  ;;  %8476 = vmatprep.subr.bf16.mxu0 %v9068_v35 }
0x15d0   : > { %v4206_v15 = vadd.f32 1.0, %v4202_v5  ;;  %v4203_v27 = vmul.f32 %v4199_v20, %v4119_v26  ;;  %v9071_v20 = vld [vmem:[#allocation14 + $0x1d0] ss:$12 sps:$4 sm:$0xff]  }
0x15d1   : > { %v4205_v25 = vadd.f32 1.0, %v4201_v2  ;;  %v4208_v24 = vmul.f32 %v4204_v10, %v4104_v11  ;;  %v9069_v2 = vld [vmem:[#allocation14 + $0x1a0] ss:$12 sps:$4 sm:$0xff]   ;;  %v9070_v11 = vld [vmem:[#allocation14 + $0x1b8] ss:$12 sps:$4 sm:$0xff]  }
0x15d2   : > { %v4207_v60 = vadd.f32 1.0, %v4203_v27  ;;  %v4210_v30 = vmul.f32 %v4206_v15, %v4106_v29  ;;  %v9072_v15 = vld [vmem:[#allocation14 + $0x1e8] ss:$12 sps:$4 sm:$0xff]   ;;  %v9075_v26 = vld [vmem:[#allocation14 + $0x230] ss:$12 sps:$4 sm:$0xff]  }
0x15d3   : > { %v4209_v38 = vmul.f32 %v4205_v25, %v4105_v16  ;;  %v4277_v42 = vpack.c.bf16 %v4208_v24, %v4208_v24  ;;  %v9073_v16 = vld [vmem:[#allocation14 + $0x200] ss:$12 sps:$4 sm:$0xff]   ;;  %v9074_v25 = vld [vmem:[#allocation14 + $0x218] ss:$12 sps:$4 sm:$0xff]  }
0x15d4   : > { %v4211_v6 = vmul.f32 %v4207_v60, %v4107_v22  ;;  %v4279_v34 = vpack.c.bf16 %v4210_v30, %v4210_v30 }
0x15d5   : > { %v4278_v41 = vpack.c.bf16 %v4209_v38, %v4209_v38  ;;  %v10645_v38 = vld [vmem:[#allocation13 + $0x10] sm:$0xff] }
0x15d6   : > { %v4280_v8 = vpack.c.bf16 %v4211_v6, %v4211_v6  ;;  %v4581_v22 = vrot.slane %v10645_v38, %v10424_v28  ;;  %v4586_v30 = vrot.slane %v10645_v38, %v10430_v43 }
0x15d7   : > { %4505 = vmatprep.mubr.bf16.mxu1 %v4278_v41 }
0x15d8   : > { %4506 = vmatmul.mubr.bf16.vlgmr.msra.gmra.mrb[40].mxu1 %v4277_v42  ;;  %4545 = vmatprep.mubr.bf16.mxu0 %v4280_v8 }
0x15d9   : > { %4775 = vmatpush1.bf16.msra.mxu1 %v9043_v37  ;;  %4806 = vmatprep.mubr.bf16.mxu1 %v9860_v0 }
0x15da   : > { %4776 = vmatprep.subr.bf16.mxu1 %v9049_v44  ;;  %4546 = vmatmul.mubr.bf16.vlgmr.msra.gmra.mrb[56].mxu0 %v4279_v34 }
0x15db   : > { %8492 = vmatprep.mubr.bf16.mxu0 %v10476_v23  ;;  %8477 = vmatpush3.bf16.msra.mxu0 %v9068_v35  ;;  %v9084_v35 = vld [vmem:[#allocation16 + $0xb8] sm:$0xff]  }
0x15dc   : > { %8478 = vmatprep.subr.bf16.mxu0 %v9069_v2 }
0x15dd   : > { %4777 = vmatpush1.bf16.msra.mxu1 %v9047_v17 }
0x15de   : > { %4778 = vmatprep.subr.bf16.mxu1 %v9052_v33 }
0x15df   : > { %8479 = vmatpush3.bf16.msra.mxu0 %v9069_v2 }
0x15e0   : > { %8480 = vmatprep.subr.bf16.mxu0 %v9070_v11 }
0x15e1   : > { %4779 = vmatpush1.bf16.msra.mxu1 %v9050_v19 }
0x15e2   : > { %4780 = vmatprep.subr.bf16.mxu1 %v9055_v31 }
0x15e3   : > { %8481 = vmatpush3.bf16.msra.mxu0 %v9070_v11 }
0x15e4   : > { %8482 = vmatprep.subr.bf16.mxu0 %v9071_v20 }
0x15e5   : > { %4781 = vmatpush1.bf16.msra.mxu1 %v9053_v45 }
0x15e6   : > { %4782 = vmatprep.subr.bf16.mxu1 %v9058_v46 }
0x15e7   : > { %8483 = vmatpush3.bf16.msra.mxu0 %v9071_v20 }
0x15e8   : > { %8484 = vmatprep.subr.bf16.mxu0 %v9072_v15 }
0x15e9   : > { %4783 = vmatpush1.bf16.msra.mxu1 %v9056_v47 }
0x15ea   : > { %4784 = vmatprep.subr.bf16.mxu1 %v9061_v53 }
0x15eb   : > { %8485 = vmatpush3.bf16.msra.mxu0 %v9072_v15 }
0x15ec   : > { %8486 = vmatprep.subr.bf16.mxu0 %v9073_v16 }
0x15ed   : > { %4785 = vmatpush1.bf16.msra.mxu1 %v9059_v48 }
0x15ee   : > { %4786 = vmatprep.subr.bf16.mxu1 %v9064_v49 }
0x15ef   : > { %8487 = vmatpush3.bf16.msra.mxu0 %v9073_v16 }
0x15f0   : > { %8488 = vmatprep.subr.bf16.mxu0 %v9074_v25 }
0x15f1   : > { %4787 = vmatpush1.bf16.msra.mxu1 %v9062_v36 }
0x15f2   : > { %4788 = vmatprep.subr.bf16.mxu1 %v9067_v52 }
0x15f3   : > { %8489 = vmatpush3.bf16.msra.mxu0 %v9074_v25 }
0x15f4   : > { %8490 = vmatprep.subr.bf16.mxu0 %v9075_v26 }
0x15f5   : > { %4789 = vmatpush1.bf16.msra.mxu1 %v9065_v58 }
0x15f6   : > { %8496 = vmatprep.subr.bf16.mxu1 %v9862_v39 }
0x15f7   : > { %8491 = vmatpush3.bf16.msra.mxu0 %v9075_v26 }
0x15f8   : > { %4807 = vmatmul.mubr.bf16.vlgmr.msra.gmra.mrb[44].mxu1 %v10476_v23 }
0x15f9   : > { %4814 = vmatprep.mubr.bf16.mxu1 %v9860_v0 }
0x16ab   : > { %v8177_v61 = vpop.f32.mrb[40].mxu1 }
0x16ac   : > { %v8178_v59 = vpop.f32.mrb[41].mxu1 }
0x16ad   : > { %v8179_v62 = vadd.f32 %v8178_v59, %v8177_v61  ;;  %v8180_v63 = vpop.f32.mrb[42].mxu1  ;;  %v8199_v13 = vpop.f32.mrb[56].mxu0 }
0x16ae   : > { %v8181_v1 = vpop.f32.mrb[43].mxu1  ;;  %v8200_v40 = vpop.f32.mrb[57].mxu0 }
0x16af   : > { %v4508_v18 = vadd.f32 %v8179_v62, %v10590_v51  ;;  %v8201_v3 = vadd.f32 %v8200_v40, %v8199_v13  ;;  %v8202_v55 = vpop.f32.mrb[58].mxu0 }
0x16b0   : > { %v8203_v14 = vpop.f32.mrb[59].mxu0 }
0x16b1   : > { %v10640_v57 = vadd.f32 %v8201_v3, %v4508_v18 }
0x16b3   : > { %4567 = vadd.xlane.f32.xlu0 %v10640_v57 }
0x16cb   : > { %v4808_v50 = vpop.f32.mrb[44].mxu1 }
0x16cc   : > { %v4809_v23 = vpop.f32.mrb[45].mxu1 }
0x16cd   : > { %v4811_v32 = vpop.f32.mrb[46].mxu1 }
0x16ce   : > { %v4812_v4 = vpop.f32.mrb[47].mxu1 }
0x16cf   : > { %v4872_v5 = vpack.c.bf16 %v4812_v4, %v4809_v23  ;;  %v9077_v23 = vld [vmem:[#allocation16 + $0x80] sm:$0xff]   ;;  %v9078_v4 = vld [vmem:[#allocation16 + $0x88] sm:$0xff]  }
0x16d1   : > { %8497 = vmatpush3.bf16.xpose.msra.mxu1 %v4872_v5  ;;  %v9079_v5 = vld [vmem:[#allocation16 + $0x90] sm:$0xff]  }
0x16d2   : > { %8498 = vmatprep.subr.bf16.mxu1 %v9862_v39 }
0x1740   : > { %v4568_v7 = vpop.xlane.xlu0 %4567 }
0x1741   : > { %v4569_v10 = vmul.f32 0.0078125, %v4568_v7  ;;  %v9080_v7 = vld [vmem:[#allocation16 + $0x98] sm:$0xff]  }
0x1743   : > { %v4570_v51 = vsub.f32 %v10640_v57, %v4569_v10  ;;  %v9081_v10 = vld [vmem:[#allocation16 + $0xa0] sm:$0xff]  }
0x1745   : > { %v4571_v21 = vmul.f32 %v4570_v51, %v4570_v51 }
0x1747   : > { %4572 = vadd.xlane.f32.xlu1 %v4571_v21  ;;  %v9083_v21 = vld [vmem:[#allocation16 + $0xb0] sm:$0xff]  }
0x17d4   : > { %v4573_v24 = vpop.xlane.xlu1 %4572 }
0x17d5   : > { %v4574_v27 = vmul.f32 0.0078125, %v4573_v24 }
0x17d7   : > { %v4575_v29 = vadd.f32 1e-05, %v4574_v27 }
0x17d9   : > { %9357 = vrsqrt.f32 %v4575_v29 }
0x17e3   : > { %v9358_v60 = vpop.eup %9357 }
0x17e4   : > { %v4577_v41 = vmul.f32 %v9358_v60, %v4570_v51  ;;  %v9082_v51 = vld [vmem:[#allocation16 + $0xa8] sm:$0xff]   ;;  %v9087_v60 = vld [vmem:[#allocation17 + $0x204] ss:$16 sps:$4 sm:$0xff]  }
0x17e5   : > { %5296 = vmatprep.subr.bf16.mxu0 %v9087_v60  ;;  %v9143_v60 = vld [vmem:[#allocation19 + $0x2d0] sm:$0xff]  }
0x17e6   : > { %v4582_v37 = vmul.f32 %v4581_v22, %v4577_v41  ;;  %v9085_v22 = vld [vmem:[#allocation17 + $0x200] ss:$16 sps:$4 sm:$0xff]   ;;  %v9090_v41 = vld [vmem:[#allocation17 + $0x20c] ss:$16 sps:$4 sm:$0xff]  }
0x17e8   : > { %v4587_v42 = vadd.f32 %v4586_v30, %v4582_v37  ;;  %v9088_v30 = vld [vmem:[#allocation17 + $0x208] ss:$16 sps:$4 sm:$0xff]   ;;  %v9093_v37 = vld [vmem:[#allocation17 + $0x224] ss:$16 sps:$4 sm:$0xff]  }
0x17ea   : > { %v4598_v6 = vpack.c.bf16 %v4587_v42, %v4587_v42  ;;  %v9096_v42 = vld [vmem:[#allocation17 + $0x22c] ss:$16 sps:$4 sm:$0xff]  }
0x17ec   : > { %4599 = vst [vmem:[#allocation3 + $0x8] sm:$0xf] %v4598_v6  ;;  %v9091_v6 = vld [vmem:[#allocation17 + $0x220] ss:$16 sps:$4 sm:$0xff]  }
0x17f3   : > { %v9076_v44 = vld [vmem:[#allocation3 + $0x8] ss:$0 sps:$4 sm:$0xff]  }
0x17f4   : > { %4815 = vmatmul.mubr.bf16.gmra.mrb[48].mxu1 %v9076_v44  ;;  %8493 = vmatmul.mubr.bf16.vlgmr.msra.gmra.mrb[60].mxu0 %v9076_v44  ;;  %v9094_v44 = vld [vmem:[#allocation17 + $0x228] ss:$16 sps:$4 sm:$0xff]  }
0x17f5   : > { %8500 = vmatprep.mubr.msk.bf16.mxu1 %vm9863_vm3, %v9862_v39  ;;  %5328 = vmatprep.mubr.bf16.mxu0 %v9860_v0 }
0x17f6   : > { %5297 = vmatpush1.bf16.msra.mxu0 %v9085_v22  ;;  %v9142_v22 = vld [vmem:[#allocation19 + $0x210] sm:$0xff]  }
0x17f7   : > { %5298 = vmatprep.subr.bf16.mxu0 %v9093_v37  ;;  %v9146_v37 = vld [vmem:[#allocation19 + $0x218] sm:$0xff]  }
0x17fa   : > { %5299 = vmatpush1.bf16.msra.mxu0 %v9091_v6  ;;  %v9148_v6 = vld [vmem:[#allocation19 + $0x298] sm:$0xff]  }
0x18c7   : > { %v4816_v8 = vpop.f32.mrb[48].mxu1  ;;  %v8494_v34 = vpop.f32.mrb[60].mxu0 }
0x18c8   : > { %v4818_v17 = vpop.f32.mrb[49].mxu1  ;;  %v4857_v33 = vpop.f32.mrb[61].mxu0  ;;  %v4871_v48 = vpack.c.bf16 %v4816_v8, %v4816_v8  ;;  %v4928_v49 = vpack.c.bf16 %v8494_v34, %v8494_v34  ;;  %v9102_v8 = vld [vmem:[#allocation17 + $0x24c] ss:$16 sps:$4 sm:$0xff]   ;;  %v9097_v34 = vld [vmem:[#allocation17 + $0x240] ss:$16 sps:$4 sm:$0xff]  }
0x18c9   : > { %v4873_v19 = vpack.c.bf16 %v4818_v17, %v4818_v17  ;;  %v4820_v31 = vpop.f32.mrb[50].mxu1  ;;  %v8495_v45 = vpop.f32.mrb[62].mxu0  ;;  %v9100_v17 = vld [vmem:[#allocation17 + $0x248] ss:$16 sps:$4 sm:$0xff]  }
0x18ca   : > { %v4821_v46 = vpop.f32.mrb[51].mxu1  ;;  %v4860_v47 = vpop.f32.mrb[63].mxu0  ;;  %v4933_v36 = vsel %vm2386_vm4, %v4928_v49, 0  ;;  %v9111_v49 = vld [vmem:[#allocation17 + $0x284] ss:$16 sps:$4 sm:$0xff]  }
0x18cb   : > { %v4927_v53 = vpack.c.bf16 %v4860_v47, %v4857_v33  ;;  %8499 = vmatpush3.bf16.xpose.msra.mxu1 %v4873_v19  ;;  %v9105_v46 = vld [vmem:[#allocation17 + $0x264] ss:$16 sps:$4 sm:$0xff]   ;;  %v9108_v47 = vld [vmem:[#allocation17 + $0x26c] ss:$16 sps:$4 sm:$0xff]  }
0x18cc   : > { %8504 = vmatprep.subr.bf16.mxu1 %v9862_v39 }
0x18d2   : > { %8501 = vmatmul.mubr.bf16.vlgmr.msra.gmra.mrb[52].mxu1 %v4871_v48  ;;  %v9106_v48 = vld [vmem:[#allocation17 + $0x268] ss:$16 sps:$4 sm:$0xff]  }
0x18d3   : > { %8505 = vmatpush3.bf16.msra.mxu1 %v4927_v53  ;;  %8508 = vmatprep.mubr.msk.bf16.mxu1 %vm9863_vm3, %v9862_v39  ;;  %v9103_v53 = vld [vmem:[#allocation17 + $0x260] ss:$16 sps:$4 sm:$0xff]  }
0x18d4   : > { %8506 = vmatprep.subr.bf16.mxu1 %v9862_v39 }
0x18d7   : > { %8507 = vmatpush3.bf16.msra.mxu1 %v4933_v36  ;;  %v9114_v36 = vld [vmem:[#allocation17 + $0x28c] ss:$16 sps:$4 sm:$0xff]  }
0x18d8   : > { %8512 = vmatprep.subr.bf16.mxu1 %v9862_v39 }
0x19a5   : > { %v4908_v52 = vpop.f32.mrb[52].mxu1 }
0x19a6   : > { %v4914_v58 = vmul.f32 0.088388346, %v4908_v52  ;;  %v8502_v61 = vpop.f32.mrb[53].mxu1  ;;  %v9109_v52 = vld [vmem:[#allocation17 + $0x280] ss:$16 sps:$4 sm:$0xff]  }
0x19a7   : > { %v4911_v59 = vpop.f32.mrb[54].mxu1  ;;  %v9117_v61 = vld [vmem:[#allocation17 + $0x2a4] ss:$16 sps:$4 sm:$0xff]  }
0x19a8   : > { %v8503_v62 = vpop.f32.mrb[55].mxu1  ;;  %v4915_v63 = vsel %vm2368_vm5, %v4914_v58, -inf  ;;  %v9120_v59 = vld [vmem:[#allocation17 + $0x2ac] ss:$16 sps:$4 sm:$0xff]  }
0x19a9   : > { %4916 = vmax.xlane.f32.xlu0 %v4915_v63  ;;  %v9115_v62 = vld [vmem:[#allocation17 + $0x2a0] ss:$16 sps:$4 sm:$0xff]   ;;  %v9118_v63 = vld [vmem:[#allocation17 + $0x2a8] ss:$16 sps:$4 sm:$0xff]  }
0x1a36   : > { %v4917_v13 = vpop.xlane.xlu0 %4916 }
0x1a37   : > { %v4918_v1 = vsub.f32 %v4914_v58, %v4917_v13  ;;  %v9112_v58 = vld [vmem:[#allocation17 + $0x288] ss:$16 sps:$4 sm:$0xff]   ;;  %v9123_v13 = vld [vmem:[#allocation17 + $0x2c4] ss:$16 sps:$4 sm:$0xff]  }
0x1a39   : > { %v4919_v18 = vmul.f32 1.442695, %v4918_v1  ;;  %v9126_v1 = vld [vmem:[#allocation17 + $0x2cc] ss:$16 sps:$4 sm:$0xff]  }
0x1a3b   : > { %9359 = vpow2.f32 %v4919_v18  ;;  %v9121_v18 = vld [vmem:[#allocation17 + $0x2c0] ss:$16 sps:$4 sm:$0xff]  }
0x1a45   : > { %v9360_v40 = vpop.eup %9359 }
0x1a46   : > { %v4921_v3 = vsel %vm2368_vm5, %v9360_v40, 0.0 }
0x1a47   : > { %4922 = vadd.xlane.f32.xlu1 %v4921_v3  ;;  %v9129_v3 = vld [vmem:[#allocation17 + $0x2e4] ss:$16 sps:$4 sm:$0xff]  }
0x1ad4   : > { %v4923_v55 = vpop.xlane.xlu1 %4922 }
0x1ad5   : > { %9361 = vrcp.f32 %v4923_v55  ;;  %v9132_v55 = vld [vmem:[#allocation17 + $0x2ec] ss:$16 sps:$4 sm:$0xff]  }
0x1adf   : > { %v9362_v14 = vpop.eup %9361 }
0x1ae0   : > { %v4925_v50 = vmul.f32 %v9362_v14, %v9360_v40  ;;  %v9124_v40 = vld [vmem:[#allocation17 + $0x2c8] ss:$16 sps:$4 sm:$0xff]   ;;  %v9127_v14 = vld [vmem:[#allocation17 + $0x2e0] ss:$16 sps:$4 sm:$0xff]  }
0x1ae2   : > { %v4926_v32 = vpack.c.bf16 %v4925_v50, %v4925_v50  ;;  %v9130_v50 = vld [vmem:[#allocation17 + $0x2e8] ss:$16 sps:$4 sm:$0xff]  }
0x1ae4   : > { %8509 = vmatmul.mubr.msk.bf16.vlgmr.msra.gmra.mrb[56].mxu1 %vm2368_vm5, %v4926_v32 }
0x1ae5   : > { %8513 = vmatpush3.bf16.msra.mxu1 %v9077_v23  ;;  %8528 = vmatprep.mubr.msk.bf16.mxu1 %vm9863_vm3, %v9862_v39 }
0x1ae6   : > { %8514 = vmatprep.subr.bf16.mxu1 %v9862_v39 }
0x1ae9   : > { %8515 = vmatpush3.bf16.msra.mxu1 %v9078_v4 }
0x1aea   : > { %8516 = vmatprep.subr.bf16.mxu1 %v9862_v39 }
0x1aed   : > { %8517 = vmatpush3.bf16.msra.mxu1 %v9079_v5  ;;  %v5095_v5 = vrot.slane %v10645_v38, %v10437_v54 }
0x1aee   : > { %8518 = vmatprep.subr.bf16.mxu1 %v9862_v39 }
0x1af1   : > { %8519 = vmatpush3.bf16.msra.mxu1 %v9080_v7 }
0x1af2   : > { %8520 = vmatprep.subr.bf16.mxu1 %v9862_v39 }
0x1af5   : > { %8521 = vmatpush3.bf16.msra.mxu1 %v9081_v10 }
0x1af6   : > { %8522 = vmatprep.subr.bf16.mxu1 %v9862_v39 }
0x1af9   : > { %8523 = vmatpush3.bf16.msra.mxu1 %v9082_v51  ;;  %v5100_v51 = vrot.slane %v10645_v38, %v10441_v56  ;;  %v9141_v38 = vld [vmem:[#allocation19 + $0x250] sm:$0xff]  }
0x1afa   : > { %8524 = vmatprep.subr.bf16.mxu1 %v9862_v39 }
0x1afd   : > { %8525 = vmatpush3.bf16.msra.mxu1 %v9083_v21 }
0x1afe   : > { %8526 = vmatprep.subr.bf16.mxu1 %v9862_v39 }
0x1b01   : > { %8527 = vmatpush3.bf16.msra.mxu1 %v9084_v35 }
0x1b02   : > { %5337 = vmatprep.subr.bf16.mxu1 %v9090_v41  ;;  %v9145_v41 = vld [vmem:[#allocation19 + $0x258] sm:$0xff]  }
0x1bb7   : > { %v4969_v2 = vpop.f32.mrb[56].mxu1 }
0x1bb8   : > { %v4975_v11 = vpack.c.bf16 %v4969_v2, %v4969_v2  ;;  %v8510_v20 = vpop.f32.mrb[57].mxu1 }
0x1bb9   : > { %v4972_v15 = vpop.f32.mrb[58].mxu1  ;;  %v9134_v20 = vld [vmem:[#allocation19 + $0x200] sm:$0xff]  }
0x1bba   : > { %v8511_v16 = vpop.f32.mrb[59].mxu1  ;;  %8529 = vmatmul.mubr.bf16.vlgmr.msra.gmra.mrb[60].mxu1 %v4975_v11  ;;  %v9133_v11 = vld [vmem:[#allocation19 + $0x240] sm:$0xff]  }
0x1bbb   : > { %5369 = vmatprep.mubr.bf16.mxu1 %v9860_v0  ;;  %5338 = vmatpush1.bf16.msra.mxu1 %v9088_v30  ;;  %v9135_v15 = vld [vmem:[#allocation19 + $0x2c0] sm:$0xff]   ;;  %v9144_v30 = vld [vmem:[#allocation19 + $0x290] sm:$0xff]  }
0x1bbc   : > { %5339 = vmatprep.subr.bf16.mxu1 %v9096_v42  ;;  %v9136_v16 = vld [vmem:[#allocation19 + $0x280] sm:$0xff]   ;;  %v9147_v42 = vld [vmem:[#allocation19 + $0x2d8] sm:$0xff]  }
0x1bbf   : > { %5340 = vmatpush1.bf16.msra.mxu1 %v9094_v44  ;;  %v9149_v44 = vld [vmem:[#allocation19 + $0x260] sm:$0xff]  }
0x1bc0   : > { %5341 = vmatprep.subr.bf16.mxu1 %v9102_v8  ;;  %v9151_v8 = vld [vmem:[#allocation19 + $0x2e0] sm:$0xff]  }
0x1bc3   : > { %5342 = vmatpush1.bf16.msra.mxu1 %v9100_v17  ;;  %v9153_v17 = vld [vmem:[#allocation19 + $0x268] sm:$0xff]  }
0x1bc4   : > { %5343 = vmatprep.subr.bf16.mxu1 %v9108_v47  ;;  %v9159_v47 = vld [vmem:[#allocation19 + $0x2f0] sm:$0xff]  }
0x1bc7   : > { %5344 = vmatpush1.bf16.msra.mxu1 %v9106_v48  ;;  %v9161_v48 = vld [vmem:[#allocation19 + $0x278] sm:$0xff]  }
0x1bc8   : > { %5345 = vmatprep.subr.bf16.mxu1 %v9114_v36  ;;  %v9163_v36 = vld [vmem:[#allocation19 + $0x2f8] sm:$0xff]  }
0x1bcb   : > { %5346 = vmatpush1.bf16.msra.mxu1 %v9112_v58  ;;  %v9167_v58 = vld [vmem:[#allocation14 + $0x244] ss:$12 sps:$4 sm:$0xff]  }
0x1bcc   : > { %5347 = vmatprep.subr.bf16.mxu1 %v9120_v59 }
0x1bcf   : > { %5348 = vmatpush1.bf16.msra.mxu1 %v9118_v63 }
0x1bd0   : > { %5349 = vmatprep.subr.bf16.mxu1 %v9126_v1 }
0x1bd3   : > { %5350 = vmatpush1.bf16.msra.mxu1 %v9124_v40 }
0x1bd4   : > { %5351 = vmatprep.subr.bf16.mxu1 %v9132_v55 }
0x1bd7   : > { %5352 = vmatpush1.bf16.msra.mxu1 %v9130_v50 }
0x1bd8   : > { %8252 = vmatprep.subr.bf16.mxu1 %v9135_v15 }
0x1c8d   : > { %v5075_v25 = vpop.f32.mrb[60].mxu1 }
0x1c8e   : > { %v10674_v26 = vadd.f32 %v5075_v25, %v10640_v57  ;;  %v8530_v24 = vpop.f32.mrb[61].mxu1  ;;  %v9099_v57 = vld [vmem:[#allocation17 + $0x244] ss:$16 sps:$4 sm:$0xff]   ;;  %v9137_v25 = vld [vmem:[#allocation19 + $0x248] sm:$0xff]  }
0x1c8f   : > { %v5078_v27 = vpop.f32.mrb[62].mxu1  ;;  %5300 = vmatprep.subr.bf16.mxu0 %v9099_v57  ;;  %v9138_v24 = vld [vmem:[#allocation19 + $0x208] sm:$0xff]   ;;  %v9150_v57 = vld [vmem:[#allocation19 + $0x220] sm:$0xff]  }
0x1c90   : > { %5081 = vadd.xlane.f32.xlu0 %v10674_v26  ;;  %v8531_v29 = vpop.f32.mrb[63].mxu1  ;;  %5301 = vmatpush1.bf16.msra.mxu0 %v9097_v34  ;;  %v9139_v27 = vld [vmem:[#allocation19 + $0x2c8] sm:$0xff]   ;;  %v9152_v34 = vld [vmem:[#allocation19 + $0x2a0] sm:$0xff]  }
0x1c91   : > { %5302 = vmatprep.subr.bf16.mxu0 %v9105_v46  ;;  %v9140_v29 = vld [vmem:[#allocation19 + $0x288] sm:$0xff]   ;;  %v9158_v46 = vld [vmem:[#allocation19 + $0x230] sm:$0xff]  }
0x1c94   : > { %5303 = vmatpush1.bf16.msra.mxu0 %v9103_v53  ;;  %v9160_v53 = vld [vmem:[#allocation19 + $0x2b0] sm:$0xff]  }
0x1c95   : > { %5304 = vmatprep.subr.bf16.mxu0 %v9111_v49  ;;  %v9162_v49 = vld [vmem:[#allocation19 + $0x238] sm:$0xff]  }
0x1c98   : > { %5305 = vmatpush1.bf16.msra.mxu0 %v9109_v52  ;;  %v9164_v52 = vld [vmem:[#allocation19 + $0x2b8] sm:$0xff]  }
0x1c99   : > { %5306 = vmatprep.subr.bf16.mxu0 %v9117_v61 }
0x1c9c   : > { %5307 = vmatpush1.bf16.msra.mxu0 %v9115_v62 }
0x1c9d   : > { %5308 = vmatprep.subr.bf16.mxu0 %v9123_v13 }
0x1ca0   : > { %5309 = vmatpush1.bf16.msra.mxu0 %v9121_v18 }
0x1ca1   : > { %5310 = vmatprep.subr.bf16.mxu0 %v9129_v3 }
0x1ca4   : > { %5311 = vmatpush1.bf16.msra.mxu0 %v9127_v14 }
0x1ca5   : > { %8230 = vmatprep.subr.bf16.mxu0 %v9133_v11 }
0x1d1d   : > { %v5082_v33 = vpop.xlane.xlu0 %5081 }
0x1d1e   : > { %v5083_v19 = vmul.f32 0.0078125, %v5082_v33  ;;  %v9154_v33 = vld [vmem:[#allocation19 + $0x228] sm:$0xff]  }
0x1d20   : > { %v5084_v31 = vsub.f32 %v10674_v26, %v5083_v19  ;;  %v9155_v19 = vld [vmem:[#allocation19 + $0x2e8] sm:$0xff]  }
0x1d22   : > { %v5085_v45 = vmul.f32 %v5084_v31, %v5084_v31 }
0x1d24   : > { %5086 = vadd.xlane.f32.xlu1 %v5085_v45  ;;  %v9157_v45 = vld [vmem:[#allocation19 + $0x270] sm:$0xff]  }
0x1db1   : > { %v5087_v23 = vpop.xlane.xlu1 %5086 }
0x1db2   : > { %v5088_v32 = vmul.f32 0.0078125, %v5087_v23 }
0x1db4   : > { %v5089_v4 = vadd.f32 1e-05, %v5088_v32 }
0x1db6   : > { %9363 = vrsqrt.f32 %v5089_v4 }
0x1dc0   : > { %v9364_v7 = vpop.eup %9363 }
0x1dc1   : > { %v5091_v10 = vmul.f32 %v9364_v7, %v5084_v31  ;;  %v9156_v31 = vld [vmem:[#allocation19 + $0x2a8] sm:$0xff]  }
0x1dc3   : > { %v5096_v21 = vmul.f32 %v5095_v5, %v5091_v10 }
0x1dc5   : > { %v5101_v35 = vadd.f32 %v5100_v51, %v5096_v21 }
0x1dc7   : > { %v5135_v2 = vpack.c.bf16 %v5101_v35, %v5101_v35 }
0x1dc9   : > { %5329 = vmatmul.mubr.bf16.vlgmr.msra.gmra.mrb[64].mxu0 %v5135_v2  ;;  %5370 = vmatmul.mubr.bf16.vlgmr.msra.gmra.mrb[64].mxu1 %v5135_v2 }
0x1dca   : > { %8231 = vmatpush3.bf16.msra.mxu0 %v9134_v20  ;;  %8253 = vmatpush3.bf16.msra.mxu1 %v9136_v16 }
0x1dcb   : > { %8232 = vmatprep.subr.bf16.mxu0 %v9137_v25  ;;  %8254 = vmatprep.subr.bf16.mxu1 %v9139_v27 }
0x1dce   : > { %8233 = vmatpush3.bf16.msra.mxu0 %v9138_v24  ;;  %8255 = vmatpush3.bf16.msra.mxu1 %v9140_v29 }
0x1dcf   : > { %8234 = vmatprep.subr.bf16.mxu0 %v9141_v38  ;;  %8256 = vmatprep.subr.bf16.mxu1 %v9143_v60 }
0x1dd2   : > { %8235 = vmatpush3.bf16.msra.mxu0 %v9142_v22  ;;  %8257 = vmatpush3.bf16.msra.mxu1 %v9144_v30 }
0x1dd3   : > { %8236 = vmatprep.subr.bf16.mxu0 %v9145_v41  ;;  %8258 = vmatprep.subr.bf16.mxu1 %v9147_v42 }
0x1dd6   : > { %8237 = vmatpush3.bf16.msra.mxu0 %v9146_v37  ;;  %8259 = vmatpush3.bf16.msra.mxu1 %v9148_v6 }
0x1dd7   : > { %8238 = vmatprep.subr.bf16.mxu0 %v9149_v44  ;;  %8260 = vmatprep.subr.bf16.mxu1 %v9151_v8 }
0x1dda   : > { %8239 = vmatpush3.bf16.msra.mxu0 %v9150_v57  ;;  %8261 = vmatpush3.bf16.msra.mxu1 %v9152_v34 }
0x1ddb   : > { %8240 = vmatprep.subr.bf16.mxu0 %v9153_v17  ;;  %8262 = vmatprep.subr.bf16.mxu1 %v9155_v19 }
0x1dde   : > { %8241 = vmatpush3.bf16.msra.mxu0 %v9154_v33  ;;  %8263 = vmatpush3.bf16.msra.mxu1 %v9156_v31 }
0x1ddf   : > { %8242 = vmatprep.subr.bf16.mxu0 %v9157_v45  ;;  %8264 = vmatprep.subr.bf16.mxu1 %v9159_v47 }
0x1de2   : > { %8243 = vmatpush3.bf16.msra.mxu0 %v9158_v46  ;;  %8265 = vmatpush3.bf16.msra.mxu1 %v9160_v53 }
0x1de3   : > { %8244 = vmatprep.subr.bf16.mxu0 %v9161_v48  ;;  %8266 = vmatprep.subr.bf16.mxu1 %v9163_v36 }
0x1de6   : > { %8245 = vmatpush3.bf16.msra.mxu0 %v9162_v49  ;;  %8267 = vmatpush3.bf16.msra.mxu1 %v9164_v52 }
0x1de7   : > { %6048 = vmatprep.subr.bf16.mxu0 %v9167_v58 }
0x1e9c   : > { %v10682_v61 = vpop.f32.mrb[64].mxu0  ;;  %v10684_v59 = vpop.f32.mrb[64].mxu1 }
0x1e9d   : > { %v10687_v62 = vmul.f32 0.70710677, %v10682_v61  ;;  %v10690_v63 = vmul.f32 0.70710677, %v10684_v59  ;;  %v10692_v13 = vpop.f32.mrb[65].mxu0  ;;  %v10694_v1 = vpop.f32.mrb[65].mxu1 }
0x1e9e   : > { %v10699_v3 = vmul.f32 0.70710677, %v10692_v13  ;;  %v5334_v55 = vpop.f32.mrb[66].mxu0  ;;  %v10703_v32 = vmul.f32 0.70710677, %v10694_v1  ;;  %v5375_v7 = vpop.f32.mrb[66].mxu1 }
0x1e9f   : > { %v5394_v18 = vand.u32 2147483647, %v10687_v62  ;;  %v5396_v40 = vand.u32 2147483647, %v10690_v63  ;;  %v5335_v10 = vpop.f32.mrb[67].mxu0  ;;  %v5376_v21 = vpop.f32.mrb[67].mxu1 }
0x1ea0   : > { %v5395_v23 = vand.u32 2147483647, %v10699_v3  ;;  %v5397_v2 = vand.u32 2147483647, %v10703_v32  ;;  %vm5386_vm14 = vcmp.lt.f32.partialorder %v10687_v62, 0.0  ;;  %vm5388_vm15 = vcmp.lt.f32.partialorder %v10690_v63, 0.0 }
0x1ea1   : > { %v5398_v14 = vmul.f32 0.3275911, %v5394_v18  ;;  %v5400_v50 = vmul.f32 0.3275911, %v5396_v40  ;;  %v5450_v15 = vsub.f32 0.0, %v5394_v18  ;;  %v5452_v16 = vsub.f32 0.0, %v5396_v40 }
0x1ea2   : > { %v5399_v51 = vmul.f32 0.3275911, %v5395_v23  ;;  %v5401_v11 = vmul.f32 0.3275911, %v5397_v2  ;;  %v5451_v27 = vsub.f32 0.0, %v5395_v23  ;;  %v5453_v41 = vsub.f32 0.0, %v5397_v2 }
0x1ea3   : > { %v5402_v4 = vadd.f32 1.0, %v5398_v14  ;;  %v5404_v5 = vadd.f32 1.0, %v5400_v50  ;;  %v5454_v24 = vmul.f32 %v5450_v15, %v5394_v18  ;;  %v5456_v22 = vmul.f32 %v5452_v16, %v5396_v40 }
0x1ea4   : > { %v5403_v35 = vadd.f32 1.0, %v5399_v51  ;;  %v5405_v20 = vadd.f32 1.0, %v5401_v11  ;;  %v5455_v44 = vmul.f32 %v5451_v27, %v5395_v23  ;;  %v5457_v45 = vmul.f32 %v5453_v41, %v5397_v2 }
0x1ea5   : > { %9365 = vrcp.f32 %v5402_v4  ;;  %v5458_v42 = vmul.f32 1.442695, %v5454_v24  ;;  %v5462_v8 = vmul.f32 1.442695, %v5456_v22  ;;  %vm5387_vm0 = vcmp.lt.f32.partialorder %v10699_v3, 0.0 }
0x1ea6   : > { %9367 = vrcp.f32 %v5404_v5  ;;  %v5460_v47 = vmul.f32 1.442695, %v5455_v44  ;;  %v5464_v40 = vmul.f32 1.442695, %v5457_v45  ;;  %vm5389_vm1 = vcmp.lt.f32.partialorder %v10703_v32, 0.0 }
0x1ea7   : > { %9369 = vrcp.f32 %v5403_v35  ;;  %v5378_v45 = vmul.f32 0.5, %v10682_v61  ;;  %v5379_v3 = vmul.f32 0.5, %v10692_v13 }
0x1ea8   : > { %9371 = vrcp.f32 %v5405_v20 }
0x1ea9   : > { %9373 = vpow2.f32 %v5458_v42  ;;  %v5390_v42 = vsel %vm5386_vm14, -1.0, %v9861_v9 }
0x1eaa   : > { %9375 = vpow2.f32 %v5462_v8 }
0x1eab   : > { %9377 = vpow2.f32 %v5460_v47 }
0x1eac   : > { %9379 = vpow2.f32 %v5464_v40 }
0x1eaf   : > { %v9366_v25 = vpop.eup %9365 }
0x1eb0   : > { %v9368_v29 = vpop.eup %9367  ;;  %v5414_v38 = vmul.f32 1.0614054, %v9366_v25 }
0x1eb1   : > { %v5416_v60 = vmul.f32 1.0614054, %v9368_v29  ;;  %v9370_v37 = vpop.eup %9369 }
0x1eb2   : > { %v5418_v30 = vadd.f32 -1.4531521, %v5414_v38  ;;  %v5415_v34 = vmul.f32 1.0614054, %v9370_v37  ;;  %v9372_v33 = vpop.eup %9371 }
0x1eb3   : > { %v5420_v6 = vadd.f32 -1.4531521, %v5416_v60  ;;  %v5417_v53 = vmul.f32 1.0614054, %v9372_v33  ;;  %v9374_v11 = vpop.eup %9373 }
0x1eb4   : > { %v5422_v57 = vmul.f32 %v9366_v25, %v5418_v30  ;;  %v5419_v31 = vadd.f32 -1.4531521, %v5415_v34  ;;  %v9376_v16 = vpop.eup %9375 }
0x1eb5   : > { %v5424_v17 = vmul.f32 %v9368_v29, %v5420_v6  ;;  %v5421_v52 = vadd.f32 -1.4531521, %v5417_v53  ;;  %v9378_v41 = vpop.eup %9377 }
0x1eb6   : > { %v5426_v19 = vadd.f32 1.4214138, %v5422_v57  ;;  %v5423_v49 = vmul.f32 %v9370_v37, %v5419_v31  ;;  %v5392_v57 = vsel %vm5388_vm15, -1.0, %v9861_v9  ;;  %v9380_v8 = vpop.eup %9379  ;;  %v5391_v31 = vsel %vm5387_vm0, -1.0, %v9861_v9 }
0x1eb7   : > { %v5428_v46 = vadd.f32 1.4214138, %v5424_v17  ;;  %v5425_v14 = vmul.f32 %v9372_v33, %v5421_v52 }
0x1eb8   : > { %v5430_v48 = vmul.f32 %v9366_v25, %v5426_v19  ;;  %v5427_v18 = vadd.f32 1.4214138, %v5423_v49 }
0x1eb9   : > { %v5432_v36 = vmul.f32 %v9368_v29, %v5428_v46  ;;  %v5429_v5 = vadd.f32 1.4214138, %v5425_v14 }
0x1eba   : > { %v5434_v58 = vadd.f32 -0.28449672, %v5430_v48  ;;  %v5431_v23 = vmul.f32 %v9370_v37, %v5427_v18  ;;  %v5393_v48 = vsel %vm5389_vm1, -1.0, %v9861_v9 }
0x1ebb   : > { %v5436_v55 = vadd.f32 -0.28449672, %v5432_v36  ;;  %v5433_v21 = vmul.f32 %v9372_v33, %v5429_v5  ;;  %v5380_v36 = vmul.f32 0.5, %v10684_v59  ;;  %v9168_v59 = vld [vmem:[#allocation3] sm:$0xff]  }
0x1ebc   : > { %v5438_v50 = vmul.f32 %v9366_v25, %v5434_v58  ;;  %v5435_v10 = vadd.f32 -0.28449672, %v5431_v23  ;;  %v5381_v58 = vmul.f32 0.5, %v10694_v1  ;;  %v9174_v5 = vld [vmem:[#allocation14 + $0x274] ss:$12 sps:$4 sm:$0xff]  }
0x1ebd   : > { %v5440_v4 = vmul.f32 %v9368_v29, %v5436_v55  ;;  %v5437_v15 = vadd.f32 -0.28449672, %v5433_v21  ;;  %v9165_v55 = vld [vmem:[#allocation14 + $0x240] ss:$12 sps:$4 sm:$0xff]   ;;  %v9172_v1 = vld [vmem:[#allocation14 + $0x270] ss:$12 sps:$4 sm:$0xff]  }
0x1ebe   : > { %v5442_v7 = vadd.f32 0.2548296, %v5438_v50  ;;  %v5439_v2 = vmul.f32 %v9370_v37, %v5435_v10  ;;  %v9171_v50 = vld [vmem:[#allocation14 + $0x25c] ss:$12 sps:$4 sm:$0xff]   ;;  %v9178_v21 = vld [vmem:[#allocation14 + $0x2a0] ss:$12 sps:$4 sm:$0xff]  }
0x1ebf   : > { %v5444_v51 = vadd.f32 0.2548296, %v5440_v4  ;;  %v5441_v22 = vmul.f32 %v9372_v33, %v5437_v15  ;;  %v9169_v4 = vld [vmem:[#allocation14 + $0x258] ss:$12 sps:$4 sm:$0xff]   ;;  %v9175_v10 = vld [vmem:[#allocation14 + $0x288] ss:$12 sps:$4 sm:$0xff]  }
0x1ec0   : > { %v5446_v35 = vmul.f32 %v9366_v25, %v5442_v7  ;;  %v5443_v27 = vadd.f32 0.2548296, %v5439_v2  ;;  %v9177_v7 = vld [vmem:[#allocation14 + $0x28c] ss:$12 sps:$4 sm:$0xff]  }
0x1ec1   : > { %v5448_v20 = vmul.f32 %v9368_v29, %v5444_v51  ;;  %v5445_v25 = vadd.f32 0.2548296, %v5441_v22  ;;  %v9180_v51 = vld [vmem:[#allocation14 + $0x2a4] ss:$12 sps:$4 sm:$0xff]   ;;  %v9189_v15 = vld [vmem:[#allocation14 + $0x2ec] ss:$12 sps:$4 sm:$0xff]  }
0x1ec2   : > { %v5466_v24 = vmul.f32 %v9374_v11, %v5446_v35  ;;  %v5447_v30 = vmul.f32 %v9370_v37, %v5443_v27  ;;  %v9183_v35 = vld [vmem:[#allocation14 + $0x2bc] ss:$12 sps:$4 sm:$0xff]   ;;  %v9181_v2 = vld [vmem:[#allocation14 + $0x2b8] ss:$12 sps:$4 sm:$0xff]   ;;  %v9186_v11 = vld [vmem:[#allocation14 + $0x2d4] ss:$12 sps:$4 sm:$0xff]  }
0x1ec3   : > { %v5468_v38 = vmul.f32 %v9376_v16, %v5448_v20  ;;  %v5449_v62 = vmul.f32 %v9372_v33, %v5445_v25  ;;  %v9184_v20 = vld [vmem:[#allocation14 + $0x2d0] ss:$12 sps:$4 sm:$0xff]   ;;  %v9187_v16 = vld [vmem:[#allocation14 + $0x2e8] ss:$12 sps:$4 sm:$0xff]  }
0x1ec4   : > { %v5470_v60 = vsub.f32 1.0, %v5466_v24  ;;  %v5467_v29 = vmul.f32 %v9378_v41, %v5447_v30 }
0x1ec5   : > { %v5472_v6 = vsub.f32 1.0, %v5468_v38  ;;  %v5469_v63 = vmul.f32 %v9380_v8, %v5449_v62 }
0x1ec6   : > { %v5474_v44 = vmul.f32 %v5470_v60, %v5390_v42  ;;  %v5471_v17 = vsub.f32 1.0, %v5467_v29 }
0x1ec7   : > { %v5476_v34 = vmul.f32 %v5472_v6, %v5392_v57  ;;  %v5473_v46 = vsub.f32 1.0, %v5469_v63 }
0x1ec8   : > { %v5478_v19 = vadd.f32 1.0, %v5474_v44  ;;  %v5475_v37 = vmul.f32 %v5471_v17, %v5391_v31 }
0x1ec9   : > { %v5480_v47 = vadd.f32 1.0, %v5476_v34  ;;  %v5477_v49 = vmul.f32 %v5473_v46, %v5393_v48  ;;  %v9192_v46 = vld [vmem:[#allocation14 + $0x278] ss:$12 sps:$4 sm:$0xff]  }
0x1eca   : > { %v5479_v53 = vadd.f32 1.0, %v5475_v37  ;;  %v5482_v33 = vmul.f32 %v5478_v19, %v5378_v45  ;;  %v9190_v37 = vld [vmem:[#allocation14 + $0x248] ss:$12 sps:$4 sm:$0xff]   ;;  %v9191_v45 = vld [vmem:[#allocation14 + $0x260] ss:$12 sps:$4 sm:$0xff]  }
0x1ecb   : > { %v5481_v18 = vadd.f32 1.0, %v5477_v49  ;;  %v5484_v32 = vmul.f32 %v5480_v47, %v5380_v36  ;;  %8532 = vmatprep.subr.bf16.mxu1 %v9190_v37  ;;  %v9193_v47 = vld [vmem:[#allocation14 + $0x290] ss:$12 sps:$4 sm:$0xff]   ;;  %v9196_v48 = vld [vmem:[#allocation14 + $0x2d8] ss:$12 sps:$4 sm:$0xff]  }
0x1ecc   : > { %v5483_v52 = vmul.f32 %v5479_v53, %v5379_v3  ;;  %v5551_v14 = vpack.c.bf16 %v5482_v33, %v5482_v33  ;;  %v9194_v3 = vld [vmem:[#allocation14 + $0x2a8] ss:$12 sps:$4 sm:$0xff]   ;;  %v9195_v53 = vld [vmem:[#allocation14 + $0x2c0] ss:$12 sps:$4 sm:$0xff]   ;;  %v9197_v33 = vld [vmem:[#allocation14 + $0x2f0] ss:$12 sps:$4 sm:$0xff]  }
0x1ecd   : > { %v5485_v61 = vmul.f32 %v5481_v18, %v5381_v58  ;;  %v5553_v13 = vpack.c.bf16 %v5484_v32, %v5484_v32  ;;  %v10727_v58 = vld [vmem:[#allocation13 + $0x18] sm:$0xff] }
0x1ece   : > { %v5552_v40 = vpack.c.bf16 %v5483_v52, %v5483_v52  ;;  %v5855_v18 = vrot.slane %v10727_v58, %v10424_v28 }
0x1ecf   : > { %v5554_v23 = vpack.c.bf16 %v5485_v61, %v5485_v61 }
0x1ed0   : > { %5779 = vmatprep.mubr.bf16.mxu0 %v5552_v40  ;;  %v5860_v40 = vrot.slane %v10727_v58, %v10430_v43 }
0x1ed1   : > { %5780 = vmatmul.mubr.bf16.vlgmr.msra.gmra.mrb[68].mxu0 %v5551_v14  ;;  %5819 = vmatprep.mubr.bf16.mxu1 %v5554_v23 }
0x1ed2   : > { %6049 = vmatpush1.bf16.msra.mxu0 %v9165_v55  ;;  %6080 = vmatprep.mubr.bf16.mxu0 %v9860_v0 }
0x1ed3   : > { %6050 = vmatprep.subr.bf16.mxu0 %v9171_v50  ;;  %5820 = vmatmul.mubr.bf16.vlgmr.msra.gmra.mrb[68].mxu1 %v5553_v13 }
0x1ed4   : > { %8548 = vmatprep.mubr.bf16.mxu1 %v9168_v59  ;;  %8533 = vmatpush3.bf16.msra.mxu1 %v9190_v37 }
0x1ed5   : > { %8534 = vmatprep.subr.bf16.mxu1 %v9191_v45 }
0x1ed6   : > { %6051 = vmatpush1.bf16.msra.mxu0 %v9169_v4 }
0x1ed7   : > { %6052 = vmatprep.subr.bf16.mxu0 %v9174_v5 }
0x1ed8   : > { %8535 = vmatpush3.bf16.msra.mxu1 %v9191_v45 }
0x1ed9   : > { %8536 = vmatprep.subr.bf16.mxu1 %v9192_v46 }
0x1eda   : > { %6053 = vmatpush1.bf16.msra.mxu0 %v9172_v1 }
0x1edb   : > { %6054 = vmatprep.subr.bf16.mxu0 %v9177_v7 }
0x1edc   : > { %8537 = vmatpush3.bf16.msra.mxu1 %v9192_v46 }
0x1edd   : > { %8538 = vmatprep.subr.bf16.mxu1 %v9193_v47 }
0x1ede   : > { %6055 = vmatpush1.bf16.msra.mxu0 %v9175_v10 }
0x1edf   : > { %6056 = vmatprep.subr.bf16.mxu0 %v9180_v51 }
0x1ee0   : > { %8539 = vmatpush3.bf16.msra.mxu1 %v9193_v47 }
0x1ee1   : > { %8540 = vmatprep.subr.bf16.mxu1 %v9194_v3 }
0x1ee2   : > { %6057 = vmatpush1.bf16.msra.mxu0 %v9178_v21 }
0x1ee3   : > { %6058 = vmatprep.subr.bf16.mxu0 %v9183_v35 }
0x1ee4   : > { %8541 = vmatpush3.bf16.msra.mxu1 %v9194_v3 }
0x1ee5   : > { %8542 = vmatprep.subr.bf16.mxu1 %v9195_v53 }
0x1ee6   : > { %6059 = vmatpush1.bf16.msra.mxu0 %v9181_v2 }
0x1ee7   : > { %6060 = vmatprep.subr.bf16.mxu0 %v9186_v11 }
0x1ee8   : > { %8543 = vmatpush3.bf16.msra.mxu1 %v9195_v53 }
0x1ee9   : > { %8544 = vmatprep.subr.bf16.mxu1 %v9196_v48 }
0x1eea   : > { %6061 = vmatpush1.bf16.msra.mxu0 %v9184_v20 }
0x1eeb   : > { %6062 = vmatprep.subr.bf16.mxu0 %v9189_v15 }
0x1eec   : > { %8545 = vmatpush3.bf16.msra.mxu1 %v9196_v48 }
0x1eed   : > { %8546 = vmatprep.subr.bf16.mxu1 %v9197_v33 }
0x1eee   : > { %6063 = vmatpush1.bf16.msra.mxu0 %v9187_v16 }
0x1eef   : > { %8552 = vmatprep.subr.bf16.mxu0 %v9862_v39 }
0x1ef0   : > { %8547 = vmatpush3.bf16.msra.mxu1 %v9197_v33 }
0x1ef1   : > { %6081 = vmatmul.mubr.bf16.vlgmr.msra.gmra.mrb[72].mxu0 %v9168_v59 }
0x1ef2   : > { %6088 = vmatprep.mubr.bf16.mxu0 %v9860_v0 }
0x1fa4   : > { %v8246_v24 = vpop.f32.mrb[68].mxu0 }
0x1fa5   : > { %v8247_v27 = vpop.f32.mrb[69].mxu0 }
0x1fa6   : > { %v8248_v38 = vadd.f32 %v8247_v27, %v8246_v24  ;;  %v8249_v22 = vpop.f32.mrb[70].mxu0  ;;  %v8268_v60 = vpop.f32.mrb[68].mxu1 }
0x1fa7   : > { %v8250_v30 = vpop.f32.mrb[71].mxu0  ;;  %v8269_v42 = vpop.f32.mrb[69].mxu1 }
0x1fa8   : > { %v5782_v41 = vadd.f32 %v8248_v38, %v10674_v26  ;;  %v8270_v6 = vadd.f32 %v8269_v42, %v8268_v60  ;;  %v8271_v25 = vpop.f32.mrb[70].mxu1 }
0x1fa9   : > { %v8272_v44 = vpop.f32.mrb[71].mxu1 }
0x1faa   : > { %v10722_v29 = vadd.f32 %v8270_v6, %v5782_v41  ;;  %v9199_v44 = vld [vmem:[#allocation16 + $0xc0] sm:$0xff]  }
0x1fac   : > { %5841 = vadd.xlane.f32.xlu0 %v10722_v29 }
0x1fc4   : > { %v6082_v57 = vpop.f32.mrb[72].mxu0 }
0x1fc5   : > { %v6083_v62 = vpop.f32.mrb[73].mxu0 }
0x1fc6   : > { %v6085_v8 = vpop.f32.mrb[74].mxu0 }
0x1fc7   : > { %v6086_v34 = vpop.f32.mrb[75].mxu0  ;;  %v9201_v8 = vld [vmem:[#allocation16 + $0xd0] sm:$0xff]  }
0x1fc8   : > { %v6146_v17 = vpack.c.bf16 %v6086_v34, %v6083_v62  ;;  %v9200_v62 = vld [vmem:[#allocation16 + $0xc8] sm:$0xff]   ;;  %v9202_v34 = vld [vmem:[#allocation16 + $0xd8] sm:$0xff]  }
0x1fca   : > { %8553 = vmatpush3.bf16.xpose.msra.mxu0 %v6146_v17  ;;  %v9203_v17 = vld [vmem:[#allocation16 + $0xe0] sm:$0xff]  }
0x1fcb   : > { %8554 = vmatprep.subr.bf16.mxu0 %v9862_v39 }
0x2039   : > { %v5842_v19 = vpop.xlane.xlu0 %5841 }
0x203a   : > { %v5843_v31 = vmul.f32 0.0078125, %v5842_v19  ;;  %v9204_v19 = vld [vmem:[#allocation16 + $0xe8] sm:$0xff]  }
0x203c   : > { %v5844_v26 = vsub.f32 %v10722_v29, %v5843_v31  ;;  %v9205_v31 = vld [vmem:[#allocation16 + $0xf0] sm:$0xff]  }
0x203e   : > { %v5845_v63 = vmul.f32 %v5844_v26, %v5844_v26 }
0x2040   : > { %5846 = vadd.xlane.f32.xlu1 %v5845_v63 }
0x20cd   : > { %v5847_v49 = vpop.xlane.xlu1 %5846 }
0x20ce   : > { %v5848_v36 = vmul.f32 0.0078125, %v5847_v49 }
0x20d0   : > { %v5849_v52 = vadd.f32 1e-05, %v5848_v36  ;;  %v9207_v36 = vld [vmem:[#allocation17 + $0x300] ss:$16 sps:$4 sm:$0xff]  }
0x20d2   : > { %9381 = vrsqrt.f32 %v5849_v52  ;;  %v9209_v52 = vld [vmem:[#allocation17 + $0x304] ss:$16 sps:$4 sm:$0xff]  }
0x20d3   : > { %6570 = vmatprep.subr.bf16.mxu1 %v9209_v52  ;;  %v9270_v52 = vld [vmem:[#allocation19 + $0x398] sm:$0xff]  }
0x20dc   : > { %v9382_v32 = vpop.eup %9381 }
0x20dd   : > { %v5851_v55 = vmul.f32 %v9382_v32, %v5844_v26  ;;  %v9206_v26 = vld [vmem:[#allocation16 + $0xf8] sm:$0xff]  }
0x20de   : > { %v9212_v32 = vld [vmem:[#allocation17 + $0x30c] ss:$16 sps:$4 sm:$0xff]  }
0x20df   : > { %v5856_v14 = vmul.f32 %v5855_v18, %v5851_v55  ;;  %v9210_v18 = vld [vmem:[#allocation17 + $0x308] ss:$16 sps:$4 sm:$0xff]   ;;  %v9218_v55 = vld [vmem:[#allocation17 + $0x32c] ss:$16 sps:$4 sm:$0xff]  }
0x20e1   : > { %v5861_v61 = vadd.f32 %v5860_v40, %v5856_v14  ;;  %v9215_v40 = vld [vmem:[#allocation17 + $0x324] ss:$16 sps:$4 sm:$0xff]   ;;  %v9213_v14 = vld [vmem:[#allocation17 + $0x320] ss:$16 sps:$4 sm:$0xff]  }
0x20e3   : > { %v5872_v50 = vpack.c.bf16 %v5861_v61, %v5861_v61  ;;  %v9224_v61 = vld [vmem:[#allocation17 + $0x34c] ss:$16 sps:$4 sm:$0xff]  }
0x20e5   : > { %5873 = vst [vmem:[#allocation3 + $0x8] sm:$0xf] %v5872_v50  ;;  %v9219_v50 = vld [vmem:[#allocation17 + $0x340] ss:$16 sps:$4 sm:$0xff]  }
0x20ec   : > { %v9198_v23 = vld [vmem:[#allocation3 + $0x8] ss:$0 sps:$4 sm:$0xff]  }
0x20ed   : > { %6089 = vmatmul.mubr.bf16.gmra.mrb[76].mxu0 %v9198_v23  ;;  %8549 = vmatmul.mubr.bf16.vlgmr.msra.gmra.mrb[72].mxu1 %v9198_v23  ;;  %v9222_v23 = vld [vmem:[#allocation17 + $0x348] ss:$16 sps:$4 sm:$0xff]  }
0x20ee   : > { %8556 = vmatprep.mubr.msk.bf16.mxu0 %vm9863_vm3, %v9862_v39  ;;  %6602 = vmatprep.mubr.bf16.mxu1 %v9860_v0 }
0x20ef   : > { %6571 = vmatpush1.bf16.msra.mxu1 %v9207_v36  ;;  %v9269_v36 = vld [vmem:[#allocation19 + $0x318] sm:$0xff]  }
0x20f0   : > { %6572 = vmatprep.subr.bf16.mxu1 %v9215_v40  ;;  %v9273_v40 = vld [vmem:[#allocation19 + $0x320] sm:$0xff]  }
0x20f3   : > { %6573 = vmatpush1.bf16.msra.mxu1 %v9213_v14  ;;  %v9275_v14 = vld [vmem:[#allocation19 + $0x368] sm:$0xff]  }
0x21c0   : > { %v6090_v13 = vpop.f32.mrb[76].mxu0  ;;  %v8550_v4 = vpop.f32.mrb[72].mxu1 }
0x21c1   : > { %v6092_v28 = vpop.f32.mrb[77].mxu0  ;;  %v6131_v59 = vpop.f32.mrb[73].mxu1  ;;  %v6145_v21 = vpack.c.bf16 %v6090_v13, %v6090_v13  ;;  %v6202_v35 = vpack.c.bf16 %v8550_v4, %v8550_v4 }
0x21c2   : > { %v6147_v5 = vpack.c.bf16 %v6092_v28, %v6092_v28  ;;  %v6094_v1 = vpop.f32.mrb[78].mxu0  ;;  %v8551_v43 = vpop.f32.mrb[74].mxu1 }
0x21c3   : > { %v6095_v7 = vpop.f32.mrb[79].mxu0  ;;  %v6134_v10 = vpop.f32.mrb[75].mxu1  ;;  %v6207_v2 = vsel %vm2386_vm4, %v6202_v35, 0  ;;  %v9230_v1 = vld [vmem:[#allocation17 + $0x36c] ss:$16 sps:$4 sm:$0xff]  }
0x21c4   : > { %v6201_v51 = vpack.c.bf16 %v6134_v10, %v6131_v59  ;;  %8555 = vmatpush3.bf16.xpose.msra.mxu0 %v6147_v5  ;;  %v9227_v5 = vld [vmem:[#allocation17 + $0x364] ss:$16 sps:$4 sm:$0xff]   ;;  %v9225_v43 = vld [vmem:[#allocation17 + $0x360] ss:$16 sps:$4 sm:$0xff]   ;;  %v9228_v7 = vld [vmem:[#allocation17 + $0x368] ss:$16 sps:$4 sm:$0xff]  }
0x21c5   : > { %8560 = vmatprep.subr.bf16.mxu0 %v9862_v39  ;;  %v9233_v10 = vld [vmem:[#allocation17 + $0x384] ss:$16 sps:$4 sm:$0xff]   ;;  %v9234_v35 = vld [vmem:[#allocation17 + $0x388] ss:$16 sps:$4 sm:$0xff]  }
0x21cb   : > { %8557 = vmatmul.mubr.bf16.vlgmr.msra.gmra.mrb[80].mxu0 %v6145_v21  ;;  %v9231_v21 = vld [vmem:[#allocation17 + $0x380] ss:$16 sps:$4 sm:$0xff]  }
0x21cc   : > { %8561 = vmatpush3.bf16.msra.mxu0 %v6201_v51  ;;  %8564 = vmatprep.mubr.msk.bf16.mxu0 %vm9863_vm3, %v9862_v39  ;;  %v9236_v51 = vld [vmem:[#allocation17 + $0x38c] ss:$16 sps:$4 sm:$0xff]  }
0x21cd   : > { %8562 = vmatprep.subr.bf16.mxu0 %v9862_v39 }
0x21d0   : > { %8563 = vmatpush3.bf16.msra.mxu0 %v6207_v2  ;;  %v9239_v2 = vld [vmem:[#allocation17 + $0x3a4] ss:$16 sps:$4 sm:$0xff]  }
0x21d1   : > { %8568 = vmatprep.subr.bf16.mxu0 %v9862_v39 }
0x229e   : > { %v6182_v11 = vpop.f32.mrb[80].mxu0 }
0x229f   : > { %v6188_v20 = vmul.f32 0.088388346, %v6182_v11  ;;  %v8558_v15 = vpop.f32.mrb[81].mxu0  ;;  %v9242_v11 = vld [vmem:[#allocation17 + $0x3ac] ss:$16 sps:$4 sm:$0xff]  }
0x22a0   : > { %v6185_v16 = vpop.f32.mrb[82].mxu0  ;;  %v9240_v15 = vld [vmem:[#allocation17 + $0x3a8] ss:$16 sps:$4 sm:$0xff]  }
0x22a1   : > { %v8559_v24 = vpop.f32.mrb[83].mxu0  ;;  %v6189_v27 = vsel %vm2368_vm5, %v6188_v20, -inf  ;;  %v9245_v16 = vld [vmem:[#allocation17 + $0x3c4] ss:$16 sps:$4 sm:$0xff]  }
0x22a2   : > { %6190 = vmax.xlane.f32.xlu0 %v6189_v27  ;;  %v9248_v24 = vld [vmem:[#allocation17 + $0x3cc] ss:$16 sps:$4 sm:$0xff]   ;;  %v9243_v27 = vld [vmem:[#allocation17 + $0x3c0] ss:$16 sps:$4 sm:$0xff]  }
0x232f   : > { %v6191_v38 = vpop.xlane.xlu0 %6190 }
0x2330   : > { %v6192_v22 = vsub.f32 %v6188_v20, %v6191_v38  ;;  %v9237_v20 = vld [vmem:[#allocation17 + $0x3a0] ss:$16 sps:$4 sm:$0xff]   ;;  %v9246_v38 = vld [vmem:[#allocation17 + $0x3c8] ss:$16 sps:$4 sm:$0xff]  }
0x2332   : > { %v6193_v60 = vmul.f32 1.442695, %v6192_v22  ;;  %v9251_v22 = vld [vmem:[#allocation17 + $0x3e4] ss:$16 sps:$4 sm:$0xff]  }
0x2334   : > { %9383 = vpow2.f32 %v6193_v60  ;;  %v9254_v60 = vld [vmem:[#allocation17 + $0x3ec] ss:$16 sps:$4 sm:$0xff]  }
0x233e   : > { %v9384_v30 = vpop.eup %9383 }
0x233f   : > { %v6195_v41 = vsel %vm2368_vm5, %v9384_v30, 0.0 }
0x2340   : > { %6196 = vadd.xlane.f32.xlu1 %v6195_v41  ;;  %v9252_v41 = vld [vmem:[#allocation17 + $0x3e8] ss:$16 sps:$4 sm:$0xff]  }
0x23cd   : > { %v6197_v42 = vpop.xlane.xlu1 %6196 }
0x23ce   : > { %9385 = vrcp.f32 %v6197_v42 }
0x23d8   : > { %v9386_v6 = vpop.eup %9385 }
0x23d9   : > { %v6199_v25 = vmul.f32 %v9386_v6, %v9384_v30  ;;  %v9249_v30 = vld [vmem:[#allocation17 + $0x3e0] ss:$16 sps:$4 sm:$0xff]  }
0x23db   : > { %v6200_v57 = vpack.c.bf16 %v6199_v25, %v6199_v25 }
0x23dd   : > { %8565 = vmatmul.mubr.msk.bf16.vlgmr.msra.gmra.mrb[84].mxu0 %vm2368_vm5, %v6200_v57 }
0x23de   : > { %8569 = vmatpush3.bf16.msra.mxu0 %v9199_v44  ;;  %8584 = vmatprep.mubr.msk.bf16.mxu0 %vm9863_vm3, %v9862_v39  ;;  %v6369_v44 = vrot.slane %v10727_v58, %v10437_v54  ;;  %v9260_v54 = vld [vmem:[#allocation19 + $0x3c8] sm:$0xff]  }
0x23df   : > { %8570 = vmatprep.subr.bf16.mxu0 %v9862_v39 }
0x23e2   : > { %8571 = vmatpush3.bf16.msra.mxu0 %v9200_v62 }
0x23e3   : > { %8572 = vmatprep.subr.bf16.mxu0 %v9862_v39 }
0x23e6   : > { %8573 = vmatpush3.bf16.msra.mxu0 %v9201_v8  ;;  %v6374_v8 = vrot.slane %v10727_v58, %v10441_v56  ;;  %v9263_v56 = vld [vmem:[#allocation19 + $0x350] sm:$0xff]  }
0x23e7   : > { %8574 = vmatprep.subr.bf16.mxu0 %v9862_v39  ;;  %v9264_v58 = vld [vmem:[#allocation19 + $0x3d0] sm:$0xff]  }
0x23ea   : > { %8575 = vmatpush3.bf16.msra.mxu0 %v9202_v34 }
0x23eb   : > { %8576 = vmatprep.subr.bf16.mxu0 %v9862_v39 }
0x23ee   : > { %8577 = vmatpush3.bf16.msra.mxu0 %v9203_v17 }
0x23ef   : > { %8578 = vmatprep.subr.bf16.mxu0 %v9862_v39 }
0x23f2   : > { %8579 = vmatpush3.bf16.msra.mxu0 %v9204_v19 }
0x23f3   : > { %8580 = vmatprep.subr.bf16.mxu0 %v9862_v39 }
0x23f6   : > { %8581 = vmatpush3.bf16.msra.mxu0 %v9205_v31  ;;  %v9255_v31 = vld [vmem:[#allocation19 + $0x340] sm:$0xff]  }
0x23f7   : > { %8582 = vmatprep.subr.bf16.mxu0 %v9862_v39 }
0x23fa   : > { %8583 = vmatpush3.bf16.msra.mxu0 %v9206_v26  ;;  %v9256_v26 = vld [vmem:[#allocation19 + $0x3c0] sm:$0xff]  }
0x23fb   : > { %6611 = vmatprep.subr.bf16.mxu0 %v9212_v32  ;;  %v9272_v32 = vld [vmem:[#allocation19 + $0x3e0] sm:$0xff]  }
0x24b0   : > { %v6243_v63 = vpop.f32.mrb[84].mxu0 }
0x24b1   : > { %v6249_v37 = vpack.c.bf16 %v6243_v63, %v6243_v63  ;;  %v8566_v45 = vpop.f32.mrb[85].mxu0  ;;  %v9257_v63 = vld [vmem:[#allocation19 + $0x300] sm:$0xff]  }
0x24b2   : > { %v6246_v46 = vpop.f32.mrb[86].mxu0  ;;  %v9259_v45 = vld [vmem:[#allocation19 + $0x348] sm:$0xff]  }
0x24b3   : > { %v8567_v47 = vpop.f32.mrb[87].mxu0  ;;  %8585 = vmatmul.mubr.bf16.vlgmr.msra.gmra.mrb[88].mxu0 %v6249_v37  ;;  %v9258_v37 = vld [vmem:[#allocation19 + $0x380] sm:$0xff]   ;;  %v9261_v46 = vld [vmem:[#allocation19 + $0x308] sm:$0xff]  }
0x24b4   : > { %6643 = vmatprep.mubr.bf16.mxu0 %v9860_v0  ;;  %6612 = vmatpush1.bf16.msra.mxu0 %v9210_v18  ;;  %v9216_v0 = vld [vmem:[#allocation17 + $0x328] ss:$16 sps:$4 sm:$0xff]   ;;  %v9271_v18 = vld [vmem:[#allocation19 + $0x360] sm:$0xff]  }
0x24b5   : > { %6613 = vmatprep.subr.bf16.mxu0 %v9218_v55  ;;  %v9262_v47 = vld [vmem:[#allocation19 + $0x388] sm:$0xff]   ;;  %v9274_v55 = vld [vmem:[#allocation19 + $0x3a0] sm:$0xff]  }
0x24b8   : > { %6614 = vmatpush1.bf16.msra.mxu0 %v9216_v0  ;;  %v9276_v0 = vld [vmem:[#allocation19 + $0x3e8] sm:$0xff]  }
0x24b9   : > { %6615 = vmatprep.subr.bf16.mxu0 %v9224_v61  ;;  %v9278_v61 = vld [vmem:[#allocation19 + $0x3a8] sm:$0xff]  }
0x24bc   : > { %6616 = vmatpush1.bf16.msra.mxu0 %v9222_v23  ;;  %v9280_v23 = vld [vmem:[#allocation19 + $0x3f0] sm:$0xff]  }
0x24bd   : > { %6617 = vmatprep.subr.bf16.mxu0 %v9230_v1  ;;  %v9286_v1 = vld [vmem:[#allocation19 + $0x3b8] sm:$0xff]  }
0x24c0   : > { %6618 = vmatpush1.bf16.msra.mxu0 %v9228_v7 }
0x24c1   : > { %6619 = vmatprep.subr.bf16.mxu0 %v9236_v51 }
0x24c4   : > { %6620 = vmatpush1.bf16.msra.mxu0 %v9234_v35 }
0x24c5   : > { %6621 = vmatprep.subr.bf16.mxu0 %v9242_v11 }
0x24c8   : > { %6622 = vmatpush1.bf16.msra.mxu0 %v9240_v15 }
0x24c9   : > { %6623 = vmatprep.subr.bf16.mxu0 %v9248_v24 }
0x24cc   : > { %6624 = vmatpush1.bf16.msra.mxu0 %v9246_v38 }
0x24cd   : > { %6625 = vmatprep.subr.bf16.mxu0 %v9254_v60 }
0x24d0   : > { %6626 = vmatpush1.bf16.msra.mxu0 %v9252_v41 }
0x24d1   : > { %8321 = vmatprep.subr.bf16.mxu0 %v9256_v26 }
0x2586   : > { %v6349_v3 = vpop.f32.mrb[88].mxu0 }
0x2587   : > { %v10756_v53 = vadd.f32 %v6349_v3, %v10722_v29  ;;  %v8586_v48 = vpop.f32.mrb[89].mxu0  ;;  %v9221_v29 = vld [vmem:[#allocation17 + $0x344] ss:$16 sps:$4 sm:$0xff]  }
0x2588   : > { %v6352_v33 = vpop.f32.mrb[90].mxu0  ;;  %6574 = vmatprep.subr.bf16.mxu1 %v9221_v29  ;;  %v9265_v3 = vld [vmem:[#allocation19 + $0x310] sm:$0xff]   ;;  %v9277_v29 = vld [vmem:[#allocation19 + $0x328] sm:$0xff]  }
0x2589   : > { %6355 = vadd.xlane.f32.xlu0 %v10756_v53  ;;  %v8587_v49 = vpop.f32.mrb[91].mxu0  ;;  %6575 = vmatpush1.bf16.msra.mxu1 %v9219_v50  ;;  %v9266_v48 = vld [vmem:[#allocation19 + $0x390] sm:$0xff]   ;;  %v9267_v33 = vld [vmem:[#allocation19 + $0x358] sm:$0xff]  }
0x258a   : > { %6576 = vmatprep.subr.bf16.mxu1 %v9227_v5  ;;  %v9268_v49 = vld [vmem:[#allocation19 + $0x3d8] sm:$0xff]   ;;  %v9279_v50 = vld [vmem:[#allocation19 + $0x370] sm:$0xff]  }
0x258b   : > { %v9285_v5 = vld [vmem:[#allocation19 + $0x338] sm:$0xff]  }
0x258d   : > { %6577 = vmatpush1.bf16.msra.mxu1 %v9225_v43 }
0x258e   : > { %6578 = vmatprep.subr.bf16.mxu1 %v9233_v10 }
0x2591   : > { %6579 = vmatpush1.bf16.msra.mxu1 %v9231_v21 }
0x2592   : > { %6580 = vmatprep.subr.bf16.mxu1 %v9239_v2 }
0x2595   : > { %6581 = vmatpush1.bf16.msra.mxu1 %v9237_v20 }
0x2596   : > { %6582 = vmatprep.subr.bf16.mxu1 %v9245_v16 }
0x2599   : > { %6583 = vmatpush1.bf16.msra.mxu1 %v9243_v27 }
0x259a   : > { %6584 = vmatprep.subr.bf16.mxu1 %v9251_v22 }
0x259d   : > { %6585 = vmatpush1.bf16.msra.mxu1 %v9249_v30 }
0x259e   : > { %8299 = vmatprep.subr.bf16.mxu1 %v9255_v31 }
0x2616   : > { %v6356_v13 = vpop.xlane.xlu0 %6355 }
0x2617   : > { %v6357_v4 = vmul.f32 0.0078125, %v6356_v13  ;;  %v9281_v13 = vld [vmem:[#allocation19 + $0x330] sm:$0xff]  }
0x2619   : > { %v6358_v28 = vsub.f32 %v10756_v53, %v6357_v4  ;;  %v9282_v4 = vld [vmem:[#allocation19 + $0x3b0] sm:$0xff]  }
0x261b   : > { %v6359_v59 = vmul.f32 %v6358_v28, %v6358_v28 }
0x261d   : > { %6360 = vadd.xlane.f32.xlu1 %v6359_v59  ;;  %v9284_v59 = vld [vmem:[#allocation19 + $0x3f8] sm:$0xff]  }
0x26aa   : > { %v6361_v42 = vpop.xlane.xlu1 %6360 }
0x26ab   : > { %v6362_v6 = vmul.f32 0.0078125, %v6361_v42 }
0x26ad   : > { %v6363_v25 = vadd.f32 1e-05, %v6362_v6 }
0x26af   : > { %9387 = vrsqrt.f32 %v6363_v25 }
0x26b9   : > { %v9388_v57 = vpop.eup %9387 }
0x26ba   : > { %v6365_v62 = vmul.f32 %v9388_v57, %v6358_v28  ;;  %v9283_v28 = vld [vmem:[#allocation19 + $0x378] sm:$0xff]  }
0x26bc   : > { %v6370_v34 = vmul.f32 %v6369_v44, %v6365_v62 }
0x26be   : > { %v6375_v17 = vadd.f32 %v6374_v8, %v6370_v34 }
0x26c0   : > { %v6409_v19 = vpack.c.bf16 %v6375_v17, %v6375_v17 }
0x26c2   : > { %6603 = vmatmul.mubr.bf16.vlgmr.msra.gmra.mrb[76].mxu1 %v6409_v19  ;;  %6644 = vmatmul.mubr.bf16.vlgmr.msra.gmra.mrb[92].mxu0 %v6409_v19 }
0x26c3   : > { %8300 = vmatpush3.bf16.msra.mxu1 %v9257_v63  ;;  %8322 = vmatpush3.bf16.msra.mxu0 %v9258_v37 }
0x26c4   : > { %8301 = vmatprep.subr.bf16.mxu1 %v9259_v45  ;;  %8323 = vmatprep.subr.bf16.mxu0 %v9260_v54 }
0x26c7   : > { %8302 = vmatpush3.bf16.msra.mxu1 %v9261_v46  ;;  %8324 = vmatpush3.bf16.msra.mxu0 %v9262_v47 }
0x26c8   : > { %8303 = vmatprep.subr.bf16.mxu1 %v9263_v56  ;;  %8325 = vmatprep.subr.bf16.mxu0 %v9264_v58 }
0x26cb   : > { %8304 = vmatpush3.bf16.msra.mxu1 %v9265_v3  ;;  %8326 = vmatpush3.bf16.msra.mxu0 %v9266_v48 }
0x26cc   : > { %8305 = vmatprep.subr.bf16.mxu1 %v9267_v33  ;;  %8327 = vmatprep.subr.bf16.mxu0 %v9268_v49 }
0x26cf   : > { %8306 = vmatpush3.bf16.msra.mxu1 %v9269_v36  ;;  %8328 = vmatpush3.bf16.msra.mxu0 %v9270_v52 }
0x26d0   : > { %8307 = vmatprep.subr.bf16.mxu1 %v9271_v18  ;;  %8329 = vmatprep.subr.bf16.mxu0 %v9272_v32 }
0x26d3   : > { %8308 = vmatpush3.bf16.msra.mxu1 %v9273_v40  ;;  %8330 = vmatpush3.bf16.msra.mxu0 %v9274_v55 }
0x26d4   : > { %8309 = vmatprep.subr.bf16.mxu1 %v9275_v14  ;;  %8331 = vmatprep.subr.bf16.mxu0 %v9276_v0 }
0x26d7   : > { %8310 = vmatpush3.bf16.msra.mxu1 %v9277_v29  ;;  %8332 = vmatpush3.bf16.msra.mxu0 %v9278_v61 }
0x26d8   : > { %8311 = vmatprep.subr.bf16.mxu1 %v9279_v50  ;;  %8333 = vmatprep.subr.bf16.mxu0 %v9280_v23 }
0x26db   : > { %8312 = vmatpush3.bf16.msra.mxu1 %v9281_v13  ;;  %8334 = vmatpush3.bf16.msra.mxu0 %v9282_v4 }
0x26dc   : > { %8313 = vmatprep.subr.bf16.mxu1 %v9283_v28  ;;  %8335 = vmatprep.subr.bf16.mxu0 %v9284_v59 }
0x26df   : > { %8314 = vmatpush3.bf16.msra.mxu1 %v9285_v5  ;;  %8336 = vmatpush3.bf16.msra.mxu0 %v9286_v1 }
0x26e0   : > { %8588 = vmatprep.subr.bf16.mxu1 %v9862_v39 }
0x2795   : > { %v10765_v43 = vpop.f32.mrb[76].mxu1  ;;  %v10767_v7 = vpop.f32.mrb[92].mxu0 }
0x2796   : > { %v10770_v10 = vmul.f32 0.70710677, %v10765_v43  ;;  %v10773_v51 = vmul.f32 0.70710677, %v10767_v7  ;;  %v10775_v21 = vpop.f32.mrb[77].mxu1  ;;  %v10777_v35 = vpop.f32.mrb[93].mxu0 }
0x2797   : > { %v10782_v20 = vmul.f32 0.70710677, %v10775_v21  ;;  %v6608_v15 = vpop.f32.mrb[78].mxu1  ;;  %v10786_v38 = vmul.f32 0.70710677, %v10777_v35  ;;  %v6649_v30 = vpop.f32.mrb[94].mxu0 }
0x2798   : > { %v6668_v2 = vand.u32 2147483647, %v10770_v10  ;;  %v6670_v11 = vand.u32 2147483647, %v10773_v51  ;;  %v6609_v41 = vpop.f32.mrb[79].mxu1  ;;  %v6650_v6 = vpop.f32.mrb[95].mxu0 }
0x2799   : > { %v6669_v27 = vand.u32 2147483647, %v10782_v20  ;;  %v6671_v44 = vand.u32 2147483647, %v10786_v38  ;;  %vm6660_vm2 = vcmp.lt.f32.partialorder %v10770_v10, 0.0  ;;  %vm6662_vm4 = vcmp.lt.f32.partialorder %v10773_v51, 0.0 }
0x279a   : > { %v6672_v16 = vmul.f32 0.3275911, %v6668_v2  ;;  %v6674_v24 = vmul.f32 0.3275911, %v6670_v11  ;;  %v6724_v8 = vsub.f32 0.0, %v6668_v2  ;;  %v6726_v34 = vsub.f32 0.0, %v6670_v11 }
0x279b   : > { %v6673_v42 = vmul.f32 0.3275911, %v6669_v27  ;;  %v6675_v57 = vmul.f32 0.3275911, %v6671_v44  ;;  %v6725_v31 = vsub.f32 0.0, %v6669_v27  ;;  %v6727_v46 = vsub.f32 0.0, %v6671_v44 }
0x279c   : > { %v6676_v22 = vadd.f32 1.0, %v6672_v16  ;;  %v6678_v60 = vadd.f32 1.0, %v6674_v24  ;;  %v6728_v19 = vmul.f32 %v6724_v8, %v6668_v2  ;;  %v6730_v37 = vmul.f32 %v6726_v34, %v6670_v11 }
0x279d   : > { %v6677_v25 = vadd.f32 1.0, %v6673_v42  ;;  %v6679_v62 = vadd.f32 1.0, %v6675_v57  ;;  %v6729_v3 = vmul.f32 %v6725_v31, %v6669_v27  ;;  %v6731_v40 = vmul.f32 %v6727_v46, %v6671_v44 }
0x279e   : > { %9389 = vrcp.f32 %v6676_v22  ;;  %v6732_v56 = vmul.f32 1.442695, %v6728_v19  ;;  %v6736_v33 = vmul.f32 1.442695, %v6730_v37  ;;  %vm6661_vm5 = vcmp.lt.f32.partialorder %v10782_v20, 0.0 }
0x279f   : > { %9391 = vrcp.f32 %v6678_v60  ;;  %v6734_v14 = vmul.f32 1.442695, %v6729_v3  ;;  %v6738_v28 = vmul.f32 1.442695, %v6731_v40  ;;  %vm6663_vm6 = vcmp.lt.f32.partialorder %v10786_v38, 0.0 }
0x27a0   : > { %9393 = vrcp.f32 %v6677_v25  ;;  %v6653_v20 = vmul.f32 0.5, %v10775_v21 }
0x27a1   : > { %9395 = vrcp.f32 %v6679_v62 }
0x27a2   : > { %9397 = vpow2.f32 %v6732_v56 }
0x27a3   : > { %9399 = vpow2.f32 %v6736_v33  ;;  %v6652_v33 = vmul.f32 0.5, %v10765_v43 }
0x27a4   : > { %9401 = vpow2.f32 %v6734_v14 }
0x27a5   : > { %9403 = vpow2.f32 %v6738_v28  ;;  %v9292_v28 = vld [vmem:[#allocation20 + $0x28] sm:$0xff]  }
0x27a8   : > { %v9390_v17 = vpop.eup %9389 }
0x27a9   : > { %v9392_v26 = vpop.eup %9391  ;;  %v6688_v63 = vmul.f32 1.0614054, %v9390_v17 }
0x27aa   : > { %v6690_v45 = vmul.f32 1.0614054, %v9392_v26  ;;  %v9394_v47 = vpop.eup %9393 }
0x27ab   : > { %v6692_v54 = vadd.f32 -1.4531521, %v6688_v63  ;;  %v6689_v49 = vmul.f32 1.0614054, %v9394_v47  ;;  %v9396_v52 = vpop.eup %9395  ;;  %v6664_v63 = vsel %vm6660_vm2, -1.0, %v9861_v9 }
0x27ac   : > { %v6694_v58 = vadd.f32 -1.4531521, %v6690_v45  ;;  %v6691_v0 = vmul.f32 1.0614054, %v9396_v52  ;;  %v9398_v41 = vpop.eup %9397 }
0x27ad   : > { %v6696_v48 = vmul.f32 %v9390_v17, %v6692_v54  ;;  %v6693_v32 = vadd.f32 -1.4531521, %v6689_v49  ;;  %v9400_v25 = vpop.eup %9399  ;;  %v6666_v54 = vsel %vm6662_vm4, -1.0, %v9861_v9 }
0x27ae   : > { %v6698_v36 = vmul.f32 %v9392_v26, %v6694_v58  ;;  %v6695_v23 = vadd.f32 -1.4531521, %v6691_v0  ;;  %v9402_v31 = vpop.eup %9401  ;;  %v6655_v0 = vmul.f32 0.5, %v10777_v35  ;;  %v9291_v35 = vld [vmem:[#allocation20 + $0x20] sm:$0xff]  }
0x27af   : > { %v6700_v18 = vadd.f32 1.4214138, %v6696_v48  ;;  %v6697_v61 = vmul.f32 %v9394_v47, %v6693_v32  ;;  %v9404_v46 = vpop.eup %9403  ;;  %v6665_v48 = vsel %vm6661_vm5, -1.0, %v9861_v9  ;;  %v6667_v32 = vsel %vm6663_vm6, -1.0, %v9861_v9  ;;  %v9289_v9 = vld [vmem:[#allocation20 + $0x10] sm:$0xff]  }
0x27b0   : > { %v6702_v55 = vadd.f32 1.4214138, %v6698_v36  ;;  %v6699_v5 = vmul.f32 %v9396_v52, %v6695_v23 }
0x27b1   : > { %v6704_v29 = vmul.f32 %v9390_v17, %v6700_v18  ;;  %v6701_v4 = vadd.f32 1.4214138, %v6697_v61 }
0x27b2   : > { %v6706_v50 = vmul.f32 %v9392_v26, %v6702_v55  ;;  %v6703_v15 = vadd.f32 1.4214138, %v6699_v5  ;;  %v6654_v55 = vmul.f32 0.5, %v10767_v7  ;;  %v9290_v7 = vld [vmem:[#allocation20 + $0x18] sm:$0xff]  }
0x27b3   : > { %v6708_v13 = vadd.f32 -0.28449672, %v6704_v29  ;;  %v6705_v2 = vmul.f32 %v9394_v47, %v6701_v4  ;;  %v9288_v4 = vld [vmem:[#allocation20 + $0x8] sm:$0xff]   ;;  %v9294_v5 = vld [vmem:[#allocation20 + $0x38] sm:$0xff]  }
0x27b4   : > { %v6710_v59 = vadd.f32 -0.28449672, %v6706_v50  ;;  %v6707_v22 = vmul.f32 %v9396_v52, %v6703_v15  ;;  %v9287_v50 = vld [vmem:[#allocation20] sm:$0xff]  }
0x27b5   : > { %v6712_v1 = vmul.f32 %v9390_v17, %v6708_v13  ;;  %v6709_v24 = vadd.f32 -0.28449672, %v6705_v2 }
0x27b6   : > { %v6714_v11 = vmul.f32 %v9392_v26, %v6710_v59  ;;  %v6711_v6 = vadd.f32 -0.28449672, %v6707_v22  ;;  %v9293_v59 = vld [vmem:[#allocation20 + $0x30] sm:$0xff]  }
0x27b7   : > { %v6716_v16 = vadd.f32 0.2548296, %v6712_v1  ;;  %v6713_v30 = vmul.f32 %v9394_v47, %v6709_v24 }
0x27b8   : > { %v6718_v27 = vadd.f32 0.2548296, %v6714_v11  ;;  %v6715_v8 = vmul.f32 %v9396_v52, %v6711_v6 }
0x27b9   : > { %v6720_v60 = vmul.f32 %v9390_v17, %v6716_v16  ;;  %v6717_v57 = vadd.f32 0.2548296, %v6713_v30 }
0x27ba   : > { %v6722_v42 = vmul.f32 %v9392_v26, %v6718_v27  ;;  %v6719_v17 = vadd.f32 0.2548296, %v6715_v8 }
0x27bb   : > { %v6740_v44 = vmul.f32 %v9398_v41, %v6720_v60  ;;  %v6721_v19 = vmul.f32 %v9394_v47, %v6717_v57 }
0x27bc   : > { %v6742_v62 = vmul.f32 %v9400_v25, %v6722_v42  ;;  %v6723_v10 = vmul.f32 %v9396_v52, %v6719_v17  ;;  %v8018_v25 = vld [vmem:[#allocation22] ss:$0 sm:$0xff] }
0x27bd   : > { %v6744_v34 = vsub.f32 1.0, %v6740_v44  ;;  %v6741_v26 = vmul.f32 %v9402_v31, %v6721_v19 }
0x27be   : > { %v6746_v37 = vsub.f32 1.0, %v6742_v62  ;;  %v6743_v51 = vmul.f32 %v9404_v46, %v6723_v10  ;;  %v8028_v10 = vld [vmem:[#allocation23 + $0x1] ss:$0 sm:$0xff] }
0x27bf   : > { %v6748_v45 = vmul.f32 %v6744_v34, %v6664_v63  ;;  %v6745_v58 = vsub.f32 1.0, %v6741_v26  ;;  %v8027_v26 = vld [vmem:[#allocation23] ss:$0 sm:$0xff] }
0x27c0   : > { %v6750_v56 = vmul.f32 %v6746_v37, %v6666_v54  ;;  %v6747_v49 = vsub.f32 1.0, %v6743_v51 }
0x27c1   : > { %v6752_v3 = vadd.f32 1.0, %v6748_v45  ;;  %v6749_v47 = vmul.f32 %v6745_v58, %v6665_v48 }
0x27c2   : > { %v6754_v36 = vadd.f32 1.0, %v6750_v56  ;;  %v6751_v40 = vmul.f32 %v6747_v49, %v6667_v32 }
0x27c3   : > { %v6753_v18 = vadd.f32 1.0, %v6749_v47  ;;  %v6756_v52 = vmul.f32 %v6752_v3, %v6652_v33 }
0x27c4   : > { %v6755_v29 = vadd.f32 1.0, %v6751_v40  ;;  %v6758_v38 = vmul.f32 %v6754_v36, %v6654_v55 }
0x27c5   : > { %v6757_v14 = vmul.f32 %v6753_v18, %v6653_v20  ;;  %v6825_v23 = vpack.c.bf16 %v6756_v52, %v6756_v52 }
0x27c6   : > { %v6759_v43 = vmul.f32 %v6755_v29, %v6655_v0  ;;  %v6827_v21 = vpack.c.bf16 %v6758_v38, %v6758_v38 }
0x27c7   : > { %v6826_v61 = vpack.c.bf16 %v6757_v14, %v6757_v14 }
0x27c8   : > { %v6828_v13 = vpack.c.bf16 %v6759_v43, %v6759_v43 }
0x27c9   : > { %7053 = vmatprep.mubr.bf16.mxu1 %v6826_v61 }
0x27ca   : > { %7054 = vmatmul.mubr.bf16.vlgmr.msra.gmra.mrb[80].mxu1 %v6825_v23  ;;  %7093 = vmatprep.mubr.bf16.mxu0 %v6828_v13 }
0x27cb   : > { %8589 = vmatpush3.bf16.msra.mxu1 %v9287_v50  ;;  %8604 = vmatprep.mubr.msk.bf16.mxu1 %vm9863_vm3, %v9862_v39 }
0x27cc   : > { %8590 = vmatprep.subr.bf16.mxu1 %v9862_v39  ;;  %7094 = vmatmul.mubr.bf16.vlgmr.msra.gmra.mrb[96].mxu0 %v6827_v21 }
0x27cf   : > { %8591 = vmatpush3.bf16.msra.mxu1 %v9288_v4 }
0x27d0   : > { %8592 = vmatprep.subr.bf16.mxu1 %v9862_v39 }
0x27d3   : > { %8593 = vmatpush3.bf16.msra.mxu1 %v9289_v9 }
0x27d4   : > { %8594 = vmatprep.subr.bf16.mxu1 %v9862_v39 }
0x27d7   : > { %8595 = vmatpush3.bf16.msra.mxu1 %v9290_v7 }
0x27d8   : > { %8596 = vmatprep.subr.bf16.mxu1 %v9862_v39 }
0x27db   : > { %8597 = vmatpush3.bf16.msra.mxu1 %v9291_v35 }
0x27dc   : > { %8598 = vmatprep.subr.bf16.mxu1 %v9862_v39 }
0x27df   : > { %8599 = vmatpush3.bf16.msra.mxu1 %v9292_v28 }
0x27e0   : > { %8600 = vmatprep.subr.bf16.mxu1 %v9862_v39 }
0x27e3   : > { %8601 = vmatpush3.bf16.msra.mxu1 %v9293_v59 }
0x27e4   : > { %8602 = vmatprep.subr.bf16.mxu1 %v9862_v39 }
0x27e7   : > { %8603 = vmatpush3.bf16.msra.mxu1 %v9294_v5 }
0x289d   : > { %v8315_v1 = vpop.f32.mrb[80].mxu1 }
0x289e   : > { %v8316_v2 = vpop.f32.mrb[81].mxu1 }
0x289f   : > { %v8317_v11 = vadd.f32 %v8316_v2, %v8315_v1  ;;  %v8318_v15 = vpop.f32.mrb[82].mxu1  ;;  %v8337_v16 = vpop.f32.mrb[96].mxu0 }
0x28a0   : > { %v8319_v24 = vpop.f32.mrb[83].mxu1  ;;  %v8338_v22 = vpop.f32.mrb[97].mxu0 }
0x28a1   : > { %v7056_v27 = vadd.f32 %v8317_v11, %v10756_v53  ;;  %v8339_v60 = vadd.f32 %v8338_v22, %v8337_v16  ;;  %v8340_v30 = vpop.f32.mrb[98].mxu0 }
0x28a2   : > { %v8341_v41 = vpop.f32.mrb[99].mxu0 }
0x28a3   : > { %v7096_v42 = vadd.f32 %v8339_v60, %v7056_v27 }
0x28a5   : > { %v7117_v6 = vpack.c.bf16 %v7096_v42, %v7096_v42 }
0x28a7   : > { %8605 = vmatmul.mubr.bf16.vlgmr.msra.gmra.mrb[84].mxu1 %v7117_v6 }
0x297a   : > { %v7207_v39 = vpop.f32.mrb[84].mxu1 }
0x297b   : > { %v7208_v44 = vadd.f32 %v8018_v25, %v7207_v39  ;;  %v8606_v57 = vpop.f32.mrb[85].mxu1 }
0x297c   : > { %v7210_v62 = vpop.f32.mrb[86].mxu1 }
0x297d   : > { %7215 = vadd.xlane.f32.xlu0 %v7208_v44  ;;  %v8607_v8 = vpop.f32.mrb[87].mxu1 }
0x2a0a   : > { %v7216_v34 = vpop.xlane.xlu0 %7215 }
0x2a0b   : > { %v7217_v19 = vmul.f32 0.0078125, %v7216_v34 }
0x2a0d   : > { %v7218_v31 = vsub.f32 %v7208_v44, %v7217_v19 }
0x2a0f   : > { %v7219_v53 = vmul.f32 %v7218_v31, %v7218_v31 }
0x2a11   : > { %7220 = vadd.xlane.f32.xlu1 %v7219_v53 }
0x2a9e   : > { %v7221_v63 = vpop.xlane.xlu1 %7220 }
0x2a9f   : > { %v7222_v37 = vmul.f32 0.0078125, %v7221_v63 }
0x2aa1   : > { %v7223_v17 = vadd.f32 1e-05, %v7222_v37 }
0x2aa3   : > { %9405 = vrsqrt.f32 %v7223_v17 }
0x2aad   : > { %v9406_v45 = vpop.eup %9405 }
0x2aae   : > { %v7225_v54 = vmul.f32 %v9406_v45, %v7218_v31 }
0x2ab0   : > { %v7230_v46 = vmul.f32 %v8027_v26, %v7225_v54 }
0x2ab2   : > { %v7235_v56 = vadd.f32 %v8028_v10, %v7230_v46 }
0x2ab4   : > { %v7236_v58 = vadd.f32 %v7235_v56, %v10450_v12 }
0x2ab6   : > { %7237 = vst [vmem:[%s717_s25] sm:$0xff] %v7236_v58 }
0x2ab7   : > { %9759 = shalt.err (!%p9756_p11)
}
0x2ab8   : > { %s9760_s18 = scalar_lea.hbm %s10817_s4, 128  ;;  %s9764_s30 = scalar_lea.hbm %s10938_s29, 256 }
0x2ab9   : > { %p9761_p13 = scmp.ne.s32.totalorder %s10817_s4, %s9760_s18  ;;  %p9765_p9 = scmp.lt.u32.totalorder %s10817_s4, %s10938_s29 }
0x2aba   : > { %p9766_p5 = scmp.lt.u32.totalorder %s9764_s30, %s9760_s18  ;;  %p9768_p0 = scmp.lt.u32.totalorder %s9760_s18, %s10817_s4 }
0x2abb   : > { %p9762_p1 = pnand %p9761_p13, %p10939_p2 }
0x2abc   : > { %p9767_p10 = por %p9766_p5, %p9765_p9 }
0x2abd   : > { %p9763_p6 = pneg %p9762_p1 }
0x2abe   : > { %p9769_p3 = por %p9768_p0, %p9767_p10 }
0x2ac0   : > { %p9770_p4 = pnand %p9769_p3, %p9763_p6 }
0x2ac2   : > { %9773 = shalt.err (!%p9770_p4)
}
0x2ac3   : > { %8656 = dma.vmem_to_hbm [thread:$0]  (%p10939_p2), %s10819_s27, 128, %s10817_s4, %s7239_s22  }
0x2ac4 PF: > { %s10940_s21 = sld [smem:[#allocation37_spill]]  ;;  %s10941_s26 = sld [smem:[#allocation34_spill]] }
0x2ac5   : > { %s10942_s28 = sld [smem:[#allocation41_spill]] }
0x2aca   : > { %p8723_p12 = scmp.ge.s32.totalorder %s10940_s21, 2  ;;  %s7264_s1 = sand.u32 1, %s10941_s26  }
0x2acb   : > { %p10943_p7 = scmp.ne.s32.totalorder %s10942_s28, 0  ;;  %s7265_s6 = scalar_lea.sflag [#allocation7], %s7264_s1 }
0x2acd   : > { %p8696_p8 = pnand %p8723_p12, %p10943_p7 }
0x2acf   : > { %9819 = dma.done.wait (!%p8696_p8), %s7265_s6, 128  }
0x2ad0   : > { %9821 = vsyncadd (!%p8696_p8), %s7265_s6, 4294967168  ;;  %s10944_s27 = sld [smem:[#allocation38_spill]]  ;;  %s10945_s24 = sld [smem:[#allocation35_spill]] }
0x2ad1   : > { %s10946_s25 = sld [smem:[#allocation36_spill]]  ;;  %s10947_s26 = sld [smem:[#allocation39_spill]] }
0x2ad6   : > { %p34_p11 = scmp.ge.s32.totalorder %s10944_s27, 4  }
0x2ad8   :  { %36 = sbr.rel (!%p34_p11) target bundleno = 16 (0x10), region = 190 }
0x2adf   :  { %7270 = vsyncpa [#allocation6], 1 }
0x2ae0   :  { %7272 = vsyncpa [#allocation6 + $0x1], 1 }
0x2ae1   :  { %7273 = vsyncpa [#allocation9], 1 }
0x2ae2   :  { %7274 = vsyncpa [#allocation12], 1 }
0x2ae3   :  { %7275 = vsyncpa [#allocation15], 1 }
0x2ae4   :  { %7276 = vsyncpa [#allocation18], 1 }
0x2ae5   :  { %7277 = vsyncpa [#allocation21], 1 }
0x2ae6   :  { %7278 = vsyncpa [#allocation24], 1 }
0x2ae7   :  { %7279 = vsyncpa [#allocation7], 1 }
0x2ae8   :  { %7281 = vsyncpa [#allocation7 + $0x1], 1 }

</bundles_post_ra>
